<compile_context>
chip_gen: v7x
topology: tpu7x:2x2x1
jax: 0.10.0
libtpu: 0.0.40
codegen_flags: <defaults>
</compile_context>

<pallas_src>
import jax
import jax.numpy as jnp
from jax.experimental import pallas as pl
from jax.experimental.pallas import tpu as pltpu


# --------------------------- fused kernel ---------------------------
def _make_encoder_kernel(tg: int, n: int, c_out: int):
    """Kernel for TG point-groups of N points each; all intermediates stay in VMEM."""

    def encoder_kernel(x_ref,
                       w1_ref, b1_ref,
                       w2_ref, b2_ref,
                       w3g_ref, w3l_ref, b3_ref,
                       w4_ref, b4_ref,
                       o_ref):
        # x block: (TG, N, 3) -> flatten the TG*N points for the pointwise convs
        x = x_ref[...].astype(jnp.float32).reshape(tg * n, 3)

        # ---- first_conv: Conv1d(3,128) [BN folded] -> ReLU -> Conv1d(128,256) ----
        h = jnp.dot(x, w1_ref[...], preferred_element_type=jnp.float32) + b1_ref[...]
        h = jnp.maximum(h, 0.0)
        f = jnp.dot(h, w2_ref[...], preferred_element_type=jnp.float32) + b2_ref[...]
        # f: (TG*N, 256)  -- local per-point features

        # ---- global max over the N points of each group ----
        fg = jnp.max(f.reshape(tg, n, 256), axis=1)          # (TG, 256)

        # ---- second_conv layer 1, channel-concat folded into the matmul ----
        # cat([global, local]) @ W3  ==  global @ W3[:256] + local @ W3[256:]
        hg = jnp.dot(fg, w3g_ref[...], preferred_element_type=jnp.float32)  # (TG, 512)
        hl = jnp.dot(f, w3l_ref[...], preferred_element_type=jnp.float32)   # (TG*N, 512)
        h2 = hl.reshape(tg, n, 512) + hg[:, None, :] + b3_ref[...]
        h2 = jnp.maximum(h2, 0.0)                            # BN2 folded; ReLU

        # ---- second_conv layer 2 + final global max ----
        f2 = jnp.dot(h2.reshape(tg * n, 512), w4_ref[...],
                     preferred_element_type=jnp.float32) + b4_ref[...]      # (TG*N, C)
        o_ref[...] = jnp.max(f2.reshape(tg, n, c_out), axis=1).astype(o_ref.dtype)

    return encoder_kernel


# --------------------------- wrapper ---------------------------
def _fold_bn(w, b, bn, eps=1e-5):
    """Fold eval-mode BatchNorm1d into the preceding 1x1 conv (w: (Cin,Cout), b: (1,Cout))."""
    s = bn["gamma"] / jnp.sqrt(bn["var"] + eps)
    t = bn["beta"] - bn["mean"] * s
    return w * s[None, :], b * s[None, :] + t[None, :]


def _pick_group_tile(bg: int) -> int:
    for tg in (32, 16, 8):          # keep output sublane dim a multiple of 8
        if bg % tg == 0:
            return tg
    return bg                        # tiny fallback: whole extent in one grid step


def encoder_forward(point_groups, params):
    """point_groups: (B, G, N, 3) -> (B, G, C). Matches Encoder.forward (eval-mode BN)."""
    B, G, N, _ = point_groups.shape
    BG = B * G
    C = params["w4"].shape[1]

    x = point_groups.reshape(BG, N, 3).astype(jnp.float32)

    # Fold BN into conv weights; split W3 so the channel-concat becomes two matmuls.
    w1, b1 = _fold_bn(params["w1"], params["b1"], params["bn1"])
    w3, b3 = _fold_bn(params["w3"], params["b3"], params["bn2"])
    w3g, w3l = w3[:256, :], w3[256:, :]   # torch.cat order: [global(0:256), local(256:512)]
    w2, b2 = params["w2"], params["b2"]
    w4, b4 = params["w4"], params["b4"]

    TG = _pick_group_tile(BG)
    grid = (BG // TG,)
    kernel = _make_encoder_kernel(TG, N, C)

    def whole(shape):
        nd = len(shape)
        return pl.BlockSpec(shape, lambda g, _nd=nd: (0,) * _nd)

    in_specs = [
        pl.BlockSpec((TG, N, 3), lambda g: (g, 0, 0)),   # points (channels-last)
        whole(w1.shape), whole(b1.shape),
        whole(w2.shape), whole(b2.shape),
        whole(w3g.shape), whole(w3l.shape), whole(b3.shape),
        whole(w4.shape), whole(b4.shape),
    ]
    out_specs = pl.BlockSpec((TG, C), lambda g: (g, 0))

    flops = 2 * BG * N * (3 * 128 + 128 * 256 + 512 * 512 + 512 * C)
    bytes_accessed = 4 * (x.size + BG * C + w1.size + w2.size + w3.size + w4.size
                          + b1.size + b2.size + b3.size + b4.size)

    out = pl.pallas_call(
        kernel,
        out_shape=jax.ShapeDtypeStruct((BG, C), jnp.float32),
        grid_spec=pltpu.PrefetchScalarGridSpec(
            num_scalar_prefetch=0,
            grid=grid,
            in_specs=in_specs,
            out_specs=out_specs,
        ),
        compiler_params=pltpu.CompilerParams(
            dimension_semantics=("parallel",)),
        cost_estimate=pl.CostEstimate(flops=flops, transcendentals=0,
                                      bytes_accessed=bytes_accessed),
    )(x, w1, b1, w2, b2, w3g, w3l, b3, w4, b4)

    return out.reshape(B, G, C)


# --------------------------- pure-JAX reference ---------------------------
def _ref_encoder(point_groups, params, eps=1e-5):
    B, G, N, _ = point_groups.shape
    x = point_groups.reshape(B * G, N, 3).astype(jnp.float32)

    def bn(y, p):
        return (y - p["mean"]) / jnp.sqrt(p["var"] + eps) * p["gamma"] + p["beta"]

    h = x @ params["w1"] + params["b1"]
    h = jnp.maximum(bn(h, params["bn1"]), 0.0)
    f = h @ params["w2"] + params["b2"]                       # (BG, N, 256)
    fg = jnp.max(f, axis=1, keepdims=True)                    # (BG, 1, 256)
    cat = jnp.concatenate([jnp.broadcast_to(fg, f.shape), f], axis=-1)   # (BG, N, 512)
    h2 = cat @ params["w3"] + params["b3"]
    h2 = jnp.maximum(bn(h2, params["bn2"]), 0.0)
    f2 = h2 @ params["w4"] + params["b4"]                     # (BG, N, C)
    return jnp.max(f2, axis=1).reshape(B, G, -1)


# --------------------------- parameter init ---------------------------
def init_params(key, encoder_channel):
    ks = jax.random.split(key, 10)

    def w(k, shape, scale):
        return (scale * jax.random.normal(k, shape)).astype(jnp.float32)

    def bn_params(k, c):
        k1, k2, k3, k4 = jax.random.split(k, 4)
        return {
            "gamma": (1.0 + 0.1 * jax.random.normal(k1, (c,))).astype(jnp.float32),
            "beta": (0.1 * jax.random.normal(k2, (c,))).astype(jnp.float32),
            "mean": (0.1 * jax.random.normal(k3, (c,))).astype(jnp.float32),
            "var": (jnp.abs(1.0 + 0.1 * jax.random.normal(k4, (c,))) + 1e-3).astype(jnp.float32),
        }

    return {
        "w1": w(ks[0], (3, 128), 0.3), "b1": w(ks[1], (1, 128), 0.1),
        "bn1": bn_params(ks[2], 128),
        "w2": w(ks[3], (128, 256), 0.08), "b2": w(ks[4], (1, 256), 0.1),
        "w3": w(ks[5], (512, 512), 0.05), "b3": w(ks[6], (1, 512), 0.1),
        "bn2": bn_params(ks[7], 512),
        "w4": w(ks[8], (512, encoder_channel), 0.05),
        "b4": w(ks[9], (1, encoder_channel), 0.1),
    }


if __name__ == "__main__":
    # Small shapes consistent with the module: B=2 samples, G=8 groups of N=32 points
    # (3 coords each), encoder_channel=256. Internal channels (128/256/512) are fixed
    # by the module definition.
    B, G, N = 2, 8, 32
    encoder_channel = 256

    key = jax.random.PRNGKey(0)
    kx, kp = jax.random.split(key)
    point_groups = jax.random.normal(kx, (B, G, N, 3), jnp.float32)
    params = init_params(kp, encoder_channel)

    out = encoder_forward(point_groups, params)
    out = jax.block_until_ready(out)
    assert out.shape == (B, G, encoder_channel)

    # sanity check against pure-JAX reference (un-folded BN, explicit concat)
    ref = _ref_encoder(point_groups, params)
    err = float(jnp.max(jnp.abs(out - ref)))
    assert jnp.allclose(out, ref, atol=1e-3, rtol=1e-3), f"mismatch vs reference, max err {err}"

    print("KERNEL_OK")
</pallas_src>

<mosaic_0001>
module attributes {stable_mosaic.version = 11 : i64} {
  func.func @encoder_kernel(%arg0: i32, %arg1: memref<16x32x3xf32, #tpu.memory_space<vmem>>, %arg2: memref<3x128xf32, #tpu.memory_space<vmem>>, %arg3: memref<1x128xf32, #tpu.memory_space<vmem>>, %arg4: memref<128x256xf32, #tpu.memory_space<vmem>>, %arg5: memref<1x256xf32, #tpu.memory_space<vmem>>, %arg6: memref<256x512xf32, #tpu.memory_space<vmem>>, %arg7: memref<256x512xf32, #tpu.memory_space<vmem>>, %arg8: memref<1x512xf32, #tpu.memory_space<vmem>>, %arg9: memref<512x256xf32, #tpu.memory_space<vmem>>, %arg10: memref<1x256xf32, #tpu.memory_space<vmem>>, %arg11: memref<16x256xf32, #tpu.memory_space<vmem>>) attributes {dimension_semantics = [#tpu.dimension_semantics<parallel>], iteration_bounds = array<i64: 1>, scalar_prefetch = 0 : i64, scratch_operands = 0 : i64, tpu.core_type = #tpu.core_type<tc>, window_params = [{transform_indices = @transform_0, window_bounds = array<i64: 16, 32, 3>}, {pipeline_mode = #tpu.pipeline_mode<synchronous>, transform_indices = @transform_1, window_bounds = array<i64: 3, 128>}, {pipeline_mode = #tpu.pipeline_mode<synchronous>, transform_indices = @transform_2, window_bounds = array<i64: 1, 128>}, {pipeline_mode = #tpu.pipeline_mode<synchronous>, transform_indices = @transform_3, window_bounds = array<i64: 128, 256>}, {pipeline_mode = #tpu.pipeline_mode<synchronous>, transform_indices = @transform_4, window_bounds = array<i64: 1, 256>}, {pipeline_mode = #tpu.pipeline_mode<synchronous>, transform_indices = @transform_5, window_bounds = array<i64: 256, 512>}, {pipeline_mode = #tpu.pipeline_mode<synchronous>, transform_indices = @transform_6, window_bounds = array<i64: 256, 512>}, {pipeline_mode = #tpu.pipeline_mode<synchronous>, transform_indices = @transform_7, window_bounds = array<i64: 1, 512>}, {pipeline_mode = #tpu.pipeline_mode<synchronous>, transform_indices = @transform_8, window_bounds = array<i64: 512, 256>}, {pipeline_mode = #tpu.pipeline_mode<synchronous>, transform_indices = @transform_9, window_bounds = array<i64: 1, 256>}, {transform_indices = @transform_10, window_bounds = array<i64: 16, 256>}]} {
    %c0 = arith.constant 0 : index
    %c0_0 = arith.constant 0 : index
    %c0_1 = arith.constant 0 : index
    %0 = vector.load %arg1[%c0, %c0_0, %c0_1] : memref<16x32x3xf32, #tpu.memory_space<vmem>>, vector<16x32x3xf32>
    %1 = vector.shape_cast %0 : vector<16x32x3xf32> to vector<512x3xf32>
    %c0_2 = arith.constant 0 : index
    %c0_3 = arith.constant 0 : index
    %2 = vector.load %arg2[%c0_2, %c0_3] : memref<3x128xf32, #tpu.memory_space<vmem>>, vector<3x128xf32>
    %cst = arith.constant dense<0.000000e+00> : vector<512x128xf32>
    %3 = tpu.matmul %1, %2, %cst {dimension_numbers = #tpu.dot_dimension_numbers<[1], [0], [0], [1], [0, 0, 1, 1], [], []>} : vector<512x3xf32>, vector<3x128xf32>, vector<512x128xf32> -> vector<512x128xf32>
    %c0_4 = arith.constant 0 : index
    %c0_5 = arith.constant 0 : index
    %4 = vector.load %arg3[%c0_4, %c0_5] : memref<1x128xf32, #tpu.memory_space<vmem>>, vector<1x128xf32>
    %5 = vector.broadcast %4 : vector<1x128xf32> to vector<512x128xf32>
    %6 = arith.addf %3, %5 : vector<512x128xf32>
    %cst_6 = arith.constant 0.000000e+00 : f32
    %7 = vector.broadcast %cst_6 : f32 to vector<512x128xf32>
    %8 = arith.maximumf %6, %7 : vector<512x128xf32>
    %c0_7 = arith.constant 0 : index
    %c0_8 = arith.constant 0 : index
    %9 = vector.load %arg4[%c0_7, %c0_8] : memref<128x256xf32, #tpu.memory_space<vmem>>, vector<128x256xf32>
    %cst_9 = arith.constant dense<0.000000e+00> : vector<512x256xf32>
    %10 = tpu.matmul %8, %9, %cst_9 {dimension_numbers = #tpu.dot_dimension_numbers<[1], [0], [0], [1], [0, 0, 1, 1], [], []>} : vector<512x128xf32>, vector<128x256xf32>, vector<512x256xf32> -> vector<512x256xf32>
    %c0_10 = arith.constant 0 : index
    %c0_11 = arith.constant 0 : index
    %11 = vector.load %arg5[%c0_10, %c0_11] : memref<1x256xf32, #tpu.memory_space<vmem>>, vector<1x256xf32>
    %12 = vector.broadcast %11 : vector<1x256xf32> to vector<512x256xf32>
    %13 = arith.addf %10, %12 : vector<512x256xf32>
    %14 = vector.shape_cast %13 : vector<512x256xf32> to vector<16x32x256xf32>
    %cst_12 = arith.constant dense<0xFF800000> : vector<16x256xf32>
    %15 = vector.multi_reduction <maximumf>, %14, %cst_12 [1] : vector<16x32x256xf32> to vector<16x256xf32>
    %c0_13 = arith.constant 0 : index
    %c0_14 = arith.constant 0 : index
    %16 = vector.load %arg6[%c0_13, %c0_14] : memref<256x512xf32, #tpu.memory_space<vmem>>, vector<256x512xf32>
    %cst_15 = arith.constant dense<0.000000e+00> : vector<16x512xf32>
    %17 = tpu.matmul %15, %16, %cst_15 {dimension_numbers = #tpu.dot_dimension_numbers<[1], [0], [0], [1], [0, 0, 1, 1], [], []>} : vector<16x256xf32>, vector<256x512xf32>, vector<16x512xf32> -> vector<16x512xf32>
    %c0_16 = arith.constant 0 : index
    %c0_17 = arith.constant 0 : index
    %18 = vector.load %arg7[%c0_16, %c0_17] : memref<256x512xf32, #tpu.memory_space<vmem>>, vector<256x512xf32>
    %cst_18 = arith.constant dense<0.000000e+00> : vector<512x512xf32>
    %19 = tpu.matmul %13, %18, %cst_18 {dimension_numbers = #tpu.dot_dimension_numbers<[1], [0], [0], [1], [0, 0, 1, 1], [], []>} : vector<512x256xf32>, vector<256x512xf32>, vector<512x512xf32> -> vector<512x512xf32>
    %20 = vector.shape_cast %19 : vector<512x512xf32> to vector<16x32x512xf32>
    %21 = vector.shape_cast %17 : vector<16x512xf32> to vector<16x1x512xf32>
    %22 = vector.broadcast %21 : vector<16x1x512xf32> to vector<16x32x512xf32>
    %23 = arith.addf %20, %22 : vector<16x32x512xf32>
    %c0_19 = arith.constant 0 : index
    %c0_20 = arith.constant 0 : index
    %24 = vector.load %arg8[%c0_19, %c0_20] : memref<1x512xf32, #tpu.memory_space<vmem>>, vector<1x512xf32>
    %25 = vector.shape_cast %24 : vector<1x512xf32> to vector<1x1x512xf32>
    %26 = vector.broadcast %25 : vector<1x1x512xf32> to vector<16x32x512xf32>
    %27 = arith.addf %23, %26 : vector<16x32x512xf32>
    %cst_21 = arith.constant 0.000000e+00 : f32
    %28 = vector.broadcast %cst_21 : f32 to vector<16x32x512xf32>
    %29 = arith.maximumf %27, %28 : vector<16x32x512xf32>
    %30 = vector.shape_cast %29 : vector<16x32x512xf32> to vector<512x512xf32>
    %c0_22 = arith.constant 0 : index
    %c0_23 = arith.constant 0 : index
    %31 = vector.load %arg9[%c0_22, %c0_23] : memref<512x256xf32, #tpu.memory_space<vmem>>, vector<512x256xf32>
    %cst_24 = arith.constant dense<0.000000e+00> : vector<512x256xf32>
    %32 = tpu.matmul %30, %31, %cst_24 {dimension_numbers = #tpu.dot_dimension_numbers<[1], [0], [0], [1], [0, 0, 1, 1], [], []>} : vector<512x512xf32>, vector<512x256xf32>, vector<512x256xf32> -> vector<512x256xf32>
    %c0_25 = arith.constant 0 : index
    %c0_26 = arith.constant 0 : index
    %33 = vector.load %arg10[%c0_25, %c0_26] : memref<1x256xf32, #tpu.memory_space<vmem>>, vector<1x256xf32>
    %34 = vector.broadcast %33 : vector<1x256xf32> to vector<512x256xf32>
    %35 = arith.addf %32, %34 : vector<512x256xf32>
    %36 = vector.shape_cast %35 : vector<512x256xf32> to vector<16x32x256xf32>
    %cst_27 = arith.constant dense<0xFF800000> : vector<16x256xf32>
    %37 = vector.multi_reduction <maximumf>, %36, %cst_27 [1] : vector<16x32x256xf32> to vector<16x256xf32>
    %c0_28 = arith.constant 0 : index
    %c0_29 = arith.constant 0 : index
    %38 = vector.load %arg11[%c0_28, %c0_29] : memref<16x256xf32, #tpu.memory_space<vmem>>, vector<16x256xf32>
    tpu.vector_store %arg11[%c0_28, %c0_29], %37 {strides = array<i32>} : memref<16x256xf32, #tpu.memory_space<vmem>>, vector<16x256xf32>,
    return
  }
  func.func @transform_0(%arg0: i32) -> (i32, i32, i32) {
    %c0_i32 = arith.constant 0 : i32
    %c0_i32_0 = arith.constant 0 : i32
    %c0_i32_1 = arith.constant 0 : i32
    return %arg0, %c0_i32, %c0_i32_0 : i32, i32, i32
  }
  func.func @transform_1(%arg0: i32) -> (i32, i32) {
    %c0_i32 = arith.constant 0 : i32
    %c0_i32_0 = arith.constant 0 : i32
    %c0_i32_1 = arith.constant 0 : i32
    return %c0_i32, %c0_i32_0 : i32, i32
  }
  func.func @transform_2(%arg0: i32) -> (i32, i32) {
    %c0_i32 = arith.constant 0 : i32
    %c0_i32_0 = arith.constant 0 : i32
    %c0_i32_1 = arith.constant 0 : i32
    return %c0_i32, %c0_i32_0 : i32, i32
  }
  func.func @transform_3(%arg0: i32) -> (i32, i32) {
    %c0_i32 = arith.constant 0 : i32
    %c0_i32_0 = arith.constant 0 : i32
    %c0_i32_1 = arith.constant 0 : i32
    return %c0_i32, %c0_i32_0 : i32, i32
  }
  func.func @transform_4(%arg0: i32) -> (i32, i32) {
    %c0_i32 = arith.constant 0 : i32
    %c0_i32_0 = arith.constant 0 : i32
    %c0_i32_1 = arith.constant 0 : i32
    return %c0_i32, %c0_i32_0 : i32, i32
  }
  func.func @transform_5(%arg0: i32) -> (i32, i32) {
    %c0_i32 = arith.constant 0 : i32
    %c0_i32_0 = arith.constant 0 : i32
    %c0_i32_1 = arith.constant 0 : i32
    return %c0_i32, %c0_i32_0 : i32, i32
  }
  func.func @transform_6(%arg0: i32) -> (i32, i32) {
    %c0_i32 = arith.constant 0 : i32
    %c0_i32_0 = arith.constant 0 : i32
    %c0_i32_1 = arith.constant 0 : i32
    return %c0_i32, %c0_i32_0 : i32, i32
  }
  func.func @transform_7(%arg0: i32) -> (i32, i32) {
    %c0_i32 = arith.constant 0 : i32
    %c0_i32_0 = arith.constant 0 : i32
    %c0_i32_1 = arith.constant 0 : i32
    return %c0_i32, %c0_i32_0 : i32, i32
  }
  func.func @transform_8(%arg0: i32) -> (i32, i32) {
    %c0_i32 = arith.constant 0 : i32
    %c0_i32_0 = arith.constant 0 : i32
    %c0_i32_1 = arith.constant 0 : i32
    return %c0_i32, %c0_i32_0 : i32, i32
  }
  func.func @transform_9(%arg0: i32) -> (i32, i32) {
    %c0_i32 = arith.constant 0 : i32
    %c0_i32_0 = arith.constant 0 : i32
    %c0_i32_1 = arith.constant 0 : i32
    return %c0_i32, %c0_i32_0 : i32, i32
  }
  func.func @transform_10(%arg0: i32) -> (i32, i32) {
    %c0_i32 = arith.constant 0 : i32
    %c0_i32_0 = arith.constant 0 : i32
    return %arg0, %c0_i32 : i32, i32
  }
}

</mosaic_0001>

<bundles_post_ra>
// kernel: tpu_custom_call.1
= control target key start
LH: loop header
LB: loop body
LE: loop exit
PB: predicated region body
PF: predicated region fallthrough
CT: control target
= control target key end

     0   :  { %15 = vsyncpa [#allocation3], 0  ;;  %s10977_s0 = inlined_call_operand.vmem [shape: f32[16,32,3], index: 0, kind: input, shape index: {}]   ;;  %s10978_s1 = inlined_call_operand.vmem [shape: f32[3,128], index: 1, kind: input, shape index: {}]   ;;  %s10979_s2 = inlined_call_operand.vmem [shape: f32[1,128], index: 2, kind: input, shape index: {}]   ;;  %s10980_s3 = inlined_call_operand.vmem [shape: f32[128,256], index: 3, kind: input, shape index: {}]   ;;  %s10981_s4 = inlined_call_operand.vmem [shape: f32[1,256], index: 4, kind: input, shape index: {}]   ;;  %s10982_s5 = inlined_call_operand.hbm [shape: f32[256,512], index: 5, kind: input, shape index: {}]   ;;  %s10983_s6 = inlined_call_operand.hbm [shape: f32[256,512], index: 6, kind: input, shape index: {}]   ;;  %s10984_s7 = inlined_call_operand.vmem [shape: f32[1,512], index: 7, kind: input, shape index: {}]   ;;  %s10985_s8 = inlined_call_operand.hbm [shape: f32[512,256], index: 8, kind: input, shape index: {}]   ;;  %s10986_s9 = inlined_call_operand.vmem [shape: f32[1,256], index: 9, kind: input, shape index: {}]   ;;  %s10987_s10 = inlined_call_operand.hbm [shape: f32[16,256], index: 10, kind: output, shape index: {}]  }
   0x1   :  { %16 = vsyncpa [#allocation6], 0 }
   0x2   :  { %17 = vsyncpa [#allocation4], 0  ;;  %s6659_s13 = smov [#allocation5]   ;;  %s6660_s15 = smov [#allocation2]  }
   0x3   :  { %s45_s14 = sshll.u32 %s6659_s13, 4  ;;  %s33_s16 = sshll.u32 %s6660_s15, 4  ;;  %s46_s14 = int_to_ptr.vmem [resolvable:$true] %s45_s14  ;;  %s6724_s16 = int_to_ptr.vmem [resolvable:$true] %s33_s16 }
   0x4   :  { %s6565_s19 = scalar_lea.hbm %s10983_s6, 16384 }
   0x5   :  { %p6566_p0 = scmp.ne.s32.totalorder %s10983_s6, %s6565_s19  ;;  %p6569_p1 = scmp.lt.u32.totalorder %s6565_s19, %s10983_s6 }
   0x7   :  { %p6571_p2 = pnand %p6569_p1, %p6566_p0 }
   0x9   :  { %6574 = shalt.err (!%p6571_p2)
}
   0xa   :  { %s6575_s24 = scalar_lea.vmem %s46_s14, 16384  ;;  %p6580_p4 = scmp.lt.s32.totalorder %s46_s14, %s46_s14 }
   0xb   :  { %p6576_p3 = scmp.ne.s32.totalorder %s46_s14, %s6575_s24  ;;  %p6581_p5 = scmp.lt.s32.totalorder %s6575_s24, %s6575_s24 }
   0xd   :  { %p6582_p6 = por %p6581_p5, %p6580_p4 }
   0xf   :  { %p6583_p7 = pnand %p6582_p6, %p6576_p3 }
  0x11   :  { %6586 = shalt.err (!%p6583_p7)
}
  0x12   :  { %s6661_s25 = smov 512   ;;  %s6662_s26 = smov 32  }
  0x13   :  { %51 = dma.hbm_to_vmem [thread:$0]  %s10983_s6, 16384, %s46_s14, [#allocation6], %s6661_s25, %s6661_s25, %s6662_s26  }
  0x14   :  { %s6587_s11 = scalar_lea.hbm %s10982_s5, 16384 }
  0x15   :  { %p6588_p8 = scmp.ne.s32.totalorder %s10982_s5, %s6587_s11  ;;  %p6591_p9 = scmp.lt.u32.totalorder %s6587_s11, %s10982_s5 }
  0x17   :  { %p6593_p10 = pnand %p6591_p9, %p6588_p8 }
  0x19   :  { %6596 = shalt.err (!%p6593_p10)
}
  0x1a   :  { %s6597_s18 = scalar_lea.vmem %s6724_s16, 16384  ;;  %p6602_p12 = scmp.lt.s32.totalorder %s6724_s16, %s6724_s16 }
  0x1b   :  { %p6598_p11 = scmp.ne.s32.totalorder %s6724_s16, %s6597_s18  ;;  %p6603_p13 = scmp.lt.s32.totalorder %s6597_s18, %s6597_s18 }
  0x1d   :  { %p6604_p0 = por %p6603_p13, %p6602_p12 }
  0x1f   :  { %p6605_p1 = pnand %p6604_p0, %p6598_p11 }
  0x21   :  { %6608 = shalt.err (!%p6605_p1)
}
  0x22   :  { %39 = dma.hbm_to_vmem [thread:$0]  %s10982_s5, 16384, %s6724_s16, [#allocation3], %s6661_s25, %s6661_s25, %s6662_s26  }
  0x23   :  { %s6663_s19 = smov [#allocation7]   ;;  %s6609_s23 = scalar_lea.hbm %s10985_s8, 16384 }
  0x24   :  { %s59_s20 = sshll.u32 %s6663_s19, 4  ;;  %p6610_p2 = scmp.ne.s32.totalorder %s10985_s8, %s6609_s23  ;;  %s60_s20 = int_to_ptr.vmem [resolvable:$true] %s59_s20 }
  0x25   :  { %p6613_p3 = scmp.lt.u32.totalorder %s6609_s23, %s10985_s8 }
  0x27   :  { %p6615_p4 = pnand %p6613_p3, %p6610_p2 }
  0x29   :  { %6618 = shalt.err (!%p6615_p4)
}
  0x2a   :  { %s6619_s30 = scalar_lea.vmem %s60_s20, 16384  ;;  %p6624_p6 = scmp.lt.s32.totalorder %s60_s20, %s60_s20 }
  0x2b   :  { %p6620_p5 = scmp.ne.s32.totalorder %s60_s20, %s6619_s30  ;;  %p6625_p7 = scmp.lt.s32.totalorder %s6619_s30, %s6619_s30 }
  0x2d   :  { %p6626_p8 = por %p6625_p7, %p6624_p6 }
  0x2f   :  { %p6627_p9 = pnand %p6626_p8, %p6620_p5 }
  0x31   :  { %6630 = shalt.err (!%p6627_p9)
}
  0x32   :  { %s6664_s5 = smov 256   ;;  %s6665_s16 = smov 16  }
  0x33   :  { %65 = dma.hbm_to_vmem [thread:$0]  %s10985_s8, 16384, %s60_s20, [#allocation6], %s6664_s5, %s6664_s5, %s6665_s16  }
  0x34   :  { %6653 = dma.done.wait [#allocation3], 16384  }
  0x35   :  { %6654 = vsyncadd [#allocation3], 4294950912 }
  0x36   :  { %6655 = dma.done.wait [#allocation6], 32768  }
  0x37   :  { %6656 = vsyncadd [#allocation6], 4294934528  ;;  %vm342_vm0 = vcmask 1042432   ;;  %vm149_vm1 = vcmask 23552   ;;  %v141_v0 = vld [vmem:[%s10978_s1] sm:$0x7] }
  0x38   :  { %v77_v1 = vld [vmem:[%s10977_s0] sm:$0xff]  ;;  %v78_v2 = vld [vmem:[%s10977_s0 + $0x8] sm:$0xff]  ;;  %5752 = vmatprep.subr.msk.mxu0 %vm342_vm0, %v141_v0  ;;  %v79_v3 = vld [vmem:[%s10977_s0 + $0x10] sm:$0xff]  ;;  %vm1736_vm2 = vcmask 1041409   ;;  %vm1738_vm3 = vcmask 1042434   ;;  %vm1740_vm4 = vcmask 1043459  }
  0x39   :  { %5754 = vmatprep.mubr.msk.f32.mxu0 %vm149_vm1, %v77_v1  ;;  %5753 = vmatpush3.msk.msra.mxu0 %vm342_vm0, %v141_v0  ;;  %v80_v4 = vld [vmem:[%s10977_s0 + $0x18] sm:$0xff]  ;;  %v81_v5 = vld [vmem:[%s10977_s0 + $0x20] sm:$0xff]  ;;  %v82_v6 = vld [vmem:[%s10977_s0 + $0x28] sm:$0xff]  ;;  %vm1742_vm5 = vcmask 1044484   ;;  %vm1744_vm6 = vcmask 1045509   ;;  %vm1746_vm7 = vcmask 1046534  }
  0x3a   :  { %5755 = vmatmul.mubr.msk.f32.vlgmr.msra.gmra.mrb[0].mxu0 %vm149_vm1, %v78_v2  ;;  %v83_v7 = vld [vmem:[%s10977_s0 + $0x30] sm:$0xff]  ;;  %v84_v8 = vld [vmem:[%s10977_s0 + $0x38] sm:$0xff]  ;;  %v85_v9 = vld [vmem:[%s10977_s0 + $0x40] sm:$0xff]  ;;  %vm1748_vm8 = vcmask 1047559  }
  0x3b   :  { %5757 = vmatprep.mubr.msk.f32.mxu0 %vm149_vm1, %v79_v3  ;;  %v86_v10 = vld [vmem:[%s10977_s0 + $0x48] sm:$0xff]  ;;  %v87_v11 = vld [vmem:[%s10977_s0 + $0x50] sm:$0xff]  ;;  %v798_v13 = vld [vmem:[%s10980_s3 + $0x18] sm:$0xff] }
  0x3c   :  { %v796_v12 = vld [vmem:[%s10980_s3 + $0x8] sm:$0xff]  ;;  %v795_v15 = vld [vmem:[%s10980_s3] sm:$0xff]  ;;  %v797_v16 = vld [vmem:[%s10980_s3 + $0x10] sm:$0xff] }
  0x3d   :  { %v5850_v14 = vpack.c.bf16 %v798_v13, %v796_v12  ;;  %v800_v17 = vld [vmem:[%s10980_s3 + $0x28] sm:$0xff]  ;;  %v5852_v18 = vpack.c.bf16 %v797_v16, %v795_v15  ;;  %v802_v19 = vld [vmem:[%s10980_s3 + $0x38] sm:$0xff]  ;;  %v799_v20 = vld [vmem:[%s10980_s3 + $0x20] sm:$0xff] }
  0x3e   :  { %5758 = vmatmul.mubr.msk.f32.gmra.mrb[2].mxu0 %vm149_vm1, %v80_v4  ;;  %v5854_v21 = vpack.c.bf16 %v802_v19, %v800_v17  ;;  %v801_v22 = vld [vmem:[%s10980_s3 + $0x30] sm:$0xff]  ;;  %v804_v23 = vld [vmem:[%s10980_s3 + $0x48] sm:$0xff]  ;;  %v88_v24 = vld [vmem:[%s10977_s0 + $0x58] sm:$0xff] }
  0x3f   :  { %5760 = vmatprep.mubr.msk.f32.mxu0 %vm149_vm1, %v81_v5  ;;  %5851 = vmatprep.subr.bf16.mxu1 %v5850_v14  ;;  %v5856_v25 = vpack.c.bf16 %v801_v22, %v799_v20  ;;  %v806_v26 = vld [vmem:[%s10980_s3 + $0x58] sm:$0xff]  ;;  %v89_v27 = vld [vmem:[%s10977_s0 + $0x60] sm:$0xff]  ;;  %v805_v30 = vld [vmem:[%s10980_s3 + $0x50] sm:$0xff] }
  0x40   :  { %5853 = vmatpush1.bf16.msra.mxu1 %v5852_v18  ;;  %v5858_v28 = vpack.c.bf16 %v806_v26, %v804_v23  ;;  %v803_v29 = vld [vmem:[%s10980_s3 + $0x40] sm:$0xff]  ;;  %v808_v31 = vld [vmem:[%s10980_s3 + $0x68] sm:$0xff]  ;;  %v810_v32 = vld [vmem:[%s10980_s3 + $0x78] sm:$0xff] }
  0x41   :  { %5855 = vmatprep.subr.bf16.mxu1 %v5854_v21  ;;  %v90_v33 = vld [vmem:[%s10977_s0 + $0x68] sm:$0xff]  ;;  %v5860_v34 = vpack.c.bf16 %v805_v30, %v803_v29  ;;  %v91_v35 = vld [vmem:[%s10977_s0 + $0x70] sm:$0xff]  ;;  %v5862_v36 = vpack.c.bf16 %v810_v32, %v808_v31  ;;  %v807_v37 = vld [vmem:[%s10980_s3 + $0x60] sm:$0xff]  ;;  %v6666_v32 = vmov 0.0  }
  0x42   :  { %5761 = vmatmul.mubr.msk.f32.gmra.mrb[4].mxu0 %vm149_vm1, %v82_v6  ;;  %v809_v38 = vld [vmem:[%s10980_s3 + $0x70] sm:$0xff]  ;;  %v812_v39 = vld [vmem:[%s10980_s3 + $0x88] sm:$0xff]  ;;  %v814_v40 = vld [vmem:[%s10980_s3 + $0x98] sm:$0xff]  ;;  %903 = vmatprep.mubr.f32.mxu1 %v6666_v32 }
  0x43   :  { %5763 = vmatprep.mubr.msk.f32.mxu0 %vm149_vm1, %v83_v7  ;;  %v92_v41 = vld [vmem:[%s10977_s0 + $0x78] sm:$0xff]  ;;  %v5864_v42 = vpack.c.bf16 %v809_v38, %v807_v37  ;;  %v93_v43 = vld [vmem:[%s10977_s0 + $0x80] sm:$0xff]  ;;  %v5866_v44 = vpack.c.bf16 %v814_v40, %v812_v39  ;;  %v813_v46 = vld [vmem:[%s10980_s3 + $0x90] sm:$0xff] }
  0x44   :  { %5857 = vmatpush1.bf16.msra.mxu1 %v5856_v25  ;;  %v811_v45 = vld [vmem:[%s10980_s3 + $0x80] sm:$0xff]  ;;  %v816_v47 = vld [vmem:[%s10980_s3 + $0xa8] sm:$0xff]  ;;  %v818_v48 = vld [vmem:[%s10980_s3 + $0xb8] sm:$0xff] }
  0x45   :  { %5859 = vmatprep.subr.bf16.mxu1 %v5858_v28  ;;  %v94_v49 = vld [vmem:[%s10977_s0 + $0x88] sm:$0xff]  ;;  %v5868_v50 = vpack.c.bf16 %v813_v46, %v811_v45  ;;  %v95_v51 = vld [vmem:[%s10977_s0 + $0x90] sm:$0xff]  ;;  %v5870_v52 = vpack.c.bf16 %v818_v48, %v816_v47  ;;  %v815_v53 = vld [vmem:[%s10980_s3 + $0xa0] sm:$0xff] }
  0x46   :  { %5764 = vmatmul.mubr.msk.f32.gmra.mrb[6].mxu0 %vm149_vm1, %v84_v8  ;;  %v817_v54 = vld [vmem:[%s10980_s3 + $0xb0] sm:$0xff]  ;;  %v820_v55 = vld [vmem:[%s10980_s3 + $0xc8] sm:$0xff]  ;;  %v822_v56 = vld [vmem:[%s10980_s3 + $0xd8] sm:$0xff] }
  0x47   :  { %5766 = vmatprep.mubr.msk.f32.mxu0 %vm149_vm1, %v85_v9  ;;  %v96_v57 = vld [vmem:[%s10977_s0 + $0x98] sm:$0xff]  ;;  %v5872_v58 = vpack.c.bf16 %v817_v54, %v815_v53  ;;  %v97_v59 = vld [vmem:[%s10977_s0 + $0xa0] sm:$0xff]  ;;  %v5874_v60 = vpack.c.bf16 %v822_v56, %v820_v55  ;;  %v821_v62 = vld [vmem:[%s10980_s3 + $0xd0] sm:$0xff] }
  0x48   :  { %5861 = vmatpush1.bf16.msra.mxu1 %v5860_v34  ;;  %v819_v61 = vld [vmem:[%s10980_s3 + $0xc0] sm:$0xff]  ;;  %v98_v63 = vld [vmem:[%s10977_s0 + $0xa8] sm:$0xff]  ;;  %v99_v1 = vld [vmem:[%s10977_s0 + $0xb0] sm:$0xff] }
  0x49   :  { %5863 = vmatprep.subr.bf16.mxu1 %v5862_v36  ;;  %v5876_v0 = vpack.c.bf16 %v821_v62, %v819_v61  ;;  %v100_v2 = vld [vmem:[%s10977_s0 + $0xb8] sm:$0xff]  ;;  %v101_v3 = vld [vmem:[%s10977_s0 + $0xc0] sm:$0xff]  ;;  %v102_v4 = vld [vmem:[%s10977_s0 + $0xc8] sm:$0xff] }
  0x4a   :  { %5767 = vmatmul.mubr.msk.f32.gmra.mrb[8].mxu0 %vm149_vm1, %v86_v10  ;;  %v103_v5 = vld [vmem:[%s10977_s0 + $0xd0] sm:$0xff]  ;;  %v104_v6 = vld [vmem:[%s10977_s0 + $0xd8] sm:$0xff]  ;;  %v105_v7 = vld [vmem:[%s10977_s0 + $0xe0] sm:$0xff] }
  0x4b   :  { %5769 = vmatprep.mubr.msk.f32.mxu0 %vm149_vm1, %v87_v11  ;;  %v106_v8 = vld [vmem:[%s10977_s0 + $0xe8] sm:$0xff]  ;;  %v107_v9 = vld [vmem:[%s10977_s0 + $0xf0] sm:$0xff]  ;;  %v108_v10 = vld [vmem:[%s10977_s0 + $0xf8] sm:$0xff] }
  0x4c   :  { %5865 = vmatpush1.bf16.msra.mxu1 %v5864_v42  ;;  %v109_v11 = vld [vmem:[%s10977_s0 + $0x100] sm:$0xff]  ;;  %v110_v12 = vld [vmem:[%s10977_s0 + $0x108] sm:$0xff]  ;;  %v111_v13 = vld [vmem:[%s10977_s0 + $0x110] sm:$0xff] }
  0x4d   :  { %5867 = vmatprep.subr.bf16.mxu1 %v5866_v44  ;;  %v112_v14 = vld [vmem:[%s10977_s0 + $0x118] sm:$0xff]  ;;  %v113_v15 = vld [vmem:[%s10977_s0 + $0x120] sm:$0xff]  ;;  %v114_v16 = vld [vmem:[%s10977_s0 + $0x128] sm:$0xff] }
  0x4e   :  { %5770 = vmatmul.mubr.msk.f32.gmra.mrb[10].mxu0 %vm149_vm1, %v88_v24  ;;  %v115_v17 = vld [vmem:[%s10977_s0 + $0x130] sm:$0xff]  ;;  %v116_v18 = vld [vmem:[%s10977_s0 + $0x138] sm:$0xff]  ;;  %v117_v19 = vld [vmem:[%s10977_s0 + $0x140] sm:$0xff] }
  0x4f   :  { %5772 = vmatprep.mubr.msk.f32.mxu0 %vm149_vm1, %v89_v27  ;;  %v118_v20 = vld [vmem:[%s10977_s0 + $0x148] sm:$0xff]  ;;  %v119_v21 = vld [vmem:[%s10977_s0 + $0x150] sm:$0xff]  ;;  %v120_v22 = vld [vmem:[%s10977_s0 + $0x158] sm:$0xff] }
  0x50   :  { %5869 = vmatpush1.bf16.msra.mxu1 %v5868_v50  ;;  %v121_v23 = vld [vmem:[%s10977_s0 + $0x160] sm:$0xff]  ;;  %v824_v24 = vld [vmem:[%s10980_s3 + $0xe8] sm:$0xff]  ;;  %v826_v25 = vld [vmem:[%s10980_s3 + $0xf8] sm:$0xff] }
  0x51   :  { %5871 = vmatprep.subr.bf16.mxu1 %v5870_v52  ;;  %v5878_v26 = vpack.c.bf16 %v826_v25, %v824_v24  ;;  %v823_v27 = vld [vmem:[%s10980_s3 + $0xe0] sm:$0xff]  ;;  %v825_v28 = vld [vmem:[%s10980_s3 + $0xf0] sm:$0xff]  ;;  %v122_v30 = vld [vmem:[%s10977_s0 + $0x168] sm:$0xff] }
  0x52   :  { %5773 = vmatmul.mubr.msk.f32.gmra.mrb[12].mxu0 %vm149_vm1, %v90_v33  ;;  %v5880_v29 = vpack.c.bf16 %v825_v28, %v823_v27  ;;  %v123_v31 = vld [vmem:[%s10977_s0 + $0x170] sm:$0xff]  ;;  %v124_v33 = vld [vmem:[%s10977_s0 + $0x178] sm:$0xff]  ;;  %v125_v34 = vld [vmem:[%s10977_s0 + $0x180] sm:$0xff] }
  0x53   :  { %5775 = vmatprep.mubr.msk.f32.mxu0 %vm149_vm1, %v91_v35  ;;  %v126_v35 = vld [vmem:[%s10977_s0 + $0x188] sm:$0xff]  ;;  %v127_v36 = vld [vmem:[%s10977_s0 + $0x190] sm:$0xff]  ;;  %v128_v37 = vld [vmem:[%s10977_s0 + $0x198] sm:$0xff] }
  0x54   :  { %5873 = vmatpush1.bf16.msra.mxu1 %v5872_v58  ;;  %v129_v38 = vld [vmem:[%s10977_s0 + $0x1a0] sm:$0xff]  ;;  %v130_v39 = vld [vmem:[%s10977_s0 + $0x1a8] sm:$0xff]  ;;  %v131_v40 = vld [vmem:[%s10977_s0 + $0x1b0] sm:$0xff] }
  0x55   :  { %5875 = vmatprep.subr.bf16.mxu1 %v5874_v60  ;;  %v133_v42 = vld [vmem:[%s10977_s0 + $0x1c0] sm:$0xff]  ;;  %v135_v44 = vld [vmem:[%s10977_s0 + $0x1d0] sm:$0xff]  ;;  %v136_v45 = vld [vmem:[%s10977_s0 + $0x1d8] sm:$0xff] }
  0x56   :  { %5776 = vmatmul.mubr.msk.f32.gmra.mrb[14].mxu0 %vm149_vm1, %v92_v41  ;;  %v132_v41 = vld [vmem:[%s10977_s0 + $0x1b8] sm:$0xff]  ;;  %v137_v46 = vld [vmem:[%s10977_s0 + $0x1e0] sm:$0xff]  ;;  %v138_v47 = vld [vmem:[%s10977_s0 + $0x1e8] sm:$0xff] }
  0x57   :  { %5778 = vmatprep.mubr.msk.f32.mxu0 %vm149_vm1, %v93_v43  ;;  %v134_v43 = vld [vmem:[%s10977_s0 + $0x1c8] sm:$0xff]  ;;  %v139_v48 = vld [vmem:[%s10977_s0 + $0x1f0] sm:$0xff]  ;;  %v7129_v50 = vld [vmem:[%s10979_s2] ss:$0 sm:$0xff] }
  0x58   :  { %5877 = vmatpush1.bf16.msra.mxu1 %v5876_v0 }
  0x59   :  { %5879 = vmatprep.subr.bf16.mxu1 %v5878_v26 }
  0x5a   :  { %5779 = vmatmul.mubr.msk.f32.gmra.mrb[16].mxu0 %vm149_vm1, %v94_v49  ;;  %v140_v49 = vld [vmem:[%s10977_s0 + $0x1f8] sm:$0xff] }
  0x5b   :  { %5781 = vmatprep.mubr.msk.f32.mxu0 %vm149_vm1, %v95_v51 }
  0x5c   :  { %5881 = vmatpush1.bf16.msra.mxu1 %v5880_v29 }
  0x5e   :  { %5782 = vmatmul.mubr.msk.f32.gmra.mrb[18].mxu0 %vm149_vm1, %v96_v57 }
  0x5f   :  { %5784 = vmatprep.mubr.msk.f32.mxu0 %vm149_vm1, %v97_v59 }
  0x62   :  { %5785 = vmatmul.mubr.msk.f32.gmra.mrb[20].mxu0 %vm149_vm1, %v98_v63 }
  0x63   :  { %5787 = vmatprep.mubr.msk.f32.mxu0 %vm149_vm1, %v99_v1 }
  0x66   :  { %5788 = vmatmul.mubr.msk.f32.gmra.mrb[22].mxu0 %vm149_vm1, %v100_v2 }
  0x67   :  { %5790 = vmatprep.mubr.msk.f32.mxu0 %vm149_vm1, %v101_v3 }
  0x6a   :  { %5791 = vmatmul.mubr.msk.f32.gmra.mrb[24].mxu0 %vm149_vm1, %v102_v4 }
  0x6b   :  { %5793 = vmatprep.mubr.msk.f32.mxu0 %vm149_vm1, %v103_v5 }
  0x6e   :  { %5794 = vmatmul.mubr.msk.f32.gmra.mrb[26].mxu0 %vm149_vm1, %v104_v6 }
  0x6f   :  { %5796 = vmatprep.mubr.msk.f32.mxu0 %vm149_vm1, %v105_v7 }
  0x72   :  { %5797 = vmatmul.mubr.msk.f32.gmra.mrb[28].mxu0 %vm149_vm1, %v106_v8 }
  0x73   :  { %5799 = vmatprep.mubr.msk.f32.mxu0 %vm149_vm1, %v107_v9 }
  0x76   :  { %5800 = vmatmul.mubr.msk.f32.gmra.mrb[30].mxu0 %vm149_vm1, %v108_v10 }
  0x77   :  { %5802 = vmatprep.mubr.msk.f32.mxu0 %vm149_vm1, %v109_v11 }
  0x7a   :  { %5803 = vmatmul.mubr.msk.f32.gmra.mrb[32].mxu0 %vm149_vm1, %v110_v12 }
  0x7b   :  { %5805 = vmatprep.mubr.msk.f32.mxu0 %vm149_vm1, %v111_v13 }
  0x7e   :  { %5806 = vmatmul.mubr.msk.f32.gmra.mrb[34].mxu0 %vm149_vm1, %v112_v14 }
  0x7f   :  { %5808 = vmatprep.mubr.msk.f32.mxu0 %vm149_vm1, %v113_v15 }
  0x82   :  { %5809 = vmatmul.mubr.msk.f32.gmra.mrb[36].mxu0 %vm149_vm1, %v114_v16 }
  0x83   :  { %5811 = vmatprep.mubr.msk.f32.mxu0 %vm149_vm1, %v115_v17 }
  0x86   :  { %5812 = vmatmul.mubr.msk.f32.gmra.mrb[38].mxu0 %vm149_vm1, %v116_v18 }
  0x87   :  { %5814 = vmatprep.mubr.msk.f32.mxu0 %vm149_vm1, %v117_v19 }
  0x8a   :  { %5815 = vmatmul.mubr.msk.f32.gmra.mrb[40].mxu0 %vm149_vm1, %v118_v20 }
  0x8b   :  { %5817 = vmatprep.mubr.msk.f32.mxu0 %vm149_vm1, %v119_v21 }
  0x8e   :  { %5818 = vmatmul.mubr.msk.f32.gmra.mrb[42].mxu0 %vm149_vm1, %v120_v22 }
  0x8f   :  { %5820 = vmatprep.mubr.msk.f32.mxu0 %vm149_vm1, %v121_v23 }
  0x92   :  { %5821 = vmatmul.mubr.msk.f32.gmra.mrb[44].mxu0 %vm149_vm1, %v122_v30 }
  0x93   :  { %5823 = vmatprep.mubr.msk.f32.mxu0 %vm149_vm1, %v123_v31 }
  0x96   :  { %5824 = vmatmul.mubr.msk.f32.gmra.mrb[46].mxu0 %vm149_vm1, %v124_v33 }
  0x97   :  { %5826 = vmatprep.mubr.msk.f32.mxu0 %vm149_vm1, %v125_v34 }
  0x9a   :  { %5827 = vmatmul.mubr.msk.f32.gmra.mrb[48].mxu0 %vm149_vm1, %v126_v35 }
  0x9b   :  { %5829 = vmatprep.mubr.msk.f32.mxu0 %vm149_vm1, %v127_v36 }
  0x9e   :  { %5830 = vmatmul.mubr.msk.f32.gmra.mrb[50].mxu0 %vm149_vm1, %v128_v37 }
  0x9f   :  { %5832 = vmatprep.mubr.msk.f32.mxu0 %vm149_vm1, %v129_v38 }
  0xa2   :  { %5833 = vmatmul.mubr.msk.f32.gmra.mrb[52].mxu0 %vm149_vm1, %v130_v39 }
  0xa3   :  { %5835 = vmatprep.mubr.msk.f32.mxu0 %vm149_vm1, %v131_v40 }
  0xa6   :  { %5836 = vmatmul.mubr.msk.f32.gmra.mrb[54].mxu0 %vm149_vm1, %v132_v41 }
  0xa7   :  { %5838 = vmatprep.mubr.msk.f32.mxu0 %vm149_vm1, %v133_v42 }
  0xaa   :  { %5839 = vmatmul.mubr.msk.f32.gmra.mrb[56].mxu0 %vm149_vm1, %v134_v43 }
  0xab   :  { %5841 = vmatprep.mubr.msk.f32.mxu0 %vm149_vm1, %v135_v44 }
  0xae   :  { %5842 = vmatmul.mubr.msk.f32.gmra.mrb[58].mxu0 %vm149_vm1, %v136_v45 }
  0xaf   :  { %5844 = vmatprep.mubr.msk.f32.mxu0 %vm149_vm1, %v137_v46 }
  0xb2   :  { %5845 = vmatmul.mubr.msk.f32.gmra.mrb[60].mxu0 %vm149_vm1, %v138_v47 }
  0xb3   :  { %5847 = vmatprep.mubr.msk.f32.mxu0 %vm149_vm1, %v139_v48 }
  0xb6   :  { %5848 = vmatmul.mubr.msk.f32.gmra.mrb[62].mxu0 %vm149_vm1, %v140_v49 }
 0x10d   :  { %v5756_v51 = vpop.f32.mrb[0].mxu0 }
 0x10e   :  { %v412_v52 = vpop.f32.mrb[1].mxu0  ;;  %v418_v54 = vadd.f32 %v5756_v51, %v7129_v50 }
 0x10f   :  { %v413_v53 = vadd.f32 %v7129_v50, %v412_v52 }
 0x110   :  { %v732_v59 = vmax.f32 %v418_v54, 0.0 }
 0x111   :  { %v731_v55 = vmax.f32 %v413_v53, 0.0  ;;  %v5759_v56 = vpop.f32.mrb[2].mxu0 }
 0x112   :  { %v422_v57 = vpop.f32.mrb[3].mxu0  ;;  %v428_v63 = vadd.f32 %v5759_v56, %v7129_v50 }
 0x113   :  { %904 = vmatmul.mubr.f32.vlgmr.msra.gmra.mrb[0].mxu1 %v731_v55  ;;  %v423_v58 = vadd.f32 %v7129_v50, %v422_v57  ;;  %v1932_v57 = vld [vmem:[#allocation5 + $0x18] sm:$0xff] }
 0x114   :  { %909 = vmatprep.mubr.f32.mxu1 %v6666_v32  ;;  %v734_v3 = vmax.f32 %v428_v63, 0.0  ;;  %v1935_v63 = vld [vmem:[#allocation5 + $0x30] sm:$0xff] }
 0x115   :  { %v5762_v60 = vpop.f32.mrb[4].mxu0  ;;  %v733_v62 = vmax.f32 %v423_v58, 0.0  ;;  %v1936_v58 = vld [vmem:[#allocation5 + $0x38] sm:$0xff] }
 0x116   :  { %v432_v61 = vpop.f32.mrb[5].mxu0  ;;  %v438_v7 = vadd.f32 %v5762_v60, %v7129_v50 }
 0x117   :  { %910 = vmatmul.mubr.f32.gmra.mrb[2].mxu1 %v732_v59  ;;  %v433_v2 = vadd.f32 %v7129_v50, %v432_v61  ;;  %v6074_v61 = vpack.c.bf16 %v1936_v58, %v1932_v57  ;;  %v1972_v58 = vld [vmem:[#allocation5 + $0x158] sm:$0xff] }
 0x118   :  { %915 = vmatprep.mubr.f32.mxu1 %v6666_v32  ;;  %v736_v11 = vmax.f32 %v438_v7, 0.0 }
 0x119   :  { %v5765_v0 = vpop.f32.mrb[6].mxu0  ;;  %v735_v6 = vmax.f32 %v433_v2, 0.0  ;;  %6075 = vmatprep.subr.bf16.mxu1 %v6074_v61 }
 0x11a   :  { %v442_v1 = vpop.f32.mrb[7].mxu0  ;;  %v448_v15 = vadd.f32 %v5765_v0, %v7129_v50 }
 0x11b   :  { %916 = vmatmul.mubr.f32.gmra.mrb[4].mxu1 %v733_v62  ;;  %v443_v10 = vadd.f32 %v7129_v50, %v442_v1  ;;  %v1931_v62 = vld [vmem:[#allocation5 + $0x10] sm:$0xff] }
 0x11c   :  { %921 = vmatprep.mubr.f32.mxu1 %v6666_v32  ;;  %v738_v19 = vmax.f32 %v448_v15, 0.0  ;;  %v6076_v1 = vpack.c.bf16 %v1935_v63, %v1931_v62  ;;  %v1971_v63 = vld [vmem:[#allocation5 + $0x150] sm:$0xff] }
 0x11d   :  { %v5768_v4 = vpop.f32.mrb[8].mxu0  ;;  %v737_v14 = vmax.f32 %v443_v10, 0.0 }
 0x11e   :  { %v452_v5 = vpop.f32.mrb[9].mxu0  ;;  %v458_v23 = vadd.f32 %v5768_v4, %v7129_v50  ;;  %6077 = vmatpush1.bf16.msra.mxu1 %v6076_v1  ;;  %v1944_v4 = vld [vmem:[#allocation5 + $0x78] sm:$0xff]  ;;  %v1975_v1 = vld [vmem:[#allocation5 + $0x170] sm:$0xff] }
 0x11f   :  { %922 = vmatmul.mubr.f32.gmra.mrb[6].mxu1 %v734_v3  ;;  %v453_v18 = vadd.f32 %v7129_v50, %v452_v5  ;;  %v1940_v3 = vld [vmem:[#allocation5 + $0x58] sm:$0xff] }
 0x120   :  { %927 = vmatprep.mubr.f32.mxu1 %v6666_v32  ;;  %v740_v27 = vmax.f32 %v458_v23, 0.0  ;;  %v6078_v7 = vpack.c.bf16 %v1944_v4, %v1940_v3  ;;  %v1956_v23 = vld [vmem:[#allocation5 + $0xd8] sm:$0xff]  ;;  %v6096_v3 = vpack.c.bf16 %v1975_v1, %v1971_v63 }
 0x121   :  { %v5771_v8 = vpop.f32.mrb[10].mxu0  ;;  %v739_v22 = vmax.f32 %v453_v18, 0.0  ;;  %v1947_v18 = vld [vmem:[#allocation5 + $0x90] sm:$0xff] }
 0x122   :  { %v462_v9 = vpop.f32.mrb[11].mxu0  ;;  %v468_v31 = vadd.f32 %v5771_v8, %v7129_v50  ;;  %v1939_v8 = vld [vmem:[#allocation5 + $0x50] sm:$0xff]  ;;  %6079 = vmatprep.subr.bf16.mxu1 %v6078_v7 }
 0x123   :  { %928 = vmatmul.mubr.f32.gmra.mrb[8].mxu1 %v735_v6  ;;  %v463_v26 = vadd.f32 %v7129_v50, %v462_v9  ;;  %v1943_v9 = vld [vmem:[#allocation5 + $0x70] sm:$0xff] }
 0x124   :  { %933 = vmatprep.mubr.f32.mxu1 %v6666_v32  ;;  %v742_v36 = vmax.f32 %v468_v31, 0.0  ;;  %v1959_v31 = vld [vmem:[#allocation5 + $0xf0] sm:$0xff] }
 0x125   :  { %v5774_v12 = vpop.f32.mrb[12].mxu0  ;;  %v741_v30 = vmax.f32 %v463_v26, 0.0 }
 0x126   :  { %v472_v13 = vpop.f32.mrb[13].mxu0  ;;  %v478_v40 = vadd.f32 %v5774_v12, %v7129_v50 }
 0x127   :  { %934 = vmatmul.mubr.f32.gmra.mrb[10].mxu1 %v736_v11  ;;  %v473_v35 = vadd.f32 %v7129_v50, %v472_v13  ;;  %v6080_v11 = vpack.c.bf16 %v1943_v9, %v1939_v8  ;;  %v1948_v13 = vld [vmem:[#allocation5 + $0x98] sm:$0xff] }
 0x128   :  { %939 = vmatprep.mubr.f32.mxu1 %v6666_v32  ;;  %v744_v44 = vmax.f32 %v478_v40, 0.0  ;;  %v1968_v40 = vld [vmem:[#allocation5 + $0x138] sm:$0xff] }
 0x129   :  { %v5777_v16 = vpop.f32.mrb[14].mxu0  ;;  %v743_v39 = vmax.f32 %v473_v35, 0.0  ;;  %6081 = vmatpush1.bf16.msra.mxu1 %v6080_v11  ;;  %v1979_v11 = vld [vmem:[#allocation5 + $0x190] sm:$0xff] }
 0x12a   :  { %v482_v17 = vpop.f32.mrb[15].mxu0  ;;  %v488_v48 = vadd.f32 %v5777_v16, %v7129_v50 }
 0x12b   :  { %940 = vmatmul.mubr.f32.gmra.mrb[12].mxu1 %v737_v14  ;;  %v483_v43 = vadd.f32 %v7129_v50, %v482_v17  ;;  %v1952_v14 = vld [vmem:[#allocation5 + $0xb8] sm:$0xff] }
 0x12c   :  { %945 = vmatprep.mubr.f32.mxu1 %v6666_v32  ;;  %v746_v53 = vmax.f32 %v488_v48, 0.0  ;;  %v6082_v17 = vpack.c.bf16 %v1952_v14, %v1948_v13  ;;  %v1963_v48 = vld [vmem:[#allocation5 + $0x110] sm:$0xff] }
 0x12d   :  { %v5780_v20 = vpop.f32.mrb[16].mxu0  ;;  %v745_v47 = vmax.f32 %v483_v43, 0.0 }
 0x12e   :  { %v492_v21 = vpop.f32.mrb[17].mxu0  ;;  %v498_v59 = vadd.f32 %v5780_v20, %v7129_v50  ;;  %6083 = vmatprep.subr.bf16.mxu1 %v6082_v17  ;;  %v1988_v17 = vld [vmem:[#allocation5 + $0x1d8] sm:$0xff] }
 0x12f   :  { %946 = vmatmul.mubr.f32.gmra.mrb[14].mxu1 %v738_v19  ;;  %v493_v52 = vadd.f32 %v7129_v50, %v492_v21  ;;  %v1951_v19 = vld [vmem:[#allocation5 + $0xb0] sm:$0xff] }
 0x130   :  { %951 = vmatprep.mubr.f32.mxu1 %v6666_v32  ;;  %v748_v5 = vmax.f32 %v498_v59, 0.0  ;;  %v6084_v21 = vpack.c.bf16 %v1951_v19, %v1947_v18  ;;  %v1976_v59 = vld [vmem:[#allocation5 + $0x178] sm:$0xff] }
 0x131   :  { %v7149_v24 = vpop.f32.mrb[18].mxu0  ;;  %v747_v56 = vmax.f32 %v493_v52, 0.0  ;;  %v1967_v52 = vld [vmem:[#allocation5 + $0x130] sm:$0xff]  ;;  %v6094_v62 = vpack.c.bf16 %v1976_v59, %v1972_v58  ;;  %v1992_v18 = vld [vmem:[#allocation5 + $0x1f8] sm:$0xff] }
 0x132   :  { %v502_v25 = vpop.f32.mrb[19].mxu0  ;;  %v508_v15 = vadd.f32 %v7149_v24, %v7129_v50  ;;  %6085 = vmatpush1.bf16.msra.mxu1 %v6084_v21  ;;  %v6102_v21 = vpack.c.bf16 %v1992_v18, %v1988_v17  ;;  %v2003_v59 = vld [vmem:[#allocation5 + $0x250] sm:$0xff]  ;;  %v2024_v17 = vld [vmem:[#allocation5 + $0x2f8] sm:$0xff] }
 0x133   :  { %952 = vmatmul.mubr.f32.gmra.mrb[16].mxu1 %v739_v22  ;;  %v503_v2 = vadd.f32 %v7129_v50, %v502_v25  ;;  %v1960_v25 = vld [vmem:[#allocation5 + $0xf8] sm:$0xff] }
 0x134   :  { %957 = vmatprep.mubr.f32.mxu1 %v6666_v32  ;;  %v750_v26 = vmax.f32 %v508_v15, 0.0 }
 0x135   :  { %v7153_v28 = vpop.f32.mrb[20].mxu0  ;;  %v749_v12 = vmax.f32 %v503_v2, 0.0 }
 0x136   :  { %v7155_v29 = vpop.f32.mrb[21].mxu0  ;;  %v518_v43 = vadd.f32 %v7153_v28, %v7129_v50 }
 0x137   :  { %958 = vmatmul.mubr.f32.gmra.mrb[18].mxu1 %v740_v27  ;;  %v513_v22 = vadd.f32 %v7129_v50, %v7155_v29  ;;  %v6086_v27 = vpack.c.bf16 %v1960_v25, %v1956_v23  ;;  %v1964_v29 = vld [vmem:[#allocation5 + $0x118] sm:$0xff]  ;;  %v1991_v23 = vld [vmem:[#allocation5 + $0x1f0] sm:$0xff] }
 0x138   :  { %963 = vmatprep.mubr.f32.mxu1 %v6666_v32  ;;  %v752_v61 = vmax.f32 %v518_v43, 0.0 }
 0x139   :  { %v7159_v33 = vpop.f32.mrb[22].mxu0  ;;  %6087 = vmatprep.subr.bf16.mxu1 %v6086_v27 }
 0x13a   :  { %v7161_v34 = vpop.f32.mrb[23].mxu0  ;;  %v528_v7 = vadd.f32 %v7159_v33, %v7129_v50 }
 0x13b   :  { %964 = vmatmul.mubr.f32.gmra.mrb[20].mxu1 %v741_v30  ;;  %v1955_v30 = vld [vmem:[#allocation5 + $0xd0] sm:$0xff]  ;;  %v523_v57 = vadd.f32 %v7129_v50, %v7161_v34  ;;  %v1980_v34 = vld [vmem:[#allocation5 + $0x198] sm:$0xff] }
 0x13c   :  { %969 = vmatprep.mubr.f32.mxu1 %v6666_v32  ;;  %v754_v19 = vmax.f32 %v528_v7, 0.0  ;;  %v2011_v7 = vld [vmem:[#allocation5 + $0x290] sm:$0xff] }
 0x13d   :  { %v7165_v37 = vpop.f32.mrb[24].mxu0  ;;  %v753_v4 = vmax.f32 %v523_v57, 0.0 }
 0x13e   :  { %v7167_v38 = vpop.f32.mrb[25].mxu0 }
 0x13f   :  { %970 = vmatmul.mubr.f32.gmra.mrb[22].mxu1 %v742_v36  ;;  %v6088_v36 = vpack.c.bf16 %v1959_v31, %v1955_v30  ;;  %v533_v15 = vadd.f32 %v7129_v50, %v7167_v38  ;;  %v1996_v38 = vld [vmem:[#allocation5 + $0x218] sm:$0xff]  ;;  %v538_v31 = vadd.f32 %v7165_v37, %v7129_v50 }
 0x140   :  { %975 = vmatprep.mubr.f32.mxu1 %v6666_v32  ;;  %v2000_v30 = vld [vmem:[#allocation5 + $0x238] sm:$0xff] }
 0x141   :  { %v7171_v41 = vpop.f32.mrb[26].mxu0  ;;  %6089 = vmatpush1.bf16.msra.mxu1 %v6088_v36  ;;  %v755_v27 = vmax.f32 %v533_v15, 0.0  ;;  %v756_v57 = vmax.f32 %v538_v31, 0.0  ;;  %v2020_v15 = vld [vmem:[#allocation5 + $0x2d8] sm:$0xff] }
 0x142   :  { %v7173_v42 = vpop.f32.mrb[27].mxu0 }
 0x143   :  { %976 = vmatmul.mubr.f32.gmra.mrb[24].mxu1 %v743_v39  ;;  %v751_v39 = vmax.f32 %v513_v22, 0.0  ;;  %v1987_v22 = vld [vmem:[#allocation5 + $0x1d0] sm:$0xff] }
 0x144   :  { %981 = vmatprep.mubr.f32.mxu1 %v6666_v32 }
 0x145   :  { %v7177_v45 = vpop.f32.mrb[28].mxu0 }
 0x146   :  { %v7179_v46 = vpop.f32.mrb[29].mxu0 }
 0x147   :  { %982 = vmatmul.mubr.f32.gmra.mrb[26].mxu1 %v744_v44 }
 0x148   :  { %987 = vmatprep.mubr.f32.mxu1 %v6666_v32 }
 0x149   :  { %v7183_v49 = vpop.f32.mrb[30].mxu0 }
 0x14a   :  { %v7185_v51 = vpop.f32.mrb[31].mxu0 }
 0x14b   :  { %988 = vmatmul.mubr.f32.gmra.mrb[28].mxu1 %v745_v47  ;;  %v6090_v47 = vpack.c.bf16 %v1968_v40, %v1964_v29  ;;  %v1995_v29 = vld [vmem:[#allocation5 + $0x210] sm:$0xff] }
 0x14c   :  { %993 = vmatprep.mubr.f32.mxu1 %v6666_v32  ;;  %v1999_v40 = vld [vmem:[#allocation5 + $0x230] sm:$0xff] }
 0x14d   :  { %v7189_v54 = vpop.f32.mrb[32].mxu0  ;;  %6091 = vmatprep.subr.bf16.mxu1 %v6090_v47  ;;  %v6108_v47 = vpack.c.bf16 %v1999_v40, %v1995_v29  ;;  %v2027_v29 = vld [vmem:[#allocation5 + $0x310] sm:$0xff] }
 0x14e   :  { %v7191_v55 = vpop.f32.mrb[33].mxu0  ;;  %v2031_v40 = vld [vmem:[#allocation5 + $0x330] sm:$0xff] }
 0x14f   :  { %994 = vmatmul.mubr.f32.gmra.mrb[30].mxu1 %v746_v53 }
 0x150   :  { %999 = vmatprep.mubr.f32.mxu1 %v6666_v32 }
 0x151   :  { %v7195_v60 = vpop.f32.mrb[34].mxu0 }
 0x152   :  { %v7197_v0 = vpop.f32.mrb[35].mxu0 }
 0x153   :  { %1000 = vmatmul.mubr.f32.gmra.mrb[32].mxu1 %v747_v56  ;;  %v6092_v56 = vpack.c.bf16 %v1967_v52, %v1963_v48  ;;  %v543_v48 = vadd.f32 %v7129_v50, %v7173_v42  ;;  %v2004_v52 = vld [vmem:[#allocation5 + $0x258] sm:$0xff] }
 0x154   :  { %1005 = vmatprep.mubr.f32.mxu1 %v6666_v32  ;;  %v2012_v42 = vld [vmem:[#allocation5 + $0x298] sm:$0xff] }
 0x155   :  { %v7201_v6 = vpop.f32.mrb[36].mxu0  ;;  %6093 = vmatpush1.bf16.msra.mxu1 %v6092_v56  ;;  %v2008_v56 = vld [vmem:[#allocation5 + $0x278] sm:$0xff]  ;;  %v757_v1 = vmax.f32 %v543_v48, 0.0  ;;  %v6124_v48 = vpack.c.bf16 %v2031_v40, %v2027_v29  ;;  %v588_v40 = vadd.f32 %v7195_v60, %v7129_v50 }
 0x156   :  { %v7203_v10 = vpop.f32.mrb[37].mxu0  ;;  %6095 = vmatprep.subr.bf16.mxu1 %v6094_v62  ;;  %v6110_v58 = vpack.c.bf16 %v2008_v56, %v2004_v52  ;;  %v563_v52 = vadd.f32 %v7129_v50, %v7185_v51  ;;  %v2036_v56 = vld [vmem:[#allocation5 + $0x358] sm:$0xff] }
 0x157   :  { %1006 = vmatmul.mubr.f32.gmra.mrb[34].mxu1 %v748_v5  ;;  %v1984_v5 = vld [vmem:[#allocation5 + $0x1b8] sm:$0xff] }
 0x158   :  { %1011 = vmatprep.mubr.f32.mxu1 %v6666_v32  ;;  %v6098_v9 = vpack.c.bf16 %v1984_v5, %v1980_v34  ;;  %v2044_v51 = vld [vmem:[#allocation5 + $0x398] sm:$0xff] }
 0x159   :  { %v7208_v16 = vpop.f32.mrb[38].mxu0  ;;  %6097 = vmatpush1.bf16.msra.mxu1 %v6096_v3  ;;  %v2016_v3 = vld [vmem:[#allocation5 + $0x2b8] sm:$0xff] }
 0x15a   :  { %v7210_v20 = vpop.f32.mrb[39].mxu0  ;;  %6099 = vmatprep.subr.bf16.mxu1 %v6098_v9  ;;  %v6114_v5 = vpack.c.bf16 %v2016_v3, %v2012_v42  ;;  %v2015_v9 = vld [vmem:[#allocation5 + $0x2b0] sm:$0xff]  ;;  %v761_v3 = vmax.f32 %v563_v52, 0.0 }
 0x15b   :  { %1012 = vmatmul.mubr.f32.gmra.mrb[36].mxu1 %v749_v12  ;;  %v1983_v12 = vld [vmem:[#allocation5 + $0x1b0] sm:$0xff] }
 0x15c   :  { %1017 = vmatprep.mubr.f32.mxu1 %v6666_v32  ;;  %v6100_v14 = vpack.c.bf16 %v1983_v12, %v1979_v11  ;;  %v6116_v12 = vpack.c.bf16 %v2015_v9, %v2011_v7 }
 0x15d   :  { %v7215_v24 = vpop.f32.mrb[40].mxu0 }
 0x15e   :  { %v7217_v35 = vpop.f32.mrb[41].mxu0  ;;  %6101 = vmatpush1.bf16.msra.mxu1 %v6100_v14  ;;  %v553_v14 = vadd.f32 %v7129_v50, %v7179_v46  ;;  %v2028_v46 = vld [vmem:[#allocation5 + $0x318] sm:$0xff] }
 0x15f   :  { %1018 = vmatmul.mubr.f32.gmra.mrb[38].mxu1 %v750_v26  ;;  %v6104_v26 = vpack.c.bf16 %v1991_v23, %v1987_v22  ;;  %6103 = vmatprep.subr.bf16.mxu1 %v6102_v21  ;;  %v2019_v21 = vld [vmem:[#allocation5 + $0x2d0] sm:$0xff] }
 0x160   :  { %1023 = vmatprep.mubr.f32.mxu1 %v6666_v32  ;;  %v2023_v22 = vld [vmem:[#allocation5 + $0x2f0] sm:$0xff] }
 0x161   :  { %v7222_v44 = vpop.f32.mrb[42].mxu0 }
 0x162   :  { %v7224_v53 = vpop.f32.mrb[43].mxu0  ;;  %6105 = vmatpush1.bf16.msra.mxu1 %v6104_v26  ;;  %v6120_v26 = vpack.c.bf16 %v2023_v22, %v2019_v21  ;;  %v2056_v21 = vld [vmem:[#allocation5 + $0x3f8] sm:$0xff] }
 0x163   :  { %1024 = vmatmul.mubr.f32.gmra.mrb[40].mxu1 %v751_v39  ;;  %v6106_v39 = vpack.c.bf16 %v2000_v30, %v1996_v38  ;;  %v2032_v38 = vld [vmem:[#allocation5 + $0x338] sm:$0xff]  ;;  %v558_v30 = vadd.f32 %v7177_v45, %v7129_v50 }
 0x164   :  { %1029 = vmatprep.mubr.f32.mxu1 %v6666_v32 }
 0x165   :  { %v7229_v28 = vpop.f32.mrb[44].mxu0  ;;  %6107 = vmatprep.subr.bf16.mxu1 %v6106_v39  ;;  %v6122_v39 = vpack.c.bf16 %v2032_v38, %v2028_v46 }
 0x166   :  { %v7231_v2 = vpop.f32.mrb[45].mxu0  ;;  %6109 = vmatpush1.bf16.msra.mxu1 %v6108_v47 }
 0x167   :  { %1030 = vmatmul.mubr.f32.gmra.mrb[42].mxu1 %v752_v61  ;;  %v2007_v61 = vld [vmem:[#allocation5 + $0x270] sm:$0xff]  ;;  %6111 = vmatprep.subr.bf16.mxu1 %v6110_v58  ;;  %v760_v58 = vmax.f32 %v558_v30, 0.0  ;;  %v583_v30 = vadd.f32 %v7129_v50, %v7197_v0  ;;  %v598_v0 = vadd.f32 %v7201_v6, %v7129_v50 }
 0x168   :  { %1035 = vmatprep.mubr.f32.mxu1 %v6666_v32  ;;  %v6112_v63 = vpack.c.bf16 %v2007_v61, %v2003_v59  ;;  %v2035_v61 = vld [vmem:[#allocation5 + $0x350] sm:$0xff] }
 0x169   :  { %v7236_v8 = vpop.f32.mrb[46].mxu0  ;;  %v765_v29 = vmax.f32 %v583_v30, 0.0  ;;  %v768_v60 = vmax.f32 %v598_v0, 0.0  ;;  %v1605_v30 = vld [vmem:[#allocation2 + $0xe8] sm:$0xff] }
 0x16a   :  { %v7238_v13 = vpop.f32.mrb[47].mxu0  ;;  %6113 = vmatpush1.bf16.msra.mxu1 %v6112_v63  ;;  %v2039_v63 = vld [vmem:[#allocation5 + $0x370] sm:$0xff]  ;;  %v1613_v0 = vld [vmem:[#allocation2 + $0x128] sm:$0xff] }
 0x16b   :  { %1036 = vmatmul.mubr.f32.gmra.mrb[44].mxu1 %v753_v4  ;;  %v548_v4 = vadd.f32 %v7171_v41, %v7129_v50  ;;  %6115 = vmatprep.subr.bf16.mxu1 %v6114_v5  ;;  %v6128_v42 = vpack.c.bf16 %v2039_v63, %v2035_v61  ;;  %v568_v5 = vadd.f32 %v7183_v49, %v7129_v50  ;;  %v1577_v63 = vld [vmem:[#allocation2 + $0x8] sm:$0xff] }
 0x16c   :  { %1041 = vmatprep.mubr.f32.mxu1 %v6666_v32  ;;  %v623_v61 = vadd.f32 %v7129_v50, %v7224_v53  ;;  %v1588_v53 = vld [vmem:[#allocation2 + $0x60] sm:$0xff] }
 0x16d   :  { %v7243_v33 = vpop.f32.mrb[48].mxu0  ;;  %v758_v18 = vmax.f32 %v548_v4, 0.0  ;;  %v2048_v4 = vld [vmem:[#allocation5 + $0x3b8] sm:$0xff]  ;;  %v762_v22 = vmax.f32 %v568_v5, 0.0 }
 0x16e   :  { %v7245_v25 = vpop.f32.mrb[49].mxu0  ;;  %6117 = vmatpush1.bf16.msra.mxu1 %v6116_v12  ;;  %v6130_v9 = vpack.c.bf16 %v2048_v4, %v2044_v51  ;;  %v2043_v12 = vld [vmem:[#allocation5 + $0x390] sm:$0xff]  ;;  %v773_v5 = vmax.f32 %v623_v61, 0.0  ;;  %v1620_v61 = vld [vmem:[#allocation2 + $0x160] sm:$0xff] }
 0x16f   :  { %1042 = vmatmul.mubr.f32.gmra.mrb[46].mxu1 %v754_v19  ;;  %v6118_v19 = vpack.c.bf16 %v2024_v17, %v2020_v15 }
 0x170   :  { %1047 = vmatprep.mubr.f32.mxu1 %v6666_v32 }
 0x171   :  { %v7250_v36 = vpop.f32.mrb[50].mxu0  ;;  %6119 = vmatprep.subr.bf16.mxu1 %v6118_v19  ;;  %v2052_v19 = vld [vmem:[#allocation5 + $0x3d8] sm:$0xff] }
 0x172   :  { %v7252_v43 = vpop.f32.mrb[51].mxu0  ;;  %6121 = vmatpush1.bf16.msra.mxu1 %v6120_v26  ;;  %v6134_v49 = vpack.c.bf16 %v2056_v21, %v2052_v19  ;;  %v2051_v26 = vld [vmem:[#allocation5 + $0x3d0] sm:$0xff]  ;;  %v633_v19 = vadd.f32 %v7129_v50, %v7231_v2  ;;  %v1593_v21 = vld [vmem:[#allocation2 + $0x88] sm:$0xff]  ;;  %v1600_v2 = vld [vmem:[#allocation2 + $0xc0] sm:$0xff] }
 0x173   :  { %1048 = vmatmul.mubr.f32.gmra.mrb[48].mxu1 %v755_v27  ;;  %v759_v27 = vmax.f32 %v553_v14, 0.0  ;;  %6123 = vmatprep.subr.bf16.mxu1 %v6122_v39  ;;  %v2047_v14 = vld [vmem:[#allocation5 + $0x3b0] sm:$0xff] }
 0x174   :  { %1053 = vmatprep.mubr.f32.mxu1 %v6666_v32  ;;  %v6132_v17 = vpack.c.bf16 %v2047_v14, %v2043_v12  ;;  %v1589_v12 = vld [vmem:[#allocation2 + $0x68] sm:$0xff]  ;;  %v1584_v14 = vld [vmem:[#allocation2 + $0x40] sm:$0xff] }
 0x175   :  { %v7257_v37 = vpop.f32.mrb[52].mxu0 }
 0x176   :  { %v7259_v62 = vpop.f32.mrb[53].mxu0  ;;  %6125 = vmatpush1.bf16.msra.mxu1 %v6124_v48  ;;  %v593_v48 = vadd.f32 %v7129_v50, %v7203_v10  ;;  %v608_v10 = vadd.f32 %v7208_v16, %v7129_v50  ;;  %v1581_v16 = vld [vmem:[#allocation2 + $0x28] sm:$0xff] }
 0x177   :  { %1054 = vmatmul.mubr.f32.gmra.mrb[50].mxu1 %v756_v57  ;;  %v2040_v57 = vld [vmem:[#allocation5 + $0x378] sm:$0xff] }
 0x178   :  { %1059 = vmatprep.mubr.f32.mxu1 %v6666_v32  ;;  %v6126_v59 = vpack.c.bf16 %v2040_v57, %v2036_v56  ;;  %v767_v52 = vmax.f32 %v593_v48, 0.0  ;;  %v603_v56 = vadd.f32 %v7129_v50, %v7210_v20  ;;  %v770_v6 = vmax.f32 %v608_v10, 0.0 }
 0x179   :  { %v7264_v34 = vpop.f32.mrb[54].mxu0  ;;  %v618_v20 = vadd.f32 %v7215_v24, %v7129_v50 }
 0x17a   :  { %v7266_v11 = vpop.f32.mrb[55].mxu0  ;;  %6127 = vmatprep.subr.bf16.mxu1 %v6126_v59  ;;  %v769_v57 = vmax.f32 %v603_v56, 0.0 }
 0x17b   :  { %1060 = vmatmul.mubr.f32.gmra.mrb[52].mxu1 %v757_v1  ;;  %v772_v51 = vmax.f32 %v618_v20, 0.0 }
 0x17c   :  { %1065 = vmatprep.mubr.f32.mxu1 %v6666_v32  ;;  %6129 = vmatpush1.bf16.msra.mxu1 %v6128_v42  ;;  %v5882_v42 = vpack.c.bf16 %v1581_v16, %v1577_v63  ;;  %v648_v63 = vadd.f32 %v7236_v8, %v7129_v50  ;;  %v1633_v8 = vld [vmem:[#allocation2 + $0x1c8] sm:$0xff] }
 0x17d   :  { %v7271_v41 = vpop.f32.mrb[56].mxu0  ;;  %6131 = vmatprep.subr.bf16.mxu1 %v6130_v9  ;;  %v1585_v9 = vld [vmem:[#allocation2 + $0x48] sm:$0xff] }
 0x17e   :  { %v7273_v23 = vpop.f32.mrb[57].mxu0  ;;  %5883 = vmatprep.subr.bf16.mxu0 %v5882_v42  ;;  %v5886_v24 = vpack.c.bf16 %v1589_v12, %v1585_v9  ;;  %v653_v42 = vadd.f32 %v7129_v50, %v7245_v25  ;;  %v778_v9 = vmax.f32 %v648_v63, 0.0  ;;  %v1632_v25 = vld [vmem:[#allocation2 + $0x1c0] sm:$0xff]  ;;  %v1673_v63 = vld [vmem:[#allocation2 + $0x308] sm:$0xff] }
 0x17f   :  { %1066 = vmatmul.mubr.f32.gmra.mrb[54].mxu1 %v758_v18  ;;  %v573_v18 = vadd.f32 %v7129_v50, %v7191_v55  ;;  %v578_v55 = vadd.f32 %v7189_v54, %v7129_v50  ;;  %v766_v54 = vmax.f32 %v588_v40, 0.0  ;;  %v638_v40 = vadd.f32 %v7229_v28, %v7129_v50  ;;  %v1617_v28 = vld [vmem:[#allocation2 + $0x148] sm:$0xff] }
 0x180   :  { %1071 = vmatprep.mubr.f32.mxu1 %v6666_v32  ;;  %6133 = vmatpush1.bf16.msra.mxu1 %v6132_v17  ;;  %v628_v17 = vadd.f32 %v7222_v44, %v7129_v50  ;;  %v1601_v44 = vld [vmem:[#allocation2 + $0xc8] sm:$0xff] }
 0x181   :  { %v7278_v31 = vpop.f32.mrb[58].mxu0  ;;  %v763_v38 = vmax.f32 %v573_v18, 0.0  ;;  %6135 = vmatprep.subr.bf16.mxu1 %v6134_v49  ;;  %v764_v39 = vmax.f32 %v578_v55, 0.0  ;;  %v5888_v18 = vpack.c.bf16 %v1588_v53, %v1584_v14  ;;  %v775_v55 = vmax.f32 %v633_v19, 0.0  ;;  %v1637_v14 = vld [vmem:[#allocation2 + $0x1e8] sm:$0xff] }
 0x182   :  { %v7280_v47 = vpop.f32.mrb[59].mxu0  ;;  %v776_v10 = vmax.f32 %v638_v40, 0.0  ;;  %v5910_v53 = vpack.c.bf16 %v1637_v14, %v1633_v8  ;;  %v1684_v8 = vld [vmem:[#allocation2 + $0x360] sm:$0xff] }
 0x183   :  { %1072 = vmatmul.mubr.f32.gmra.mrb[56].mxu1 %v759_v27  ;;  %v2055_v27 = vld [vmem:[#allocation5 + $0x3f0] sm:$0xff]  ;;  %v7373_v14 = vld [vmem:[%s10979_s2] ss:$0 sm:$0xff] }
 0x184   :  { %1077 = vmatprep.mubr.f32.mxu1 %v6666_v32  ;;  %v6136_v46 = vpack.c.bf16 %v2055_v27, %v2051_v26  ;;  %v1592_v26 = vld [vmem:[#allocation2 + $0x80] sm:$0xff] }
 0x185   :  { %v7285_v45 = vpop.f32.mrb[60].mxu0  ;;  %v1596_v27 = vld [vmem:[#allocation2 + $0xa0] sm:$0xff] }
 0x186   :  { %v7287_v1 = vpop.f32.mrb[61].mxu0  ;;  %6137 = vmatpush1.bf16.msra.mxu1 %v6136_v46  ;;  %v774_v46 = vmax.f32 %v628_v17, 0.0  ;;  %v1636_v17 = vld [vmem:[#allocation2 + $0x1e0] sm:$0xff] }
 0x187   :  { %1078 = vmatmul.mubr.f32.gmra.mrb[58].mxu1 %v760_v58  ;;  %v613_v58 = vadd.f32 %v7129_v50, %v7217_v35  ;;  %v1576_v35 = vld [vmem:[#allocation2] sm:$0xff]  ;;  %v5912_v19 = vpack.c.bf16 %v1636_v17, %v1632_v25 }
 0x188   :  { %1083 = vmatprep.mubr.f32.mxu1 %v6666_v32 }
 0x189   :  { %v7292_v7 = vpop.f32.mrb[62].mxu0  ;;  %v771_v59 = vmax.f32 %v613_v58, 0.0 }
 0x18a   :  { %v7294_v15 = vpop.f32.mrb[63].mxu0 }
 0x18b   :  { %1084 = vmatmul.mubr.f32.gmra.mrb[60].mxu1 %v761_v3  ;;  %v1580_v3 = vld [vmem:[#allocation2 + $0x20] sm:$0xff] }
 0x18c   :  { %1089 = vmatprep.mubr.f32.mxu1 %v6666_v32  ;;  %v5884_v4 = vpack.c.bf16 %v1580_v3, %v1576_v35  ;;  %v1625_v35 = vld [vmem:[#allocation2 + $0x188] sm:$0xff] }
 0x18d   :  { %v1629_v3 = vld [vmem:[#allocation2 + $0x1a8] sm:$0xff] }
 0x18e   :  { %5885 = vmatpush1.bf16.msra.mxu0 %v5884_v4  ;;  %v1624_v4 = vld [vmem:[#allocation2 + $0x180] sm:$0xff] }
 0x18f   :  { %1090 = vmatmul.mubr.f32.gmra.mrb[62].mxu1 %v762_v22  ;;  %5887 = vmatprep.subr.bf16.mxu0 %v5886_v24  ;;  %v1597_v22 = vld [vmem:[#allocation2 + $0xa8] sm:$0xff]  ;;  %v779_v24 = vmax.f32 %v653_v42, 0.0 }
 0x190   :  { %1095 = vmatprep.mubr.f32.mxu1 %v6666_v32  ;;  %v5890_v49 = vpack.c.bf16 %v1597_v22, %v1593_v21  ;;  %v663_v21 = vadd.f32 %v7129_v50, %v7252_v43  ;;  %v1641_v22 = vld [vmem:[#allocation2 + $0x208] sm:$0xff]  ;;  %v1648_v43 = vld [vmem:[#allocation2 + $0x240] sm:$0xff] }
 0x192   :  { %5889 = vmatpush1.bf16.msra.mxu0 %v5888_v18  ;;  %v658_v18 = vadd.f32 %v7243_v33, %v7129_v50  ;;  %v1649_v33 = vld [vmem:[#allocation2 + $0x248] sm:$0xff] }
 0x193   :  { %1096 = vmatmul.mubr.f32.gmra.mrb[64].mxu1 %v763_v38  ;;  %v5892_v38 = vpack.c.bf16 %v1596_v27, %v1592_v26  ;;  %5891 = vmatprep.subr.bf16.mxu0 %v5890_v49  ;;  %v1645_v49 = vld [vmem:[#allocation2 + $0x228] sm:$0xff]  ;;  %v1640_v27 = vld [vmem:[#allocation2 + $0x200] sm:$0xff] }
 0x194   :  { %1101 = vmatprep.mubr.f32.mxu1 %v6666_v32  ;;  %v5914_v26 = vpack.c.bf16 %v1645_v49, %v1641_v22  ;;  %v1693_v22 = vld [vmem:[#allocation2 + $0x3a8] sm:$0xff] }
 0x196   :  { %5893 = vmatpush1.bf16.msra.mxu0 %v5892_v38  ;;  %v780_v38 = vmax.f32 %v658_v18, 0.0 }
 0x197   :  { %1102 = vmatmul.mubr.f32.gmra.mrb[66].mxu1 %v764_v39  ;;  %v5894_v39 = vpack.c.bf16 %v1605_v30, %v1601_v44  ;;  %v781_v44 = vmax.f32 %v663_v21, 0.0  ;;  %v1653_v30 = vld [vmem:[#allocation2 + $0x268] sm:$0xff] }
 0x198   :  { %1107 = vmatprep.mubr.f32.mxu1 %v6666_v32  ;;  %v1689_v21 = vld [vmem:[#allocation2 + $0x388] sm:$0xff] }
 0x199   :  { %5895 = vmatprep.subr.bf16.mxu0 %v5894_v39  ;;  %v5918_v39 = vpack.c.bf16 %v1653_v30, %v1649_v33  ;;  %v5938_v49 = vpack.c.bf16 %v1693_v22, %v1689_v21  ;;  %v1697_v33 = vld [vmem:[#allocation2 + $0x3c8] sm:$0xff] }
 0x19b   :  { %1108 = vmatmul.mubr.f32.gmra.mrb[68].mxu1 %v765_v29  ;;  %v1604_v29 = vld [vmem:[#allocation2 + $0xe0] sm:$0xff] }
 0x19c   :  { %1113 = vmatprep.mubr.f32.mxu1 %v6666_v32  ;;  %v5896_v48 = vpack.c.bf16 %v1604_v29, %v1600_v2  ;;  %v1652_v2 = vld [vmem:[#allocation2 + $0x260] sm:$0xff]  ;;  %v668_v29 = vadd.f32 %v7250_v36, %v7129_v50  ;;  %v1665_v36 = vld [vmem:[#allocation2 + $0x2c8] sm:$0xff] }
 0x19d   :  { %v5920_v40 = vpack.c.bf16 %v1652_v2, %v1648_v43  ;;  %v1700_v43 = vld [vmem:[#allocation2 + $0x3e0] sm:$0xff]  ;;  %v698_v2 = vadd.f32 %v7373_v14, %v7271_v41 }
 0x19e   :  { %5897 = vmatpush1.bf16.msra.mxu0 %v5896_v48  ;;  %v673_v48 = vadd.f32 %v7129_v50, %v7259_v62  ;;  %v1664_v62 = vld [vmem:[#allocation2 + $0x2c0] sm:$0xff] }
 0x19f   :  { %1114 = vmatmul.mubr.f32.gmra.mrb[70].mxu1 %v766_v54  ;;  %v643_v54 = vadd.f32 %v7129_v50, %v7238_v13  ;;  %v1616_v13 = vld [vmem:[#allocation2 + $0x140] sm:$0xff] }
 0x1a0   :  { %1119 = vmatprep.mubr.f32.mxu1 %v6666_v32  ;;  %v5904_v16 = vpack.c.bf16 %v1620_v61, %v1616_v13  ;;  %v683_v61 = vadd.f32 %v7129_v50, %v7266_v11 }
 0x1a3   :  { %1120 = vmatmul.mubr.f32.gmra.mrb[72].mxu1 %v767_v52  ;;  %v1609_v52 = vld [vmem:[#allocation2 + $0x108] sm:$0xff] }
 0x1a4   :  { %1125 = vmatprep.mubr.f32.mxu1 %v6666_v32  ;;  %v5898_v56 = vpack.c.bf16 %v1613_v0, %v1609_v52  ;;  %v1661_v52 = vld [vmem:[#allocation2 + $0x2a8] sm:$0xff] }
 0x1a6   :  { %5899 = vmatprep.subr.bf16.mxu0 %v5898_v56  ;;  %v1656_v56 = vld [vmem:[#allocation2 + $0x280] sm:$0xff] }
 0x1a7   :  { %1126 = vmatmul.mubr.f32.gmra.mrb[74].mxu1 %v768_v60  ;;  %v1608_v60 = vld [vmem:[#allocation2 + $0x100] sm:$0xff] }
 0x1a8   :  { %1131 = vmatprep.mubr.f32.mxu1 %v6666_v32 }
 0x1ab   :  { %1132 = vmatmul.mubr.f32.gmra.mrb[76].mxu1 %v769_v57  ;;  %v1612_v57 = vld [vmem:[#allocation2 + $0x120] sm:$0xff] }
 0x1ac   :  { %1137 = vmatprep.mubr.f32.mxu1 %v6666_v32  ;;  %v5900_v58 = vpack.c.bf16 %v1612_v57, %v1608_v60  ;;  %v1660_v60 = vld [vmem:[#allocation2 + $0x2a0] sm:$0xff]  ;;  %v782_v57 = vmax.f32 %v668_v29, 0.0 }
 0x1ae   :  { %5901 = vmatpush1.bf16.msra.mxu0 %v5900_v58  ;;  %v783_v58 = vmax.f32 %v673_v48, 0.0 }
 0x1af   :  { %1138 = vmatmul.mubr.f32.gmra.mrb[78].mxu1 %v770_v6  ;;  %v777_v6 = vmax.f32 %v643_v54, 0.0  ;;  %v1657_v54 = vld [vmem:[#allocation2 + $0x288] sm:$0xff] }
 0x1b0   :  { %1143 = vmatprep.mubr.f32.mxu1 %v6666_v32  ;;  %v5922_v0 = vpack.c.bf16 %v1661_v52, %v1657_v54  ;;  %v703_v54 = vadd.f32 %v7373_v14, %v7280_v47  ;;  %v788_v52 = vmax.f32 %v698_v2, 0.0  ;;  %v713_v47 = vadd.f32 %v7373_v14, %v7287_v1 }
 0x1b2   :  { %v789_v41 = vmax.f32 %v703_v54, 0.0 }
 0x1b3   :  { %1144 = vmatmul.mubr.f32.gmra.mrb[80].mxu1 %v771_v59  ;;  %v1621_v59 = vld [vmem:[#allocation2 + $0x168] sm:$0xff] }
 0x1b4   :  { %1149 = vmatprep.mubr.f32.mxu1 %v6666_v32  ;;  %v5902_v20 = vpack.c.bf16 %v1621_v59, %v1617_v28  ;;  %v1668_v59 = vld [vmem:[#allocation2 + $0x2e0] sm:$0xff] }
 0x1b5   :  { %v5928_v13 = vpack.c.bf16 %v1668_v59, %v1664_v62  ;;  %v791_v62 = vmax.f32 %v713_v47, 0.0 }
 0x1b6   :  { %5903 = vmatprep.subr.bf16.mxu0 %v5902_v20  ;;  %v678_v20 = vadd.f32 %v7257_v37, %v7129_v50  ;;  %v1685_v50 = vld [vmem:[#allocation2 + $0x368] sm:$0xff] }
 0x1b7   :  { %1150 = vmatmul.mubr.f32.gmra.mrb[82].mxu1 %v772_v51  ;;  %5905 = vmatpush1.bf16.msra.mxu0 %v5904_v16  ;;  %v5906_v51 = vpack.c.bf16 %v1629_v3, %v1625_v35  ;;  %v1677_v16 = vld [vmem:[#allocation2 + $0x328] sm:$0xff]  ;;  %v1672_v35 = vld [vmem:[#allocation2 + $0x300] sm:$0xff] }
 0x1b8   :  { %1155 = vmatprep.mubr.f32.mxu1 %v6666_v32  ;;  %v5930_v42 = vpack.c.bf16 %v1677_v16, %v1673_v63  ;;  %v1676_v3 = vld [vmem:[#allocation2 + $0x320] sm:$0xff] }
 0x1b9   :  { %5907 = vmatprep.subr.bf16.mxu0 %v5906_v51  ;;  %v784_v51 = vmax.f32 %v678_v20, 0.0 }
 0x1bb   :  { %1156 = vmatmul.mubr.f32.gmra.mrb[84].mxu1 %v773_v5  ;;  %v1628_v5 = vld [vmem:[#allocation2 + $0x1a0] sm:$0xff] }
 0x1bc   :  { %1161 = vmatprep.mubr.f32.mxu1 %v6666_v32  ;;  %v5908_v12 = vpack.c.bf16 %v1628_v5, %v1624_v4  ;;  %v5932_v4 = vpack.c.bf16 %v1676_v3, %v1672_v35 }
 0x1be   :  { %5909 = vmatpush1.bf16.msra.mxu0 %v5908_v12  ;;  %v1681_v12 = vld [vmem:[#allocation2 + $0x348] sm:$0xff] }
 0x1bf   :  { %1162 = vmatmul.mubr.f32.gmra.mrb[86].mxu1 %v774_v46  ;;  %5911 = vmatprep.subr.bf16.mxu0 %v5910_v53  ;;  %v1644_v46 = vld [vmem:[#allocation2 + $0x220] sm:$0xff]  ;;  %v5934_v11 = vpack.c.bf16 %v1685_v50, %v1681_v12  ;;  %v688_v53 = vadd.f32 %v7373_v14, %v7264_v34 }
 0x1c0   :  { %1167 = vmatprep.mubr.f32.mxu1 %v6666_v32 }
 0x1c2   :  { %5913 = vmatpush1.bf16.msra.mxu0 %v5912_v19  ;;  %v693_v19 = vadd.f32 %v7373_v14, %v7273_v23  ;;  %v1701_v23 = vld [vmem:[#allocation2 + $0x3e8] sm:$0xff] }
 0x1c3   :  { %1168 = vmatmul.mubr.f32.gmra.mrb[88].mxu1 %v775_v55  ;;  %v5916_v55 = vpack.c.bf16 %v1644_v46, %v1640_v27  ;;  %5915 = vmatprep.subr.bf16.mxu0 %v5914_v26  ;;  %v1688_v26 = vld [vmem:[#allocation2 + $0x380] sm:$0xff]  ;;  %v786_v46 = vmax.f32 %v688_v53, 0.0  ;;  %v5942_v30 = vpack.c.bf16 %v1701_v23, %v1697_v33 }
 0x1c4   :  { %1173 = vmatprep.mubr.f32.mxu1 %v6666_v32  ;;  %v1692_v27 = vld [vmem:[#allocation2 + $0x3a0] sm:$0xff] }
 0x1c5   :  { %v5940_v34 = vpack.c.bf16 %v1692_v27, %v1688_v26 }
 0x1c6   :  { %5917 = vmatpush1.bf16.msra.mxu0 %v5916_v55 }
 0x1c7   :  { %1174 = vmatmul.mubr.f32.gmra.mrb[90].mxu1 %v776_v10  ;;  %5919 = vmatprep.subr.bf16.mxu0 %v5918_v39  ;;  %v5924_v10 = vpack.c.bf16 %v1660_v60, %v1656_v56  ;;  %v1696_v39 = vld [vmem:[#allocation2 + $0x3c0] sm:$0xff]  ;;  %v708_v60 = vadd.f32 %v7373_v14, %v7278_v31  ;;  %v718_v31 = vadd.f32 %v7373_v14, %v7285_v45 }
 0x1c8   :  { %1179 = vmatprep.mubr.f32.mxu1 %v6666_v32  ;;  %v5944_v29 = vpack.c.bf16 %v1700_v43, %v1696_v39  ;;  %v827_v45 = vld [vmem:[%s10981_s4] sm:$0x3] }
 0x1ca   :  { %5921 = vmatpush1.bf16.msra.mxu0 %v5920_v40 }
 0x1cb   :  { %1180 = vmatmul.mubr.f32.gmra.mrb[92].mxu1 %v777_v6  ;;  %5923 = vmatprep.subr.bf16.mxu0 %v5922_v0  ;;  %v1669_v6 = vld [vmem:[#allocation2 + $0x2e8] sm:$0xff] }
 0x1cc   :  { %1185 = vmatprep.mubr.f32.mxu1 %v6666_v32  ;;  %v5926_v28 = vpack.c.bf16 %v1669_v6, %v1665_v36  ;;  %v829_v36 = vlaneseq }
 0x1ce   :  { %5925 = vmatpush1.bf16.msra.mxu0 %v5924_v10  ;;  %v7419_v59 = vshrl.u32 %v829_v36, 7 }
 0x1cf   :  { %1186 = vmatmul.mubr.f32.gmra.mrb[94].mxu1 %v778_v9  ;;  %5927 = vmatprep.subr.bf16.mxu0 %v5926_v28  ;;  %v785_v9 = vmax.f32 %v683_v61, 0.0  ;;  %v792_v61 = vmax.f32 %v718_v31, 0.0  ;;  %v1583_v31 = vld [vmem:[#allocation2 + $0x38] sm:$0xff] }
 0x1d0   :  { %1191 = vmatprep.mubr.f32.mxu1 %v6666_v32  ;;  %11184 = vst [vmem:[#allocation12_spill] sm:$0xff] %v7419_v59  ;;  %v7429_v63 = vsub.s32 1, %v7419_v59  ;;  %v7438_v3 = vsub.s32 0, %v7419_v59 }
 0x1d2   :  { %5929 = vmatpush1.bf16.msra.mxu0 %v5928_v13  ;;  %v723_v13 = vadd.f32 %v7373_v14, %v7294_v15  ;;  %11185 = vst [vmem:[#allocation13_spill] sm:$0xff] %v7429_v63  ;;  %11186 = vst [vmem:[#allocation14_spill] sm:$0xff] %v7438_v3  ;;  %v728_v15 = vadd.f32 %v7373_v14, %v7292_v7  ;;  %v7449_v12 = vrot.slane %v827_v45, %v7438_v3 }
 0x1d3   :  { %1192 = vmatmul.mubr.f32.gmra.mrb[96].mxu1 %v779_v24  ;;  %5931 = vmatprep.subr.bf16.mxu0 %v5930_v42  ;;  %v1680_v24 = vld [vmem:[#allocation2 + $0x340] sm:$0xff] }
 0x1d4   :  { %1197 = vmatprep.mubr.f32.mxu1 %v6666_v32  ;;  %v5936_v25 = vpack.c.bf16 %v1684_v8, %v1680_v24  ;;  %v793_v35 = vmax.f32 %v723_v13, 0.0  ;;  %v794_v50 = vmax.f32 %v728_v15, 0.0 }
 0x1d6   :  { %5933 = vmatpush1.bf16.msra.mxu0 %v5932_v4 }
 0x1d7   :  { %1198 = vmatmul.mubr.f32.gmra.mrb[98].mxu1 %v780_v38  ;;  %5935 = vmatprep.subr.bf16.mxu0 %v5934_v11 }
 0x1d8   :  { %1203 = vmatprep.mubr.f32.mxu1 %v6666_v32 }
 0x1da   :  { %5937 = vmatpush1.bf16.msra.mxu0 %v5936_v25 }
 0x1db   :  { %1204 = vmatmul.mubr.f32.gmra.mrb[100].mxu1 %v781_v44  ;;  %5939 = vmatprep.subr.bf16.mxu0 %v5938_v49  ;;  %v787_v44 = vmax.f32 %v693_v19, 0.0 }
 0x1dc   :  { %1209 = vmatprep.mubr.f32.mxu1 %v6666_v32 }
 0x1de   :  { %5941 = vmatpush1.bf16.msra.mxu0 %v5940_v34 }
 0x1df   :  { %1210 = vmatmul.mubr.f32.gmra.mrb[102].mxu1 %v782_v57  ;;  %5943 = vmatprep.subr.bf16.mxu0 %v5942_v30 }
 0x1e0   :  { %1215 = vmatprep.mubr.f32.mxu1 %v6666_v32 }
 0x1e2   :  { %5945 = vmatpush1.bf16.msra.mxu0 %v5944_v29 }
 0x1e3   :  { %1216 = vmatmul.mubr.f32.gmra.mrb[104].mxu1 %v783_v58  ;;  %v790_v58 = vmax.f32 %v708_v60, 0.0 }
 0x1e4   :  { %1221 = vmatprep.mubr.f32.mxu1 %v6666_v32 }
 0x1e6   :  { %v7365_v5 = vpop.f32.mrb[0].mxu1 }
 0x1e7   :  { %v7367_v37 = vpop.f32.mrb[1].mxu1  ;;  %1222 = vmatmul.mubr.f32.gmra.mrb[106].mxu1 %v784_v51  ;;  %v7443_v51 = vrot.slane %v827_v45, %v7429_v63  ;;  %v7460_v8 = vadd.f32 %v7365_v5, %v7449_v12 }
 0x1e8   :  { %1227 = vmatprep.mubr.f32.mxu1 %v6666_v32 }
 0x1e9   :  { %v7453_v11 = vadd.f32 %v7367_v37, %v7443_v51 }
 0x1ea   :  { %v7377_v17 = vpop.f32.mrb[2].mxu1 }
 0x1eb   :  { %v7379_v18 = vpop.f32.mrb[3].mxu1  ;;  %1228 = vmatmul.mubr.f32.gmra.mrb[108].mxu1 %v785_v9  ;;  %v7474_v37 = vadd.f32 %v7377_v17, %v7449_v12 }
 0x1ec   :  { %1233 = vmatprep.mubr.f32.mxu1 %v6666_v32 }
 0x1ed   :  { %11188 = vst [vmem:[#allocation16_spill] sm:$0xff] %v7474_v37 }
 0x1ee   :  { %v7384_v38 = vpop.f32.mrb[4].mxu1 }
 0x1ef   :  { %v7386_v55 = vpop.f32.mrb[5].mxu1  ;;  %1234 = vmatmul.mubr.f32.gmra.mrb[110].mxu1 %v786_v46  ;;  %v7488_v19 = vadd.f32 %v7384_v38, %v7449_v12 }
 0x1f0   :  { %1239 = vmatprep.mubr.f32.mxu1 %v6666_v32  ;;  %v7478_v5 = vadd.f32 %v7386_v55, %v7443_v51 }
 0x1f1   :  { %11190 = vst [vmem:[#allocation18_spill] sm:$0xff] %v7488_v19 }
 0x1f2   :  { %v7391_v40 = vpop.f32.mrb[6].mxu1  ;;  %11189 = vst [vmem:[#allocation17_spill] sm:$0xff] %v7478_v5 }
 0x1f3   :  { %v7393_v48 = vpop.f32.mrb[7].mxu1  ;;  %1240 = vmatmul.mubr.f32.gmra.mrb[112].mxu1 %v787_v44  ;;  %v7502_v49 = vadd.f32 %v7391_v40, %v7449_v12 }
 0x1f4   :  { %1245 = vmatprep.mubr.f32.mxu1 %v6666_v32  ;;  %v7492_v17 = vadd.f32 %v7393_v48, %v7443_v51 }
 0x1f5   :  { %11192 = vst [vmem:[#allocation20_spill] sm:$0xff] %v7502_v49 }
 0x1f6   :  { %v7398_v0 = vpop.f32.mrb[8].mxu1  ;;  %11191 = vst [vmem:[#allocation19_spill] sm:$0xff] %v7492_v17 }
 0x1f7   :  { %v7400_v56 = vpop.f32.mrb[9].mxu1  ;;  %1246 = vmatmul.mubr.f32.gmra.mrb[114].mxu1 %v788_v52  ;;  %v7516_v34 = vadd.f32 %v7398_v0, %v7449_v12 }
 0x1f8   :  { %1251 = vmatprep.mubr.f32.mxu1 %v6666_v32  ;;  %v7506_v26 = vadd.f32 %v7400_v56, %v7443_v51 }
 0x1f9   :  { %11194 = vst [vmem:[#allocation22_spill] sm:$0xff] %v7516_v34 }
 0x1fa   :  { %v7405_v57 = vpop.f32.mrb[10].mxu1  ;;  %11193 = vst [vmem:[#allocation21_spill] sm:$0xff] %v7506_v26 }
 0x1fb   :  { %v7407_v10 = vpop.f32.mrb[11].mxu1  ;;  %1252 = vmatmul.mubr.f32.gmra.mrb[116].mxu1 %v789_v41  ;;  %v7530_v33 = vadd.f32 %v7405_v57, %v7449_v12 }
 0x1fc   :  { %1257 = vmatprep.mubr.f32.mxu1 %v6666_v32  ;;  %v7520_v38 = vadd.f32 %v7407_v10, %v7443_v51  ;;  %v1288_v10 = vmax.f32 %v7460_v8, %v7474_v37 }
 0x1fd   :  { %11196 = vst [vmem:[#allocation24_spill] sm:$0xff] %v7530_v33 }
 0x1fe   :  { %v7412_v6 = vpop.f32.mrb[12].mxu1  ;;  %11195 = vst [vmem:[#allocation23_spill] sm:$0xff] %v7520_v38  ;;  %v1289_v36 = vmax.f32 %v1288_v10, %v7488_v19 }
 0x1ff   :  { %v7414_v28 = vpop.f32.mrb[13].mxu1  ;;  %1258 = vmatmul.mubr.f32.gmra.mrb[118].mxu1 %v790_v58  ;;  %v7544_v43 = vadd.f32 %v7412_v6, %v7449_v12 }
 0x200   :  { %1263 = vmatprep.mubr.f32.mxu1 %v6666_v32  ;;  %v7534_v23 = vadd.f32 %v7414_v28, %v7443_v51 }
 0x201   :  { %11198 = vst [vmem:[#allocation26_spill] sm:$0xff] %v7544_v43 }
 0x202   :  { %v7421_v20 = vpop.f32.mrb[14].mxu1  ;;  %11197 = vst [vmem:[#allocation25_spill] sm:$0xff] %v7534_v23 }
 0x203   :  { %v7423_v1 = vpop.f32.mrb[15].mxu1  ;;  %1264 = vmatmul.mubr.f32.gmra.mrb[120].mxu1 %v791_v62  ;;  %v7558_v48 = vadd.f32 %v7421_v20, %v7449_v12  ;;  %v1579_v62 = vld [vmem:[#allocation2 + $0x18] sm:$0xff] }
 0x204   :  { %1269 = vmatprep.mubr.f32.mxu1 %v6666_v32  ;;  %v7548_v2 = vadd.f32 %v7423_v1, %v7443_v51  ;;  %v5946_v13 = vpack.c.bf16 %v1583_v31, %v1579_v62 }
 0x205   :  { %11200 = vst [vmem:[#allocation28_spill] sm:$0xff] %v7558_v48 }
 0x206   :  { %v7431_v16 = vpop.f32.mrb[16].mxu1  ;;  %11199 = vst [vmem:[#allocation27_spill] sm:$0xff] %v7548_v2  ;;  %5947 = vmatprep.subr.bf16.mxu0 %v5946_v13 }
 0x207   :  { %v955_v42 = vpop.f32.mrb[17].mxu1  ;;  %1270 = vmatmul.mubr.f32.gmra.mrb[122].mxu1 %v792_v61  ;;  %v7571_v56 = vadd.f32 %v7431_v16, %v7449_v12  ;;  %v1290_v61 = vmax.f32 %v1289_v36, %v7502_v49  ;;  %v1315_v36 = vmax.f32 %v7506_v26, %v7520_v38 }
 0x208   :  { %1275 = vmatprep.mubr.f32.mxu1 %v6666_v32  ;;  %v7561_v54 = vadd.f32 %v955_v42, %v7443_v51 }
 0x209   :  { %11202 = vst [vmem:[#allocation30_spill] sm:$0xff] %v7571_v56  ;;  %v1316_v31 = vmax.f32 %v1315_v36, %v7534_v23 }
 0x20a   :  { %v7445_v4 = vpop.f32.mrb[18].mxu1  ;;  %11201 = vst [vmem:[#allocation29_spill] sm:$0xff] %v7561_v54 }
 0x20b   :  { %v961_v9 = vpop.f32.mrb[19].mxu1  ;;  %1276 = vmatmul.mubr.f32.gmra.mrb[124].mxu1 %v793_v35  ;;  %v7588_v58 = vadd.f32 %v7445_v4, %v7449_v12  ;;  %v1291_v4 = vrot.slane %v1290_v61, 4 }
 0x20c   :  { %1281 = vmatprep.mubr.f32.mxu1 %v6666_v32  ;;  %v7464_v32 = vadd.f32 %v7379_v18, %v7443_v51  ;;  %v7574_v41 = vadd.f32 %v961_v9, %v7443_v51 }
 0x20d   :  { %11204 = vst [vmem:[#allocation32_spill] sm:$0xff] %v7588_v58 }
 0x20e   :  { %v7455_v24 = vpop.f32.mrb[20].mxu1  ;;  %11187 = vst [vmem:[#allocation15_spill] sm:$0xff] %v7464_v32  ;;  %11203 = vst [vmem:[#allocation31_spill] sm:$0xff] %v7574_v41  ;;  %v1297_v47 = vmax.f32 %v7453_v11, %v7464_v32 }
 0x20f   :  { %v967_v7 = vpop.f32.mrb[21].mxu1  ;;  %1282 = vmatmul.mubr.f32.gmra.mrb[126].mxu1 %v794_v50  ;;  %v7605_v45 = vadd.f32 %v7455_v24, %v7449_v12 }
 0x210   :  { %2570 = vmatprep.mubr.f32.mxu1 %v7453_v11  ;;  %v7592_v6 = vadd.f32 %v967_v7, %v7443_v51  ;;  %v1298_v20 = vmax.f32 %v1297_v47, %v7478_v5  ;;  %v1292_v47 = vmax.f32 %v1290_v61, %v1291_v4 }
 0x211   :  { %11206 = vst [vmem:[#allocation34_spill] sm:$0xff] %v7605_v45 }
 0x212   :  { %v7466_v14 = vpop.f32.mrb[22].mxu1  ;;  %11205 = vst [vmem:[#allocation33_spill] sm:$0xff] %v7592_v6  ;;  %v1299_v16 = vmax.f32 %v1298_v20, %v7492_v17 }
 0x213   :  { %v7468_v53 = vpop.f32.mrb[23].mxu1  ;;  %2571 = vmatmul.mubr.f32.vlgmr.msra.gmra.mrb[128].mxu1 %v7460_v8  ;;  %v7619_v50 = vadd.f32 %v7466_v14, %v7449_v12 }
 0x214   :  { %2576 = vmatprep.mubr.f32.mxu1 %v7464_v32  ;;  %v7609_v42 = vadd.f32 %v7468_v53, %v7443_v51  ;;  %v1300_v9 = vrot.slane %v1299_v16, 4  ;;  %v1306_v53 = vmax.f32 %v7516_v34, %v7530_v33 }
 0x215   :  { %11208 = vst [vmem:[#allocation36_spill] sm:$0xff] %v7619_v50 }
 0x216   :  { %v7480_v25 = vpop.f32.mrb[24].mxu1  ;;  %11207 = vst [vmem:[#allocation35_spill] sm:$0xff] %v7609_v42  ;;  %v1301_v14 = vmax.f32 %v1299_v16, %v1300_v9  ;;  %v1307_v62 = vmax.f32 %v1306_v53, %v7544_v43  ;;  %v1293_v16 = vrot.slane %v1292_v47, 2  ;;  %v1317_v9 = vmax.f32 %v1316_v31, %v7548_v2 }
 0x217   :  { %v7482_v18 = vpop.f32.mrb[25].mxu1  ;;  %2577 = vmatmul.mubr.f32.gmra.mrb[130].mxu1 %v7474_v37  ;;  %v1324_v53 = vmax.f32 %v7571_v56, %v7588_v58 }
 0x218   :  { %2582 = vmatprep.mubr.f32.mxu1 %v7478_v5  ;;  %v7623_v24 = vadd.f32 %v7482_v18, %v7443_v51  ;;  %v7638_v18 = vadd.f32 %v7480_v25, %v7449_v12  ;;  %v1308_v61 = vmax.f32 %v1307_v62, %v7558_v48  ;;  %v1302_v25 = vrot.slane %v1301_v14, 2 }
 0x219   :  { %v1325_v3 = vmax.f32 %v1324_v53, %v7605_v45  ;;  %v7665_v31 = vmax.f32 %v1292_v47, %v1293_v16 }
 0x21a   :  { %v7494_v21 = vpop.f32.mrb[26].mxu1  ;;  %11209 = vst [vmem:[#allocation37_spill] sm:$0xff] %v7623_v24  ;;  %11210 = vst [vmem:[#allocation38_spill] sm:$0xff] %v7638_v18  ;;  %v1309_v63 = vrot.slane %v1308_v61, 4 }
 0x21b   :  { %v7496_v22 = vpop.f32.mrb[27].mxu1  ;;  %2583 = vmatmul.mubr.f32.gmra.mrb[132].mxu1 %v7488_v19 }
 0x21c   :  { %2588 = vmatprep.mubr.f32.mxu1 %v7492_v17  ;;  %v7643_v20 = vadd.f32 %v7496_v22, %v7443_v51  ;;  %v7657_v22 = vadd.f32 %v7494_v21, %v7449_v12  ;;  %v7670_v21 = vmax.f32 %v1301_v14, %v1302_v25 }
 0x21e   :  { %v7508_v27 = vpop.f32.mrb[28].mxu1  ;;  %11211 = vst [vmem:[#allocation39_spill] sm:$0xff] %v7643_v20  ;;  %11212 = vst [vmem:[#allocation40_spill] sm:$0xff] %v7657_v22  ;;  %v1351_v16 = vmax.f32 %v7623_v24, %v7643_v20 }
 0x21f   :  { %v7510_v46 = vpop.f32.mrb[29].mxu1  ;;  %2589 = vmatmul.mubr.f32.gmra.mrb[134].mxu1 %v7502_v49 }
 0x220   :  { %2594 = vmatprep.mubr.f32.mxu1 %v7506_v26  ;;  %v7661_v36 = vadd.f32 %v7510_v46, %v7443_v51  ;;  %v7673_v46 = vmax.f32 %v1325_v3, %v7619_v50 }
 0x222   :  { %v7522_v55 = vpop.f32.mrb[30].mxu1  ;;  %11213 = vst [vmem:[#allocation41_spill] sm:$0xff] %v7661_v36 }
 0x223   :  { %v7524_v44 = vpop.f32.mrb[31].mxu1  ;;  %2595 = vmatmul.mubr.f32.gmra.mrb[136].mxu1 %v7516_v34 }
 0x224   :  { %2600 = vmatprep.mubr.f32.mxu1 %v7520_v38  ;;  %v7688_v14 = vadd.f32 %v7524_v44, %v7443_v51 }
 0x226   :  { %v7536_v30 = vpop.f32.mrb[32].mxu1  ;;  %11216 = vst [vmem:[#allocation44_spill] sm:$0xff] %v7688_v14 }
 0x227   :  { %v7538_v39 = vpop.f32.mrb[33].mxu1  ;;  %2601 = vmatmul.mubr.f32.gmra.mrb[138].mxu1 %v7530_v33 }
 0x228   :  { %2606 = vmatprep.mubr.f32.mxu1 %v7534_v23 }
 0x22a   :  { %v7550_v29 = vpop.f32.mrb[34].mxu1 }
 0x22b   :  { %v7552_v40 = vpop.f32.mrb[35].mxu1  ;;  %2607 = vmatmul.mubr.f32.gmra.mrb[140].mxu1 %v7544_v43  ;;  %v7681_v53 = vadd.f32 %v7550_v29, %v7449_v12  ;;  %v1342_v29 = vmax.f32 %v7638_v18, %v7657_v22 }
 0x22c   :  { %2612 = vmatprep.mubr.f32.mxu1 %v7548_v2  ;;  %v7692_v3 = vadd.f32 %v7552_v40, %v7443_v51  ;;  %v1295_v2 = vrot.slane %v7665_v31, 1 }
 0x22d   :  { %11215 = vst [vmem:[#allocation43_spill] sm:$0xff] %v7681_v53 }
 0x22e   :  { %v7563_v52 = vpop.f32.mrb[36].mxu1  ;;  %11217 = vst [vmem:[#allocation45_spill] sm:$0xff] %v7692_v3 }
 0x22f   :  { %v7565_v0 = vpop.f32.mrb[37].mxu1  ;;  %2613 = vmatmul.mubr.f32.gmra.mrb[142].mxu1 %v7558_v48  ;;  %v1318_v48 = vrot.slane %v1317_v9, 4 }
 0x230   :  { %2618 = vmatprep.mubr.f32.mxu1 %v7561_v54 }
 0x232   :  { %v7576_v60 = vpop.f32.mrb[38].mxu1 }
 0x233   :  { %v7578_v57 = vpop.f32.mrb[39].mxu1  ;;  %2619 = vmatmul.mubr.f32.gmra.mrb[144].mxu1 %v7571_v56  ;;  %v7677_v56 = vadd.f32 %v7508_v27, %v7449_v12  ;;  %v7694_v27 = vmax.f32 %v1308_v61, %v1309_v63  ;;  %v1352_v63 = vmax.f32 %v1351_v16, %v7661_v36  ;;  %v7715_v61 = vadd.f32 %v7538_v39, %v7443_v51 }
 0x234   :  { %2624 = vmatprep.mubr.f32.mxu1 %v7574_v41 }
 0x235   :  { %11214 = vst [vmem:[#allocation42_spill] sm:$0xff] %v7677_v56  ;;  %11220 = vst [vmem:[#allocation48_spill] sm:$0xff] %v7715_v61  ;;  %v1369_v39 = vmax.f32 %v7715_v61, %v7692_v3 }
 0x236   :  { %v7594_v28 = vpop.f32.mrb[40].mxu1 }
 0x237   :  { %v7597_v1 = vpop.f32.mrb[41].mxu1  ;;  %2625 = vmatmul.mubr.f32.gmra.mrb[146].mxu1 %v7588_v58  ;;  %v1333_v58 = vmax.f32 %v7561_v54, %v7574_v41 }
 0x238   :  { %2630 = vmatprep.mubr.f32.mxu1 %v7592_v6 }
 0x239   :  { %v1334_v47 = vmax.f32 %v1333_v58, %v7592_v6  ;;  %v7700_v58 = vadd.f32 %v7536_v30, %v7449_v12  ;;  %v1327_v30 = vrot.slane %v7673_v46, 4 }
 0x23a   :  { %v7611_v35 = vpop.f32.mrb[42].mxu1 }
 0x23b   :  { %v7613_v15 = vpop.f32.mrb[43].mxu1  ;;  %2631 = vmatmul.mubr.f32.gmra.mrb[148].mxu1 %v7605_v45  ;;  %11218 = vst [vmem:[#allocation46_spill] sm:$0xff] %v7700_v58  ;;  %v7710_v40 = vmax.f32 %v1334_v47, %v7609_v42  ;;  %v7733_v47 = vadd.f32 %v7565_v0, %v7443_v51 }
 0x23c   :  { %2636 = vmatprep.mubr.f32.mxu1 %v7609_v42  ;;  %v7737_v16 = vadd.f32 %v7613_v15, %v7443_v51  ;;  %v7754_v15 = vadd.f32 %v7578_v57, %v7443_v51 }
 0x23d   :  { %11222 = vst [vmem:[#allocation50_spill] sm:$0xff] %v7733_v47 }
 0x23e   :  { %v7625_v7 = vpop.f32.mrb[44].mxu1  ;;  %11223 = vst [vmem:[#allocation51_spill] sm:$0xff] %v7737_v16  ;;  %11227 = vst [vmem:[#allocation55_spill] sm:$0xff] %v7754_v15 }
 0x23f   :  { %v7629_v10 = vpop.f32.mrb[45].mxu1  ;;  %2637 = vmatmul.mubr.f32.gmra.mrb[150].mxu1 %v7619_v50  ;;  %v7774_v57 = vadd.f32 %v7625_v7, %v7449_v12 }
 0x240   :  { %2642 = vmatprep.mubr.f32.mxu1 %v7623_v24  ;;  %v7707_v24 = vmax.f32 %v1317_v9, %v1318_v48  ;;  %v1360_v48 = vmax.f32 %v7700_v58, %v7681_v53  ;;  %v7727_v9 = vmax.f32 %v1352_v63, %v7688_v14  ;;  %v7746_v63 = vadd.f32 %v7611_v35, %v7449_v12 }
 0x241   :  { %11232 = vst [vmem:[#allocation60_spill] sm:$0xff] %v7774_v57 }
 0x242   :  { %v7645_v13 = vpop.f32.mrb[46].mxu1  ;;  %11225 = vst [vmem:[#allocation53_spill] sm:$0xff] %v7746_v63 }
 0x243   :  { %v7648_v4 = vpop.f32.mrb[47].mxu1  ;;  %2643 = vmatmul.mubr.f32.gmra.mrb[152].mxu1 %v7638_v18  ;;  %v7799_v18 = vadd.f32 %v7645_v13, %v7449_v12 }
 0x244   :  { %2648 = vmatprep.mubr.f32.mxu1 %v7643_v20  ;;  %v7704_v20 = vadd.f32 %v7563_v52, %v7449_v12  ;;  %v1343_v52 = vmax.f32 %v1342_v29, %v7677_v56 }
 0x245   :  { %11237 = vst [vmem:[#allocation65_spill] sm:$0xff] %v7799_v18 }
 0x246   :  { %v1049_v62 = vpop.f32.mrb[48].mxu1  ;;  %11219 = vst [vmem:[#allocation47_spill] sm:$0xff] %v7704_v20 }
 0x247   :  { %v1051_v59 = vpop.f32.mrb[49].mxu1  ;;  %2649 = vmatmul.mubr.f32.gmra.mrb[154].mxu1 %v7657_v22  ;;  %v7722_v22 = vadd.f32 %v7522_v55, %v7449_v12  ;;  %v1361_v55 = vmax.f32 %v1360_v48, %v7704_v20  ;;  %v7758_v48 = vadd.f32 %v7597_v1, %v7443_v51 }
 0x248   :  { %2654 = vmatprep.mubr.f32.mxu1 %v7661_v36  ;;  %v7777_v1 = vadd.f32 %v1051_v59, %v7443_v51  ;;  %v1370_v59 = vmax.f32 %v1369_v39, %v7733_v47 }
 0x249   :  { %11221 = vst [vmem:[#allocation49_spill] sm:$0xff] %v7722_v22  ;;  %11228 = vst [vmem:[#allocation56_spill] sm:$0xff] %v7758_v48  ;;  %v1344_v13 = vmax.f32 %v1343_v52, %v7722_v22 }
 0x24a   :  { %v1055_v25 = vpop.f32.mrb[50].mxu1  ;;  %11233 = vst [vmem:[#allocation61_spill] sm:$0xff] %v7777_v1  ;;  %v1371_v45 = vmax.f32 %v1370_v59, %v7754_v15 }
 0x24b   :  { %v1057_v44 = vpop.f32.mrb[51].mxu1  ;;  %2655 = vmatmul.mubr.f32.gmra.mrb[156].mxu1 %v7677_v56  ;;  %v7742_v56 = vadd.f32 %v7576_v60, %v7449_v12  ;;  %v7762_v60 = vadd.f32 %v7629_v10, %v7443_v51  ;;  %v7765_v35 = vadd.f32 %v1055_v25, %v7449_v12  ;;  %v1387_v10 = vmax.f32 %v7758_v48, %v7737_v16 }
 0x24c   :  { %2660 = vmatprep.mubr.f32.mxu1 %v7688_v14  ;;  %v7749_v14 = vadd.f32 %v1057_v44, %v7443_v51  ;;  %v7770_v44 = vadd.f32 %v7594_v28, %v7449_v12  ;;  %v7786_v25 = vadd.f32 %v7648_v4, %v7443_v51  ;;  %v7789_v28 = vadd.f32 %v1049_v62, %v7449_v12 }
 0x24d   :  { %11224 = vst [vmem:[#allocation52_spill] sm:$0xff] %v7742_v56  ;;  %11229 = vst [vmem:[#allocation57_spill] sm:$0xff] %v7762_v60  ;;  %v1388_v62 = vmax.f32 %v1387_v10, %v7762_v60  ;;  %v1336_v10 = vrot.slane %v7710_v40, 4  ;;  %v1362_v41 = vmax.f32 %v1361_v55, %v7742_v56  ;;  %v1320_v55 = vrot.slane %v7707_v24, 2 }
 0x24e   :  { %v1061_v29 = vpop.f32.mrb[52].mxu1  ;;  %11226 = vst [vmem:[#allocation54_spill] sm:$0xff] %v7749_v14  ;;  %11230 = vst [vmem:[#allocation58_spill] sm:$0xff] %v7765_v35  ;;  %v1405_v4 = vmax.f32 %v7777_v1, %v7749_v14  ;;  %v1345_v43 = vrot.slane %v1344_v13, 4  ;;  %v1372_v23 = vrot.slane %v1371_v45, 4 }
 0x24f   :  { %v1063_v0 = vpop.f32.mrb[53].mxu1  ;;  %2661 = vmatmul.mubr.f32.gmra.mrb[158].mxu1 %v7722_v22  ;;  %11231 = vst [vmem:[#allocation59_spill] sm:$0xff] %v7770_v44  ;;  %11235 = vst [vmem:[#allocation63_spill] sm:$0xff] %v7789_v28  ;;  %v1328_v22 = vmax.f32 %v7673_v46, %v1327_v30  ;;  %v7845_v30 = vmax.f32 %v7707_v24, %v1320_v55 }
 0x250   :  { %2666 = vmatprep.mubr.f32.mxu1 %v7715_v61  ;;  %v7780_v36 = vadd.f32 %v1063_v0, %v7443_v51  ;;  %v7792_v61 = vadd.f32 %v1061_v29, %v7449_v12  ;;  %v1378_v0 = vmax.f32 %v7770_v44, %v7746_v63  ;;  %v1396_v29 = vmax.f32 %v7789_v28, %v7765_v35 }
 0x252   :  { %11234 = vst [vmem:[#allocation62_spill] sm:$0xff] %v7780_v36  ;;  %11236 = vst [vmem:[#allocation64_spill] sm:$0xff] %v7792_v61  ;;  %v1067_v7 = vpop.f32.mrb[54].mxu1  ;;  %v1379_v6 = vmax.f32 %v1378_v0, %v7774_v57  ;;  %v1397_v54 = vmax.f32 %v1396_v29, %v7792_v61 }
 0x253   :  { %v1069_v50 = vpop.f32.mrb[55].mxu1  ;;  %2667 = vmatmul.mubr.f32.gmra.mrb[160].mxu1 %v7700_v58  ;;  %v7808_v39 = vadd.f32 %v1067_v7, %v7449_v12  ;;  %v1406_v58 = vmax.f32 %v1405_v4, %v7780_v36  ;;  %v1389_v7 = vmax.f32 %v1388_v62, %v7786_v25  ;;  %v1311_v4 = vrot.slane %v7694_v27, 2 }
 0x254   :  { %v7811_v42 = vadd.f32 %v1069_v50, %v7443_v51  ;;  %2672 = vmatprep.mubr.f32.mxu1 %v7692_v3  ;;  %v1304_v3 = vrot.slane %v7670_v21, 1  ;;  %v1380_v52 = vmax.f32 %v1379_v6, %v7799_v18  ;;  %v1354_v62 = vrot.slane %v7727_v9, 4 }
 0x255   :  { %11238 = vst [vmem:[#allocation66_spill] sm:$0xff] %v7808_v39  ;;  %v1398_v29 = vmax.f32 %v1397_v54, %v7808_v39  ;;  %v1337_v6 = vmax.f32 %v7710_v40, %v1336_v10  ;;  %v1390_v33 = vrot.slane %v1389_v7, 4  ;;  %v7842_v46 = vmax.f32 %v7694_v27, %v1311_v4 }
 0x256   :  { %11239 = vst [vmem:[#allocation67_spill] sm:$0xff] %v7811_v42  ;;  %v1073_v50 = vpop.f32.mrb[56].mxu1  ;;  %v1407_v59 = vmax.f32 %v1406_v58, %v7811_v42  ;;  %v1363_v58 = vrot.slane %v1362_v41, 4  ;;  %v7838_v34 = vmax.f32 %v7670_v21, %v1304_v3  ;;  %v1381_v26 = vrot.slane %v1380_v52, 4 }
 0x257   :  { %v1075_v0 = vpop.f32.mrb[57].mxu1  ;;  %2673 = vmatmul.mubr.f32.gmra.mrb[162].mxu1 %v7681_v53  ;;  %v7835_v53 = vmax.f32 %v7665_v31, %v1295_v2  ;;  %v1355_v40 = vmax.f32 %v7727_v9, %v1354_v62  ;;  %v1399_v10 = vrot.slane %v1398_v29, 4  ;;  %v1329_v2 = vrot.slane %v1328_v22, 2 }
 0x258   :  { %2678 = vmatprep.mubr.f32.mxu1 %v7733_v47  ;;  %v1408_v49 = vrot.slane %v1407_v59, 4  ;;  %v1346_v31 = vmax.f32 %v1344_v13, %v1345_v43  ;;  %v1373_v21 = vmax.f32 %v1371_v45, %v1372_v23  ;;  %v1338_v47 = vrot.slane %v1337_v6, 2 }
 0x259   :  { %v1364_v17 = vmax.f32 %v1362_v41, %v1363_v58  ;;  %v1382_v24 = vmax.f32 %v1380_v52, %v1381_v26  ;;  %v7856_v9 = vadd.f32 %v1073_v50, %v7449_v12  ;;  %v1400_v23 = vmax.f32 %v1398_v29, %v1399_v10 }
 0x25a   :  { %v1079_v38 = vpop.f32.mrb[58].mxu1  ;;  %v1409_v55 = vmax.f32 %v1407_v59, %v1408_v49  ;;  %v7863_v41 = vadd.f32 %v1075_v0, %v7443_v51  ;;  %v1330_v49 = vmax.f32 %v1328_v22, %v1329_v2  ;;  %v1347_v26 = vrot.slane %v1346_v31, 2 }
 0x25b   :  { %v1081_v54 = vpop.f32.mrb[59].mxu1  ;;  %2679 = vmatmul.mubr.f32.gmra.mrb[164].mxu1 %v7704_v20  ;;  %v7850_v3 = vadd.f32 %v1079_v38, %v7449_v12  ;;  %v1391_v20 = vmax.f32 %v1389_v7, %v1390_v33  ;;  %11242 = vst [vmem:[#allocation70_spill] sm:$0xff] %v7856_v9  ;;  %v1356_v38 = vrot.slane %v1355_v40, 2  ;;  %v1374_v45 = vrot.slane %v1373_v21, 2 }
 0x25c   :  { %2684 = vmatprep.mubr.f32.mxu1 %v7754_v15  ;;  %v7853_v27 = vadd.f32 %v1081_v54, %v7443_v51  ;;  %11244 = vst [vmem:[#allocation72_spill] sm:$0xff] %v7863_v41  ;;  %v1339_v7 = vmax.f32 %v1337_v6, %v1338_v47  ;;  %v1365_v50 = vrot.slane %v1364_v17, 2  ;;  %v1383_v29 = vrot.slane %v1382_v24, 2 }
 0x25d   :  { %11240 = vst [vmem:[#allocation68_spill] sm:$0xff] %v7850_v3  ;;  %v1414_v13 = vmax.f32 %v7856_v9, %v7850_v3  ;;  %v1392_v52 = vrot.slane %v1391_v20, 2  ;;  %v1410_v58 = vrot.slane %v1409_v55, 2  ;;  %v1357_v2 = vmax.f32 %v1355_v40, %v1356_v38 }
 0x25e   :  { %11241 = vst [vmem:[#allocation69_spill] sm:$0xff] %v7853_v27  ;;  %v1085_v4 = vpop.f32.mrb[60].mxu1  ;;  %v1423_v59 = vmax.f32 %v7863_v41, %v7853_v27  ;;  %v1384_v15 = vmax.f32 %v1382_v24, %v1383_v29 }
 0x25f   :  { %v7859_v62 = vadd.f32 %v1085_v4, %v7449_v12  ;;  %v1087_v43 = vpop.f32.mrb[61].mxu1  ;;  %2685 = vmatmul.mubr.f32.gmra.mrb[166].mxu1 %v7742_v56  ;;  %v1401_v4 = vrot.slane %v1400_v23, 2  ;;  %v1322_v56 = vrot.slane %v7845_v30, 1  ;;  %v1393_v40 = vmax.f32 %v1391_v20, %v1392_v52 }
 0x260   :  { %v7866_v33 = vadd.f32 %v1087_v43, %v7443_v51  ;;  %2690 = vmatprep.mubr.f32.mxu1 %v7758_v48  ;;  %v1313_v43 = vrot.slane %v7842_v46, 1  ;;  %v1348_v48 = vmax.f32 %v1346_v31, %v1347_v26  ;;  %v1411_v31 = vmax.f32 %v1409_v55, %v1410_v58 }
 0x261   :  { %11243 = vst [vmem:[#allocation71_spill] sm:$0xff] %v7859_v62  ;;  %v1415_v54 = vmax.f32 %v1414_v13, %v7859_v62  ;;  %v1375_v13 = vmax.f32 %v1373_v21, %v1374_v45  ;;  %v1331_v21 = vrot.slane %v1330_v49, 1  ;;  %v1358_v26 = vrot.slane %v1357_v2, 1 }
 0x262   :  { %11245 = vst [vmem:[#allocation73_spill] sm:$0xff] %v7866_v33  ;;  %v1091_v0 = vpop.f32.mrb[62].mxu1  ;;  %v1424_v47 = vmax.f32 %v1423_v59, %v7866_v33  ;;  %v1402_v45 = vmax.f32 %v1400_v23, %v1401_v4  ;;  %v1349_v20 = vrot.slane %v1348_v48, 1  ;;  %v1323_v24 = vmax.f32 %v7845_v30, %v1322_v56 }
 0x263   :  { %v7875_v10 = vadd.f32 %v1091_v0, %v7449_v12  ;;  %v1093_v22 = vpop.f32.mrb[63].mxu1  ;;  %2691 = vmatmul.mubr.f32.gmra.mrb[168].mxu1 %v7770_v44  ;;  %v1366_v44 = vmax.f32 %v1364_v17, %v1365_v50  ;;  %v1314_v17 = vmax.f32 %v7842_v46, %v1313_v43  ;;  %v1376_v50 = vrot.slane %v1375_v13, 1 }
 0x264   :  { %v7880_v6 = vadd.f32 %v1093_v22, %v7443_v51  ;;  %2696 = vmatprep.mubr.f32.mxu1 %v7737_v16  ;;  %v1340_v22 = vrot.slane %v1339_v7, 1  ;;  %v1394_v55 = vrot.slane %v1393_v40, 1  ;;  %v1412_v4 = vrot.slane %v1411_v31, 1 }
 0x265   :  { %11246 = vst [vmem:[#allocation74_spill] sm:$0xff] %v7875_v10  ;;  %v1416_v0 = vmax.f32 %v1415_v54, %v7875_v10  ;;  %v1367_v29 = vrot.slane %v1366_v44, 1  ;;  %v1359_v46 = vmax.f32 %v1357_v2, %v1358_v26  ;;  %v1403_v43 = vrot.slane %v1402_v45, 1 }
 0x266   :  { %11247 = vst [vmem:[#allocation75_spill] sm:$0xff] %v7880_v6  ;;  %v1425_v38 = vmax.f32 %v1424_v47, %v7880_v6  ;;  %v7887_v59 = vpop.f32.mrb[64].mxu1  ;;  %v1341_v58 = vmax.f32 %v1339_v7, %v1340_v22  ;;  %v1737_v56 = vsel %vm1736_vm2, %v1314_v17, %v7835_v53  ;;  %v1350_v30 = vmax.f32 %v1348_v48, %v1349_v20  ;;  %v1582_v17 = vld [vmem:[#allocation2 + $0x30] sm:$0xff]  ;;  %v1591_v20 = vld [vmem:[#allocation2 + $0x78] sm:$0xff] }
 0x267   :  { %v1417_v16 = vrot.slane %v1416_v0, 4  ;;  %v7889_v19 = vpop.f32.mrb[65].mxu1  ;;  %2697 = vmatmul.mubr.f32.gmra.mrb[170].mxu1 %v7746_v63  ;;  %v1385_v63 = vrot.slane %v1384_v15, 1  ;;  %v1368_v7 = vmax.f32 %v1366_v44, %v1367_v29  ;;  %v1404_v44 = vmax.f32 %v1402_v45, %v1403_v43 }
 0x268   :  { %v1426_v54 = vrot.slane %v1425_v38, 4  ;;  %2702 = vmatprep.mubr.f32.mxu1 %v7762_v60  ;;  %v1332_v60 = vmax.f32 %v1330_v49, %v1331_v21  ;;  %v1413_v21 = vmax.f32 %v1411_v31, %v1412_v4  ;;  %v1587_v31 = vld [vmem:[#allocation2 + $0x58] sm:$0xff]  ;;  %v1586_v4 = vld [vmem:[#allocation2 + $0x50] sm:$0xff] }
 0x269   :  { %v1418_v52 = vmax.f32 %v1416_v0, %v1417_v16  ;;  %v1386_v49 = vmax.f32 %v1384_v15, %v1385_v63 }
 0x26a   :  { %v1427_v47 = vmax.f32 %v1425_v38, %v1426_v54  ;;  %v7895_v5 = vpop.f32.mrb[66].mxu1  ;;  %v1377_v38 = vmax.f32 %v1375_v13, %v1376_v50  ;;  %v1395_v54 = vmax.f32 %v1393_v40, %v1394_v55  ;;  %v1739_v13 = vsel %vm1738_vm3, %v1332_v60, %v1737_v56  ;;  %v1578_v40 = vld [vmem:[#allocation2 + $0x10] sm:$0xff]  ;;  %v1599_v56 = vld [vmem:[#allocation2 + $0xb8] sm:$0xff] }
 0x26b   :  { %v1419_v37 = vrot.slane %v1418_v52, 2  ;;  %v7897_v23 = vpop.f32.mrb[67].mxu1  ;;  %2703 = vmatmul.mubr.f32.gmra.mrb[172].mxu1 %v7774_v57  ;;  %v1750_v57 = vsel %vm1736_vm2, %v1323_v24, %v7838_v34  ;;  %v1741_v15 = vsel %vm1740_vm4, %v1350_v30, %v1739_v13  ;;  %v1602_v13 = vld [vmem:[#allocation2 + $0xd0] sm:$0xff] }
 0x26c   :  { %2708 = vmatprep.mubr.f32.mxu1 %v7786_v25  ;;  %v1428_v16 = vrot.slane %v1427_v47, 2  ;;  %v1751_v26 = vsel %vm1738_vm3, %v1341_v58, %v1750_v57  ;;  %v1743_v24 = vsel %vm1742_vm5, %v1368_v7, %v1741_v15  ;;  %v5950_v58 = vpack.c.bf16 %v1591_v20, %v1587_v31 }
 0x26d   :  { %v1420_v0 = vmax.f32 %v1418_v52, %v1419_v37  ;;  %v1752_v48 = vsel %vm1740_vm4, %v1359_v46, %v1751_v26  ;;  %v1745_v29 = vsel %vm1744_vm6, %v1386_v49, %v1743_v24  ;;  %v1590_v46 = vld [vmem:[#allocation2 + $0x70] sm:$0xff]  ;;  %v1607_v26 = vld [vmem:[#allocation2 + $0xf8] sm:$0xff] }
 0x26e   :  { %v7903_v22 = vpop.f32.mrb[68].mxu1  ;;  %v1429_v32 = vmax.f32 %v1427_v47, %v1428_v16  ;;  %v1753_v34 = vsel %vm1742_vm5, %v1377_v38, %v1752_v48  ;;  %v5948_v47 = vpack.c.bf16 %v1582_v17, %v1578_v40  ;;  %v1595_v16 = vld [vmem:[#allocation2 + $0x98] sm:$0xff]  ;;  %v5952_v38 = vpack.c.bf16 %v1590_v46, %v1586_v4  ;;  %v1598_v49 = vld [vmem:[#allocation2 + $0xb0] sm:$0xff] }
 0x26f   :  { %v7907_v2 = vpop.f32.mrb[69].mxu1  ;;  %2709 = vmatmul.mubr.f32.gmra.mrb[174].mxu1 %v7799_v18  ;;  %v1421_v53 = vrot.slane %v1420_v0, 1  ;;  %v1754_v52 = vsel %vm1744_vm6, %v1395_v54, %v1753_v34  ;;  %v5954_v7 = vpack.c.bf16 %v1599_v56, %v1595_v16  ;;  %v1594_v54 = vld [vmem:[#allocation2 + $0x90] sm:$0xff]  ;;  %v1611_v17 = vld [vmem:[#allocation2 + $0x118] sm:$0xff] }
 0x270   :  { %2714 = vmatprep.mubr.f32.mxu1 %v7777_v1  ;;  %v1430_v37 = vrot.slane %v1429_v32, 1  ;;  %v1755_v60 = vsel %vm1746_vm7, %v1413_v21, %v1754_v52  ;;  %v1603_v21 = vld [vmem:[#allocation2 + $0xd8] sm:$0xff]  ;;  %v5956_v48 = vpack.c.bf16 %v1598_v49, %v1594_v54  ;;  %v1606_v40 = vld [vmem:[#allocation2 + $0xf0] sm:$0xff] }
 0x271   :  { %v1422_v63 = vmax.f32 %v1420_v0, %v1421_v53  ;;  %v1615_v34 = vld [vmem:[#allocation2 + $0x138] sm:$0xff]  ;;  %v5960_v31 = vpack.c.bf16 %v1606_v40, %v1602_v13  ;;  %v1614_v52 = vld [vmem:[#allocation2 + $0x130] sm:$0xff] }
 0x272   :  { %v7916_v57 = vpop.f32.mrb[70].mxu1  ;;  %v1431_v50 = vmax.f32 %v1429_v32, %v1430_v37  ;;  %v1747_v32 = vsel %vm1746_vm7, %v1404_v44, %v1745_v29  ;;  %v5958_v44 = vpack.c.bf16 %v1607_v26, %v1603_v21  ;;  %v5962_v20 = vpack.c.bf16 %v1615_v34, %v1611_v17  ;;  %v1619_v24 = vld [vmem:[#allocation2 + $0x158] sm:$0xff]  ;;  %v1618_v4 = vld [vmem:[#allocation2 + $0x150] sm:$0xff] }
 0x273   :  { %v7920_v45 = vpop.f32.mrb[71].mxu1  ;;  %2715 = vmatmul.mubr.f32.gmra.mrb[176].mxu1 %v7789_v28  ;;  %v7932_v43 = vsel %vm1748_vm8, %v1422_v63, %v1747_v32  ;;  %v1622_v46 = vld [vmem:[#allocation2 + $0x170] sm:$0xff]  ;;  %v1627_v16 = vld [vmem:[#allocation2 + $0x198] sm:$0xff] }
 0x274   :  { %2720 = vmatprep.mubr.f32.mxu1 %v7749_v14  ;;  %v7927_v55 = vsel %vm1748_vm8, %v1431_v50, %v1755_v60  ;;  %v1610_v50 = vld [vmem:[#allocation2 + $0x110] sm:$0xff]  ;;  %v1623_v60 = vld [vmem:[#allocation2 + $0x178] sm:$0xff]  ;;  %v5968_v54 = vpack.c.bf16 %v1622_v46, %v1618_v4 }
 0x275   :  { %1839 = vmatprep.mubr.f32.mxu0 %v7927_v55  ;;  %v5964_v32 = vpack.c.bf16 %v1614_v52, %v1610_v50  ;;  %v1631_v56 = vld [vmem:[#allocation2 + $0x1b8] sm:$0xff]  ;;  %v1626_v21 = vld [vmem:[#allocation2 + $0x190] sm:$0xff] }
 0x276   :  { %v7934_v30 = vpop.f32.mrb[72].mxu1  ;;  %1840 = vmatmul.mubr.f32.vlgmr.msra.gmra.mrb[64].mxu0 %v7932_v43  ;;  %v5970_v49 = vpack.c.bf16 %v1631_v56, %v1627_v16  ;;  %v1630_v26 = vld [vmem:[#allocation2 + $0x1b0] sm:$0xff]  ;;  %v1643_v50 = vld [vmem:[#allocation2 + $0x218] sm:$0xff]  ;;  %v7983_v56 = vadd.f32 %v7887_v59, %v7449_v12 }
 0x277   :  { %v7937_v0 = vpop.f32.mrb[73].mxu1  ;;  %2721 = vmatmul.mubr.f32.gmra.mrb[178].mxu1 %v7765_v35  ;;  %5949 = vmatpush1.bf16.msra.mxu0 %v5948_v47  ;;  %v5972_v17 = vpack.c.bf16 %v1630_v26, %v1626_v21  ;;  %v1647_v52 = vld [vmem:[#allocation2 + $0x238] sm:$0xff]  ;;  %v1642_v46 = vld [vmem:[#allocation2 + $0x210] sm:$0xff] }
 0x278   :  { %2726 = vmatprep.mubr.f32.mxu1 %v7780_v36  ;;  %5951 = vmatprep.subr.bf16.mxu0 %v5950_v58  ;;  %v5966_v58 = vpack.c.bf16 %v1623_v60, %v1619_v24  ;;  %v7973_v24 = vadd.f32 %v7889_v19, %v7443_v51  ;;  %v5978_v4 = vpack.c.bf16 %v1647_v52, %v1643_v50  ;;  %v1646_v16 = vld [vmem:[#allocation2 + $0x230] sm:$0xff]  ;;  %v1651_v19 = vld [vmem:[#allocation2 + $0x258] sm:$0xff] }
 0x279   :  { %11249 = vst [vmem:[#allocation77_spill] sm:$0xff] %v7983_v56  ;;  %v1650_v59 = vld [vmem:[#allocation2 + $0x250] sm:$0xff] }
 0x27a   :  { %v7941_v53 = vpop.f32.mrb[74].mxu1  ;;  %11248 = vst [vmem:[#allocation76_spill] sm:$0xff] %v7973_v24 }
 0x27b   :  { %v7943_v37 = vpop.f32.mrb[75].mxu1  ;;  %2727 = vmatmul.mubr.f32.gmra.mrb[180].mxu1 %v7792_v61  ;;  %5953 = vmatpush1.bf16.msra.mxu0 %v5952_v38 }
 0x27c   :  { %2732 = vmatprep.mubr.f32.mxu1 %v7811_v42  ;;  %5955 = vmatprep.subr.bf16.mxu0 %v5954_v7 }
 0x27e   :  { %v7947_v63 = vpop.f32.mrb[76].mxu1 }
 0x27f   :  { %v7949_v15 = vpop.f32.mrb[77].mxu1  ;;  %2733 = vmatmul.mubr.f32.gmra.mrb[182].mxu1 %v7808_v39  ;;  %5957 = vmatpush1.bf16.msra.mxu0 %v5956_v48  ;;  %v1635_v48 = vld [vmem:[#allocation2 + $0x1d8] sm:$0xff] }
 0x280   :  { %2738 = vmatprep.mubr.f32.mxu1 %v7863_v41  ;;  %5959 = vmatprep.subr.bf16.mxu0 %v5958_v44  ;;  %v1639_v44 = vld [vmem:[#allocation2 + $0x1f8] sm:$0xff] }
 0x281   :  { %v5974_v34 = vpack.c.bf16 %v1639_v44, %v1635_v48  ;;  %v5980_v48 = vpack.c.bf16 %v1646_v16, %v1642_v46  ;;  %v1662_v46 = vld [vmem:[#allocation2 + $0x2b0] sm:$0xff]  ;;  %v8011_v16 = vadd.f32 %v7903_v22, %v7449_v12 }
 0x282   :  { %v7953_v29 = vpop.f32.mrb[78].mxu1  ;;  %v1666_v22 = vld [vmem:[#allocation2 + $0x2d0] sm:$0xff] }
 0x283   :  { %v7955_v47 = vpop.f32.mrb[79].mxu1  ;;  %2739 = vmatmul.mubr.f32.gmra.mrb[184].mxu1 %v7856_v9  ;;  %5961 = vmatpush1.bf16.msra.mxu0 %v5960_v31  ;;  %v1634_v31 = vld [vmem:[#allocation2 + $0x1d0] sm:$0xff]  ;;  %11253 = vst [vmem:[#allocation81_spill] sm:$0xff] %v8011_v16 }
 0x284   :  { %2744 = vmatprep.mubr.f32.mxu1 %v7853_v27  ;;  %5963 = vmatprep.subr.bf16.mxu0 %v5962_v20  ;;  %v1638_v20 = vld [vmem:[#allocation2 + $0x1f0] sm:$0xff]  ;;  %v8057_v27 = vadd.f32 %v7949_v15, %v7443_v51  ;;  %v1699_v15 = vld [vmem:[#allocation2 + $0x3d8] sm:$0xff]  ;;  %v8071_v41 = vadd.f32 %v7955_v47, %v7443_v51  ;;  %v1930_v47 = vld [vmem:[#allocation5 + $0x8] sm:$0xff] }
 0x286   :  { %v7959_v38 = vpop.f32.mrb[80].mxu1  ;;  %11260 = vst [vmem:[#allocation88_spill] sm:$0xff] %v8057_v27  ;;  %11262 = vst [vmem:[#allocation90_spill] sm:$0xff] %v8071_v41 }
 0x287   :  { %v7961_v7 = vpop.f32.mrb[81].mxu1  ;;  %2745 = vmatmul.mubr.f32.gmra.mrb[186].mxu1 %v7850_v3  ;;  %5965 = vmatpush1.bf16.msra.mxu0 %v5964_v32 }
 0x288   :  { %2750 = vmatprep.mubr.f32.mxu1 %v7866_v33  ;;  %5967 = vmatprep.subr.bf16.mxu0 %v5966_v58  ;;  %v5976_v58 = vpack.c.bf16 %v1638_v20, %v1634_v31  ;;  %v1663_v31 = vld [vmem:[#allocation2 + $0x2b8] sm:$0xff]  ;;  %v8001_v20 = vadd.f32 %v7907_v2, %v7443_v51  ;;  %v8043_v33 = vadd.f32 %v7943_v37, %v7443_v51 }
 0x289   :  { %v1667_v2 = vld [vmem:[#allocation2 + $0x2d8] sm:$0xff]  ;;  %v8085_v42 = vadd.f32 %v7961_v7, %v7443_v51 }
 0x28a   :  { %v7965_v13 = vpop.f32.mrb[82].mxu1  ;;  %11252 = vst [vmem:[#allocation80_spill] sm:$0xff] %v8001_v20  ;;  %11258 = vst [vmem:[#allocation86_spill] sm:$0xff] %v8043_v33  ;;  %v1691_v37 = vld [vmem:[#allocation2 + $0x398] sm:$0xff] }
 0x28b   :  { %v7967_v40 = vpop.f32.mrb[83].mxu1  ;;  %2751 = vmatmul.mubr.f32.gmra.mrb[188].mxu1 %v7859_v62  ;;  %5969 = vmatpush1.bf16.msra.mxu0 %v5968_v54  ;;  %v1655_v54 = vld [vmem:[#allocation2 + $0x278] sm:$0xff]  ;;  %11264 = vst [vmem:[#allocation92_spill] sm:$0xff] %v8085_v42 }
 0x28c   :  { %2756 = vmatprep.mubr.f32.mxu1 %v7880_v6  ;;  %5971 = vmatprep.subr.bf16.mxu0 %v5970_v49  ;;  %v7987_v49 = vadd.f32 %v7897_v23, %v7443_v51  ;;  %v5982_v44 = vpack.c.bf16 %v1655_v54, %v1651_v19  ;;  %v1659_v23 = vld [vmem:[#allocation2 + $0x298] sm:$0xff]  ;;  %v8015_v54 = vadd.f32 %v7920_v45, %v7443_v51 }
 0x28d   :  { %v1671_v19 = vld [vmem:[#allocation2 + $0x2f8] sm:$0xff]  ;;  %v8029_v6 = vadd.f32 %v7937_v0, %v7443_v51  ;;  %v8099_v7 = vadd.f32 %v7967_v40, %v7443_v51 }
 0x28e   :  { %v7975_v60 = vpop.f32.mrb[84].mxu1  ;;  %11250 = vst [vmem:[#allocation78_spill] sm:$0xff] %v7987_v49  ;;  %11254 = vst [vmem:[#allocation82_spill] sm:$0xff] %v8015_v54  ;;  %v1675_v45 = vld [vmem:[#allocation2 + $0x318] sm:$0xff]  ;;  %v1441_v40 = vmax.f32 %v7973_v24, %v7987_v49 }
 0x28f   :  { %v7977_v32 = vpop.f32.mrb[85].mxu1  ;;  %2757 = vmatmul.mubr.f32.gmra.mrb[190].mxu1 %v7875_v10  ;;  %5973 = vmatpush1.bf16.msra.mxu0 %v5972_v17  ;;  %v1654_v17 = vld [vmem:[#allocation2 + $0x270] sm:$0xff]  ;;  %11256 = vst [vmem:[#allocation84_spill] sm:$0xff] %v8029_v6  ;;  %v1683_v0 = vld [vmem:[#allocation2 + $0x358] sm:$0xff]  ;;  %11266 = vst [vmem:[#allocation94_spill] sm:$0xff] %v8099_v7 }
 0x290   :  { %2762 = vmatprep.mubr.f32.mxu1 %v7973_v24  ;;  %5975 = vmatprep.subr.bf16.mxu0 %v5974_v34  ;;  %v7997_v34 = vadd.f32 %v7895_v5, %v7449_v12  ;;  %v1658_v5 = vld [vmem:[#allocation2 + $0x290] sm:$0xff] }
 0x292   :  { %v7989_v21 = vpop.f32.mrb[86].mxu1  ;;  %11251 = vst [vmem:[#allocation79_spill] sm:$0xff] %v7997_v34 }
 0x293   :  { %v7991_v26 = vpop.f32.mrb[87].mxu1  ;;  %2763 = vmatmul.mubr.f32.gmra.mrb[192].mxu1 %v7983_v56  ;;  %5977 = vmatpush1.bf16.msra.mxu0 %v5976_v58  ;;  %v5984_v58 = vpack.c.bf16 %v1654_v17, %v1650_v59  ;;  %v5990_v59 = vpack.c.bf16 %v1671_v19, %v1667_v2  ;;  %v1670_v17 = vld [vmem:[#allocation2 + $0x2f0] sm:$0xff]  ;;  %v8039_v2 = vadd.f32 %v7934_v30, %v7449_v12  ;;  %v1687_v19 = vld [vmem:[#allocation2 + $0x378] sm:$0xff] }
 0x294   :  { %2768 = vmatprep.mubr.f32.mxu1 %v7987_v49  ;;  %5979 = vmatprep.subr.bf16.mxu0 %v5978_v4  ;;  %v5986_v4 = vpack.c.bf16 %v1663_v31, %v1659_v23  ;;  %v8025_v23 = vadd.f32 %v7916_v57, %v7449_v12  ;;  %v1679_v31 = vld [vmem:[#allocation2 + $0x338] sm:$0xff]  ;;  %v1674_v57 = vld [vmem:[#allocation2 + $0x310] sm:$0xff] }
 0x295   :  { %11257 = vst [vmem:[#allocation85_spill] sm:$0xff] %v8039_v2  ;;  %v1682_v30 = vld [vmem:[#allocation2 + $0x350] sm:$0xff] }
 0x296   :  { %v8003_v50 = vpop.f32.mrb[88].mxu1  ;;  %11255 = vst [vmem:[#allocation83_spill] sm:$0xff] %v8025_v23 }
 0x297   :  { %v8005_v52 = vpop.f32.mrb[89].mxu1  ;;  %2769 = vmatmul.mubr.f32.gmra.mrb[194].mxu1 %v7997_v34  ;;  %5981 = vmatpush1.bf16.msra.mxu0 %v5980_v48 }
 0x298   :  { %2774 = vmatprep.mubr.f32.mxu1 %v8001_v20  ;;  %5983 = vmatprep.subr.bf16.mxu0 %v5982_v44  ;;  %v5988_v44 = vpack.c.bf16 %v1662_v46, %v1658_v5  ;;  %v5994_v5 = vpack.c.bf16 %v1679_v31, %v1675_v45  ;;  %v1678_v46 = vld [vmem:[#allocation2 + $0x330] sm:$0xff]  ;;  %v8053_v45 = vadd.f32 %v7941_v53, %v7449_v12  ;;  %v1695_v31 = vld [vmem:[#allocation2 + $0x3b8] sm:$0xff] }
 0x299   :  { %v1690_v53 = vld [vmem:[#allocation2 + $0x390] sm:$0xff] }
 0x29a   :  { %v8017_v10 = vpop.f32.mrb[90].mxu1  ;;  %11259 = vst [vmem:[#allocation87_spill] sm:$0xff] %v8053_v45 }
 0x29b   :  { %v8019_v48 = vpop.f32.mrb[91].mxu1  ;;  %2775 = vmatmul.mubr.f32.gmra.mrb[196].mxu1 %v8011_v16  ;;  %5985 = vmatpush1.bf16.msra.mxu0 %v5984_v58 }
 0x29c   :  { %2780 = vmatprep.mubr.f32.mxu1 %v8015_v54  ;;  %5987 = vmatprep.subr.bf16.mxu0 %v5986_v4  ;;  %v5992_v4 = vpack.c.bf16 %v1670_v17, %v1666_v22  ;;  %v5998_v22 = vpack.c.bf16 %v1687_v19, %v1683_v0  ;;  %v1686_v17 = vld [vmem:[#allocation2 + $0x370] sm:$0xff]  ;;  %v8067_v0 = vadd.f32 %v7947_v63, %v7449_v12  ;;  %v1703_v19 = vld [vmem:[#allocation2 + $0x3f8] sm:$0xff] }
 0x29d   :  { %v1698_v63 = vld [vmem:[#allocation2 + $0x3d0] sm:$0xff] }
 0x29e   :  { %v8031_v62 = vpop.f32.mrb[92].mxu1  ;;  %11261 = vst [vmem:[#allocation89_spill] sm:$0xff] %v8067_v0 }
 0x29f   :  { %v8033_v58 = vpop.f32.mrb[93].mxu1  ;;  %2781 = vmatmul.mubr.f32.gmra.mrb[198].mxu1 %v8025_v23  ;;  %5989 = vmatpush1.bf16.msra.mxu0 %v5988_v44 }
 0x2a0   :  { %2786 = vmatprep.mubr.f32.mxu1 %v8029_v6  ;;  %5991 = vmatprep.subr.bf16.mxu0 %v5990_v59  ;;  %v5996_v59 = vpack.c.bf16 %v1678_v46, %v1674_v57  ;;  %v6002_v57 = vpack.c.bf16 %v1695_v31, %v1691_v37  ;;  %v1694_v46 = vld [vmem:[#allocation2 + $0x3b0] sm:$0xff]  ;;  %v8081_v37 = vadd.f32 %v7953_v29, %v7449_v12  ;;  %v1934_v31 = vld [vmem:[#allocation5 + $0x28] sm:$0xff] }
 0x2a1   :  { %v8095_v29 = vadd.f32 %v7959_v38, %v7449_v12  ;;  %v8111_v38 = vadd.f32 %v7965_v13, %v7449_v12 }
 0x2a2   :  { %v8045_v3 = vpop.f32.mrb[94].mxu1  ;;  %11263 = vst [vmem:[#allocation91_spill] sm:$0xff] %v8081_v37 }
 0x2a3   :  { %v8047_v44 = vpop.f32.mrb[95].mxu1  ;;  %2787 = vmatmul.mubr.f32.gmra.mrb[200].mxu1 %v8039_v2  ;;  %5993 = vmatpush1.bf16.msra.mxu0 %v5992_v4  ;;  %11265 = vst [vmem:[#allocation93_spill] sm:$0xff] %v8095_v29  ;;  %11267 = vst [vmem:[#allocation95_spill] sm:$0xff] %v8111_v38 }
 0x2a4   :  { %2792 = vmatprep.mubr.f32.mxu1 %v8043_v33  ;;  %5995 = vmatprep.subr.bf16.mxu0 %v5994_v5  ;;  %v6000_v5 = vpack.c.bf16 %v1686_v17, %v1682_v30  ;;  %v6006_v30 = vpack.c.bf16 %v1703_v19, %v1699_v15  ;;  %v1702_v17 = vld [vmem:[#allocation2 + $0x3f0] sm:$0xff]  ;;  %v1432_v19 = vmax.f32 %v7983_v56, %v7997_v34 }
 0x2a6   :  { %v8059_v9 = vpop.f32.mrb[96].mxu1 }
 0x2a7   :  { %v8061_v4 = vpop.f32.mrb[97].mxu1  ;;  %2793 = vmatmul.mubr.f32.gmra.mrb[202].mxu1 %v8053_v45  ;;  %5997 = vmatpush1.bf16.msra.mxu0 %v5996_v59 }
 0x2a8   :  { %2798 = vmatprep.mubr.f32.mxu1 %v8057_v27  ;;  %5999 = vmatprep.subr.bf16.mxu0 %v5998_v22  ;;  %v6004_v22 = vpack.c.bf16 %v1694_v46, %v1690_v53  ;;  %v6010_v53 = vpack.c.bf16 %v1934_v31, %v1930_v47  ;;  %v1442_v47 = vmax.f32 %v1441_v40, %v8001_v20 }
 0x2a9   :  { %v8130_v31 = vadd.f32 %v7975_v60, %v7449_v12  ;;  %v1450_v40 = vmax.f32 %v8039_v2, %v8053_v45  ;;  %v8147_v60 = vadd.f32 %v7989_v21, %v7449_v12 }
 0x2aa   :  { %v8073_v39 = vpop.f32.mrb[98].mxu1 }
 0x2ab   :  { %v8075_v59 = vpop.f32.mrb[99].mxu1  ;;  %2799 = vmatmul.mubr.f32.gmra.mrb[204].mxu1 %v8067_v0  ;;  %6001 = vmatpush1.bf16.msra.mxu0 %v6000_v5  ;;  %11269 = vst [vmem:[#allocation97_spill] sm:$0xff] %v8130_v31  ;;  %11271 = vst [vmem:[#allocation99_spill] sm:$0xff] %v8147_v60 }
 0x2ac   :  { %2804 = vmatprep.mubr.f32.mxu1 %v8071_v41  ;;  %6003 = vmatprep.subr.bf16.mxu0 %v6002_v57  ;;  %v6008_v57 = vpack.c.bf16 %v1702_v17, %v1698_v63  ;;  %v1433_v63 = vmax.f32 %v1432_v19, %v8011_v16  ;;  %v1459_v16 = vmax.f32 %v8029_v6, %v8043_v33 }
 0x2ad   :  { %v8172_v33 = vadd.f32 %v8019_v48, %v7443_v51 }
 0x2ae   :  { %v8087_v61 = vpop.f32.mrb[100].mxu1  ;;  %v1434_v13 = vmax.f32 %v1433_v63, %v8025_v23  ;;  %v8152_v23 = vadd.f32 %v8005_v52, %v7443_v51  ;;  %v1468_v52 = vmax.f32 %v8095_v29, %v8111_v38 }
 0x2af   :  { %v8089_v5 = vpop.f32.mrb[101].mxu1  ;;  %2805 = vmatmul.mubr.f32.gmra.mrb[206].mxu1 %v8081_v37  ;;  %6005 = vmatpush1.bf16.msra.mxu0 %v6004_v22  ;;  %v8117_v22 = vadd.f32 %v7977_v32, %v7443_v51  ;;  %v1443_v32 = vmax.f32 %v1442_v47, %v8015_v54  ;;  %11274 = vst [vmem:[#allocation102_spill] sm:$0xff] %v8172_v33 }
 0x2b0   :  { %2810 = vmatprep.mubr.f32.mxu1 %v8085_v42  ;;  %6007 = vmatprep.subr.bf16.mxu0 %v6006_v30  ;;  %v1435_v63 = vrot.slane %v1434_v13, 4  ;;  %11272 = vst [vmem:[#allocation100_spill] sm:$0xff] %v8152_v23 }
 0x2b1   :  { %11268 = vst [vmem:[#allocation96_spill] sm:$0xff] %v8117_v22  ;;  %v1444_v47 = vrot.slane %v1443_v32, 4 }
 0x2b2   :  { %v8101_v46 = vpop.f32.mrb[102].mxu1  ;;  %v1436_v21 = vmax.f32 %v1434_v13, %v1435_v63  ;;  %v1469_v13 = vmax.f32 %v1468_v52, %v8130_v31 }
 0x2b3   :  { %v8103_v15 = vpop.f32.mrb[103].mxu1  ;;  %2811 = vmatmul.mubr.f32.gmra.mrb[208].mxu1 %v8095_v29  ;;  %6009 = vmatpush1.bf16.msra.mxu0 %v6008_v57  ;;  %v8135_v57 = vadd.f32 %v7991_v26, %v7443_v51  ;;  %v1451_v26 = vmax.f32 %v1450_v40, %v8067_v0  ;;  %v1460_v40 = vmax.f32 %v1459_v16, %v8057_v27 }
 0x2b4   :  { %2816 = vmatprep.mubr.f32.mxu1 %v8099_v7  ;;  %6011 = vmatprep.subr.bf16.mxu0 %v6010_v53  ;;  %v8168_v0 = vadd.f32 %v8003_v50, %v7449_v12  ;;  %v1445_v20 = vmax.f32 %v1443_v32, %v1444_v47  ;;  %v1477_v50 = vmax.f32 %v8085_v42, %v8099_v7  ;;  %v1437_v32 = vrot.slane %v1436_v21, 2 }
 0x2b5   :  { %11270 = vst [vmem:[#allocation98_spill] sm:$0xff] %v8135_v57  ;;  %v1452_v2 = vmax.f32 %v1451_v26, %v8081_v37  ;;  %v1461_v26 = vmax.f32 %v1460_v40, %v8071_v41  ;;  %v1470_v48 = vmax.f32 %v1469_v13, %v8147_v60  ;;  %v8187_v47 = vadd.f32 %v8017_v10, %v7449_v12 }
 0x2b6   :  { %v8119_v30 = vpop.f32.mrb[104].mxu1  ;;  %11273 = vst [vmem:[#allocation101_spill] sm:$0xff] %v8168_v0  ;;  %v1446_v40 = vrot.slane %v1445_v20, 2  ;;  %v1478_v52 = vmax.f32 %v1477_v50, %v8117_v22  ;;  %v8201_v10 = vmax.f32 %v1436_v21, %v1437_v32  ;;  %v8205_v50 = vadd.f32 %v8031_v62, %v7449_v12 }
 0x2b7   :  { %v8122_v17 = vpop.f32.mrb[105].mxu1  ;;  %2817 = vmatmul.mubr.f32.gmra.mrb[210].mxu1 %v8111_v38  ;;  %v1453_v16 = vrot.slane %v1452_v2, 4  ;;  %11275 = vst [vmem:[#allocation103_spill] sm:$0xff] %v8187_v47  ;;  %v1462_v29 = vrot.slane %v1461_v26, 4  ;;  %v8221_v21 = vadd.f32 %v8075_v59, %v7443_v51 }
 0x2b8   :  { %2822 = vmatprep.mubr.f32.mxu1 %v8117_v22  ;;  %v8198_v13 = vmax.f32 %v1478_v52, %v8135_v57  ;;  %11277 = vst [vmem:[#allocation105_spill] sm:$0xff] %v8205_v50  ;;  %v8211_v22 = vmax.f32 %v1445_v20, %v1446_v40  ;;  %v8229_v20 = vadd.f32 %v8059_v9, %v7449_v12 }
 0x2b9   :  { %v8195_v7 = vmax.f32 %v1452_v2, %v1453_v16  ;;  %v1495_v2 = vmax.f32 %v8152_v23, %v8172_v33  ;;  %v8217_v16 = vadd.f32 %v8047_v44, %v7443_v51  ;;  %11280 = vst [vmem:[#allocation108_spill] sm:$0xff] %v8221_v21  ;;  %v8223_v62 = vmax.f32 %v1461_v26, %v1462_v29 }
 0x2ba   :  { %v8137_v53 = vpop.f32.mrb[106].mxu1  ;;  %11281 = vst [vmem:[#allocation109_spill] sm:$0xff] %v8229_v20  ;;  %v8233_v40 = vadd.f32 %v8087_v61, %v7449_v12  ;;  %v1480_v52 = vrot.slane %v8198_v13, 4  ;;  %v8241_v26 = vadd.f32 %v8061_v4, %v7443_v51  ;;  %v8258_v4 = vadd.f32 %v8089_v5, %v7443_v51 }
 0x2bb   :  { %v8139_v19 = vpop.f32.mrb[107].mxu1  ;;  %2823 = vmatmul.mubr.f32.gmra.mrb[212].mxu1 %v8130_v31  ;;  %v8192_v31 = vadd.f32 %v8033_v58, %v7443_v51  ;;  %v8209_v58 = vadd.f32 %v8073_v39, %v7449_v12  ;;  %11279 = vst [vmem:[#allocation107_spill] sm:$0xff] %v8217_v16  ;;  %v1486_v39 = vmax.f32 %v8168_v0, %v8187_v47  ;;  %v1455_v59 = vrot.slane %v8195_v7, 2 }
 0x2bc   :  { %2828 = vmatprep.mubr.f32.mxu1 %v8135_v57  ;;  %11282 = vst [vmem:[#allocation110_spill] sm:$0xff] %v8233_v40  ;;  %11283 = vst [vmem:[#allocation111_spill] sm:$0xff] %v8241_v26 }
 0x2bd   :  { %11276 = vst [vmem:[#allocation104_spill] sm:$0xff] %v8192_v31  ;;  %11278 = vst [vmem:[#allocation106_spill] sm:$0xff] %v8209_v58  ;;  %v1496_v29 = vmax.f32 %v1495_v2, %v8192_v31  ;;  %v1487_v61 = vmax.f32 %v1486_v39, %v8205_v50  ;;  %v1513_v2 = vmax.f32 %v8241_v26, %v8221_v21 }
 0x2be   :  { %v8154_v54 = vpop.f32.mrb[108].mxu1  ;;  %11285 = vst [vmem:[#allocation113_spill] sm:$0xff] %v8258_v4  ;;  %v8267_v39 = vadd.f32 %v8101_v46, %v7449_v12 }
 0x2bf   :  { %v8158_v45 = vpop.f32.mrb[109].mxu1  ;;  %2829 = vmatmul.mubr.f32.gmra.mrb[214].mxu1 %v8147_v60  ;;  %v1471_v60 = vrot.slane %v1470_v48, 4 }
 0x2c0   :  { %2834 = vmatprep.mubr.f32.mxu1 %v8152_v23  ;;  %11287 = vst [vmem:[#allocation115_spill] sm:$0xff] %v8267_v39  ;;  %v8287_v46 = vadd.f32 %v8158_v45, %v7443_v51 }
 0x2c1   :  { %v8244_v9 = vmax.f32 %v1470_v48, %v1471_v60  ;;  %v8262_v60 = vadd.f32 %v8139_v19, %v7443_v51  ;;  %v8279_v19 = vadd.f32 %v8103_v15, %v7443_v51  ;;  %v8299_v15 = vadd.f32 %v8154_v54, %v7449_v12 }
 0x2c2   :  { %v8174_v6 = vpop.f32.mrb[110].mxu1  ;;  %11292 = vst [vmem:[#allocation120_spill] sm:$0xff] %v8287_v46 }
 0x2c3   :  { %v8178_v63 = vpop.f32.mrb[111].mxu1  ;;  %2835 = vmatmul.mubr.f32.gmra.mrb[216].mxu1 %v8168_v0  ;;  %v1497_v0 = vmax.f32 %v1496_v29, %v8217_v16  ;;  %11286 = vst [vmem:[#allocation114_spill] sm:$0xff] %v8262_v60  ;;  %v8271_v29 = vadd.f32 %v8137_v53, %v7449_v12  ;;  %11290 = vst [vmem:[#allocation118_spill] sm:$0xff] %v8279_v19 }
 0x2c4   :  { %2840 = vmatprep.mubr.f32.mxu1 %v8172_v33  ;;  %v1504_v33 = vmax.f32 %v8229_v20, %v8209_v58  ;;  %11295 = vst [vmem:[#allocation123_spill] sm:$0xff] %v8299_v15 }
 0x2c5   :  { %11288 = vst [vmem:[#allocation116_spill] sm:$0xff] %v8271_v29 }
 0x2c6   :  { %v1241_v38 = vpop.f32.mrb[112].mxu1 }
 0x2c7   :  { %v1243_v37 = vpop.f32.mrb[113].mxu1  ;;  %2841 = vmatmul.mubr.f32.gmra.mrb[218].mxu1 %v8187_v47  ;;  %v8249_v47 = vadd.f32 %v8045_v3, %v7449_v12  ;;  %v1505_v3 = vmax.f32 %v1504_v33, %v8233_v40  ;;  %v8283_v33 = vadd.f32 %v8122_v17, %v7443_v51 }
 0x2c8   :  { %2846 = vmatprep.mubr.f32.mxu1 %v8192_v31  ;;  %v8302_v17 = vadd.f32 %v1243_v37, %v7443_v51  ;;  %v1514_v37 = vmax.f32 %v1513_v2, %v8258_v4  ;;  %v8324_v31 = vadd.f32 %v8174_v6, %v7449_v12 }
 0x2c9   :  { %11284 = vst [vmem:[#allocation112_spill] sm:$0xff] %v8249_v47  ;;  %11291 = vst [vmem:[#allocation119_spill] sm:$0xff] %v8283_v33  ;;  %v1531_v45 = vmax.f32 %v8283_v33, %v8262_v60  ;;  %v1488_v6 = vmax.f32 %v1487_v61, %v8249_v47  ;;  %v1506_v27 = vmax.f32 %v1505_v3, %v8267_v39  ;;  %v1464_v3 = vrot.slane %v8223_v62, 2 }
 0x2ca   :  { %v1247_v32 = vpop.f32.mrb[114].mxu1  ;;  %11296 = vst [vmem:[#allocation124_spill] sm:$0xff] %v8302_v17  ;;  %11301 = vst [vmem:[#allocation129_spill] sm:$0xff] %v8324_v31  ;;  %v1515_v42 = vmax.f32 %v1514_v37, %v8279_v19 }
 0x2cb   :  { %v1249_v44 = vpop.f32.mrb[115].mxu1  ;;  %2847 = vmatmul.mubr.f32.gmra.mrb[220].mxu1 %v8205_v50  ;;  %v8290_v53 = vadd.f32 %v1247_v32, %v7449_v12  ;;  %v8311_v32 = vadd.f32 %v8178_v63, %v7443_v51  ;;  %v1489_v56 = vrot.slane %v1488_v6, 4 }
 0x2cc   :  { %2852 = vmatprep.mubr.f32.mxu1 %v8217_v16  ;;  %v8274_v16 = vadd.f32 %v1249_v44, %v7443_v51  ;;  %v8295_v44 = vadd.f32 %v8119_v30, %v7449_v12  ;;  %v8314_v30 = vadd.f32 %v1241_v38, %v7449_v12  ;;  %v1532_v38 = vmax.f32 %v1531_v45, %v8287_v46 }
 0x2cd   :  { %11293 = vst [vmem:[#allocation121_spill] sm:$0xff] %v8290_v53  ;;  %11298 = vst [vmem:[#allocation126_spill] sm:$0xff] %v8311_v32  ;;  %v1498_v45 = vrot.slane %v1497_v0, 4 }
 0x2ce   :  { %v1253_v48 = vpop.f32.mrb[116].mxu1  ;;  %11289 = vst [vmem:[#allocation117_spill] sm:$0xff] %v8274_v16  ;;  %11294 = vst [vmem:[#allocation122_spill] sm:$0xff] %v8295_v44  ;;  %v1549_v63 = vmax.f32 %v8302_v17, %v8274_v16  ;;  %v1533_v34 = vmax.f32 %v1532_v38, %v8311_v32 }
 0x2cf   :  { %v1255_v5 = vpop.f32.mrb[117].mxu1  ;;  %2853 = vmatmul.mubr.f32.gmra.mrb[222].mxu1 %v8249_v47  ;;  %11299 = vst [vmem:[#allocation127_spill] sm:$0xff] %v8314_v30  ;;  %v1499_v24 = vmax.f32 %v1497_v0, %v1498_v45 }
 0x2d0   :  { %2858 = vmatprep.mubr.f32.mxu1 %v8241_v26  ;;  %v8305_v50 = vadd.f32 %v1255_v5, %v7443_v51  ;;  %v8317_v26 = vadd.f32 %v1253_v48, %v7449_v12  ;;  %v1522_v5 = vmax.f32 %v8295_v44, %v8271_v29  ;;  %v1540_v48 = vmax.f32 %v8314_v30, %v8290_v53 }
 0x2d1   :  { %v1534_v36 = vrot.slane %v1533_v34, 4  ;;  %v1500_v14 = vrot.slane %v1499_v24, 2 }
 0x2d2   :  { %11297 = vst [vmem:[#allocation125_spill] sm:$0xff] %v8305_v50  ;;  %11300 = vst [vmem:[#allocation128_spill] sm:$0xff] %v8317_v26  ;;  %v1259_v54 = vpop.f32.mrb[118].mxu1  ;;  %v1523_v41 = vmax.f32 %v1522_v5, %v8299_v15  ;;  %v8352_v5 = vmax.f32 %v8195_v7, %v1455_v59 }
 0x2d3   :  { %v1261_v23 = vpop.f32.mrb[119].mxu1  ;;  %2859 = vmatmul.mubr.f32.gmra.mrb[224].mxu1 %v8229_v20  ;;  %v8333_v2 = vadd.f32 %v1259_v54, %v7449_v12  ;;  %v1550_v20 = vmax.f32 %v1549_v63, %v8305_v50  ;;  %v1541_v54 = vmax.f32 %v1540_v48, %v8317_v26  ;;  %v1481_v63 = vmax.f32 %v8198_v13, %v1480_v52 }
 0x2d4   :  { %v8336_v57 = vadd.f32 %v1261_v23, %v7443_v51  ;;  %2864 = vmatprep.mubr.f32.mxu1 %v8221_v21  ;;  %v1439_v23 = vrot.slane %v8201_v10, 1  ;;  %v1448_v21 = vrot.slane %v8211_v22, 1  ;;  %v1524_v61 = vmax.f32 %v1523_v41, %v8324_v31 }
 0x2d5   :  { %11302 = vst [vmem:[#allocation130_spill] sm:$0xff] %v8333_v2  ;;  %v1542_v38 = vmax.f32 %v1541_v54, %v8333_v2  ;;  %v1473_v48 = vrot.slane %v8244_v9, 2  ;;  %v1516_v41 = vrot.slane %v1515_v42, 4  ;;  %v1482_v0 = vrot.slane %v1481_v63, 2 }
 0x2d6   :  { %11303 = vst [vmem:[#allocation131_spill] sm:$0xff] %v8336_v57  ;;  %v1265_v49 = vpop.f32.mrb[120].mxu1  ;;  %v1551_v37 = vmax.f32 %v1550_v20, %v8336_v57  ;;  %v1507_v20 = vrot.slane %v1506_v27, 4  ;;  %v8363_v7 = vmax.f32 %v8211_v22, %v1448_v21  ;;  %v1525_v59 = vrot.slane %v1524_v61, 4 }
 0x2d7   :  { %v1267_v47 = vpop.f32.mrb[121].mxu1  ;;  %2865 = vmatmul.mubr.f32.gmra.mrb[226].mxu1 %v8209_v58  ;;  %v8360_v58 = vmax.f32 %v8201_v10, %v1439_v23  ;;  %v1543_v45 = vrot.slane %v1542_v38, 4  ;;  %v8372_v10 = vmax.f32 %v8244_v9, %v1473_v48  ;;  %v1490_v23 = vmax.f32 %v1488_v6, %v1489_v56  ;;  %v4273_v6 = vld [vmem:[#allocation7 + $0x200] sm:$0xff] }
 0x2d8   :  { %2870 = vmatprep.mubr.f32.mxu1 %v8258_v4  ;;  %v1552_v13 = vrot.slane %v1551_v37, 4  ;;  %v8368_v4 = vmax.f32 %v8223_v62, %v1464_v3  ;;  %v1517_v22 = vmax.f32 %v1515_v42, %v1516_v41  ;;  %v1508_v28 = vmax.f32 %v1506_v27, %v1507_v20  ;;  %v4274_v42 = vld [vmem:[#allocation7 + $0x208] sm:$0xff] }
 0x2d9   :  { %v1526_v3 = vmax.f32 %v1524_v61, %v1525_v59  ;;  %v8381_v18 = vadd.f32 %v1265_v49, %v7449_v12  ;;  %v1544_v27 = vmax.f32 %v1542_v38, %v1543_v45  ;;  %v4275_v61 = vld [vmem:[#allocation7 + $0x210] sm:$0xff]  ;;  %v1483_v59 = vmax.f32 %v1481_v63, %v1482_v0 }
 0x2da   :  { %v1271_v35 = vpop.f32.mrb[122].mxu1  ;;  %v1553_v1 = vmax.f32 %v1551_v37, %v1552_v13  ;;  %v1491_v37 = vrot.slane %v1490_v23, 2  ;;  %v1518_v48 = vrot.slane %v1517_v22, 2  ;;  %v8398_v20 = vpack.c.bf16 %v4275_v61, %v4273_v6 }
 0x2db   :  { %v1273_v52 = vpop.f32.mrb[123].mxu1  ;;  %2871 = vmatmul.mubr.f32.gmra.mrb[228].mxu1 %v8233_v40  ;;  %v8375_v21 = vadd.f32 %v1271_v35, %v7449_v12  ;;  %v1535_v40 = vmax.f32 %v1533_v34, %v1534_v36  ;;  %11306 = vst [vmem:[#allocation134_spill] sm:$0xff] %v8381_v18  ;;  %v4276_v35 = vld [vmem:[#allocation7 + $0x218] sm:$0xff]  ;;  %v8388_v36 = vadd.f32 %v1267_v47, %v7443_v51  ;;  %v1509_v38 = vrot.slane %v1508_v28, 2 }
 0x2dc   :  { %2876 = vmatprep.mubr.f32.mxu1 %v8279_v19  ;;  %v8378_v54 = vadd.f32 %v1273_v52, %v7443_v51  ;;  %v8394_v49 = vpack.c.bf16 %v4276_v35, %v4274_v42  ;;  %11310 = vst [vmem:[#allocation138_spill] sm:$0xff] %v8398_v20  ;;  %v1527_v45 = vrot.slane %v1526_v3, 2  ;;  %v1501_v6 = vmax.f32 %v1499_v24, %v1500_v14 }
 0x2dd   :  { %11304 = vst [vmem:[#allocation132_spill] sm:$0xff] %v8375_v21  ;;  %11308 = vst [vmem:[#allocation136_spill] sm:$0xff] %v8388_v36  ;;  %v1558_v41 = vmax.f32 %v8381_v18, %v8375_v21  ;;  %v1536_v13 = vrot.slane %v1535_v40, 2  ;;  %v1545_v63 = vrot.slane %v1544_v27, 2 }
 0x2de   :  { %11305 = vst [vmem:[#allocation133_spill] sm:$0xff] %v8378_v54  ;;  %v1277_v62 = vpop.f32.mrb[124].mxu1  ;;  %v1567_v47 = vmax.f32 %v8388_v36, %v8378_v54  ;;  %6266 = vmatprep.subr.bf16.mxu1 %v8394_v49 }
 0x2df   :  { %v8384_v9 = vadd.f32 %v1277_v62, %v7449_v12  ;;  %v1279_v56 = vpop.f32.mrb[125].mxu1  ;;  %2877 = vmatmul.mubr.f32.gmra.mrb[230].mxu1 %v8267_v39  ;;  %v1554_v62 = vrot.slane %v1553_v1, 2  ;;  %v1519_v39 = vmax.f32 %v1517_v22, %v1518_v48  ;;  %v1537_v14 = vmax.f32 %v1535_v40, %v1536_v13 }
 0x2e0   :  { %v8391_v34 = vadd.f32 %v1279_v56, %v7443_v51  ;;  %2882 = vmatprep.mubr.f32.mxu1 %v8283_v33  ;;  %6282 = vmatpush1.bf16.msra.mxu1 %v8398_v20  ;;  %v1466_v33 = vrot.slane %v8368_v4, 1 }
 0x2e1   :  { %11307 = vst [vmem:[#allocation135_spill] sm:$0xff] %v8384_v9  ;;  %v1559_v56 = vmax.f32 %v1558_v41, %v8384_v9  ;;  %v1492_v41 = vmax.f32 %v1490_v23, %v1491_v37  ;;  %v1555_v20 = vmax.f32 %v1553_v1, %v1554_v62  ;;  %v11315_v23 = vrot.slane %v8352_v5, 1 }
 0x2e2   :  { %11309 = vst [vmem:[#allocation137_spill] sm:$0xff] %v8391_v34  ;;  %v1283_v52 = vpop.f32.mrb[126].mxu1  ;;  %v1568_v0 = vmax.f32 %v1567_v47, %v8391_v34  ;;  %v1502_v37 = vrot.slane %v1501_v6, 1  ;;  %v1467_v40 = vmax.f32 %v8368_v4, %v1466_v33  ;;  %v1520_v13 = vrot.slane %v1519_v39, 1 }
 0x2e3   :  { %v8405_v42 = vadd.f32 %v1283_v52, %v7449_v12  ;;  %v1285_v35 = vpop.f32.mrb[127].mxu1  ;;  %2883 = vmatmul.mubr.f32.gmra.mrb[232].mxu1 %v8295_v44  ;;  %v1475_v52 = vrot.slane %v8372_v10, 1  ;;  %v1510_v44 = vmax.f32 %v1508_v28, %v1509_v38  ;;  %v1458_v22 = vmax.f32 %v8352_v5, %v11315_v23 }
 0x2e4   :  { %v8410_v61 = vadd.f32 %v1285_v35, %v7443_v51  ;;  %2888 = vmatprep.mubr.f32.mxu1 %v8262_v60  ;;  %v1484_v51 = vrot.slane %v1483_v59, 1  ;;  %v1528_v35 = vmax.f32 %v1526_v3, %v1527_v45  ;;  %v1546_v28 = vmax.f32 %v1544_v27, %v1545_v63 }
 0x2e5   :  { %11311 = vst [vmem:[#allocation139_spill] sm:$0xff] %v8405_v42  ;;  %v1560_v12 = vmax.f32 %v1559_v56, %v8405_v42  ;;  %v1493_v38 = vrot.slane %v1492_v41, 1  ;;  %v1476_v45 = vmax.f32 %v8372_v10, %v1475_v52  ;;  %v1511_v56 = vrot.slane %v1510_v44, 1 }
 0x2e6   :  { %11312 = vst [vmem:[#allocation140_spill] sm:$0xff] %v8410_v61  ;;  %v1569_v24 = vmax.f32 %v1568_v0, %v8410_v61  ;;  %v8418_v47 = vpop.f32.mrb[128].mxu1  ;;  %v1538_v1 = vrot.slane %v1537_v14, 1  ;;  %v1485_v62 = vmax.f32 %v1483_v59, %v1484_v51  ;;  %v1556_v23 = vrot.slane %v1555_v20, 1 }
 0x2e7   :  { %11313 = vst [vmem:[#allocation141_spill] sm:$0xff] %v8418_v47  ;;  %v1561_v19 = vrot.slane %v1560_v12, 4  ;;  %v8420_v60 = vpop.f32.mrb[129].mxu1  ;;  %2889 = vmatmul.mubr.f32.gmra.mrb[234].mxu1 %v8271_v29  ;;  %v1529_v27 = vrot.slane %v1528_v35, 1  ;;  %v1503_v63 = vmax.f32 %v1501_v6, %v1502_v37  ;;  %v1757_v33 = vsel %vm1736_vm2, %v1458_v22, %v8360_v58  ;;  %v4278_v22 = vld [vmem:[#allocation7 + $0x228] sm:$0xff] }
 0x2e8   :  { %11314 = vst [vmem:[#allocation142_spill] sm:$0xff] %v8420_v60  ;;  %v1570_v48 = vrot.slane %v1569_v24, 4  ;;  %2894 = vmatprep.mubr.f32.mxu1 %v8287_v46  ;;  %v1494_v10 = vmax.f32 %v1492_v41, %v1493_v38  ;;  %v1764_v59 = vsel %vm1736_vm2, %v1467_v40, %v8363_v7  ;;  %v1539_v51 = vmax.f32 %v1537_v14, %v1538_v1  ;;  %v4280_v38 = vld [vmem:[#allocation7 + $0x238] sm:$0xff]  ;;  %v4277_v7 = vld [vmem:[#allocation7 + $0x220] sm:$0xff]  ;;  %v4234_v29 = vld [vmem:[#allocation7 + $0xc8] sm:$0xff] }
 0x2e9   :  { %v1562_v3 = vmax.f32 %v1560_v12, %v1561_v19  ;;  %v1547_v19 = vrot.slane %v1546_v28, 1  ;;  %v1521_v12 = vmax.f32 %v1519_v39, %v1520_v13  ;;  %v1758_v6 = vsel %vm1738_vm3, %v1476_v45, %v1757_v33  ;;  %v4279_v13 = vld [vmem:[#allocation7 + $0x230] sm:$0xff]  ;;  %v1933_v33 = vld [vmem:[#allocation5 + $0x20] sm:$0xff] }
 0x2ea   :  { %v1571_v0 = vmax.f32 %v1569_v24, %v1570_v48  ;;  %v8429_v47 = vpop.f32.mrb[130].mxu1  ;;  %v1765_v58 = vsel %vm1738_vm3, %v1485_v62, %v1764_v59  ;;  %v1530_v41 = vmax.f32 %v1528_v35, %v1529_v27  ;;  %v8448_v40 = vpack.c.bf16 %v4280_v38, %v4278_v22 }
 0x2eb   :  { %11316 = vst [vmem:[#allocation143_spill] sm:$0xff] %v8429_v47  ;;  %v1563_v60 = vrot.slane %v1562_v3, 2  ;;  %v8431_v5 = vpop.f32.mrb[131].mxu1  ;;  %2895 = vmatmul.mubr.f32.gmra.mrb[236].mxu1 %v8299_v15  ;;  %v1512_v47 = vmax.f32 %v1510_v44, %v1511_v56  ;;  %v1766_v14 = vsel %vm1740_vm4, %v1503_v63, %v1765_v58  ;;  %v1548_v44 = vmax.f32 %v1546_v28, %v1547_v19  ;;  %v1929_v19 = vld [vmem:[#allocation5] sm:$0xff]  ;;  %v1946_v58 = vld [vmem:[#allocation5 + $0x88] sm:$0xff]  ;;  %v4232_v15 = vld [vmem:[#allocation7 + $0xb8] sm:$0xff] }
 0x2ec   :  { %11317 = vst [vmem:[#allocation144_spill] sm:$0xff] %v8431_v5  ;;  %v1572_v4 = vrot.slane %v1571_v0, 2  ;;  %2900 = vmatprep.mubr.f32.mxu1 %v8311_v32  ;;  %v1557_v5 = vmax.f32 %v1555_v20, %v1556_v23  ;;  %11320 = vst [vmem:[#allocation147_spill] sm:$0xff] %v8448_v40  ;;  %v1759_v20 = vsel %vm1740_vm4, %v1494_v10, %v1758_v6  ;;  %6267 = vmatprep.subr.bf16.mxu1 %v8448_v40  ;;  %v1938_v10 = vld [vmem:[#allocation5 + $0x48] sm:$0xff]  ;;  %v1941_v6 = vld [vmem:[#allocation5 + $0x60] sm:$0xff] }
 0x2ed   :  { %v1564_v52 = vmax.f32 %v1562_v3, %v1563_v60  ;;  %v1767_v3 = vsel %vm1742_vm5, %v1521_v12, %v1766_v14  ;;  %v8452_v56 = vpack.c.bf16 %v4279_v13, %v4277_v7  ;;  %v1760_v62 = vsel %vm1742_vm5, %v1512_v47, %v1759_v20  ;;  %v1942_v12 = vld [vmem:[#allocation5 + $0x68] sm:$0xff]  ;;  %v1945_v7 = vld [vmem:[#allocation5 + $0x80] sm:$0xff]  ;;  %v4284_v20 = vld [vmem:[#allocation7 + $0x258] sm:$0xff] }
 0x2ee   :  { %v8439_v24 = vpop.f32.mrb[132].mxu1  ;;  %v1573_v48 = vmax.f32 %v1571_v0, %v1572_v4  ;;  %v1768_v1 = vsel %vm1744_vm6, %v1539_v51, %v1767_v3  ;;  %v1761_v27 = vsel %vm1744_vm6, %v1530_v41, %v1760_v62  ;;  %v6014_v51 = vpack.c.bf16 %v1942_v12, %v1938_v10  ;;  %v1950_v41 = vld [vmem:[#allocation5 + $0xa8] sm:$0xff]  ;;  %v1953_v62 = vld [vmem:[#allocation5 + $0xc0] sm:$0xff] }
 0x2ef   :  { %11318 = vst [vmem:[#allocation145_spill] sm:$0xff] %v8439_v24  ;;  %v8442_v37 = vpop.f32.mrb[133].mxu1  ;;  %2901 = vmatmul.mubr.f32.gmra.mrb[238].mxu1 %v8324_v31  ;;  %v1565_v39 = vrot.slane %v1564_v52, 1  ;;  %11321 = vst [vmem:[#allocation148_spill] sm:$0xff] %v8452_v56  ;;  %v1769_v23 = vsel %vm1746_vm7, %v1557_v5, %v1768_v1  ;;  %v1762_v4 = vsel %vm1746_vm7, %v1548_v44, %v1761_v27  ;;  %v1954_v14 = vld [vmem:[#allocation5 + $0xc8] sm:$0xff]  ;;  %v2005_v24 = vld [vmem:[#allocation5 + $0x260] sm:$0xff] }
 0x2f0   :  { %11319 = vst [vmem:[#allocation146_spill] sm:$0xff] %v8442_v37  ;;  %2906 = vmatprep.mubr.f32.mxu1 %v8302_v17  ;;  %v1574_v60 = vrot.slane %v1573_v48, 1  ;;  %6283 = vmatpush1.bf16.msra.mxu1 %v8452_v56  ;;  %v6018_v38 = vpack.c.bf16 %v1950_v41, %v1946_v58  ;;  %v1958_v44 = vld [vmem:[#allocation5 + $0xe8] sm:$0xff]  ;;  %v2017_v56 = vld [vmem:[#allocation5 + $0x2c0] sm:$0xff]  ;;  %v4228_v31 = vld [vmem:[#allocation7 + $0x98] sm:$0xff] }
 0x2f1   :  { %v1566_v45 = vmax.f32 %v1564_v52, %v1565_v39  ;;  %v6012_v52 = vpack.c.bf16 %v1933_v33, %v1929_v19  ;;  %v6022_v1 = vpack.c.bf16 %v1958_v44, %v1954_v14  ;;  %v1966_v19 = vld [vmem:[#allocation5 + $0x128] sm:$0xff]  ;;  %v2021_v40 = vld [vmem:[#allocation5 + $0x2e0] sm:$0xff] }
 0x2f2   :  { %v8454_v35 = vpop.f32.mrb[134].mxu1  ;;  %v1575_v0 = vmax.f32 %v1573_v48, %v1574_v60  ;;  %v1937_v48 = vld [vmem:[#allocation5 + $0x40] sm:$0xff]  ;;  %v1978_v14 = vld [vmem:[#allocation5 + $0x188] sm:$0xff] }
 0x2f3   :  { %11322 = vst [vmem:[#allocation149_spill] sm:$0xff] %v8454_v35  ;;  %v8459_v28 = vpop.f32.mrb[135].mxu1  ;;  %2907 = vmatmul.mubr.f32.gmra.mrb[240].mxu1 %v8314_v30  ;;  %v1763_v47 = vsel %vm1748_vm8, %v1566_v45, %v1762_v4  ;;  %v1949_v60 = vld [vmem:[#allocation5 + $0xa0] sm:$0xff]  ;;  %v4282_v45 = vld [vmem:[#allocation7 + $0x248] sm:$0xff] }
 0x2f4   :  { %11323 = vst [vmem:[#allocation150_spill] sm:$0xff] %v8459_v28  ;;  %2912 = vmatprep.mubr.f32.mxu1 %v8274_v16  ;;  %v1770_v63 = vsel %vm1748_vm8, %v1575_v0, %v1769_v23  ;;  %v6020_v3 = vpack.c.bf16 %v1949_v60, %v1945_v7  ;;  %v4281_v0 = vld [vmem:[#allocation7 + $0x240] sm:$0xff]  ;;  %v8489_v27 = vpack.c.bf16 %v4284_v20, %v4282_v45  ;;  %v1962_v4 = vld [vmem:[#allocation5 + $0x108] sm:$0xff]  ;;  %v4224_v16 = vld [vmem:[#allocation7 + $0x78] sm:$0xff] }
 0x2f5   :  { %1845 = vmatprep.mubr.f32.mxu0 %v1770_v63  ;;  %v1957_v23 = vld [vmem:[#allocation5 + $0xe0] sm:$0xff]  ;;  %v6026_v12 = vpack.c.bf16 %v1966_v19, %v1962_v4  ;;  %v1982_v44 = vld [vmem:[#allocation5 + $0x1a8] sm:$0xff] }
 0x2f6   :  { %1846 = vmatmul.mubr.f32.gmra.mrb[66].mxu0 %v1763_v47  ;;  %v8469_v59 = vpop.f32.mrb[136].mxu1  ;;  %11324 = vst [vmem:[#allocation151_spill] sm:$0xff] %v8489_v27  ;;  %6268 = vmatprep.subr.bf16.mxu1 %v8489_v27  ;;  %v6024_v10 = vpack.c.bf16 %v1957_v23, %v1953_v62  ;;  %v1969_v7 = vld [vmem:[#allocation5 + $0x140] sm:$0xff]  ;;  %v1986_v23 = vld [vmem:[#allocation5 + $0x1c8] sm:$0xff] }
 0x2f7   :  { %1916 = vmatprep.mubr.f32.mxu0 %v7927_v55  ;;  %v8472_v5 = vpop.f32.mrb[137].mxu1  ;;  %2913 = vmatmul.mubr.f32.gmra.mrb[242].mxu1 %v8290_v53  ;;  %v6016_v55 = vpack.c.bf16 %v1941_v6, %v1937_v48  ;;  %v1970_v48 = vld [vmem:[#allocation5 + $0x148] sm:$0xff]  ;;  %v1973_v60 = vld [vmem:[#allocation5 + $0x160] sm:$0xff] }
 0x2f8   :  { %2918 = vmatprep.mubr.f32.mxu1 %v8305_v50  ;;  %v1974_v6 = vld [vmem:[#allocation5 + $0x168] sm:$0xff]  ;;  %v6032_v20 = vpack.c.bf16 %v1973_v60, %v1969_v7  ;;  %v1981_v62 = vld [vmem:[#allocation5 + $0x1a0] sm:$0xff]  ;;  %v4287_v7 = vld [vmem:[#allocation7 + $0x270] sm:$0xff] }
 0x2f9   :  { %v1994_v60 = vld [vmem:[#allocation5 + $0x208] sm:$0xff]  ;;  %v4220_v50 = vld [vmem:[#allocation7 + $0x58] sm:$0xff] }
 0x2fa   :  { %1917 = vmatmul.mubr.f32.vlgmr.msra.gmra.mrb[68].mxu0 %v7932_v43  ;;  %v8477_v39 = vpop.f32.mrb[138].mxu1  ;;  %v2010_v37 = vld [vmem:[#allocation5 + $0x288] sm:$0xff] }
 0x2fb   :  { %6013 = vmatpush1.bf16.msra.mxu0 %v6012_v52  ;;  %1922 = vmatprep.mubr.f32.mxu0 %v1770_v63  ;;  %v8479_v22 = vpop.f32.mrb[139].mxu1  ;;  %v4283_v63 = vld [vmem:[#allocation7 + $0x250] sm:$0xff]  ;;  %v1961_v52 = vld [vmem:[#allocation5 + $0x100] sm:$0xff]  ;;  %v4222_v53 = vld [vmem:[#allocation7 + $0x68] sm:$0xff] }
 0x2fc   :  { %2919 = vmatmul.mubr.f32.gmra.mrb[244].mxu1 %v8317_v26  ;;  %6015 = vmatprep.subr.bf16.mxu0 %v6014_v51  ;;  %v1965_v51 = vld [vmem:[#allocation5 + $0x120] sm:$0xff]  ;;  %v4230_v32 = vld [vmem:[#allocation7 + $0xa8] sm:$0xff] }
 0x2fd   :  { %2924 = vmatprep.mubr.f32.mxu1 %v8336_v57  ;;  %v4297_v26 = vld [vmem:[#allocation7 + $0x2c0] sm:$0xff] }
 0x2fe   :  { %1923 = vmatmul.mubr.f32.gmra.mrb[70].mxu0 %v1763_v47  ;;  %v8483_v13 = vpop.f32.mrb[140].mxu1 }
 0x2ff   :  { %6017 = vmatpush1.bf16.msra.mxu0 %v6016_v55  ;;  %2121 = vmatprep.mubr.f32.mxu0 %v7453_v11  ;;  %v8486_v43 = vpop.f32.mrb[141].mxu1  ;;  %v8492_v11 = vpack.c.bf16 %v4283_v63, %v4281_v0  ;;  %v6028_v55 = vpack.c.bf16 %v1965_v51, %v1961_v52  ;;  %v6034_v0 = vpack.c.bf16 %v1982_v44, %v1978_v14  ;;  %v1990_v63 = vld [vmem:[#allocation5 + $0x1e8] sm:$0xff]  ;;  %v4288_v52 = vld [vmem:[#allocation7 + $0x278] sm:$0xff]  ;;  %v4285_v51 = vld [vmem:[#allocation7 + $0x260] sm:$0xff] }
 0x300   :  { %2925 = vmatmul.mubr.f32.gmra.mrb[246].mxu1 %v8333_v2  ;;  %6019 = vmatprep.subr.bf16.mxu0 %v6018_v38  ;;  %v6030_v38 = vpack.c.bf16 %v1974_v6, %v1970_v48  ;;  %v6038_v48 = vpack.c.bf16 %v1990_v63, %v1986_v23  ;;  %v1985_v6 = vld [vmem:[#allocation5 + $0x1c0] sm:$0xff]  ;;  %v1998_v14 = vld [vmem:[#allocation5 + $0x228] sm:$0xff]  ;;  %v8521_v44 = vpack.c.bf16 %v4287_v7, %v4285_v51 }
 0x301   :  { %2930 = vmatprep.mubr.f32.mxu1 %v8388_v36  ;;  %11325 = vst [vmem:[#allocation152_spill] sm:$0xff] %v8492_v11  ;;  %6284 = vmatpush1.bf16.msra.mxu1 %v8492_v11  ;;  %v1993_v23 = vld [vmem:[#allocation5 + $0x200] sm:$0xff]  ;;  %v2022_v11 = vld [vmem:[#allocation5 + $0x2e8] sm:$0xff] }
 0x302   :  { %v8494_v33 = vpop.f32.mrb[142].mxu1  ;;  %11327 = vst [vmem:[#allocation154_spill] sm:$0xff] %v8521_v44  ;;  %v1997_v63 = vld [vmem:[#allocation5 + $0x220] sm:$0xff] }
 0x303   :  { %6021 = vmatpush1.bf16.msra.mxu0 %v6020_v3  ;;  %v8497_v47 = vpop.f32.mrb[143].mxu1  ;;  %v6044_v7 = vpack.c.bf16 %v1997_v63, %v1993_v23  ;;  %v4290_v63 = vld [vmem:[#allocation7 + $0x288] sm:$0xff]  ;;  %v2053_v36 = vld [vmem:[#allocation5 + $0x3e0] sm:$0xff] }
 0x304   :  { %2931 = vmatmul.mubr.f32.gmra.mrb[248].mxu1 %v8381_v18  ;;  %6023 = vmatprep.subr.bf16.mxu0 %v6022_v1  ;;  %v1977_v1 = vld [vmem:[#allocation5 + $0x180] sm:$0xff] }
 0x305   :  { %2936 = vmatprep.mubr.f32.mxu1 %v8378_v54  ;;  %v2049_v18 = vld [vmem:[#allocation5 + $0x3c0] sm:$0xff] }
 0x306   :  { %v8502_v58 = vpop.f32.mrb[144].mxu1 }
 0x307   :  { %6025 = vmatpush1.bf16.msra.mxu0 %v6024_v10  ;;  %v8504_v41 = vpop.f32.mrb[145].mxu1  ;;  %v6036_v10 = vpack.c.bf16 %v1981_v62, %v1977_v1 }
 0x308   :  { %2937 = vmatmul.mubr.f32.gmra.mrb[250].mxu1 %v8375_v21  ;;  %6027 = vmatprep.subr.bf16.mxu0 %v6026_v12  ;;  %v4286_v12 = vld [vmem:[#allocation7 + $0x268] sm:$0xff] }
 0x309   :  { %2942 = vmatprep.mubr.f32.mxu1 %v8391_v34  ;;  %v2045_v34 = vld [vmem:[#allocation5 + $0x3a0] sm:$0xff]  ;;  %v2054_v21 = vld [vmem:[#allocation5 + $0x3e8] sm:$0xff] }
 0x30a   :  { %v8508_v3 = vpop.f32.mrb[146].mxu1 }
 0x30b   :  { %6029 = vmatpush1.bf16.msra.mxu0 %v6028_v55  ;;  %v8510_v45 = vpop.f32.mrb[147].mxu1  ;;  %v1989_v55 = vld [vmem:[#allocation5 + $0x1e0] sm:$0xff] }
 0x30c   :  { %2943 = vmatmul.mubr.f32.gmra.mrb[252].mxu1 %v8384_v9  ;;  %6031 = vmatprep.subr.bf16.mxu0 %v6030_v38  ;;  %v8519_v38 = vpack.c.bf16 %v4288_v52, %v4286_v12  ;;  %v6040_v62 = vpack.c.bf16 %v1989_v55, %v1985_v6  ;;  %v2002_v12 = vld [vmem:[#allocation5 + $0x248] sm:$0xff] }
 0x30d   :  { %2948 = vmatprep.mubr.f32.mxu1 %v8410_v61  ;;  %v2006_v52 = vld [vmem:[#allocation5 + $0x268] sm:$0xff]  ;;  %v2037_v61 = vld [vmem:[#allocation5 + $0x360] sm:$0xff] }
 0x30e   :  { %v8514_v4 = vpop.f32.mrb[148].mxu1  ;;  %11326 = vst [vmem:[#allocation153_spill] sm:$0xff] %v8519_v38  ;;  %6269 = vmatprep.subr.bf16.mxu1 %v8519_v38  ;;  %v6046_v28 = vpack.c.bf16 %v2006_v52, %v2002_v12  ;;  %v2014_v6 = vld [vmem:[#allocation5 + $0x2a8] sm:$0xff]  ;;  %v2013_v38 = vld [vmem:[#allocation5 + $0x2a0] sm:$0xff]  ;;  %v4292_v12 = vld [vmem:[#allocation7 + $0x298] sm:$0xff] }
 0x30f   :  { %6033 = vmatpush1.bf16.msra.mxu0 %v6032_v20  ;;  %v8516_v19 = vpop.f32.mrb[149].mxu1  ;;  %6285 = vmatpush1.bf16.msra.mxu1 %v8521_v44  ;;  %v2009_v44 = vld [vmem:[#allocation5 + $0x280] sm:$0xff]  ;;  %v2042_v9 = vld [vmem:[#allocation5 + $0x388] sm:$0xff] }
 0x310   :  { %2949 = vmatmul.mubr.f32.gmra.mrb[254].mxu1 %v8405_v42  ;;  %6035 = vmatprep.subr.bf16.mxu0 %v6034_v0  ;;  %v6042_v0 = vpack.c.bf16 %v1998_v14, %v1994_v60  ;;  %v6050_v14 = vpack.c.bf16 %v2014_v6, %v2010_v37  ;;  %v6052_v23 = vpack.c.bf16 %v2013_v38, %v2009_v44  ;;  %v4289_v52 = vld [vmem:[#allocation7 + $0x280] sm:$0xff]  ;;  %v4291_v37 = vld [vmem:[#allocation7 + $0x290] sm:$0xff] }
 0x311   :  { %v8543_v6 = vpack.c.bf16 %v4291_v37, %v4289_v52  ;;  %v6056_v44 = vpack.c.bf16 %v2021_v40, %v2017_v56  ;;  %v2046_v40 = vld [vmem:[#allocation5 + $0x3a8] sm:$0xff] }
 0x312   :  { %v8523_v20 = vpop.f32.mrb[150].mxu1 }
 0x313   :  { %6037 = vmatpush1.bf16.msra.mxu0 %v6036_v10  ;;  %v8526_v1 = vpop.f32.mrb[151].mxu1  ;;  %v2001_v10 = vld [vmem:[#allocation5 + $0x240] sm:$0xff]  ;;  %11329 = vst [vmem:[#allocation156_spill] sm:$0xff] %v8543_v6 }
 0x314   :  { %6039 = vmatprep.subr.bf16.mxu0 %v6038_v48  ;;  %v6048_v60 = vpack.c.bf16 %v2005_v24, %v2001_v10  ;;  %v8541_v24 = vpack.c.bf16 %v4292_v12, %v4290_v63  ;;  %v2030_v10 = vld [vmem:[#allocation5 + $0x328] sm:$0xff] }
 0x315   :  { %v2038_v63 = vld [vmem:[#allocation5 + $0x368] sm:$0xff] }
 0x316   :  { %v8529_v35 = vpop.f32.mrb[152].mxu1  ;;  %11328 = vst [vmem:[#allocation155_spill] sm:$0xff] %v8541_v24  ;;  %6270 = vmatprep.subr.bf16.mxu1 %v8541_v24 }
 0x317   :  { %6041 = vmatpush1.bf16.msra.mxu0 %v6040_v62  ;;  %v8531_v51 = vpop.f32.mrb[153].mxu1  ;;  %v2018_v62 = vld [vmem:[#allocation5 + $0x2c8] sm:$0xff]  ;;  %6286 = vmatpush1.bf16.msra.mxu1 %v8543_v6  ;;  %v2041_v6 = vld [vmem:[#allocation5 + $0x380] sm:$0xff] }
 0x318   :  { %6043 = vmatprep.subr.bf16.mxu0 %v6042_v0 }
 0x31a   :  { %v8533_v55 = vpop.f32.mrb[154].mxu1 }
 0x31b   :  { %6045 = vmatpush1.bf16.msra.mxu0 %v6044_v7  ;;  %v8535_v48 = vpop.f32.mrb[155].mxu1  ;;  %v6054_v7 = vpack.c.bf16 %v2022_v11, %v2018_v62  ;;  %v2034_v62 = vld [vmem:[#allocation5 + $0x348] sm:$0xff] }
 0x31c   :  { %6047 = vmatprep.subr.bf16.mxu0 %v6046_v28  ;;  %v2026_v28 = vld [vmem:[#allocation5 + $0x308] sm:$0xff]  ;;  %v6062_v24 = vpack.c.bf16 %v2038_v63, %v2034_v62  ;;  %v4296_v62 = vld [vmem:[#allocation7 + $0x2b8] sm:$0xff]  ;;  %v4293_v63 = vld [vmem:[#allocation7 + $0x2a0] sm:$0xff] }
 0x31d   :  { %v6058_v11 = vpack.c.bf16 %v2030_v10, %v2026_v28  ;;  %v6066_v10 = vpack.c.bf16 %v2046_v40, %v2042_v9  ;;  %v4295_v9 = vld [vmem:[#allocation7 + $0x2b0] sm:$0xff] }
 0x31e   :  { %v8537_v27 = vpop.f32.mrb[156].mxu1  ;;  %v8565_v40 = vpack.c.bf16 %v4295_v9, %v4293_v63  ;;  %v4298_v63 = vld [vmem:[#allocation7 + $0x2c8] sm:$0xff]  ;;  %v4300_v9 = vld [vmem:[#allocation7 + $0x2d8] sm:$0xff] }
 0x31f   :  { %6049 = vmatpush1.bf16.msra.mxu0 %v6048_v60  ;;  %v8539_v0 = vpop.f32.mrb[157].mxu1  ;;  %v2025_v60 = vld [vmem:[#allocation5 + $0x300] sm:$0xff] }
 0x320   :  { %6051 = vmatprep.subr.bf16.mxu0 %v6050_v14  ;;  %v2029_v14 = vld [vmem:[#allocation5 + $0x320] sm:$0xff]  ;;  %11331 = vst [vmem:[#allocation158_spill] sm:$0xff] %v8565_v40 }
 0x321   :  { %v6060_v37 = vpack.c.bf16 %v2029_v14, %v2025_v60  ;;  %v6068_v60 = vpack.c.bf16 %v2045_v34, %v2041_v6  ;;  %v4294_v14 = vld [vmem:[#allocation7 + $0x2a8] sm:$0xff]  ;;  %v6072_v6 = vpack.c.bf16 %v2053_v36, %v2049_v18  ;;  %v4299_v18 = vld [vmem:[#allocation7 + $0x2d0] sm:$0xff] }
 0x322   :  { %v8545_v42 = vpop.f32.mrb[158].mxu1 }
 0x323   :  { %6053 = vmatpush1.bf16.msra.mxu0 %v6052_v23  ;;  %v8548_v38 = vpop.f32.mrb[159].mxu1  ;;  %v2033_v23 = vld [vmem:[#allocation5 + $0x340] sm:$0xff] }
 0x324   :  { %6055 = vmatprep.subr.bf16.mxu0 %v6054_v7  ;;  %v6064_v28 = vpack.c.bf16 %v2037_v61, %v2033_v23  ;;  %v8563_v61 = vpack.c.bf16 %v4296_v62, %v4294_v14  ;;  %v4212_v23 = vld [vmem:[#allocation7 + $0x18] sm:$0xff] }
 0x325   :  { %v4216_v14 = vld [vmem:[#allocation7 + $0x38] sm:$0xff] }
 0x326   :  { %v8551_v12 = vpop.f32.mrb[160].mxu1  ;;  %11330 = vst [vmem:[#allocation157_spill] sm:$0xff] %v8563_v61  ;;  %6271 = vmatprep.subr.bf16.mxu1 %v8563_v61 }
 0x327   :  { %6057 = vmatpush1.bf16.msra.mxu0 %v6056_v44  ;;  %v8553_v52 = vpop.f32.mrb[161].mxu1  ;;  %v2050_v44 = vld [vmem:[#allocation5 + $0x3c8] sm:$0xff]  ;;  %6287 = vmatpush1.bf16.msra.mxu1 %v8565_v40 }
 0x328   :  { %6059 = vmatprep.subr.bf16.mxu0 %v6058_v11  ;;  %v4218_v40 = vld [vmem:[#allocation7 + $0x48] sm:$0xff] }
 0x32a   :  { %v8555_v56 = vpop.f32.mrb[162].mxu1 }
 0x32b   :  { %6061 = vmatpush1.bf16.msra.mxu0 %v6060_v37  ;;  %v8557_v7 = vpop.f32.mrb[163].mxu1  ;;  %v6070_v37 = vpack.c.bf16 %v2054_v21, %v2050_v44  ;;  %v4214_v44 = vld [vmem:[#allocation7 + $0x28] sm:$0xff] }
 0x32c   :  { %6063 = vmatprep.subr.bf16.mxu0 %v6062_v24  ;;  %v4210_v24 = vld [vmem:[#allocation7 + $0x8] sm:$0xff]  ;;  %v6142_v36 = vpack.c.bf16 %v4216_v14, %v4214_v44  ;;  %v4217_v14 = vld [vmem:[#allocation7 + $0x40] sm:$0xff] }
 0x32d   :  { %v6138_v21 = vpack.c.bf16 %v4212_v23, %v4210_v24  ;;  %v4215_v24 = vld [vmem:[#allocation7 + $0x30] sm:$0xff]  ;;  %v8579_v23 = vpack.c.bf16 %v4299_v18, %v4297_v26  ;;  %v4304_v26 = vld [vmem:[#allocation7 + $0x2f8] sm:$0xff] }
 0x32e   :  { %v8559_v54 = vpop.f32.mrb[164].mxu1 }
 0x32f   :  { %6065 = vmatpush1.bf16.msra.mxu0 %v6064_v28  ;;  %v8561_v11 = vpop.f32.mrb[165].mxu1  ;;  %v4209_v28 = vld [vmem:[#allocation7] sm:$0xff]  ;;  %11333 = vst [vmem:[#allocation160_spill] sm:$0xff] %v8579_v23 }
 0x330   :  { %6067 = vmatprep.subr.bf16.mxu0 %v6066_v10  ;;  %v4211_v10 = vld [vmem:[#allocation7 + $0x10] sm:$0xff] }
 0x331   :  { %v6140_v61 = vpack.c.bf16 %v4211_v10, %v4209_v28  ;;  %v4302_v28 = vld [vmem:[#allocation7 + $0x2e8] sm:$0xff]  ;;  %v11334_v10 = vld [vmem:[#allocation15_spill] sm:$0xff] }
 0x332   :  { %v8567_v2 = vpop.f32.mrb[166].mxu1  ;;  %v8589_v18 = vpack.c.bf16 %v4304_v26, %v4302_v28  ;;  %v4305_v28 = vld [vmem:[#allocation7 + $0x300] sm:$0xff]  ;;  %v4307_v26 = vld [vmem:[#allocation7 + $0x310] sm:$0xff] }
 0x333   :  { %6069 = vmatpush1.bf16.msra.mxu0 %v6068_v60  ;;  %v8570_v34 = vpop.f32.mrb[167].mxu1  ;;  %v8577_v60 = vpack.c.bf16 %v4300_v9, %v4298_v63  ;;  %v6146_v63 = vpack.c.bf16 %v4220_v50, %v4218_v40  ;;  %v4219_v9 = vld [vmem:[#allocation7 + $0x50] sm:$0xff]  ;;  %v8603_v17 = vpack.c.bf16 %v4307_v26, %v4305_v28 }
 0x334   :  { %6071 = vmatprep.subr.bf16.mxu0 %v6070_v37  ;;  %v4213_v37 = vld [vmem:[#allocation7 + $0x20] sm:$0xff]  ;;  %11335 = vst [vmem:[#allocation15_spill] sm:$0xff] %v8589_v18  ;;  %v6148_v40 = vpack.c.bf16 %v4219_v9, %v4217_v14  ;;  %v4310_v14 = vld [vmem:[#allocation7 + $0x328] sm:$0xff]  ;;  %v4312_v9 = vld [vmem:[#allocation7 + $0x338] sm:$0xff] }
 0x335   :  { %11332 = vst [vmem:[#allocation159_spill] sm:$0xff] %v8577_v60  ;;  %6272 = vmatprep.subr.bf16.mxu1 %v8577_v60  ;;  %v6144_v44 = vpack.c.bf16 %v4215_v24, %v4213_v37  ;;  %v4301_v60 = vld [vmem:[#allocation7 + $0x2e0] sm:$0xff]  ;;  %v4308_v37 = vld [vmem:[#allocation7 + $0x318] sm:$0xff]  ;;  %v11338_v24 = vld [vmem:[#allocation17_spill] sm:$0xff] }
 0x336   :  { %v8573_v62 = vpop.f32.mrb[168].mxu1  ;;  %6288 = vmatpush1.bf16.msra.mxu1 %v8579_v23  ;;  %v11337_v23 = vld [vmem:[#allocation16_spill] sm:$0xff]  ;;  %11340 = vst [vmem:[#allocation17_spill] sm:$0xff] %v8603_v17  ;;  %v4311_v28 = vld [vmem:[#allocation7 + $0x330] sm:$0xff] }
 0x337   :  { %6073 = vmatpush1.bf16.msra.mxu0 %v6072_v6  ;;  %v8575_v57 = vpop.f32.mrb[169].mxu1  ;;  %6273 = vmatprep.subr.bf16.mxu1 %v8589_v18  ;;  %v4226_v18 = vld [vmem:[#allocation7 + $0x88] sm:$0xff] }
 0x338   :  { %6139 = vmatprep.subr.bf16.mxu0 %v6138_v21  ;;  %v6154_v26 = vpack.c.bf16 %v4228_v31, %v4226_v18 }
 0x33a   :  { %2122 = vmatmul.mubr.f32.vlgmr.msra.gmra.mrb[72].mxu0 %v7460_v8  ;;  %v8583_v6 = vpop.f32.mrb[170].mxu1  ;;  %v4303_v8 = vld [vmem:[#allocation7 + $0x2f0] sm:$0xff] }
 0x33b   :  { %2127 = vmatprep.mubr.f32.mxu0 %v11334_v10  ;;  %6141 = vmatpush1.bf16.msra.mxu0 %v6140_v61  ;;  %v8587_v21 = vpop.f32.mrb[171].mxu1  ;;  %v8591_v30 = vpack.c.bf16 %v4303_v8, %v4301_v60  ;;  %v4306_v61 = vld [vmem:[#allocation7 + $0x308] sm:$0xff]  ;;  %v6150_v60 = vpack.c.bf16 %v4224_v16, %v4222_v53  ;;  %v4221_v8 = vld [vmem:[#allocation7 + $0x60] sm:$0xff]  ;;  %v8612_v53 = vpack.c.bf16 %v4312_v9, %v4310_v14 }
 0x33c   :  { %6143 = vmatprep.subr.bf16.mxu0 %v6142_v36  ;;  %v8600_v36 = vpack.c.bf16 %v4308_v37, %v4306_v61  ;;  %v11343_v61 = vld [vmem:[#allocation19_spill] sm:$0xff]  ;;  %v4309_v37 = vld [vmem:[#allocation7 + $0x320] sm:$0xff]  ;;  %v11348_v14 = vld [vmem:[#allocation21_spill] sm:$0xff] }
 0x33d   :  { %11336 = vst [vmem:[#allocation161_spill] sm:$0xff] %v8591_v30  ;;  %6289 = vmatpush1.bf16.msra.mxu1 %v8591_v30  ;;  %11344 = vst [vmem:[#allocation19_spill] sm:$0xff] %v8612_v53  ;;  %v4225_v30 = vld [vmem:[#allocation7 + $0x80] sm:$0xff] }
 0x33e   :  { %2128 = vmatmul.mubr.f32.gmra.mrb[74].mxu0 %v11337_v23  ;;  %v8594_v10 = vpop.f32.mrb[172].mxu1  ;;  %11339 = vst [vmem:[#allocation16_spill] sm:$0xff] %v8600_v36  ;;  %v4223_v23 = vld [vmem:[#allocation7 + $0x70] sm:$0xff]  ;;  %6274 = vmatprep.subr.bf16.mxu1 %v8600_v36  ;;  %v4313_v9 = vld [vmem:[#allocation7 + $0x340] sm:$0xff] }
 0x33f   :  { %2133 = vmatprep.mubr.f32.mxu0 %v11338_v24  ;;  %v8598_v50 = vpop.f32.mrb[173].mxu1  ;;  %6145 = vmatpush1.bf16.msra.mxu0 %v6144_v44  ;;  %v11341_v24 = vld [vmem:[#allocation18_spill] sm:$0xff]  ;;  %v6152_v16 = vpack.c.bf16 %v4223_v23, %v4221_v8  ;;  %v4314_v8 = vld [vmem:[#allocation7 + $0x348] sm:$0xff]  ;;  %v4316_v23 = vld [vmem:[#allocation7 + $0x358] sm:$0xff] }
 0x340   :  { %6147 = vmatprep.subr.bf16.mxu0 %v6146_v63  ;;  %v4227_v36 = vld [vmem:[#allocation7 + $0x90] sm:$0xff]  ;;  %v8624_v18 = vpack.c.bf16 %v4316_v23, %v4314_v8  ;;  %v11354_v8 = vld [vmem:[#allocation23_spill] sm:$0xff] }
 0x341   :  { %6290 = vmatpush1.bf16.msra.mxu1 %v8603_v17  ;;  %v6156_v31 = vpack.c.bf16 %v4227_v36, %v4225_v30  ;;  %v4229_v17 = vld [vmem:[#allocation7 + $0xa0] sm:$0xff] }
 0x342   :  { %2134 = vmatmul.mubr.f32.gmra.mrb[76].mxu0 %v11341_v24  ;;  %v8607_v44 = vpop.f32.mrb[174].mxu1  ;;  %v8615_v24 = vpack.c.bf16 %v4311_v28, %v4309_v37  ;;  %6275 = vmatprep.subr.bf16.mxu1 %v8612_v53  ;;  %11350 = vst [vmem:[#allocation163_spill] sm:$0xff] %v8624_v18  ;;  %v4315_v37 = vld [vmem:[#allocation7 + $0x350] sm:$0xff]  ;;  %v6158_v28 = vpack.c.bf16 %v4232_v15, %v4230_v32  ;;  %v4238_v32 = vld [vmem:[#allocation7 + $0xe8] sm:$0xff] }
 0x343   :  { %11342 = vst [vmem:[#allocation18_spill] sm:$0xff] %v8607_v44  ;;  %2139 = vmatprep.mubr.f32.mxu0 %v11343_v61  ;;  %v8610_v63 = vpop.f32.mrb[175].mxu1  ;;  %6149 = vmatpush1.bf16.msra.mxu0 %v6148_v40  ;;  %v11346_v61 = vld [vmem:[#allocation20_spill] sm:$0xff]  ;;  %v4231_v53 = vld [vmem:[#allocation7 + $0xb0] sm:$0xff]  ;;  %v4240_v44 = vld [vmem:[#allocation7 + $0xf8] sm:$0xff] }
 0x344   :  { %6151 = vmatprep.subr.bf16.mxu0 %v6150_v60  ;;  %11345 = vst [vmem:[#allocation162_spill] sm:$0xff] %v8615_v24 }
 0x345   :  { %6291 = vmatpush1.bf16.msra.mxu1 %v8615_v24 }
 0x346   :  { %2140 = vmatmul.mubr.f32.gmra.mrb[78].mxu0 %v11346_v61  ;;  %v8619_v40 = vpop.f32.mrb[176].mxu1  ;;  %v8627_v61 = vpack.c.bf16 %v4315_v37, %v4313_v9  ;;  %6276 = vmatprep.subr.bf16.mxu1 %v8624_v18  ;;  %v6160_v9 = vpack.c.bf16 %v4231_v53, %v4229_v17  ;;  %v4320_v37 = vld [vmem:[#allocation7 + $0x378] sm:$0xff]  ;;  %v4317_v18 = vld [vmem:[#allocation7 + $0x360] sm:$0xff]  ;;  %v4322_v17 = vld [vmem:[#allocation7 + $0x388] sm:$0xff] }
 0x347   :  { %11347 = vst [vmem:[#allocation20_spill] sm:$0xff] %v8619_v40  ;;  %2145 = vmatprep.mubr.f32.mxu0 %v11348_v14  ;;  %v8622_v60 = vpop.f32.mrb[177].mxu1  ;;  %6153 = vmatpush1.bf16.msra.mxu0 %v6152_v16  ;;  %v4236_v14 = vld [vmem:[#allocation7 + $0xd8] sm:$0xff]  ;;  %v11352_v16 = vld [vmem:[#allocation22_spill] sm:$0xff]  ;;  %v4233_v40 = vld [vmem:[#allocation7 + $0xc0] sm:$0xff] }
 0x348   :  { %11349 = vst [vmem:[#allocation21_spill] sm:$0xff] %v8622_v60  ;;  %6155 = vmatprep.subr.bf16.mxu0 %v6154_v26  ;;  %11351 = vst [vmem:[#allocation164_spill] sm:$0xff] %v8627_v61  ;;  %v4318_v26 = vld [vmem:[#allocation7 + $0x368] sm:$0xff]  ;;  %v6162_v24 = vpack.c.bf16 %v4236_v14, %v4234_v29  ;;  %v4324_v53 = vld [vmem:[#allocation7 + $0x398] sm:$0xff] }
 0x349   :  { %v8629_v46 = vpop.f32.mrb[64].mxu0  ;;  %6292 = vmatpush1.bf16.msra.mxu1 %v8627_v61  ;;  %v8645_v60 = vpack.c.bf16 %v4320_v37, %v4318_v26  ;;  %v8656_v14 = vpack.c.bf16 %v4324_v53, %v4322_v17  ;;  %v4323_v26 = vld [vmem:[#allocation7 + $0x390] sm:$0xff]  ;;  %v6166_v37 = vpack.c.bf16 %v4240_v44, %v4238_v32  ;;  %v11366_v17 = vld [vmem:[#allocation27_spill] sm:$0xff]  ;;  %v4325_v53 = vld [vmem:[#allocation7 + $0x3a0] sm:$0xff] }
 0x34a   :  { %2146 = vmatmul.mubr.f32.gmra.mrb[80].mxu0 %v11352_v16  ;;  %v8633_v30 = vpop.f32.mrb[65].mxu0  ;;  %v8635_v36 = vpop.f32.mrb[178].mxu1  ;;  %v4319_v16 = vld [vmem:[#allocation7 + $0x370] sm:$0xff] }
 0x34b   :  { %11353 = vst [vmem:[#allocation22_spill] sm:$0xff] %v8635_v36  ;;  %2151 = vmatprep.mubr.f32.mxu0 %v11354_v8  ;;  %v8642_v23 = vpop.f32.mrb[179].mxu1  ;;  %6157 = vmatpush1.bf16.msra.mxu0 %v6156_v31  ;;  %v4235_v36 = vld [vmem:[#allocation7 + $0xd0] sm:$0xff]  ;;  %11356 = vst [vmem:[#allocation165_spill] sm:$0xff] %v8645_v60  ;;  %v8647_v15 = vpack.c.bf16 %v4319_v16, %v4317_v18  ;;  %v11358_v8 = vld [vmem:[#allocation24_spill] sm:$0xff] }
 0x34c   :  { %11355 = vst [vmem:[#allocation23_spill] sm:$0xff] %v8642_v23  ;;  %6159 = vmatprep.subr.bf16.mxu0 %v6158_v28  ;;  %6277 = vmatprep.subr.bf16.mxu1 %v8645_v60  ;;  %v11360_v31 = vld [vmem:[#allocation25_spill] sm:$0xff]  ;;  %v6164_v28 = vpack.c.bf16 %v4235_v36, %v4233_v40  ;;  %11362 = vst [vmem:[#allocation167_spill] sm:$0xff] %v8656_v14  ;;  %v4321_v18 = vld [vmem:[#allocation7 + $0x380] sm:$0xff] }
 0x34d   :  { %11357 = vst [vmem:[#allocation166_spill] sm:$0xff] %v8647_v15  ;;  %v4237_v16 = vld [vmem:[#allocation7 + $0xe0] sm:$0xff]  ;;  %6293 = vmatpush1.bf16.msra.mxu1 %v8647_v15  ;;  %v8659_v61 = vpack.c.bf16 %v4323_v26, %v4321_v18  ;;  %v4242_v60 = vld [vmem:[#allocation7 + $0x108] sm:$0xff]  ;;  %v4328_v36 = vld [vmem:[#allocation7 + $0x3b8] sm:$0xff] }
 0x34e   :  { %2152 = vmatmul.mubr.f32.gmra.mrb[82].mxu0 %v11358_v8  ;;  %v8650_v23 = vpop.f32.mrb[180].mxu1  ;;  %v4239_v8 = vld [vmem:[#allocation7 + $0xf0] sm:$0xff]  ;;  %6278 = vmatprep.subr.bf16.mxu1 %v8656_v14  ;;  %v4326_v40 = vld [vmem:[#allocation7 + $0x3a8] sm:$0xff]  ;;  %v4241_v15 = vld [vmem:[#allocation7 + $0x100] sm:$0xff] }
 0x34f   :  { %11359 = vst [vmem:[#allocation24_spill] sm:$0xff] %v8650_v23  ;;  %2157 = vmatprep.mubr.f32.mxu0 %v11360_v31  ;;  %v8654_v29 = vpop.f32.mrb[181].mxu1  ;;  %6161 = vmatpush1.bf16.msra.mxu0 %v6160_v9  ;;  %11363 = vst [vmem:[#allocation168_spill] sm:$0xff] %v8659_v61  ;;  %v4244_v23 = vld [vmem:[#allocation7 + $0x118] sm:$0xff]  ;;  %v11364_v31 = vld [vmem:[#allocation26_spill] sm:$0xff]  ;;  %v6168_v44 = vpack.c.bf16 %v4239_v8, %v4237_v16  ;;  %v8668_v32 = vpack.c.bf16 %v4328_v36, %v4326_v40 }
 0x350   :  { %11361 = vst [vmem:[#allocation25_spill] sm:$0xff] %v8654_v29  ;;  %6163 = vmatprep.subr.bf16.mxu0 %v6162_v24  ;;  %v4327_v18 = vld [vmem:[#allocation7 + $0x3b0] sm:$0xff]  ;;  %v6170_v26 = vpack.c.bf16 %v4244_v23, %v4242_v60  ;;  %v4248_v29 = vld [vmem:[#allocation7 + $0x138] sm:$0xff]  ;;  %v4330_v16 = vld [vmem:[#allocation7 + $0x3c8] sm:$0xff] }
 0x351   :  { %11368 = vst [vmem:[#allocation169_spill] sm:$0xff] %v8668_v32  ;;  %v4243_v14 = vld [vmem:[#allocation7 + $0x110] sm:$0xff]  ;;  %6294 = vmatpush1.bf16.msra.mxu1 %v8659_v61  ;;  %v4332_v8 = vld [vmem:[#allocation7 + $0x3d8] sm:$0xff]  ;;  %v11372_v40 = vld [vmem:[#allocation29_spill] sm:$0xff] }
 0x352   :  { %2158 = vmatmul.mubr.f32.gmra.mrb[84].mxu0 %v11364_v31  ;;  %v8663_v9 = vpop.f32.mrb[182].mxu1  ;;  %v8671_v31 = vpack.c.bf16 %v4327_v18, %v4325_v53  ;;  %6279 = vmatprep.subr.bf16.mxu1 %v8668_v32  ;;  %v6172_v60 = vpack.c.bf16 %v4243_v14, %v4241_v15  ;;  %v8680_v23 = vpack.c.bf16 %v4332_v8, %v4330_v16  ;;  %v4329_v36 = vld [vmem:[#allocation7 + $0x3c0] sm:$0xff]  ;;  %v4331_v53 = vld [vmem:[#allocation7 + $0x3d0] sm:$0xff] }
 0x353   :  { %11365 = vst [vmem:[#allocation26_spill] sm:$0xff] %v8663_v9  ;;  %2163 = vmatprep.mubr.f32.mxu0 %v11366_v17  ;;  %v8666_v24 = vpop.f32.mrb[183].mxu1  ;;  %6165 = vmatpush1.bf16.msra.mxu0 %v6164_v28  ;;  %v4246_v9 = vld [vmem:[#allocation7 + $0x128] sm:$0xff]  ;;  %v11370_v17 = vld [vmem:[#allocation28_spill] sm:$0xff]  ;;  %v4247_v32 = vld [vmem:[#allocation7 + $0x130] sm:$0xff] }
 0x354   :  { %11367 = vst [vmem:[#allocation27_spill] sm:$0xff] %v8666_v24  ;;  %6167 = vmatprep.subr.bf16.mxu0 %v6166_v37  ;;  %11369 = vst [vmem:[#allocation170_spill] sm:$0xff] %v8671_v31  ;;  %v6174_v18 = vpack.c.bf16 %v4248_v29, %v4246_v9  ;;  %v4245_v61 = vld [vmem:[#allocation7 + $0x120] sm:$0xff]  ;;  %v4336_v29 = vld [vmem:[#allocation7 + $0x3f8] sm:$0xff] }
 0x355   :  { %11374 = vst [vmem:[#allocation171_spill] sm:$0xff] %v8680_v23  ;;  %6295 = vmatpush1.bf16.msra.mxu1 %v8671_v31  ;;  %v6176_v14 = vpack.c.bf16 %v4247_v32, %v4245_v61  ;;  %v4333_v16 = vld [vmem:[#allocation7 + $0x3e0] sm:$0xff]  ;;  %v4335_v8 = vld [vmem:[#allocation7 + $0x3f0] sm:$0xff]  ;;  %v4254_v31 = vld [vmem:[#allocation7 + $0x168] sm:$0xff] }
 0x356   :  { %2164 = vmatmul.mubr.f32.gmra.mrb[86].mxu0 %v11370_v17  ;;  %v8675_v28 = vpop.f32.mrb[184].mxu1  ;;  %v8683_v17 = vpack.c.bf16 %v4331_v53, %v4329_v36  ;;  %6280 = vmatprep.subr.bf16.mxu1 %v8680_v23  ;;  %v8695_v36 = vpack.c.bf16 %v4335_v8, %v4333_v16  ;;  %v11386_v32 = vld [vmem:[#allocation34_spill] sm:$0xff]  ;;  %v4252_v16 = vld [vmem:[#allocation7 + $0x158] sm:$0xff]  ;;  %v11392_v23 = vld [vmem:[#allocation37_spill] sm:$0xff] }
 0x357   :  { %11371 = vst [vmem:[#allocation28_spill] sm:$0xff] %v8675_v28  ;;  %2169 = vmatprep.mubr.f32.mxu0 %v11372_v40  ;;  %v8678_v37 = vpop.f32.mrb[185].mxu1  ;;  %6169 = vmatpush1.bf16.msra.mxu0 %v6168_v44  ;;  %v11376_v28 = vld [vmem:[#allocation30_spill] sm:$0xff]  ;;  %v11378_v44 = vld [vmem:[#allocation31_spill] sm:$0xff] }
 0x358   :  { %11373 = vst [vmem:[#allocation29_spill] sm:$0xff] %v8678_v37  ;;  %6171 = vmatprep.subr.bf16.mxu0 %v6170_v26  ;;  %11375 = vst [vmem:[#allocation172_spill] sm:$0xff] %v8683_v17  ;;  %v4334_v26 = vld [vmem:[#allocation7 + $0x3e8] sm:$0xff]  ;;  %v11513_v24 = vld [vmem:[#allocation94_spill] sm:$0xff] }
 0x359   :  { %6296 = vmatpush1.bf16.msra.mxu1 %v8683_v17  ;;  %v8693_v9 = vpack.c.bf16 %v4336_v29, %v4334_v26  ;;  %11381 = vst [vmem:[#allocation174_spill] sm:$0xff] %v8695_v36  ;;  %v4250_v29 = vld [vmem:[#allocation7 + $0x148] sm:$0xff]  ;;  %v11390_v17 = vld [vmem:[#allocation36_spill] sm:$0xff] }
 0x35a   :  { %2170 = vmatmul.mubr.f32.gmra.mrb[88].mxu0 %v11376_v28  ;;  %v8687_v40 = vpop.f32.mrb[186].mxu1  ;;  %v11382_v28 = vld [vmem:[#allocation32_spill] sm:$0xff]  ;;  %v6178_v8 = vpack.c.bf16 %v4252_v16, %v4250_v29  ;;  %v11396_v29 = vld [vmem:[#allocation39_spill] sm:$0xff] }
 0x35b   :  { %11377 = vst [vmem:[#allocation30_spill] sm:$0xff] %v8687_v40  ;;  %2175 = vmatprep.mubr.f32.mxu0 %v11378_v44  ;;  %v8690_v15 = vpop.f32.mrb[187].mxu1  ;;  %6173 = vmatpush1.bf16.msra.mxu0 %v6172_v60  ;;  %11380 = vst [vmem:[#allocation173_spill] sm:$0xff] %v8693_v9  ;;  %v11384_v44 = vld [vmem:[#allocation33_spill] sm:$0xff] }
 0x35c   :  { %11379 = vst [vmem:[#allocation31_spill] sm:$0xff] %v8690_v15  ;;  %6175 = vmatprep.subr.bf16.mxu0 %v6174_v18  ;;  %6281 = vmatprep.subr.bf16.mxu1 %v8693_v9  ;;  %v11388_v18 = vld [vmem:[#allocation35_spill] sm:$0xff]  ;;  %v4251_v9 = vld [vmem:[#allocation7 + $0x150] sm:$0xff] }
 0x35d   :  { %6297 = vmatpush1.bf16.msra.mxu1 %v8695_v36 }
 0x35e   :  { %2176 = vmatmul.mubr.f32.gmra.mrb[90].mxu0 %v11382_v28  ;;  %v8698_v53 = vpop.f32.mrb[188].mxu1  ;;  %v4249_v28 = vld [vmem:[#allocation7 + $0x140] sm:$0xff] }
 0x35f   :  { %11383 = vst [vmem:[#allocation32_spill] sm:$0xff] %v8698_v53  ;;  %2181 = vmatprep.mubr.f32.mxu0 %v11384_v44  ;;  %v8702_v61 = vpop.f32.mrb[189].mxu1  ;;  %6177 = vmatpush1.bf16.msra.mxu0 %v6176_v14  ;;  %v6180_v14 = vpack.c.bf16 %v4251_v9, %v4249_v28 }
 0x360   :  { %11385 = vst [vmem:[#allocation33_spill] sm:$0xff] %v8702_v61  ;;  %6179 = vmatprep.subr.bf16.mxu0 %v6178_v8  ;;  %v11400_v8 = vld [vmem:[#allocation41_spill] sm:$0xff] }
 0x362   :  { %2182 = vmatmul.mubr.f32.gmra.mrb[92].mxu0 %v11386_v32  ;;  %v8706_v60 = vpop.f32.mrb[190].mxu1  ;;  %v11394_v32 = vld [vmem:[#allocation38_spill] sm:$0xff] }
 0x363   :  { %11387 = vst [vmem:[#allocation34_spill] sm:$0xff] %v8706_v60  ;;  %2187 = vmatprep.mubr.f32.mxu0 %v11388_v18  ;;  %v8709_v26 = vpop.f32.mrb[191].mxu1  ;;  %6181 = vmatpush1.bf16.msra.mxu0 %v6180_v14  ;;  %v4256_v60 = vld [vmem:[#allocation7 + $0x178] sm:$0xff] }
 0x364   :  { %11389 = vst [vmem:[#allocation35_spill] sm:$0xff] %v8709_v26  ;;  %v4253_v26 = vld [vmem:[#allocation7 + $0x160] sm:$0xff] }
 0x366   :  { %2188 = vmatmul.mubr.f32.gmra.mrb[94].mxu0 %v11390_v17  ;;  %v8712_v44 = vpop.f32.mrb[192].mxu1  ;;  %v6182_v17 = vpack.c.bf16 %v4256_v60, %v4254_v31  ;;  %v11406_v60 = vld [vmem:[#allocation49_spill] sm:$0xff] }
 0x367   :  { %11391 = vst [vmem:[#allocation36_spill] sm:$0xff] %v8712_v44  ;;  %2193 = vmatprep.mubr.f32.mxu0 %v11392_v23  ;;  %v8715_v36 = vpop.f32.mrb[193].mxu1  ;;  %v4255_v44 = vld [vmem:[#allocation7 + $0x170] sm:$0xff]  ;;  %v11398_v23 = vld [vmem:[#allocation40_spill] sm:$0xff] }
 0x368   :  { %11393 = vst [vmem:[#allocation37_spill] sm:$0xff] %v8715_v36  ;;  %v6184_v9 = vpack.c.bf16 %v4255_v44, %v4253_v26  ;;  %6183 = vmatprep.subr.bf16.mxu0 %v6182_v17  ;;  %v11408_v44 = vld [vmem:[#allocation48_spill] sm:$0xff] }
 0x369   :  { %v11496_v36 = vld [vmem:[#allocation88_spill] sm:$0xff] }
 0x36a   :  { %2194 = vmatmul.mubr.f32.gmra.mrb[96].mxu0 %v11394_v32  ;;  %v8718_v18 = vpop.f32.mrb[194].mxu1  ;;  %v11402_v32 = vld [vmem:[#allocation42_spill] sm:$0xff] }
 0x36b   :  { %11395 = vst [vmem:[#allocation38_spill] sm:$0xff] %v8718_v18  ;;  %2199 = vmatprep.mubr.f32.mxu0 %v11396_v29  ;;  %v8721_v16 = vpop.f32.mrb[195].mxu1  ;;  %6185 = vmatpush1.bf16.msra.mxu0 %v6184_v9  ;;  %v11404_v29 = vld [vmem:[#allocation44_spill] sm:$0xff]  ;;  %v4258_v9 = vld [vmem:[#allocation7 + $0x188] sm:$0xff] }
 0x36c   :  { %11397 = vst [vmem:[#allocation39_spill] sm:$0xff] %v8721_v16 }
 0x36e   :  { %2200 = vmatmul.mubr.f32.gmra.mrb[98].mxu0 %v11398_v23  ;;  %v8724_v28 = vpop.f32.mrb[196].mxu1  ;;  %v11410_v23 = vld [vmem:[#allocation46_spill] sm:$0xff] }
 0x36f   :  { %11399 = vst [vmem:[#allocation40_spill] sm:$0xff] %v8724_v28  ;;  %2205 = vmatprep.mubr.f32.mxu0 %v11400_v8  ;;  %v8727_v14 = vpop.f32.mrb[197].mxu1  ;;  %v11412_v28 = vld [vmem:[#allocation45_spill] sm:$0xff] }
 0x370   :  { %11401 = vst [vmem:[#allocation41_spill] sm:$0xff] %v8727_v14  ;;  %v4259_v14 = vld [vmem:[#allocation7 + $0x190] sm:$0xff] }
 0x372   :  { %2206 = vmatmul.mubr.f32.gmra.mrb[100].mxu0 %v11402_v32  ;;  %v8730_v18 = vpop.f32.mrb[198].mxu1  ;;  %v4260_v32 = vld [vmem:[#allocation7 + $0x198] sm:$0xff] }
 0x373   :  { %11403 = vst [vmem:[#allocation42_spill] sm:$0xff] %v8730_v18  ;;  %2211 = vmatprep.mubr.f32.mxu0 %v11404_v29  ;;  %v8733_v31 = vpop.f32.mrb[199].mxu1  ;;  %v6186_v29 = vpack.c.bf16 %v4260_v32, %v4258_v9  ;;  %v11422_v32 = vld [vmem:[#allocation52_spill] sm:$0xff] }
 0x374   :  { %11405 = vst [vmem:[#allocation44_spill] sm:$0xff] %v8733_v31  ;;  %v4257_v31 = vld [vmem:[#allocation7 + $0x180] sm:$0xff] }
 0x375   :  { %6187 = vmatprep.subr.bf16.mxu0 %v6186_v29 }
 0x376   :  { %2212 = vmatmul.mubr.f32.gmra.mrb[102].mxu0 %v11406_v60  ;;  %v8736_v26 = vpop.f32.mrb[200].mxu1  ;;  %v6188_v60 = vpack.c.bf16 %v4259_v14, %v4257_v31  ;;  %v11424_v31 = vld [vmem:[#allocation56_spill] sm:$0xff] }
 0x377   :  { %11407 = vst [vmem:[#allocation49_spill] sm:$0xff] %v8736_v26  ;;  %2217 = vmatprep.mubr.f32.mxu0 %v11408_v44  ;;  %v8739_v17 = vpop.f32.mrb[201].mxu1  ;;  %v11414_v26 = vld [vmem:[#allocation43_spill] sm:$0xff] }
 0x378   :  { %11409 = vst [vmem:[#allocation48_spill] sm:$0xff] %v8739_v17  ;;  %v11416_v17 = vld [vmem:[#allocation50_spill] sm:$0xff]  ;;  %6189 = vmatpush1.bf16.msra.mxu0 %v6188_v60  ;;  %v4262_v60 = vld [vmem:[#allocation7 + $0x1a8] sm:$0xff] }
 0x37a   :  { %2218 = vmatmul.mubr.f32.gmra.mrb[104].mxu0 %v11410_v23  ;;  %v8742_v8 = vpop.f32.mrb[202].mxu1 }
 0x37b   :  { %11411 = vst [vmem:[#allocation46_spill] sm:$0xff] %v8742_v8  ;;  %2223 = vmatprep.mubr.f32.mxu0 %v11412_v28  ;;  %v8745_v18 = vpop.f32.mrb[203].mxu1  ;;  %v11418_v8 = vld [vmem:[#allocation47_spill] sm:$0xff] }
 0x37c   :  { %11413 = vst [vmem:[#allocation45_spill] sm:$0xff] %v8745_v18  ;;  %v11420_v28 = vld [vmem:[#allocation55_spill] sm:$0xff] }
 0x37e   :  { %2224 = vmatmul.mubr.f32.gmra.mrb[106].mxu0 %v11414_v26  ;;  %v8748_v44 = vpop.f32.mrb[204].mxu1 }
 0x37f   :  { %11415 = vst [vmem:[#allocation43_spill] sm:$0xff] %v8748_v44  ;;  %2229 = vmatprep.mubr.f32.mxu0 %v11416_v17  ;;  %v8751_v23 = vpop.f32.mrb[205].mxu1  ;;  %v11426_v17 = vld [vmem:[#allocation59_spill] sm:$0xff] }
 0x380   :  { %11417 = vst [vmem:[#allocation50_spill] sm:$0xff] %v8751_v23  ;;  %v11428_v44 = vld [vmem:[#allocation51_spill] sm:$0xff]  ;;  %v4263_v23 = vld [vmem:[#allocation7 + $0x1b0] sm:$0xff] }
 0x382   :  { %2230 = vmatmul.mubr.f32.gmra.mrb[108].mxu0 %v11418_v8  ;;  %v8754_v16 = vpop.f32.mrb[206].mxu1  ;;  %v4264_v8 = vld [vmem:[#allocation7 + $0x1b8] sm:$0xff] }
 0x383   :  { %11419 = vst [vmem:[#allocation47_spill] sm:$0xff] %v8754_v16  ;;  %2235 = vmatprep.mubr.f32.mxu0 %v11420_v28  ;;  %v8757_v9 = vpop.f32.mrb[207].mxu1  ;;  %v6190_v28 = vpack.c.bf16 %v4264_v8, %v4262_v60  ;;  %v11437_v60 = vld [vmem:[#allocation65_spill] sm:$0xff] }
 0x384   :  { %11421 = vst [vmem:[#allocation55_spill] sm:$0xff] %v8757_v9  ;;  %v4261_v9 = vld [vmem:[#allocation7 + $0x1a0] sm:$0xff] }
 0x385   :  { %6191 = vmatprep.subr.bf16.mxu0 %v6190_v28  ;;  %v11443_v28 = vld [vmem:[#allocation54_spill] sm:$0xff] }
 0x386   :  { %2236 = vmatmul.mubr.f32.gmra.mrb[110].mxu0 %v11422_v32  ;;  %v8760_v14 = vpop.f32.mrb[208].mxu1  ;;  %v6192_v32 = vpack.c.bf16 %v4263_v23, %v4261_v9  ;;  %v11439_v9 = vld [vmem:[#allocation61_spill] sm:$0xff] }
 0x387   :  { %11423 = vst [vmem:[#allocation52_spill] sm:$0xff] %v8760_v14  ;;  %2241 = vmatprep.mubr.f32.mxu0 %v11424_v31  ;;  %v8763_v26 = vpop.f32.mrb[209].mxu1  ;;  %v11430_v14 = vld [vmem:[#allocation53_spill] sm:$0xff] }
 0x388   :  { %11425 = vst [vmem:[#allocation56_spill] sm:$0xff] %v8763_v26  ;;  %v11432_v26 = vld [vmem:[#allocation57_spill] sm:$0xff]  ;;  %6193 = vmatpush1.bf16.msra.mxu0 %v6192_v32  ;;  %v11445_v32 = vld [vmem:[#allocation58_spill] sm:$0xff] }
 0x38a   :  { %2242 = vmatmul.mubr.f32.gmra.mrb[112].mxu0 %v11426_v17  ;;  %v8766_v29 = vpop.f32.mrb[210].mxu1 }
 0x38b   :  { %11427 = vst [vmem:[#allocation59_spill] sm:$0xff] %v8766_v29  ;;  %2247 = vmatprep.mubr.f32.mxu0 %v11428_v44  ;;  %v8769_v16 = vpop.f32.mrb[211].mxu1  ;;  %v11434_v29 = vld [vmem:[#allocation60_spill] sm:$0xff] }
 0x38c   :  { %11429 = vst [vmem:[#allocation51_spill] sm:$0xff] %v8769_v16 }
 0x38e   :  { %2248 = vmatmul.mubr.f32.gmra.mrb[114].mxu0 %v11430_v14  ;;  %v8772_v31 = vpop.f32.mrb[212].mxu1 }
 0x38f   :  { %11431 = vst [vmem:[#allocation53_spill] sm:$0xff] %v8772_v31  ;;  %2253 = vmatprep.mubr.f32.mxu0 %v11432_v26  ;;  %v8775_v17 = vpop.f32.mrb[213].mxu1  ;;  %v11441_v26 = vld [vmem:[#allocation63_spill] sm:$0xff]  ;;  %v4267_v31 = vld [vmem:[#allocation7 + $0x1d0] sm:$0xff] }
 0x390   :  { %11433 = vst [vmem:[#allocation57_spill] sm:$0xff] %v8775_v17  ;;  %v11449_v17 = vld [vmem:[#allocation64_spill] sm:$0xff] }
 0x392   :  { %2254 = vmatmul.mubr.f32.gmra.mrb[116].mxu0 %v11434_v29  ;;  %v8778_v18 = vpop.f32.mrb[214].mxu1 }
 0x393   :  { %11435 = vst [vmem:[#allocation60_spill] sm:$0xff] %v8778_v18  ;;  %2259 = vmatprep.mubr.f32.mxu0 %v7786_v25  ;;  %v8781_v44 = vpop.f32.mrb[215].mxu1  ;;  %v11447_v18 = vld [vmem:[#allocation62_spill] sm:$0xff] }
 0x394   :  { %11436 = vst [vmem:[#allocation175_spill] sm:$0xff] %v8781_v44  ;;  %v4265_v44 = vld [vmem:[#allocation7 + $0x1c0] sm:$0xff] }
 0x396   :  { %2260 = vmatmul.mubr.f32.gmra.mrb[118].mxu0 %v11437_v60  ;;  %v8784_v23 = vpop.f32.mrb[216].mxu1 }
 0x397   :  { %11438 = vst [vmem:[#allocation65_spill] sm:$0xff] %v8784_v23  ;;  %2265 = vmatprep.mubr.f32.mxu0 %v11439_v9  ;;  %v8787_v14 = vpop.f32.mrb[217].mxu1  ;;  %v4266_v23 = vld [vmem:[#allocation7 + $0x1c8] sm:$0xff]  ;;  %v4268_v9 = vld [vmem:[#allocation7 + $0x1d8] sm:$0xff] }
 0x398   :  { %11440 = vst [vmem:[#allocation61_spill] sm:$0xff] %v8787_v14  ;;  %v6194_v14 = vpack.c.bf16 %v4268_v9, %v4266_v23  ;;  %v11457_v23 = vld [vmem:[#allocation70_spill] sm:$0xff] }
 0x39a   :  { %2266 = vmatmul.mubr.f32.gmra.mrb[120].mxu0 %v11441_v26  ;;  %v8790_v8 = vpop.f32.mrb[218].mxu1  ;;  %v6196_v26 = vpack.c.bf16 %v4267_v31, %v4265_v44  ;;  %6195 = vmatprep.subr.bf16.mxu0 %v6194_v14  ;;  %v11461_v14 = vld [vmem:[#allocation68_spill] sm:$0xff] }
 0x39b   :  { %11442 = vst [vmem:[#allocation63_spill] sm:$0xff] %v8790_v8  ;;  %2271 = vmatprep.mubr.f32.mxu0 %v11443_v28  ;;  %v8793_v29 = vpop.f32.mrb[219].mxu1  ;;  %v11451_v28 = vld [vmem:[#allocation67_spill] sm:$0xff] }
 0x39c   :  { %11444 = vst [vmem:[#allocation54_spill] sm:$0xff] %v8793_v29  ;;  %6197 = vmatpush1.bf16.msra.mxu0 %v6196_v26  ;;  %v11463_v26 = vld [vmem:[#allocation73_spill] sm:$0xff] }
 0x39e   :  { %2272 = vmatmul.mubr.f32.gmra.mrb[122].mxu0 %v11445_v32  ;;  %v8796_v25 = vpop.f32.mrb[220].mxu1 }
 0x39f   :  { %11446 = vst [vmem:[#allocation58_spill] sm:$0xff] %v8796_v25  ;;  %2277 = vmatprep.mubr.f32.mxu0 %v11447_v18  ;;  %v8799_v60 = vpop.f32.mrb[221].mxu1  ;;  %v11453_v25 = vld [vmem:[#allocation66_spill] sm:$0xff] }
 0x3a0   :  { %11448 = vst [vmem:[#allocation62_spill] sm:$0xff] %v8799_v60  ;;  %v11455_v60 = vld [vmem:[#allocation72_spill] sm:$0xff] }
 0x3a2   :  { %2278 = vmatmul.mubr.f32.gmra.mrb[124].mxu0 %v11449_v17  ;;  %v8802_v8 = vpop.f32.mrb[222].mxu1  ;;  %v11459_v17 = vld [vmem:[#allocation69_spill] sm:$0xff] }
 0x3a3   :  { %11450 = vst [vmem:[#allocation64_spill] sm:$0xff] %v8802_v8  ;;  %2283 = vmatprep.mubr.f32.mxu0 %v11451_v28  ;;  %v8805_v32 = vpop.f32.mrb[223].mxu1  ;;  %v4270_v28 = vld [vmem:[#allocation7 + $0x1e8] sm:$0xff]  ;;  %v4271_v8 = vld [vmem:[#allocation7 + $0x1f0] sm:$0xff] }
 0x3a4   :  { %11452 = vst [vmem:[#allocation67_spill] sm:$0xff] %v8805_v32  ;;  %v11465_v32 = vld [vmem:[#allocation71_spill] sm:$0xff] }
 0x3a6   :  { %2284 = vmatmul.mubr.f32.gmra.mrb[126].mxu0 %v11453_v25  ;;  %v8808_v18 = vpop.f32.mrb[224].mxu1 }
 0x3a7   :  { %11454 = vst [vmem:[#allocation66_spill] sm:$0xff] %v8808_v18  ;;  %2289 = vmatprep.mubr.f32.mxu0 %v11455_v60  ;;  %v8811_v29 = vpop.f32.mrb[225].mxu1  ;;  %v4272_v60 = vld [vmem:[#allocation7 + $0x1f8] sm:$0xff]  ;;  %v4269_v18 = vld [vmem:[#allocation7 + $0x1e0] sm:$0xff] }
 0x3a8   :  { %11456 = vst [vmem:[#allocation72_spill] sm:$0xff] %v8811_v29  ;;  %v6198_v29 = vpack.c.bf16 %v4272_v60, %v4270_v28  ;;  %v11477_v60 = vld [vmem:[#allocation79_spill] sm:$0xff] }
 0x3aa   :  { %2290 = vmatmul.mubr.f32.gmra.mrb[128].mxu0 %v11457_v23  ;;  %v8814_v31 = vpop.f32.mrb[226].mxu1  ;;  %v6200_v23 = vpack.c.bf16 %v4271_v8, %v4269_v18  ;;  %6199 = vmatprep.subr.bf16.mxu0 %v6198_v29  ;;  %v11473_v8 = vld [vmem:[#allocation77_spill] sm:$0xff]  ;;  %v11475_v29 = vld [vmem:[#allocation78_spill] sm:$0xff] }
 0x3ab   :  { %11458 = vst [vmem:[#allocation70_spill] sm:$0xff] %v8814_v31  ;;  %2295 = vmatprep.mubr.f32.mxu0 %v11459_v17  ;;  %v8817_v44 = vpop.f32.mrb[227].mxu1  ;;  %v11467_v17 = vld [vmem:[#allocation75_spill] sm:$0xff] }
 0x3ac   :  { %11460 = vst [vmem:[#allocation69_spill] sm:$0xff] %v8817_v44  ;;  %6201 = vmatpush1.bf16.msra.mxu0 %v6200_v23 }
 0x3ad   :  { %6203 = vmatprep.subr.bf16.mxu0 %v8394_v49  ;;  %v11479_v49 = vld [vmem:[#allocation80_spill] sm:$0xff] }
 0x3ae   :  { %2296 = vmatmul.mubr.f32.gmra.mrb[130].mxu0 %v11461_v14  ;;  %v8820_v9 = vpop.f32.mrb[228].mxu1 }
 0x3af   :  { %11462 = vst [vmem:[#allocation68_spill] sm:$0xff] %v8820_v9  ;;  %2301 = vmatprep.mubr.f32.mxu0 %v11463_v26  ;;  %v8823_v25 = vpop.f32.mrb[229].mxu1  ;;  %v11469_v26 = vld [vmem:[#allocation74_spill] sm:$0xff] }
 0x3b0   :  { %11464 = vst [vmem:[#allocation73_spill] sm:$0xff] %v8823_v25  ;;  %v11471_v25 = vld [vmem:[#allocation76_spill] sm:$0xff] }
 0x3b2   :  { %2302 = vmatmul.mubr.f32.gmra.mrb[132].mxu0 %v11465_v32  ;;  %v8826_v31 = vpop.f32.mrb[230].mxu1 }
 0x3b3   :  { %11466 = vst [vmem:[#allocation71_spill] sm:$0xff] %v8826_v31  ;;  %2307 = vmatprep.mubr.f32.mxu0 %v11467_v17  ;;  %v8829_v14 = vpop.f32.mrb[231].mxu1  ;;  %v11489_v31 = vld [vmem:[#allocation85_spill] sm:$0xff] }
 0x3b4   :  { %11468 = vst [vmem:[#allocation75_spill] sm:$0xff] %v8829_v14 }
 0x3b6   :  { %2308 = vmatmul.mubr.f32.gmra.mrb[134].mxu0 %v11469_v26  ;;  %v8833_v9 = vpop.f32.mrb[232].mxu1  ;;  %v11481_v26 = vld [vmem:[#allocation81_spill] sm:$0xff] }
 0x3b7   :  { %11470 = vst [vmem:[#allocation74_spill] sm:$0xff] %v8833_v9  ;;  %2313 = vmatprep.mubr.f32.mxu0 %v11471_v25  ;;  %v8836_v28 = vpop.f32.mrb[233].mxu1  ;;  %v11483_v9 = vld [vmem:[#allocation82_spill] sm:$0xff] }
 0x3b8   :  { %11472 = vst [vmem:[#allocation76_spill] sm:$0xff] %v8836_v28  ;;  %v11485_v28 = vld [vmem:[#allocation83_spill] sm:$0xff] }
 0x3ba   :  { %2314 = vmatmul.mubr.f32.gmra.mrb[136].mxu0 %v11473_v8  ;;  %v8839_v32 = vpop.f32.mrb[234].mxu1 }
 0x3bb   :  { %11474 = vst [vmem:[#allocation77_spill] sm:$0xff] %v8839_v32  ;;  %2319 = vmatprep.mubr.f32.mxu0 %v11475_v29  ;;  %v8842_v18 = vpop.f32.mrb[235].mxu1  ;;  %v6667_v32 = vmov 1966171168  }
 0x3bc   :  { %11476 = vst [vmem:[#allocation78_spill] sm:$0xff] %v8842_v18  ;;  %v2968_v29 = vunpack.c.l.s4 %v6667_v32 }
 0x3be   :  { %2320 = vmatmul.mubr.f32.gmra.mrb[138].mxu0 %v11477_v60  ;;  %v8845_v23 = vpop.f32.mrb[236].mxu1  ;;  %v11487_v60 = vld [vmem:[#allocation84_spill] sm:$0xff] }
 0x3bf   :  { %11478 = vst [vmem:[#allocation79_spill] sm:$0xff] %v8845_v23  ;;  %2325 = vmatprep.mubr.f32.mxu0 %v11479_v49  ;;  %v8848_v17 = vpop.f32.mrb[237].mxu1  ;;  %v2969_v49 = vunpack.c.0.s8 %v2968_v29 }
 0x3c0   :  { %11480 = vst [vmem:[#allocation80_spill] sm:$0xff] %v8848_v17 }
 0x3c2   :  { %2326 = vmatmul.mubr.f32.gmra.mrb[140].mxu0 %v11481_v26  ;;  %v8851_v25 = vpop.f32.mrb[238].mxu1 }
 0x3c3   :  { %11482 = vst [vmem:[#allocation81_spill] sm:$0xff] %v8851_v25  ;;  %2331 = vmatprep.mubr.f32.mxu0 %v11483_v9  ;;  %v8854_v8 = vpop.f32.mrb[239].mxu1 }
 0x3c4   :  { %11484 = vst [vmem:[#allocation82_spill] sm:$0xff] %v8854_v8  ;;  %v11491_v8 = vld [vmem:[#allocation86_spill] sm:$0xff] }
 0x3c6   :  { %2332 = vmatmul.mubr.f32.gmra.mrb[142].mxu0 %v11485_v28  ;;  %v8857_v18 = vpop.f32.mrb[240].mxu1  ;;  %v11493_v28 = vld [vmem:[#allocation12_spill] sm:$0xff] }
 0x3c7   :  { %11486 = vst [vmem:[#allocation83_spill] sm:$0xff] %v8857_v18  ;;  %2337 = vmatprep.mubr.f32.mxu0 %v11487_v60  ;;  %v8860_v23 = vpop.f32.mrb[241].mxu1  ;;  %v8869_v44 = vsub.s32 %v2969_v49, %v11493_v28  ;;  %v11495_v60 = vld [vmem:[#allocation87_spill] sm:$0xff]  ;;  %v11500_v49 = vcombine.high %v8629_v46, %v8633_v30 }
 0x3c8   :  { %11488 = vst [vmem:[#allocation84_spill] sm:$0xff] %v8860_v23 }
 0x3c9   :  { %v1847_v17 = vpop.f32.mrb[66].mxu0  ;;  %11494 = vst [vmem:[#allocation12_spill] sm:$0xff] %v8869_v44 }
 0x3ca   :  { %2338 = vmatmul.mubr.f32.gmra.mrb[144].mxu0 %v11489_v31  ;;  %v1849_v26 = vpop.f32.mrb[67].mxu0  ;;  %v8863_v25 = vpop.f32.mrb[242].mxu1 }
 0x3cb   :  { %11490 = vst [vmem:[#allocation85_spill] sm:$0xff] %v8863_v25  ;;  %v3031_v9 = vcombine.low %v1847_v17, %v1849_v26  ;;  %v3032_v14 = vcombine.high %v1847_v17, %v1849_v26  ;;  %2343 = vmatprep.mubr.f32.mxu0 %v11491_v8  ;;  %v8866_v32 = vpop.f32.mrb[243].mxu1  ;;  %v11499_v17 = vcombine.low %v8629_v46, %v8633_v30 }
 0x3cc   :  { %11492 = vst [vmem:[#allocation86_spill] sm:$0xff] %v8866_v32  ;;  %v8885_v26 = vrot.slane %v11500_v49, %v8869_v44 }
 0x3cd   :  { %v1918_v18 = vpop.f32.mrb[68].mxu0  ;;  %v2973_v8 = vrot.slane %v11499_v17, %v8869_v44  ;;  %v8896_v17 = vsub.s32 3, %v11493_v28  ;;  %v8919_v30 = vrot.slane %v3032_v14, %v8869_v44  ;;  %v11509_v14 = vld [vmem:[#allocation92_spill] sm:$0xff] }
 0x3ce   :  { %2344 = vmatmul.mubr.f32.gmra.mrb[146].mxu0 %v11495_v60  ;;  %v1920_v23 = vpop.f32.mrb[69].mxu0 }
 0x3cf   :  { %v2965_v29 = vcombine.low %v1918_v18, %v1920_v23  ;;  %v2966_v16 = vcombine.high %v1918_v18, %v1920_v23  ;;  %2349 = vmatprep.mubr.f32.mxu0 %v11496_v36  ;;  %v8873_v31 = vpop.f32.mrb[244].mxu1  ;;  %v8892_v23 = vsub.s32 2, %v11493_v28  ;;  %11506 = vst [vmem:[#allocation177_spill] sm:$0xff] %v8919_v30  ;;  %v11516_v30 = vld [vmem:[#allocation95_spill] sm:$0xff] }
 0x3d0   :  { %11497 = vst [vmem:[#allocation87_spill] sm:$0xff] %v8873_v31  ;;  %v8875_v25 = vpop.f32.mrb[245].mxu1  ;;  %v11501_v31 = vld [vmem:[#allocation89_spill] sm:$0xff] }
 0x3d1   :  { %11498 = vst [vmem:[#allocation88_spill] sm:$0xff] %v8875_v25  ;;  %v2987_v60 = vrot.slane %v2965_v29, %v8869_v44  ;;  %v8889_v18 = vrot.slane %v2966_v16, %v8869_v44  ;;  %v1924_v36 = vpop.f32.mrb[70].mxu0  ;;  %v11502_v16 = vld [vmem:[#allocation90_spill] sm:$0xff] }
 0x3d2   :  { %2350 = vmatmul.mubr.f32.gmra.mrb[148].mxu0 %v11501_v31  ;;  %v1926_v25 = vpop.f32.mrb[71].mxu0  ;;  %v8908_v31 = vld [vmem:[%s10984_s7] sm:$0xf] }
 0x3d3   :  { %v2995_v32 = vcombine.low %v2973_v8, %v2987_v60  ;;  %v2996_v53 = vcombine.high %v2973_v8, %v2987_v60  ;;  %2355 = vmatprep.mubr.f32.mxu0 %v11502_v16  ;;  %v8903_v29 = vpop.f32.mrb[246].mxu1  ;;  %11504 = vst [vmem:[#allocation90_spill] sm:$0xff] %v8908_v31  ;;  %v3033_v49 = vcombine.low %v1924_v36, %v1926_v25 }
 0x3d4   :  { %11503 = vst [vmem:[#allocation89_spill] sm:$0xff] %v8903_v29  ;;  %v3034_v28 = vcombine.high %v1924_v36, %v1926_v25  ;;  %v8910_v61 = vpop.f32.mrb[247].mxu1  ;;  %v8916_v60 = vrot.slane %v3031_v9, %v8869_v44  ;;  %v11508_v29 = vld [vmem:[#allocation91_spill] sm:$0xff]  ;;  %v8936_v9 = vrot.slane %v8908_v31, %v8896_v17 }
 0x3d5   :  { %11505 = vst [vmem:[#allocation176_spill] sm:$0xff] %v8910_v61  ;;  %v8913_v8 = vrot.slane %v2996_v53, %v8869_v44  ;;  %v8922_v16 = vrot.slane %v3033_v49, %v8869_v44  ;;  %v8932_v53 = vrot.slane %v8908_v31, %v8892_v23 }
 0x3d6   :  { %v8925_v46 = vrot.slane %v3034_v28, %v8869_v44  ;;  %2356 = vmatmul.mubr.f32.gmra.mrb[150].mxu0 %v11508_v29  ;;  %v11512_v29 = vld [vmem:[#allocation93_spill] sm:$0xff] }
 0x3d7   :  { %v3126_v25 = vrot.slane %v8913_v8, %v8892_v23  ;;  %2361 = vmatprep.mubr.f32.mxu0 %v11509_v14  ;;  %v8939_v36 = vpop.f32.mrb[248].mxu1  ;;  %v3130_v49 = vrot.slane %v8913_v8, %v8896_v17 }
 0x3d8   :  { %11507 = vst [vmem:[#allocation178_spill] sm:$0xff] %v8925_v46  ;;  %11510 = vst [vmem:[#allocation91_spill] sm:$0xff] %v8939_v36  ;;  %v8951_v40 = vpop.f32.mrb[249].mxu1 }
 0x3d9   :  { %11511 = vst [vmem:[#allocation92_spill] sm:$0xff] %v8951_v40  ;;  %v3438_v14 = vadd.f32 %v3130_v49, %v8472_v5  ;;  %v3437_v36 = vadd.f32 %v3126_v25, %v8469_v59  ;;  %v3442_v15 = vadd.f32 %v3130_v49, %v8479_v22  ;;  %v3441_v37 = vadd.f32 %v3126_v25, %v8477_v39 }
 0x3da   :  { %2362 = vmatmul.mubr.f32.gmra.mrb[152].mxu0 %v11512_v29  ;;  %v3446_v59 = vadd.f32 %v3130_v49, %v8486_v43  ;;  %v3445_v5 = vadd.f32 %v3126_v25, %v8483_v13  ;;  %v8971_v29 = vrot.slane %v2995_v32, %v8869_v44  ;;  %v11521_v13 = vld [vmem:[#allocation97_spill] sm:$0xff] }
 0x3db   :  { %2367 = vmatprep.mubr.f32.mxu0 %v11513_v24  ;;  %v8959_v28 = vpop.f32.mrb[250].mxu1  ;;  %v3716_v61 = vadd.f32 %v8936_v9, %v3438_v14  ;;  %v3715_v31 = vadd.f32 %v8932_v53, %v3437_v36  ;;  %v3720_v40 = vadd.f32 %v8936_v9, %v3442_v15  ;;  %v3719_v24 = vadd.f32 %v8932_v53, %v3441_v37  ;;  %v11518_v14 = vld [vmem:[#allocation96_spill] sm:$0xff] }
 0x3dc   :  { %11514 = vst [vmem:[#allocation93_spill] sm:$0xff] %v8959_v28  ;;  %v8964_v46 = vpop.f32.mrb[251].mxu1  ;;  %11517 = vst [vmem:[#allocation95_spill] sm:$0xff] %v8971_v29  ;;  %v3450_v28 = vadd.f32 %v3130_v49, %v8497_v47  ;;  %v3724_v37 = vadd.f32 %v8936_v9, %v3446_v59  ;;  %v3723_v32 = vadd.f32 %v8932_v53, %v3445_v5  ;;  %v11525_v49 = vld [vmem:[#allocation99_spill] sm:$0xff]  ;;  %v11526_v5 = vld [vmem:[#allocation100_spill] sm:$0xff] }
 0x3dd   :  { %11515 = vst [vmem:[#allocation94_spill] sm:$0xff] %v8964_v46  ;;  %v3972_v22 = vmax.f32 %v3716_v61, 0.0  ;;  %v3971_v39 = vmax.f32 %v3715_v31, 0.0  ;;  %v3976_v15 = vmax.f32 %v3720_v40, 0.0  ;;  %v3975_v61 = vmax.f32 %v3719_v24, 0.0 }
 0x3de   :  { %2368 = vmatmul.mubr.f32.gmra.mrb[154].mxu0 %v11516_v30  ;;  %v11522_v30 = vld [vmem:[#allocation98_spill] sm:$0xff]  ;;  %v8987_v40 = vcombine.high %v8971_v29, %v8971_v29  ;;  %v8994_v59 = vcombine.high %v8913_v8, %v8913_v8  ;;  %v3728_v24 = vadd.f32 %v8936_v9, %v3450_v28 }
 0x3df   :  { %2373 = vmatprep.mubr.f32.mxu0 %v11518_v14  ;;  %v8974_v36 = vpop.f32.mrb[252].mxu1  ;;  %4886 = vmatprep.mubr.f32.mxu1 %v3972_v22  ;;  %v3980_v22 = vmax.f32 %v3724_v37, 0.0  ;;  %v3449_v14 = vadd.f32 %v3126_v25, %v8494_v33 }
 0x3e0   :  { %11519 = vst [vmem:[#allocation96_spill] sm:$0xff] %v8974_v36  ;;  %v8977_v43 = vpop.f32.mrb[253].mxu1  ;;  %4887 = vmatmul.mubr.f32.vlgmr.msra.gmra.mrb[0].mxu1 %v3971_v39  ;;  %v3979_v39 = vmax.f32 %v3723_v32, 0.0  ;;  %v3162_v25 = vrot.slane %v8994_v59, %v8896_v17  ;;  %v11575_v36 = vld [vmem:[#allocation124_spill] sm:$0xff] }
 0x3e1   :  { %11520 = vst [vmem:[#allocation179_spill] sm:$0xff] %v8977_v43  ;;  %4892 = vmatprep.mubr.f32.mxu1 %v3976_v15  ;;  %v3146_v15 = vrot.slane %v8987_v40, %v8896_v17  ;;  %v3727_v37 = vadd.f32 %v8932_v53, %v3449_v14  ;;  %v11529_v14 = vld [vmem:[#allocation103_spill] sm:$0xff] }
 0x3e2   :  { %2374 = vmatmul.mubr.f32.gmra.mrb[156].mxu0 %v11521_v13  ;;  %v3142_v13 = vrot.slane %v8987_v40, %v8892_v23 }
 0x3e3   :  { %2379 = vmatprep.mubr.f32.mxu0 %v11522_v30  ;;  %v8983_v31 = vpop.f32.mrb[254].mxu1  ;;  %v3454_v32 = vadd.f32 %v3146_v15, %v8504_v41  ;;  %v3458_v28 = vadd.f32 %v3146_v15, %v8510_v45  ;;  %v3462_v45 = vadd.f32 %v3146_v15, %v8516_v19 }
 0x3e4   :  { %11523 = vst [vmem:[#allocation97_spill] sm:$0xff] %v8983_v31  ;;  %v8989_v47 = vpop.f32.mrb[255].mxu1  ;;  %4893 = vmatmul.mubr.f32.gmra.mrb[2].mxu1 %v3975_v61  ;;  %v3984_v61 = vmax.f32 %v3728_v24, 0.0  ;;  %v3453_v30 = vadd.f32 %v3142_v13, %v8502_v58  ;;  %v3457_v33 = vadd.f32 %v3142_v13, %v8508_v3  ;;  %v3158_v58 = vrot.slane %v8994_v59, %v8892_v23 }
 0x3e5   :  { %11524 = vst [vmem:[#allocation98_spill] sm:$0xff] %v8989_v47  ;;  %4898 = vmatprep.mubr.f32.mxu1 %v3980_v22  ;;  %v3983_v22 = vmax.f32 %v3727_v37, 0.0  ;;  %v3736_v41 = vadd.f32 %v8936_v9, %v3458_v28  ;;  %v11530_v37 = vld [vmem:[#allocation104_spill] sm:$0xff]  ;;  %v3740_v19 = vadd.f32 %v8936_v9, %v3462_v45 }
 0x3e6   :  { %2380 = vmatmul.mubr.f32.gmra.mrb[158].mxu0 %v11525_v49  ;;  %v11527_v49 = vld [vmem:[#allocation101_spill] sm:$0xff]  ;;  %v3731_v24 = vadd.f32 %v8932_v53, %v3453_v30  ;;  %v3466_v30 = vadd.f32 %v3146_v15, %v8526_v1  ;;  %v3469_v28 = vadd.f32 %v3158_v58, %v8529_v35  ;;  %v3465_v35 = vadd.f32 %v3142_v13, %v8523_v20  ;;  %v11533_v15 = vld [vmem:[#allocation107_spill] sm:$0xff] }
 0x3e7   :  { %2385 = vmatprep.mubr.f32.mxu0 %v11526_v5  ;;  %v11528_v5 = vld [vmem:[#allocation102_spill] sm:$0xff]  ;;  %v3992_v31 = vmax.f32 %v3736_v41, 0.0  ;;  %v11532_v1 = vld [vmem:[#allocation105_spill] sm:$0xff]  ;;  %v3482_v41 = vadd.f32 %v3162_v25, %v8548_v38  ;;  %v3996_v45 = vmax.f32 %v3740_v19, 0.0  ;;  %v11537_v38 = vld [vmem:[#allocation111_spill] sm:$0xff] }
 0x3e8   :  { %4899 = vmatmul.mubr.f32.gmra.mrb[4].mxu1 %v3979_v39  ;;  %v3732_v39 = vadd.f32 %v8936_v9, %v3454_v32  ;;  %v3987_v32 = vmax.f32 %v3731_v24, 0.0  ;;  %v3747_v19 = vadd.f32 %v8932_v53, %v3469_v28 }
 0x3e9   :  { %4904 = vmatprep.mubr.f32.mxu1 %v3984_v61  ;;  %v3735_v61 = vadd.f32 %v8932_v53, %v3457_v33  ;;  %v11531_v33 = vcombine.low %v8885_v26, %v8889_v18 }
 0x3ea   :  { %2386 = vmatmul.mubr.f32.gmra.mrb[160].mxu0 %v11527_v49  ;;  %v3988_v3 = vmax.f32 %v3732_v39, 0.0  ;;  %v3461_v49 = vadd.f32 %v3142_v13, %v8514_v4  ;;  %v3473_v39 = vadd.f32 %v3158_v58, %v8533_v55  ;;  %v3478_v4 = vadd.f32 %v3162_v25, %v8539_v0 }
 0x3eb   :  { %2391 = vmatprep.mubr.f32.mxu0 %v11528_v5  ;;  %v3470_v5 = vadd.f32 %v3162_v25, %v8531_v51  ;;  %v9033_v24 = vrot.slane %v11531_v33, %v8869_v44  ;;  %v3477_v51 = vadd.f32 %v3158_v58, %v8537_v27  ;;  %v3744_v0 = vadd.f32 %v8936_v9, %v3466_v30  ;;  %v11536_v27 = vld [vmem:[#allocation112_spill] sm:$0xff] }
 0x3ec   :  { %4905 = vmatmul.mubr.f32.gmra.mrb[6].mxu1 %v3983_v22  ;;  %v3474_v22 = vadd.f32 %v3162_v25, %v8535_v48  ;;  %v3991_v48 = vmax.f32 %v3735_v61, 0.0  ;;  %v3739_v55 = vadd.f32 %v8932_v53, %v3461_v49  ;;  %v4003_v28 = vmax.f32 %v3747_v19, 0.0 }
 0x3ed   :  { %4910 = vmatprep.mubr.f32.mxu1 %v3988_v3  ;;  %v3481_v3 = vadd.f32 %v3158_v58, %v8545_v42  ;;  %v3178_v13 = vrot.slane %v9033_v24, %v8896_v17  ;;  %v4000_v61 = vmax.f32 %v3744_v0, 0.0  ;;  %v3743_v42 = vadd.f32 %v8932_v53, %v3465_v35 }
 0x3ee   :  { %2392 = vmatmul.mubr.f32.gmra.mrb[162].mxu0 %v11529_v14  ;;  %v3174_v14 = vrot.slane %v9033_v24, %v8892_v23  ;;  %v3995_v25 = vmax.f32 %v3739_v55, 0.0  ;;  %v3748_v58 = vadd.f32 %v8936_v9, %v3470_v5 }
 0x3ef   :  { %2397 = vmatprep.mubr.f32.mxu0 %v11530_v37  ;;  %v9062_v49 = vadd.f32 %v3178_v13, %v8557_v7  ;;  %v9074_v5 = vadd.f32 %v3178_v13, %v8570_v34  ;;  %v11539_v7 = vld [vmem:[#allocation108_spill] sm:$0xff]  ;;  %v11540_v34 = vld [vmem:[#allocation106_spill] sm:$0xff] }
 0x3f0   :  { %4911 = vmatmul.mubr.f32.gmra.mrb[8].mxu1 %v3987_v32  ;;  %v9065_v37 = vadd.f32 %v3174_v14, %v8555_v56  ;;  %v9068_v32 = vadd.f32 %v3178_v13, %v8561_v11  ;;  %v9071_v30 = vadd.f32 %v3174_v14, %v8559_v54  ;;  %v3999_v56 = vmax.f32 %v3743_v42, 0.0 }
 0x3f1   :  { %4916 = vmatprep.mubr.f32.mxu1 %v3992_v31  ;;  %v11534_v31 = vcombine.high %v8885_v26, %v8889_v18  ;;  %v3486_v26 = vadd.f32 %v3178_v13, %v8553_v52  ;;  %v9059_v18 = vadd.f32 %v3174_v14, %v8551_v12  ;;  %v11538_v52 = vld [vmem:[#allocation109_spill] sm:$0xff]  ;;  %v4004_v33 = vmax.f32 %v3748_v58, 0.0  ;;  %v11544_v13 = vld [vmem:[#allocation118_spill] sm:$0xff] }
 0x3f2   :  { %2398 = vmatmul.mubr.f32.gmra.mrb[164].mxu0 %v11532_v1  ;;  %v3752_v11 = vadd.f32 %v8936_v9, %v3474_v22  ;;  %v9083_v54 = vadd.f32 %v3174_v14, %v8567_v2  ;;  %v3751_v1 = vadd.f32 %v8932_v53, %v3473_v39  ;;  %v3756_v39 = vadd.f32 %v8936_v9, %v3478_v4 }
 0x3f3   :  { %2403 = vmatprep.mubr.f32.mxu0 %v11533_v15  ;;  %v9047_v20 = vrot.slane %v11534_v31, %v8869_v44  ;;  %v3760_v14 = vadd.f32 %v8936_v9, %v3482_v41 }
 0x3f4   :  { %4917 = vmatmul.mubr.f32.gmra.mrb[10].mxu1 %v3991_v48  ;;  %v11541_v48 = vld [vmem:[#allocation113_spill] sm:$0xff]  ;;  %v4008_v0 = vmax.f32 %v3752_v11, 0.0  ;;  %v4007_v4 = vmax.f32 %v3751_v1, 0.0  ;;  %v11552_v11 = vld [vmem:[#allocation22_spill] sm:$0xff] }
 0x3f5   :  { %11535 = vst [vmem:[#allocation99_spill] sm:$0xff] %v9047_v20  ;;  %4922 = vmatprep.mubr.f32.mxu1 %v3996_v45  ;;  %v3194_v12 = vrot.slane %v9047_v20, %v8896_v17  ;;  %v3190_v15 = vrot.slane %v9047_v20, %v8892_v23  ;;  %v9132_v41 = vcombine.high %v9047_v20, %v9047_v20  ;;  %v4016_v58 = vmax.f32 %v3760_v14, 0.0  ;;  %v11553_v1 = vld [vmem:[#allocation122_spill] sm:$0xff] }
 0x3f6   :  { %2404 = vmatmul.mubr.f32.gmra.mrb[166].mxu0 %v11536_v27  ;;  %v3768_v14 = vadd.f32 %v8936_v9, %v9062_v49  ;;  %v3767_v49 = vadd.f32 %v8932_v53, %v9065_v37  ;;  %v11567_v37 = vld [vmem:[#allocation33_spill] sm:$0xff] }
 0x3f7   :  { %2409 = vmatprep.mubr.f32.mxu0 %v11537_v38  ;;  %v9088_v35 = vadd.f32 %v3194_v12, %v8575_v57  ;;  %v9094_v22 = vadd.f32 %v3194_v12, %v8587_v21  ;;  %v9097_v2 = vadd.f32 %v3194_v12, %v8598_v50  ;;  %v9100_v55 = vadd.f32 %v3194_v12, %v8610_v63  ;;  %v11542_v21 = vld [vmem:[#allocation110_spill] sm:$0xff]  ;;  %v11549_v12 = vld [vmem:[#allocation21_spill] sm:$0xff] }
 0x3f8   :  { %4923 = vmatmul.mubr.f32.gmra.mrb[12].mxu1 %v3995_v25  ;;  %v9104_v57 = vadd.f32 %v3190_v15, %v8573_v62  ;;  %v9107_v45 = vadd.f32 %v3190_v15, %v8583_v6  ;;  %v9110_v31 = vadd.f32 %v3190_v15, %v8594_v10  ;;  %v3755_v50 = vadd.f32 %v8932_v53, %v3477_v51  ;;  %v11543_v63 = vld [vmem:[#allocation18_spill] sm:$0xff]  ;;  %v11546_v10 = vld [vmem:[#allocation115_spill] sm:$0xff] }
 0x3f9   :  { %4928 = vmatprep.mubr.f32.mxu1 %v4000_v61  ;;  %v9115_v27 = vadd.f32 %v3190_v15, %v11543_v63  ;;  %v4012_v62 = vmax.f32 %v3756_v39, 0.0  ;;  %v9121_v6 = vcombine.high %v9033_v24, %v9033_v24  ;;  %v11547_v25 = vld [vmem:[#allocation119_spill] sm:$0xff]  ;;  %v3759_v51 = vadd.f32 %v8932_v53, %v3481_v3  ;;  %11548 = vst [vmem:[#allocation101_spill] sm:$0xff] %v9132_v41  ;;  %v11554_v15 = vld [vmem:[#allocation25_spill] sm:$0xff] }
 0x3fa   :  { %2410 = vmatmul.mubr.f32.gmra.mrb[168].mxu0 %v11538_v52  ;;  %v4011_v38 = vmax.f32 %v3755_v50, 0.0  ;;  %v3764_v52 = vadd.f32 %v8936_v9, %v3486_v26  ;;  %v11551_v3 = vld [vmem:[#allocation23_spill] sm:$0xff]  ;;  %v11555_v26 = vld [vmem:[#allocation24_spill] sm:$0xff]  ;;  %v3763_v63 = vadd.f32 %v8932_v53, %v9059_v18  ;;  %v11559_v18 = vcombine.low %v8916_v60, %v8922_v16 }
 0x3fb   :  { %2415 = vmatprep.mubr.f32.mxu0 %v11539_v7  ;;  %11545 = vst [vmem:[#allocation100_spill] sm:$0xff] %v9121_v6  ;;  %v3210_v61 = vrot.slane %v9121_v6, %v8896_v17  ;;  %v3206_v42 = vrot.slane %v9121_v6, %v8892_v23  ;;  %v4015_v50 = vmax.f32 %v3759_v51, 0.0  ;;  %v11584_v6 = vld [vmem:[#allocation41_spill] sm:$0xff] }
 0x3fc   :  { %4929 = vmatmul.mubr.f32.gmra.mrb[14].mxu1 %v3999_v56  ;;  %v11550_v56 = vld [vmem:[#allocation20_spill] sm:$0xff]  ;;  %v9175_v51 = vrot.slane %v11559_v18, %v8869_v44  ;;  %v11569_v18 = vld [vmem:[#allocation126_spill] sm:$0xff] }
 0x3fd   :  { %4934 = vmatprep.mubr.f32.mxu1 %v4004_v33  ;;  %v9136_v7 = vadd.f32 %v3210_v61, %v11549_v12  ;;  %v9139_v19 = vadd.f32 %v3206_v42, %v11550_v56  ;;  %v9142_v33 = vadd.f32 %v3210_v61, %v11551_v3  ;;  %v3772_v12 = vadd.f32 %v8936_v9, %v9068_v32  ;;  %v11563_v56 = vld [vmem:[#allocation29_spill] sm:$0xff] }
 0x3fe   :  { %2416 = vmatmul.mubr.f32.gmra.mrb[170].mxu0 %v11540_v34  ;;  %v9145_v34 = vadd.f32 %v3206_v42, %v11552_v11  ;;  %11560 = vst [vmem:[#allocation102_spill] sm:$0xff] %v9175_v51  ;;  %v11564_v11 = vld [vmem:[#allocation28_spill] sm:$0xff] }
 0x3ff   :  { %2421 = vmatprep.mubr.f32.mxu0 %v11541_v48  ;;  %v9149_v48 = vadd.f32 %v3210_v61, %v11554_v15  ;;  %v4024_v15 = vmax.f32 %v3768_v14, 0.0  ;;  %v3242_v14 = vrot.slane %v9175_v51, %v8896_v17 }
 0x400   :  { %4935 = vmatmul.mubr.f32.gmra.mrb[16].mxu1 %v4003_v28  ;;  %v9152_v28 = vadd.f32 %v3206_v42, %v11555_v26  ;;  %v11565_v26 = vld [vmem:[#allocation31_spill] sm:$0xff] }
 0x401   :  { %4940 = vmatprep.mubr.f32.mxu1 %v4008_v0  ;;  %v11556_v0 = vld [vmem:[#allocation27_spill] sm:$0xff]  ;;  %v9258_v20 = vadd.f32 %v3242_v14, %v11584_v6 }
 0x402   :  { %2422 = vmatmul.mubr.f32.gmra.mrb[172].mxu0 %v11542_v21  ;;  %v9155_v39 = vadd.f32 %v3210_v61, %v11556_v0  ;;  %v11557_v21 = vld [vmem:[#allocation114_spill] sm:$0xff] }
 0x403   :  { %2427 = vmatprep.mubr.f32.mxu0 %v11544_v13  ;;  %v3226_v13 = vrot.slane %v9132_v41, %v8896_v17  ;;  %11585 = vst [vmem:[#allocation105_spill] sm:$0xff] %v9258_v20  ;;  %v11592_v20 = vld [vmem:[#allocation121_spill] sm:$0xff] }
 0x404   :  { %4941 = vmatmul.mubr.f32.gmra.mrb[18].mxu1 %v4007_v4  ;;  %v3222_v4 = vrot.slane %v9132_v41, %v8892_v23 }
 0x405   :  { %4946 = vmatprep.mubr.f32.mxu1 %v4012_v62  ;;  %v4020_v62 = vmax.f32 %v3764_v52, 0.0  ;;  %v11562_v52 = vld [vmem:[#allocation120_spill] sm:$0xff]  ;;  %v9186_v3 = vadd.f32 %v3226_v13, %v11563_v56  ;;  %v9192_v0 = vadd.f32 %v3226_v13, %v11565_v26  ;;  %v4028_v56 = vmax.f32 %v3772_v12, 0.0  ;;  %v11573_v12 = vld [vmem:[#allocation129_spill] sm:$0xff] }
 0x406   :  { %2428 = vmatmul.mubr.f32.gmra.mrb[174].mxu0 %v11546_v10  ;;  %v11558_v10 = vld [vmem:[#allocation26_spill] sm:$0xff] }
 0x407   :  { %2433 = vmatprep.mubr.f32.mxu0 %v11547_v25 }
 0x408   :  { %4947 = vmatmul.mubr.f32.gmra.mrb[20].mxu1 %v4011_v38  ;;  %v9167_v38 = vadd.f32 %v3206_v42, %v11558_v10  ;;  %v4019_v42 = vmax.f32 %v3763_v63, 0.0  ;;  %v11568_v10 = vld [vmem:[#allocation123_spill] sm:$0xff] }
 0x409   :  { %4952 = vmatprep.mubr.f32.mxu1 %v4016_v58  ;;  %v11561_v58 = vld [vmem:[#allocation116_spill] sm:$0xff] }
 0x40a   :  { %2434 = vmatmul.mubr.f32.gmra.mrb[176].mxu0 %v11553_v1  ;;  %v9189_v1 = vadd.f32 %v3222_v4, %v11564_v11  ;;  %v3776_v11 = vadd.f32 %v8936_v9, %v9074_v5  ;;  %v11574_v5 = vld [vmem:[#allocation37_spill] sm:$0xff] }
 0x40b   :  { %2439 = vmatprep.mubr.f32.mxu0 %v11557_v21  ;;  %v11566_v21 = vld [vmem:[#allocation30_spill] sm:$0xff]  ;;  %v9229_v47 = vadd.f32 %v3242_v14, %v11574_v5 }
 0x40c   :  { %4953 = vmatmul.mubr.f32.gmra.mrb[22].mxu1 %v4015_v50  ;;  %v9195_v50 = vadd.f32 %v3222_v4, %v11566_v21  ;;  %v4032_v43 = vmax.f32 %v3776_v11, 0.0 }
 0x40d   :  { %v9169_v25 = vpop.f32.mrb[72].mxu0  ;;  %4958 = vmatprep.mubr.f32.mxu1 %v4020_v62  ;;  %v9198_v62 = vadd.f32 %v3226_v13, %v11567_v37  ;;  %v11571_v37 = vld [vmem:[#allocation35_spill] sm:$0xff] }
 0x40e   :  { %v9177_v61 = vpop.f32.mrb[73].mxu0  ;;  %2440 = vmatmul.mubr.f32.gmra.mrb[178].mxu0 %v11561_v58  ;;  %v4023_v58 = vmax.f32 %v3767_v49, 0.0  ;;  %v11572_v49 = vld [vmem:[#allocation34_spill] sm:$0xff] }
 0x40f   :  { %2445 = vmatprep.mubr.f32.mxu0 %v11562_v52  ;;  %v3771_v52 = vadd.f32 %v8932_v53, %v9071_v30 }
 0x410   :  { %4959 = vmatmul.mubr.f32.gmra.mrb[24].mxu1 %v4019_v42  ;;  %v3238_v42 = vrot.slane %v9175_v51, %v8892_v23 }
 0x411   :  { %v9200_v63 = vpop.f32.mrb[74].mxu0  ;;  %4964 = vmatprep.mubr.f32.mxu1 %v4024_v15  ;;  %v11570_v15 = vld [vmem:[#allocation32_spill] sm:$0xff] }
 0x412   :  { %v9202_v32 = vpop.f32.mrb[75].mxu0  ;;  %2446 = vmatmul.mubr.f32.gmra.mrb[180].mxu0 %v11568_v10  ;;  %v9217_v21 = vadd.f32 %v3222_v4, %v11570_v15  ;;  %v9220_v10 = vadd.f32 %v3226_v13, %v11571_v37  ;;  %v3775_v15 = vadd.f32 %v8932_v53, %v9083_v54  ;;  %v3780_v13 = vadd.f32 %v8936_v9, %v9088_v35  ;;  %v11581_v54 = vld [vmem:[#allocation14_spill] sm:$0xff] }
 0x413   :  { %2451 = vmatprep.mubr.f32.mxu0 %v11569_v18  ;;  %v9223_v18 = vadd.f32 %v3222_v4, %v11572_v49  ;;  %v11576_v4 = vld [vmem:[#allocation36_spill] sm:$0xff]  ;;  %v3118_v11 = vrot.slane %v8913_v8, %v11581_v54 }
 0x414   :  { %4965 = vmatmul.mubr.f32.gmra.mrb[26].mxu1 %v4023_v58  ;;  %v4027_v58 = vmax.f32 %v3771_v52, 0.0  ;;  %v9237_v37 = vadd.f32 %v3238_v42, %v11576_v4  ;;  %v11580_v52 = vld [vmem:[#allocation117_spill] sm:$0xff]  ;;  %v4031_v35 = vmax.f32 %v3775_v15, 0.0  ;;  %v3779_v4 = vadd.f32 %v8932_v53, %v9104_v57 }
 0x415   :  { %v9214_v26 = vpop.f32.mrb[76].mxu0  ;;  %4970 = vmatprep.mubr.f32.mxu1 %v4028_v56  ;;  %v11577_v56 = vld [vmem:[#allocation39_spill] sm:$0xff]  ;;  %v4036_v46 = vmax.f32 %v3780_v13, 0.0  ;;  %v11588_v15 = vcombine.high %v8916_v60, %v8922_v16  ;;  %v11590_v13 = vld [vmem:[#allocation44_spill] sm:$0xff]  ;;  %v3783_v16 = vadd.f32 %v8932_v53, %v9107_v45  ;;  %v3787_v45 = vadd.f32 %v8932_v53, %v9110_v31 }
 0x416   :  { %v9225_v30 = vpop.f32.mrb[77].mxu0  ;;  %2452 = vmatmul.mubr.f32.gmra.mrb[182].mxu0 %v11573_v12  ;;  %v9242_v12 = vadd.f32 %v3242_v14, %v11577_v56  ;;  %v11582_v56 = vld [vmem:[#allocation38_spill] sm:$0xff]  ;;  %v4035_v60 = vmax.f32 %v3779_v4, 0.0 }
 0x417   :  { %2457 = vmatprep.mubr.f32.mxu0 %v11575_v36  ;;  %v11579_v36 = vld [vmem:[#allocation127_spill] sm:$0xff]  ;;  %v9255_v41 = vadd.f32 %v3238_v42, %v11582_v56  ;;  %v9272_v56 = vadd.f32 %v3242_v14, %v11590_v13  ;;  %v11594_v14 = vld [vmem:[#allocation42_spill] sm:$0xff] }
 0x418   :  { %4971 = vmatmul.mubr.f32.gmra.mrb[28].mxu1 %v4027_v58  ;;  %11578 = vst [vmem:[#allocation103_spill] sm:$0xff] %v9242_v12  ;;  %v3784_v58 = vadd.f32 %v8936_v9, %v9094_v22  ;;  %v11589_v12 = vld [vmem:[#allocation13_spill] sm:$0xff] }
 0x419   :  { %v9239_v49 = vpop.f32.mrb[78].mxu0  ;;  %4976 = vmatprep.mubr.f32.mxu1 %v4032_v43  ;;  %11583 = vst [vmem:[#allocation104_spill] sm:$0xff] %v9255_v41  ;;  %v11586_v43 = vld [vmem:[#allocation40_spill] sm:$0xff]  ;;  %v3122_v22 = vrot.slane %v8913_v8, %v11589_v12  ;;  %11591 = vst [vmem:[#allocation112_spill] sm:$0xff] %v9272_v56  ;;  %v3788_v8 = vadd.f32 %v8936_v9, %v9097_v2 }
 0x41a   :  { %v9244_v5 = vpop.f32.mrb[79].mxu0  ;;  %2458 = vmatmul.mubr.f32.gmra.mrb[184].mxu0 %v11579_v36  ;;  %v9261_v36 = vadd.f32 %v3238_v42, %v11586_v43 }
 0x41b   :  { %2463 = vmatprep.mubr.f32.mxu0 %v11580_v52  ;;  %v9267_v52 = vrot.slane %v11588_v15, %v8869_v44  ;;  %v9285_v15 = vadd.f32 %v3238_v42, %v11594_v14  ;;  %v11597_v42 = vld [vmem:[#allocation131_spill] sm:$0xff]  ;;  %v11600_v14 = vld [vmem:[#allocation45_spill] sm:$0xff]  ;;  %v4044_v44 = vmax.f32 %v3788_v8, 0.0 }
 0x41c   :  { %11587 = vst [vmem:[#allocation107_spill] sm:$0xff] %v9261_v36  ;;  %4977 = vmatmul.mubr.f32.gmra.mrb[30].mxu1 %v4031_v35  ;;  %v11593_v36 = vld [vmem:[#allocation125_spill] sm:$0xff]  ;;  %v4040_v35 = vmax.f32 %v3784_v58, 0.0  ;;  %v4039_v58 = vmax.f32 %v3783_v16, 0.0 }
 0x41d   :  { %v2147_v57 = vpop.f32.mrb[80].mxu0  ;;  %4982 = vmatprep.mubr.f32.mxu1 %v4036_v46  ;;  %11595 = vst [vmem:[#allocation111_spill] sm:$0xff] %v9285_v15  ;;  %v3258_v46 = vrot.slane %v9267_v52, %v8896_v17  ;;  %v3254_v2 = vrot.slane %v9267_v52, %v8892_v23  ;;  %v11604_v15 = vld [vmem:[#allocation46_spill] sm:$0xff] }
 0x41e   :  { %v9274_v41 = vadd.f32 %v3118_v11, %v2147_v57  ;;  %v2149_v6 = vpop.f32.mrb[81].mxu0  ;;  %2464 = vmatmul.mubr.f32.gmra.mrb[186].mxu0 %v11592_v20 }
 0x41f   :  { %v9277_v43 = vadd.f32 %v3122_v22, %v2149_v6  ;;  %2469 = vmatprep.mubr.f32.mxu0 %v11593_v36  ;;  %v11596_v36 = vld [vmem:[#allocation128_spill] sm:$0xff]  ;;  %v9311_v56 = vadd.f32 %v3254_v2, %v11604_v15  ;;  %v3791_v15 = vadd.f32 %v8932_v53, %v9115_v27  ;;  %v11614_v27 = vld [vmem:[#allocation134_spill] sm:$0xff] }
 0x420   :  { %4983 = vmatmul.mubr.f32.gmra.mrb[32].mxu1 %v4035_v60  ;;  %v11598_v6 = vld [vmem:[#allocation48_spill] sm:$0xff] }
 0x421   :  { %v2153_v57 = vpop.f32.mrb[82].mxu0  ;;  %4988 = vmatprep.mubr.f32.mxu1 %v4040_v35  ;;  %v9300_v60 = vadd.f32 %v3258_v46, %v11598_v6  ;;  %v3792_v35 = vadd.f32 %v8936_v9, %v9100_v55  ;;  %11605 = vst [vmem:[#allocation113_spill] sm:$0xff] %v9311_v56  ;;  %v11609_v55 = vld [vmem:[#allocation136_spill] sm:$0xff] }
 0x422   :  { %v9289_v20 = vadd.f32 %v3118_v11, %v2153_v57  ;;  %v2155_v13 = vpop.f32.mrb[83].mxu0  ;;  %2470 = vmatmul.mubr.f32.gmra.mrb[188].mxu0 %v11596_v36  ;;  %v9303_v57 = vadd.f32 %v3258_v46, %v11600_v14  ;;  %v11602_v36 = vld [vmem:[#allocation49_spill] sm:$0xff]  ;;  %v11608_v14 = vld [vmem:[#allocation130_spill] sm:$0xff] }
 0x423   :  { %v9296_v4 = vadd.f32 %v3122_v22, %v2155_v13  ;;  %2475 = vmatprep.mubr.f32.mxu0 %v11597_v42  ;;  %11599 = vst [vmem:[#allocation109_spill] sm:$0xff] %v9300_v60  ;;  %v9308_v31 = vadd.f32 %v3254_v2, %v11602_v36  ;;  %v11606_v42 = vld [vmem:[#allocation50_spill] sm:$0xff]  ;;  %v4043_v36 = vmax.f32 %v3787_v45, 0.0  ;;  %v4048_v56 = vmax.f32 %v3792_v35, 0.0  ;;  %v11615_v35 = vld [vmem:[#allocation47_spill] sm:$0xff] }
 0x424   :  { %11601 = vst [vmem:[#allocation108_spill] sm:$0xff] %v9303_v57  ;;  %4989 = vmatmul.mubr.f32.gmra.mrb[34].mxu1 %v4039_v58  ;;  %v9314_v16 = vadd.f32 %v3258_v46, %v11606_v42  ;;  %v3796_v58 = vadd.f32 %v8936_v9, %v9136_v7  ;;  %v3795_v7 = vadd.f32 %v8932_v53, %v9139_v19 }
 0x425   :  { %11603 = vst [vmem:[#allocation106_spill] sm:$0xff] %v9308_v31  ;;  %v2159_v13 = vpop.f32.mrb[84].mxu0  ;;  %4994 = vmatprep.mubr.f32.mxu1 %v4044_v44  ;;  %v9342_v57 = vadd.f32 %v3254_v2, %v11615_v35  ;;  %v9357_v19 = vrot.slane %v8987_v40, %v11581_v54  ;;  %v11621_v35 = vld [vmem:[#allocation132_spill] sm:$0xff] }
 0x426   :  { %11607 = vst [vmem:[#allocation110_spill] sm:$0xff] %v9314_v16  ;;  %v9316_v6 = vadd.f32 %v3118_v11, %v2159_v13  ;;  %v2161_v60 = vpop.f32.mrb[85].mxu0  ;;  %2476 = vmatmul.mubr.f32.gmra.mrb[190].mxu0 %v11608_v14  ;;  %v9328_v13 = vrot.slane %v8971_v29, %v11589_v12  ;;  %v11610_v14 = vld [vmem:[#allocation43_spill] sm:$0xff] }
 0x427   :  { %v9319_v8 = vadd.f32 %v3122_v22, %v2161_v60  ;;  %2481 = vmatprep.mubr.f32.mxu0 %v11609_v55  ;;  %v9331_v44 = vadd.f32 %v3254_v2, %v11610_v14  ;;  %v11612_v60 = vld [vmem:[#allocation55_spill] sm:$0xff]  ;;  %11616 = vst [vmem:[#allocation115_spill] sm:$0xff] %v9342_v57  ;;  %v4052_v2 = vmax.f32 %v3796_v58, 0.0  ;;  %v3799_v58 = vadd.f32 %v8932_v53, %v9145_v34  ;;  %v11622_v34 = vld [vmem:[#allocation137_spill] sm:$0xff] }
 0x428   :  { %4995 = vmatmul.mubr.f32.gmra.mrb[36].mxu1 %v4043_v36  ;;  %v9334_v16 = vadd.f32 %v3258_v46, %v11612_v60  ;;  %v11617_v36 = vld [vmem:[#allocation90_spill] sm:$0xff]  ;;  %v11618_v46 = vld [vmem:[#allocation133_spill] sm:$0xff]  ;;  %v9361_v60 = vcombine.high %v9175_v51, %v9175_v51 }
 0x429   :  { %v2165_v42 = vpop.f32.mrb[86].mxu0  ;;  %11611 = vst [vmem:[#allocation18_spill] sm:$0xff] %v9331_v44  ;;  %5000 = vmatprep.mubr.f32.mxu1 %v4048_v56  ;;  %v9346_v31 = vrot.slane %v11617_v36, %v11589_v12  ;;  %v3420_v56 = vadd.f32 %v9328_v13, %v9177_v61  ;;  %v9373_v61 = vrot.slane %v8987_v40, %v11589_v12 }
 0x42a   :  { %11613 = vst [vmem:[#allocation118_spill] sm:$0xff] %v9334_v16  ;;  %v9336_v45 = vadd.f32 %v3118_v11, %v2165_v42  ;;  %v2167_v55 = vpop.f32.mrb[87].mxu0  ;;  %2482 = vmatmul.mubr.f32.gmra.mrb[192].mxu0 %v11614_v27  ;;  %v4047_v11 = vmax.f32 %v3791_v15, 0.0  ;;  %v3800_v42 = vadd.f32 %v8936_v9, %v9142_v33  ;;  %11619 = vst [vmem:[#allocation119_spill] sm:$0xff] %v9361_v60  ;;  %v11627_v16 = vld [vmem:[#allocation57_spill] sm:$0xff] }
 0x42b   :  { %v9348_v14 = vadd.f32 %v3122_v22, %v2167_v55  ;;  %2487 = vmatprep.mubr.f32.mxu0 %v11618_v46  ;;  %v9365_v22 = vrot.slane %v8971_v29, %v11581_v54  ;;  %v9369_v15 = vrot.slane %v11617_v36, %v11581_v54  ;;  %v4051_v46 = vmax.f32 %v3795_v7, 0.0 }
 0x42c   :  { %5001 = vmatmul.mubr.f32.gmra.mrb[38].mxu1 %v4047_v11  ;;  %v3804_v36 = vadd.f32 %v8936_v9, %v9149_v48  ;;  %v3274_v11 = vrot.slane %v9361_v60, %v8896_v17  ;;  %v3698_v7 = vadd.f32 %v9346_v31, %v3420_v56  ;;  %v11625_v48 = vld [vmem:[#allocation51_spill] sm:$0xff]  ;;  %v11633_v56 = vld [vmem:[#allocation53_spill] sm:$0xff] }
 0x42d   :  { %v2171_v33 = vpop.f32.mrb[88].mxu0  ;;  %5006 = vmatprep.mubr.f32.mxu1 %v4052_v2  ;;  %v3419_v40 = vadd.f32 %v9365_v22, %v9169_v25  ;;  %v11623_v2 = vld [vmem:[#allocation56_spill] sm:$0xff]  ;;  %v3424_v25 = vadd.f32 %v9328_v13, %v9202_v32  ;;  %v3803_v32 = vadd.f32 %v8932_v53, %v9152_v28  ;;  %v3428_v28 = vadd.f32 %v9328_v13, %v9225_v30 }
 0x42e   :  { %v9378_v55 = vadd.f32 %v9357_v19, %v2171_v33  ;;  %v2173_v27 = vpop.f32.mrb[89].mxu0  ;;  %2488 = vmatmul.mubr.f32.gmra.mrb[194].mxu0 %v11621_v35  ;;  %v4056_v33 = vmax.f32 %v3800_v42, 0.0  ;;  %v3270_v35 = vrot.slane %v9361_v60, %v8892_v23  ;;  %v9395_v51 = vadd.f32 %v3274_v11, %v11623_v2  ;;  %v11629_v42 = vld [vmem:[#allocation52_spill] sm:$0xff]  ;;  %v11631_v60 = vld [vmem:[#allocation59_spill] sm:$0xff] }
 0x42f   :  { %v9388_v29 = vadd.f32 %v9373_v61, %v2173_v27  ;;  %2493 = vmatprep.mubr.f32.mxu0 %v11622_v34  ;;  %v9398_v57 = vadd.f32 %v3274_v11, %v11625_v48  ;;  %v9401_v44 = vadd.f32 %v3274_v11, %v11627_v16  ;;  %v11635_v16 = vld [vmem:[#allocation135_spill] sm:$0xff] }
 0x430   :  { %11620 = vst [vmem:[#allocation21_spill] sm:$0xff] %v9378_v55  ;;  %11624 = vst [vmem:[#allocation20_spill] sm:$0xff] %v9395_v51  ;;  %5007 = vmatmul.mubr.f32.gmra.mrb[40].mxu1 %v4051_v46  ;;  %v9406_v34 = vadd.f32 %v3270_v35, %v11629_v42  ;;  %v9409_v55 = vadd.f32 %v3270_v35, %v11631_v60  ;;  %v9412_v2 = vadd.f32 %v3270_v35, %v11633_v56  ;;  %v11636_v56 = vld [vmem:[#allocation140_spill] sm:$0xff] }
 0x431   :  { %11626 = vst [vmem:[#allocation23_spill] sm:$0xff] %v9398_v57  ;;  %11628 = vst [vmem:[#allocation22_spill] sm:$0xff] %v9401_v44  ;;  %v2177_v27 = vpop.f32.mrb[90].mxu0  ;;  %5012 = vmatprep.mubr.f32.mxu1 %v4056_v33  ;;  %v9422_v46 = vrot.slane %v8994_v59, %v11581_v54  ;;  %v3423_v60 = vadd.f32 %v9365_v22, %v9200_v63  ;;  %v3697_v33 = vadd.f32 %v9369_v15, %v3419_v40 }
 0x432   :  { %11630 = vst [vmem:[#allocation122_spill] sm:$0xff] %v9406_v34  ;;  %11632 = vst [vmem:[#allocation25_spill] sm:$0xff] %v9409_v55  ;;  %v9415_v48 = vadd.f32 %v9357_v19, %v2177_v27  ;;  %v2179_v57 = vpop.f32.mrb[91].mxu0  ;;  %2494 = vmatmul.mubr.f32.gmra.mrb[196].mxu0 %v11635_v16  ;;  %v4055_v27 = vmax.f32 %v3799_v58, 0.0  ;;  %v3808_v16 = vadd.f32 %v8936_v9, %v9155_v39  ;;  %v3954_v55 = vmax.f32 %v3698_v7, 0.0  ;;  %v11640_v34 = vld [vmem:[#allocation60_spill] sm:$0xff] }
 0x433   :  { %11634 = vst [vmem:[#allocation24_spill] sm:$0xff] %v9412_v2  ;;  %v9427_v42 = vadd.f32 %v9373_v61, %v2179_v57  ;;  %2499 = vmatprep.mubr.f32.mxu0 %v11636_v56  ;;  %v4060_v2 = vmax.f32 %v3804_v36, 0.0  ;;  %v3807_v44 = vadd.f32 %v8932_v53, %v9167_v38  ;;  %v3702_v63 = vadd.f32 %v9346_v31, %v3424_v25  ;;  %v11638_v38 = vld [vmem:[#allocation139_spill] sm:$0xff] }
 0x434   :  { %5013 = vmatmul.mubr.f32.gmra.mrb[42].mxu1 %v4055_v27  ;;  %v9440_v58 = vrot.slane %v8994_v59, %v11589_v12  ;;  %v3812_v39 = vadd.f32 %v8936_v9, %v9186_v3  ;;  %v3427_v40 = vadd.f32 %v9365_v22, %v9214_v26  ;;  %v4059_v7 = vmax.f32 %v3803_v32, 0.0  ;;  %v11639_v25 = vld [vmem:[#allocation175_spill] sm:$0xff] }
 0x435   :  { %v2183_v57 = vpop.f32.mrb[92].mxu0  ;;  %5018 = vmatprep.mubr.f32.mxu1 %v4060_v2  ;;  %v9451_v56 = vadd.f32 %v3274_v11, %v11639_v25  ;;  %v3701_v59 = vadd.f32 %v9369_v15, %v3423_v60  ;;  %v4064_v3 = vmax.f32 %v3808_v16, 0.0  ;;  %v9458_v26 = vadd.f32 %v3270_v35, %v11640_v34  ;;  %v11645_v25 = vld [vmem:[#allocation62_spill] sm:$0xff] }
 0x436   :  { %v9447_v30 = vadd.f32 %v9357_v19, %v2183_v57  ;;  %v2185_v36 = vpop.f32.mrb[93].mxu0  ;;  %2500 = vmatmul.mubr.f32.gmra.mrb[198].mxu0 %v11638_v38  ;;  %v3953_v57 = vmax.f32 %v3697_v33, 0.0  ;;  %v3706_v51 = vadd.f32 %v9346_v31, %v3428_v28  ;;  %v9463_v2 = vcombine.high %v9267_v52, %v9267_v52  ;;  %v11644_v38 = vld [vmem:[#allocation54_spill] sm:$0xff] }
 0x437   :  { %v9455_v27 = vadd.f32 %v9373_v61, %v2185_v36  ;;  %4413 = vmatprep.mubr.f32.mxu0 %v3954_v55  ;;  %v3958_v11 = vmax.f32 %v3702_v63, 0.0  ;;  %v3432_v32 = vadd.f32 %v9328_v13, %v9244_v5  ;;  %v3811_v55 = vadd.f32 %v8932_v53, %v9189_v1 }
 0x438   :  { %11637 = vst [vmem:[#allocation27_spill] sm:$0xff] %v9447_v30  ;;  %v4063_v30 = vmax.f32 %v3807_v44, 0.0  ;;  %5019 = vmatmul.mubr.f32.gmra.mrb[44].mxu1 %v4059_v7  ;;  %v3816_v35 = vadd.f32 %v8936_v9, %v9192_v0  ;;  %v3705_v34 = vadd.f32 %v9369_v15, %v3427_v40  ;;  %v4068_v33 = vmax.f32 %v3812_v39, 0.0  ;;  %v11641_v0 = vld [vmem:[#allocation138_spill] sm:$0xff]  ;;  %v11642_v40 = vld [vmem:[#allocation147_spill] sm:$0xff]  ;;  %v11643_v39 = vld [vmem:[#allocation61_spill] sm:$0xff] }
 0x439   :  { %v2189_v60 = vpop.f32.mrb[94].mxu0  ;;  %5024 = vmatprep.mubr.f32.mxu1 %v4064_v3  ;;  %v3290_v5 = vrot.slane %v9463_v2, %v8896_v17  ;;  %v3957_v13 = vmax.f32 %v3701_v59, 0.0  ;;  %v3431_v28 = vadd.f32 %v9365_v22, %v9239_v49  ;;  %v3962_v63 = vmax.f32 %v3706_v51, 0.0  ;;  %v11646_v59 = vld [vmem:[#allocation65_spill] sm:$0xff] }
 0x43a   :  { %v9473_v44 = vadd.f32 %v9357_v19, %v2189_v60  ;;  %v2191_v16 = vpop.f32.mrb[95].mxu0  ;;  %4414 = vmatmul.mubr.f32.vlgmr.msra.gmra.mrb[200].mxu0 %v3953_v57  ;;  %v3286_v19 = vrot.slane %v9463_v2, %v8892_v23  ;;  %v3710_v22 = vadd.f32 %v9346_v31, %v3432_v32  ;;  %v11647_v57 = vld [vmem:[#allocation63_spill] sm:$0xff]  ;;  %v3815_v32 = vadd.f32 %v8932_v53, %v9195_v50 }
 0x43b   :  { %v9480_v1 = vadd.f32 %v9373_v61, %v2191_v16  ;;  %4419 = vmatprep.mubr.f32.mxu0 %v3958_v11  ;;  %6205 = vmatpush1.bf16.msra.mxu0 %v11641_v0  ;;  %v9487_v36 = vadd.f32 %v3290_v5, %v11643_v39  ;;  %v9490_v7 = vadd.f32 %v3290_v5, %v11644_v38  ;;  %v11648_v11 = vld [vmem:[#allocation58_spill] sm:$0xff]  ;;  %v11649_v39 = vld [vmem:[#allocation148_spill] sm:$0xff]  ;;  %v3961_v38 = vmax.f32 %v3705_v34, 0.0  ;;  %v11651_v34 = vld [vmem:[#allocation67_spill] sm:$0xff] }
 0x43c   :  { %6207 = vmatprep.subr.bf16.mxu0 %v11642_v40  ;;  %v9493_v49 = vadd.f32 %v3290_v5, %v11645_v25  ;;  %5025 = vmatmul.mubr.f32.gmra.mrb[46].mxu1 %v4063_v30  ;;  %v9497_v3 = vadd.f32 %v3286_v19, %v11646_v59  ;;  %v9500_v51 = vadd.f32 %v3286_v19, %v11647_v57  ;;  %v4067_v30 = vmax.f32 %v3811_v55, 0.0  ;;  %v11650_v57 = vld [vmem:[#allocation151_spill] sm:$0xff] }
 0x43d   :  { %v2195_v61 = vpop.f32.mrb[96].mxu0  ;;  %v9503_v60 = vadd.f32 %v3286_v19, %v11648_v11  ;;  %5030 = vmatprep.mubr.f32.mxu1 %v4068_v33  ;;  %v3709_v25 = vadd.f32 %v9369_v15, %v3431_v28  ;;  %v4072_v59 = vmax.f32 %v3816_v35, 0.0  ;;  %v3966_v33 = vmax.f32 %v3710_v22, 0.0  ;;  %v11653_v11 = vld [vmem:[#allocation64_spill] sm:$0xff] }
 0x43e   :  { %v9506_v16 = vadd.f32 %v9422_v46, %v2195_v61  ;;  %v2197_v0 = vpop.f32.mrb[97].mxu0  ;;  %4420 = vmatmul.mubr.f32.gmra.mrb[202].mxu0 %v3957_v13  ;;  %v3820_v61 = vadd.f32 %v8936_v9, %v9198_v62  ;;  %v3714_v13 = vadd.f32 %v9346_v31, %v9277_v43  ;;  %v9524_v28 = vadd.f32 %v3290_v5, %v11651_v34  ;;  %v11652_v43 = vld [vmem:[#allocation152_spill] sm:$0xff]  ;;  %v11656_v34 = vld [vmem:[#allocation155_spill] sm:$0xff] }
 0x43f   :  { %v9509_v40 = vadd.f32 %v9440_v58, %v2197_v0  ;;  %4425 = vmatprep.mubr.f32.mxu0 %v3962_v63  ;;  %6209 = vmatpush1.bf16.msra.mxu0 %v11649_v39  ;;  %v4071_v62 = vmax.f32 %v3815_v32, 0.0  ;;  %v3819_v22 = vadd.f32 %v8932_v53, %v9217_v21  ;;  %v9533_v0 = vadd.f32 %v3286_v19, %v11653_v11 }
 0x440   :  { %6211 = vmatprep.subr.bf16.mxu0 %v11650_v57  ;;  %5031 = vmatmul.mubr.f32.gmra.mrb[48].mxu1 %v4067_v30  ;;  %v3965_v30 = vmax.f32 %v3709_v25, 0.0  ;;  %v3713_v39 = vadd.f32 %v9369_v15, %v9274_v41  ;;  %v3824_v5 = vadd.f32 %v8936_v9, %v9220_v10  ;;  %v3970_v57 = vmax.f32 %v3714_v13, 0.0 }
 0x441   :  { %v2201_v63 = vpop.f32.mrb[98].mxu0  ;;  %5036 = vmatprep.mubr.f32.mxu1 %v4072_v59  ;;  %v11654_v59 = vld [vmem:[#allocation153_spill] sm:$0xff]  ;;  %v3718_v32 = vadd.f32 %v9346_v31, %v9296_v4  ;;  %v4075_v25 = vmax.f32 %v3819_v22, 0.0  ;;  %v3823_v10 = vadd.f32 %v8932_v53, %v9223_v18  ;;  %v3717_v4 = vadd.f32 %v9369_v15, %v9289_v20 }
 0x442   :  { %v9521_v55 = vadd.f32 %v9422_v46, %v2201_v63  ;;  %v2203_v50 = vpop.f32.mrb[99].mxu0  ;;  %4426 = vmatmul.mubr.f32.gmra.mrb[204].mxu0 %v3961_v38  ;;  %v4076_v38 = vmax.f32 %v3820_v61, 0.0  ;;  %v11655_v61 = vld [vmem:[#allocation154_spill] sm:$0xff]  ;;  %v3969_v13 = vmax.f32 %v3713_v39, 0.0  ;;  %v4080_v63 = vmax.f32 %v3824_v5, 0.0  ;;  %v11657_v39 = vld [vmem:[#allocation156_spill] sm:$0xff] }
 0x443   :  { %v9527_v35 = vadd.f32 %v9440_v58, %v2203_v50  ;;  %4431 = vmatprep.mubr.f32.mxu0 %v3966_v33  ;;  %6213 = vmatpush1.bf16.msra.mxu0 %v11652_v43  ;;  %v3828_v50 = vadd.f32 %v8936_v9, %v9229_v47  ;;  %v3722_v43 = vadd.f32 %v9346_v31, %v9319_v8 }
 0x444   :  { %6215 = vmatprep.subr.bf16.mxu0 %v11654_v59  ;;  %5037 = vmatmul.mubr.f32.gmra.mrb[50].mxu1 %v4071_v62  ;;  %v3974_v62 = vmax.f32 %v3718_v32, 0.0  ;;  %v9566_v47 = vrot.slane %v9033_v24, %v11581_v54  ;;  %v3827_v8 = vadd.f32 %v8932_v53, %v9237_v37  ;;  %v11658_v59 = vld [vmem:[#allocation103_spill] sm:$0xff]  ;;  %v3170_v37 = vrot.slane %v9033_v24, %v11589_v12 }
 0x445   :  { %v2207_v21 = vpop.f32.mrb[100].mxu0  ;;  %5042 = vmatprep.mubr.f32.mxu1 %v4076_v38  ;;  %v3973_v38 = vmax.f32 %v3717_v4, 0.0  ;;  %v4084_v5 = vmax.f32 %v3828_v50, 0.0  ;;  %v3978_v32 = vmax.f32 %v3722_v43, 0.0  ;;  %v3725_v50 = vadd.f32 %v9369_v15, %v9336_v45  ;;  %v11663_v43 = vld [vmem:[#allocation159_spill] sm:$0xff] }
 0x446   :  { %v9543_v33 = vadd.f32 %v9422_v46, %v2207_v21  ;;  %v2209_v19 = vpop.f32.mrb[101].mxu0  ;;  %4432 = vmatmul.mubr.f32.gmra.mrb[206].mxu0 %v3965_v30  ;;  %v4079_v30 = vmax.f32 %v3823_v10, 0.0  ;;  %v3726_v21 = vadd.f32 %v9346_v31, %v9348_v14 }
 0x447   :  { %v9546_v41 = vadd.f32 %v9440_v58, %v2209_v19  ;;  %4437 = vmatprep.mubr.f32.mxu0 %v3970_v57  ;;  %6217 = vmatpush1.bf16.msra.mxu0 %v11655_v61  ;;  %v11659_v57 = vld [vmem:[#allocation157_spill] sm:$0xff]  ;;  %v4083_v61 = vmax.f32 %v3827_v8, 0.0 }
 0x448   :  { %6219 = vmatprep.subr.bf16.mxu0 %v11656_v34  ;;  %5043 = vmatmul.mubr.f32.gmra.mrb[52].mxu1 %v4075_v25  ;;  %v11662_v34 = vld [vmem:[#allocation105_spill] sm:$0xff] }
 0x449   :  { %v2213_v22 = vpop.f32.mrb[102].mxu0  ;;  %5048 = vmatprep.mubr.f32.mxu1 %v4080_v63  ;;  %v11661_v63 = vld [vmem:[#allocation158_spill] sm:$0xff] }
 0x44a   :  { %v9559_v18 = vadd.f32 %v9422_v46, %v2213_v22  ;;  %v2215_v11 = vpop.f32.mrb[103].mxu0  ;;  %4438 = vmatmul.mubr.f32.gmra.mrb[208].mxu0 %v3969_v13  ;;  %v3721_v46 = vadd.f32 %v9369_v15, %v9316_v6  ;;  %v11660_v13 = vld [vmem:[#allocation104_spill] sm:$0xff]  ;;  %v3982_v22 = vmax.f32 %v3726_v21, 0.0 }
 0x44b   :  { %v9562_v20 = vadd.f32 %v9440_v58, %v2215_v11  ;;  %4443 = vmatprep.mubr.f32.mxu0 %v3974_v62  ;;  %6221 = vmatpush1.bf16.msra.mxu0 %v11657_v39  ;;  %v3832_v58 = vadd.f32 %v8936_v9, %v11658_v59  ;;  %v3831_v4 = vadd.f32 %v8932_v53, %v11660_v13  ;;  %v11665_v59 = vld [vmem:[#allocation160_spill] sm:$0xff] }
 0x44c   :  { %6223 = vmatprep.subr.bf16.mxu0 %v11659_v57  ;;  %5049 = vmatmul.mubr.f32.gmra.mrb[54].mxu1 %v4079_v30  ;;  %v3977_v14 = vmax.f32 %v3721_v46, 0.0  ;;  %v3836_v62 = vadd.f32 %v8936_v9, %v11662_v34  ;;  %v3730_v11 = vadd.f32 %v9346_v31, %v9388_v29  ;;  %v11664_v46 = vld [vmem:[#allocation107_spill] sm:$0xff]  ;;  %v11666_v57 = vld [vmem:[#allocation21_spill] sm:$0xff]  ;;  %v11667_v21 = vld [vmem:[#allocation112_spill] sm:$0xff]  ;;  %v3734_v13 = vadd.f32 %v9346_v31, %v9427_v42 }
 0x44d   :  { %v2219_v19 = vpop.f32.mrb[104].mxu0  ;;  %5054 = vmatprep.mubr.f32.mxu1 %v4084_v5  ;;  %v4088_v24 = vmax.f32 %v3832_v58, 0.0  ;;  %v4087_v45 = vmax.f32 %v3831_v4, 0.0  ;;  %v3835_v5 = vadd.f32 %v8932_v53, %v11664_v46  ;;  %v3981_v58 = vmax.f32 %v3725_v50, 0.0  ;;  %v11669_v34 = vld [vmem:[#allocation111_spill] sm:$0xff] }
 0x44e   :  { %v9581_v25 = vadd.f32 %v9566_v47, %v2219_v19  ;;  %v2221_v10 = vpop.f32.mrb[105].mxu0  ;;  %4444 = vmatmul.mubr.f32.gmra.mrb[210].mxu0 %v3973_v38  ;;  %v3729_v29 = vadd.f32 %v9369_v15, %v11666_v57  ;;  %v3840_v19 = vadd.f32 %v8936_v9, %v11667_v21  ;;  %v3733_v42 = vadd.f32 %v9369_v15, %v9415_v48  ;;  %v11673_v48 = vld [vmem:[#allocation99_spill] sm:$0xff] }
 0x44f   :  { %v9583_v6 = vadd.f32 %v3170_v37, %v2221_v10  ;;  %4449 = vmatprep.mubr.f32.mxu0 %v3978_v32  ;;  %6225 = vmatpush1.bf16.msra.mxu0 %v11661_v63  ;;  %v4092_v32 = vmax.f32 %v3836_v62, 0.0  ;;  %v11668_v10 = vld [vmem:[#allocation15_spill] sm:$0xff]  ;;  %v3839_v62 = vadd.f32 %v8932_v53, %v11669_v34  ;;  %v3990_v46 = vmax.f32 %v3734_v13, 0.0 }
 0x450   :  { %6227 = vmatprep.subr.bf16.mxu0 %v11663_v43  ;;  %5055 = vmatmul.mubr.f32.gmra.mrb[56].mxu1 %v4083_v61  ;;  %v3986_v61 = vmax.f32 %v3730_v11, 0.0  ;;  %v11670_v43 = vld [vmem:[#allocation161_spill] sm:$0xff]  ;;  %v4096_v11 = vmax.f32 %v3840_v19, 0.0  ;;  %v11674_v19 = vld [vmem:[#allocation106_spill] sm:$0xff]  ;;  %v11676_v13 = vld [vmem:[#allocation27_spill] sm:$0xff] }
 0x451   :  { %v2225_v30 = vpop.f32.mrb[106].mxu0  ;;  %5060 = vmatprep.mubr.f32.mxu1 %v4088_v24  ;;  %v4091_v24 = vmax.f32 %v3835_v5, 0.0  ;;  %v4095_v21 = vmax.f32 %v3839_v62, 0.0 }
 0x452   :  { %v9596_v8 = vadd.f32 %v9566_v47, %v2225_v30  ;;  %v2227_v39 = vpop.f32.mrb[107].mxu0  ;;  %4450 = vmatmul.mubr.f32.gmra.mrb[212].mxu0 %v3977_v14  ;;  %v11671_v30 = vld [vmem:[#allocation109_spill] sm:$0xff] }
 0x453   :  { %v9598_v38 = vadd.f32 %v3170_v37, %v2227_v39  ;;  %4455 = vmatprep.mubr.f32.mxu0 %v3982_v22  ;;  %6229 = vmatpush1.bf16.msra.mxu0 %v11665_v59  ;;  %v3985_v22 = vmax.f32 %v3729_v29, 0.0  ;;  %v3844_v39 = vadd.f32 %v8936_v9, %v11671_v30  ;;  %v3738_v59 = vadd.f32 %v9346_v31, %v9455_v27  ;;  %v11675_v27 = vld [vmem:[#allocation17_spill] sm:$0xff] }
 0x454   :  { %6231 = vmatprep.subr.bf16.mxu0 %v11668_v10  ;;  %5061 = vmatmul.mubr.f32.gmra.mrb[58].mxu1 %v4087_v45  ;;  %v11672_v45 = vld [vmem:[#allocation16_spill] sm:$0xff]  ;;  %v3843_v10 = vadd.f32 %v8932_v53, %v11674_v19  ;;  %v11682_v19 = vld [vmem:[#allocation163_spill] sm:$0xff] }
 0x455   :  { %v2231_v4 = vpop.f32.mrb[108].mxu0  ;;  %5066 = vmatprep.mubr.f32.mxu1 %v4092_v32  ;;  %v9632_v32 = vrot.slane %v11673_v48, %v11581_v54  ;;  %v3994_v34 = vmax.f32 %v3738_v59, 0.0  ;;  %v11680_v59 = vld [vmem:[#allocation162_spill] sm:$0xff] }
 0x456   :  { %v9611_v63 = vadd.f32 %v9566_v47, %v2231_v4  ;;  %v2233_v14 = vpop.f32.mrb[109].mxu0  ;;  %4456 = vmatmul.mubr.f32.gmra.mrb[214].mxu0 %v3981_v58  ;;  %v4100_v4 = vmax.f32 %v3844_v39, 0.0  ;;  %v4099_v39 = vmax.f32 %v3843_v10, 0.0 }
 0x457   :  { %v9613_v50 = vadd.f32 %v3170_v37, %v2233_v14  ;;  %4461 = vmatprep.mubr.f32.mxu0 %v3986_v61  ;;  %6233 = vmatpush1.bf16.msra.mxu0 %v11670_v43  ;;  %v3989_v61 = vmax.f32 %v3733_v42, 0.0  ;;  %v11677_v14 = vld [vmem:[#allocation108_spill] sm:$0xff]  ;;  %v3742_v43 = vadd.f32 %v9346_v31, %v9480_v1 }
 0x458   :  { %6235 = vmatprep.subr.bf16.mxu0 %v11672_v45  ;;  %5067 = vmatmul.mubr.f32.gmra.mrb[60].mxu1 %v4091_v24  ;;  %v11678_v24 = vld [vmem:[#allocation19_spill] sm:$0xff]  ;;  %v11679_v45 = vld [vmem:[#allocation113_spill] sm:$0xff] }
 0x459   :  { %v2237_v5 = vpop.f32.mrb[110].mxu0  ;;  %5072 = vmatprep.mubr.f32.mxu1 %v4096_v11 }
 0x45a   :  { %v9626_v58 = vadd.f32 %v9566_v47, %v2237_v5  ;;  %v2239_v57 = vpop.f32.mrb[111].mxu0  ;;  %4462 = vmatmul.mubr.f32.gmra.mrb[216].mxu0 %v3985_v22  ;;  %v3737_v47 = vadd.f32 %v9369_v15, %v11676_v13  ;;  %v3186_v22 = vrot.slane %v11673_v48, %v11589_v12  ;;  %v3741_v5 = vadd.f32 %v9369_v15, %v9473_v44  ;;  %v11681_v48 = vld [vmem:[#allocation110_spill] sm:$0xff] }
 0x45b   :  { %v9628_v29 = vadd.f32 %v3170_v37, %v2239_v57  ;;  %4467 = vmatprep.mubr.f32.mxu0 %v3990_v46  ;;  %6237 = vmatpush1.bf16.msra.mxu0 %v11675_v27  ;;  %v3848_v37 = vadd.f32 %v8936_v9, %v11677_v14  ;;  %v3847_v46 = vadd.f32 %v8932_v53, %v11679_v45  ;;  %v3998_v27 = vmax.f32 %v3742_v43, 0.0  ;;  %v11683_v14 = vld [vmem:[#allocation18_spill] sm:$0xff] }
 0x45c   :  { %6239 = vmatprep.subr.bf16.mxu0 %v11678_v24  ;;  %5073 = vmatmul.mubr.f32.gmra.mrb[62].mxu1 %v4095_v21  ;;  %v3993_v1 = vmax.f32 %v3737_v47, 0.0  ;;  %v3852_v21 = vadd.f32 %v8936_v9, %v11681_v48  ;;  %v11684_v24 = vld [vmem:[#allocation164_spill] sm:$0xff]  ;;  %v11687_v48 = vld [vmem:[#allocation115_spill] sm:$0xff] }
 0x45d   :  { %v2243_v62 = vpop.f32.mrb[112].mxu0  ;;  %5078 = vmatprep.mubr.f32.mxu1 %v4100_v4  ;;  %v4104_v57 = vmax.f32 %v3848_v37, 0.0  ;;  %v4103_v44 = vmax.f32 %v3847_v46, 0.0  ;;  %v3851_v37 = vadd.f32 %v8932_v53, %v11683_v14 }
 0x45e   :  { %v9647_v42 = vadd.f32 %v9632_v32, %v2243_v62  ;;  %v2245_v11 = vpop.f32.mrb[113].mxu0  ;;  %4468 = vmatmul.mubr.f32.gmra.mrb[218].mxu0 %v3989_v61  ;;  %v3746_v61 = vadd.f32 %v9346_v31, %v9509_v40  ;;  %v3745_v40 = vadd.f32 %v9369_v15, %v9506_v16  ;;  %v4108_v43 = vmax.f32 %v3852_v21, 0.0  ;;  %v11685_v62 = vld [vmem:[#allocation118_spill] sm:$0xff] }
 0x45f   :  { %v9649_v30 = vadd.f32 %v3186_v22, %v2245_v11  ;;  %4473 = vmatprep.mubr.f32.mxu0 %v3994_v34  ;;  %6241 = vmatpush1.bf16.msra.mxu0 %v11680_v59  ;;  %v3997_v34 = vmax.f32 %v3741_v5, 0.0  ;;  %v3856_v11 = vadd.f32 %v8936_v9, %v11685_v62  ;;  %v3750_v59 = vadd.f32 %v9346_v31, %v9527_v35 }
 0x460   :  { %6243 = vmatprep.subr.bf16.mxu0 %v11682_v19  ;;  %5079 = vmatmul.mubr.f32.gmra.mrb[64].mxu1 %v4099_v39  ;;  %v11686_v39 = vld [vmem:[#allocation165_spill] sm:$0xff]  ;;  %v4002_v45 = vmax.f32 %v3746_v61, 0.0  ;;  %v4107_v16 = vmax.f32 %v3851_v37, 0.0  ;;  %v3855_v21 = vadd.f32 %v8932_v53, %v11687_v48  ;;  %v11688_v19 = vld [vmem:[#allocation166_spill] sm:$0xff]  ;;  %v3749_v35 = vadd.f32 %v9369_v15, %v9521_v55  ;;  %v11691_v55 = vld [vmem:[#allocation100_spill] sm:$0xff] }
 0x461   :  { %v2249_v10 = vpop.f32.mrb[114].mxu0  ;;  %5084 = vmatprep.mubr.f32.mxu1 %v4104_v57  ;;  %v4112_v61 = vmax.f32 %v3856_v11, 0.0  ;;  %v4006_v14 = vmax.f32 %v3750_v59, 0.0  ;;  %v9698_v62 = vrot.slane %v11691_v55, %v11581_v54 }
 0x462   :  { %v9662_v13 = vadd.f32 %v9632_v32, %v2249_v10  ;;  %v2251_v4 = vpop.f32.mrb[115].mxu0  ;;  %4474 = vmatmul.mubr.f32.gmra.mrb[220].mxu0 %v3993_v1  ;;  %v11689_v10 = vld [vmem:[#allocation20_spill] sm:$0xff]  ;;  %v4111_v11 = vmax.f32 %v3855_v21, 0.0  ;;  %v4005_v59 = vmax.f32 %v3749_v35, 0.0 }
 0x463   :  { %v9664_v47 = vadd.f32 %v3186_v22, %v2251_v4  ;;  %4479 = vmatprep.mubr.f32.mxu0 %v3998_v27  ;;  %6245 = vmatpush1.bf16.msra.mxu0 %v11684_v24  ;;  %v4001_v27 = vmax.f32 %v3745_v40, 0.0  ;;  %v3860_v4 = vadd.f32 %v8936_v9, %v11689_v10  ;;  %v3754_v24 = vadd.f32 %v9346_v31, %v9546_v41  ;;  %v11693_v41 = vld [vmem:[#allocation168_spill] sm:$0xff] }
 0x464   :  { %6247 = vmatprep.subr.bf16.mxu0 %v11686_v39  ;;  %5085 = vmatmul.mubr.f32.gmra.mrb[66].mxu1 %v4103_v44  ;;  %v11690_v44 = vld [vmem:[#allocation167_spill] sm:$0xff]  ;;  %v11692_v39 = vld [vmem:[#allocation122_spill] sm:$0xff] }
 0x465   :  { %v2255_v46 = vpop.f32.mrb[116].mxu0  ;;  %5090 = vmatprep.mubr.f32.mxu1 %v4108_v43  ;;  %v4010_v48 = vmax.f32 %v3754_v24, 0.0  ;;  %v3757_v24 = vadd.f32 %v9369_v15, %v9559_v18 }
 0x466   :  { %v9677_v1 = vadd.f32 %v9632_v32, %v2255_v46  ;;  %v2257_v57 = vpop.f32.mrb[117].mxu0  ;;  %4480 = vmatmul.mubr.f32.gmra.mrb[222].mxu0 %v3997_v34  ;;  %v4116_v46 = vmax.f32 %v3860_v4, 0.0  ;;  %v11696_v4 = vld [vmem:[#allocation25_spill] sm:$0xff] }
 0x467   :  { %v9679_v5 = vadd.f32 %v3186_v22, %v2257_v57  ;;  %4485 = vmatprep.mubr.f32.mxu0 %v4002_v45  ;;  %6249 = vmatpush1.bf16.msra.mxu0 %v11688_v19  ;;  %v3859_v45 = vadd.f32 %v8932_v53, %v11692_v39  ;;  %v11694_v57 = vld [vmem:[#allocation23_spill] sm:$0xff]  ;;  %v3758_v19 = vadd.f32 %v9346_v31, %v9562_v20 }
 0x468   :  { %6251 = vmatprep.subr.bf16.mxu0 %v11690_v44  ;;  %5091 = vmatmul.mubr.f32.gmra.mrb[68].mxu1 %v4107_v16  ;;  %v11695_v16 = vld [vmem:[#allocation169_spill] sm:$0xff]  ;;  %v3863_v44 = vadd.f32 %v8932_v53, %v11696_v4  ;;  %v3766_v4 = vadd.f32 %v9346_v31, %v9598_v38  ;;  %v3765_v38 = vadd.f32 %v9369_v15, %v9596_v8 }
 0x469   :  { %v2261_v37 = vpop.f32.mrb[118].mxu0  ;;  %5096 = vmatprep.mubr.f32.mxu1 %v4112_v61  ;;  %v4115_v10 = vmax.f32 %v3859_v45, 0.0  ;;  %v4014_v39 = vmax.f32 %v3758_v19, 0.0 }
 0x46a   :  { %v9692_v34 = vadd.f32 %v9632_v32, %v2261_v37  ;;  %v2263_v43 = vpop.f32.mrb[119].mxu0  ;;  %4486 = vmatmul.mubr.f32.gmra.mrb[224].mxu0 %v4001_v27  ;;  %v3753_v32 = vadd.f32 %v9369_v15, %v9543_v33  ;;  %v3202_v27 = vrot.slane %v11691_v55, %v11589_v12  ;;  %v4119_v18 = vmax.f32 %v3863_v44, 0.0 }
 0x46b   :  { %v9694_v40 = vadd.f32 %v3186_v22, %v2263_v43  ;;  %4491 = vmatprep.mubr.f32.mxu0 %v4006_v14  ;;  %6253 = vmatpush1.bf16.msra.mxu0 %v11693_v41  ;;  %v3864_v22 = vadd.f32 %v8936_v9, %v11694_v57  ;;  %v11697_v14 = vld [vmem:[#allocation170_spill] sm:$0xff]  ;;  %v3762_v41 = vadd.f32 %v9346_v31, %v9583_v6  ;;  %v11700_v57 = vld [vmem:[#allocation24_spill] sm:$0xff] }
 0x46c   :  { %6255 = vmatprep.subr.bf16.mxu0 %v11695_v16  ;;  %5097 = vmatmul.mubr.f32.gmra.mrb[70].mxu1 %v4111_v11  ;;  %v4009_v20 = vmax.f32 %v3753_v32, 0.0  ;;  %v11698_v43 = vld [vmem:[#allocation22_spill] sm:$0xff]  ;;  %v11699_v11 = vld [vmem:[#allocation171_spill] sm:$0xff]  ;;  %v11701_v16 = vld [vmem:[#allocation172_spill] sm:$0xff]  ;;  %v3761_v6 = vadd.f32 %v9369_v15, %v9581_v25 }
 0x46d   :  { %v2267_v21 = vpop.f32.mrb[120].mxu0  ;;  %5102 = vmatprep.mubr.f32.mxu1 %v4116_v46  ;;  %v4120_v37 = vmax.f32 %v3864_v22, 0.0  ;;  %v3868_v55 = vadd.f32 %v8936_v9, %v11698_v43  ;;  %v3867_v22 = vadd.f32 %v8932_v53, %v11700_v57  ;;  %v11706_v57 = vld [vmem:[#allocation178_spill] sm:$0xff] }
 0x46e   :  { %v9713_v35 = vadd.f32 %v9698_v62, %v2267_v21  ;;  %v2269_v61 = vpop.f32.mrb[121].mxu0  ;;  %4492 = vmatmul.mubr.f32.gmra.mrb[226].mxu0 %v4005_v59  ;;  %v3872_v21 = vadd.f32 %v8936_v9, %v9451_v56  ;;  %v3871_v56 = vadd.f32 %v8932_v53, %v9458_v26  ;;  %v4017_v43 = vmax.f32 %v3761_v6, 0.0 }
 0x46f   :  { %v9715_v33 = vadd.f32 %v3202_v27, %v2269_v61  ;;  %4497 = vmatprep.mubr.f32.mxu0 %v4010_v48  ;;  %6257 = vmatpush1.bf16.msra.mxu0 %v11697_v14  ;;  %v4013_v48 = vmax.f32 %v3757_v24, 0.0  ;;  %v4124_v19 = vmax.f32 %v3868_v55, 0.0  ;;  %v11702_v61 = vld [vmem:[#allocation173_spill] sm:$0xff]  ;;  %v4123_v25 = vmax.f32 %v3867_v22, 0.0 }
 0x470   :  { %6259 = vmatprep.subr.bf16.mxu0 %v11699_v11  ;;  %5103 = vmatmul.mubr.f32.gmra.mrb[72].mxu1 %v4115_v10  ;;  %v4018_v10 = vmax.f32 %v3762_v41, 0.0  ;;  %v4128_v55 = vmax.f32 %v3872_v21, 0.0  ;;  %v3876_v11 = vadd.f32 %v8936_v9, %v9487_v36  ;;  %v3770_v41 = vadd.f32 %v9346_v31, %v9613_v50  ;;  %v11708_v36 = vld [vmem:[#allocation101_spill] sm:$0xff] }
 0x471   :  { %v2273_v45 = vpop.f32.mrb[122].mxu0  ;;  %5108 = vmatprep.mubr.f32.mxu1 %v4120_v37  ;;  %v11703_v37 = vld [vmem:[#allocation174_spill] sm:$0xff]  ;;  %v9769_v50 = vrot.slane %v11708_v36, %v11581_v54  ;;  %v4127_v6 = vmax.f32 %v3871_v56, 0.0  ;;  %v4021_v21 = vmax.f32 %v3765_v38, 0.0 }
 0x472   :  { %v9728_v59 = vadd.f32 %v9698_v62, %v2273_v45  ;;  %v2275_v46 = vpop.f32.mrb[123].mxu0  ;;  %4498 = vmatmul.mubr.f32.gmra.mrb[228].mxu0 %v4009_v20 }
 0x473   :  { %v9730_v32 = vadd.f32 %v3202_v27, %v2275_v46  ;;  %4503 = vmatprep.mubr.f32.mxu0 %v4014_v39  ;;  %6261 = vmatpush1.bf16.msra.mxu0 %v11701_v16  ;;  %v4022_v39 = vmax.f32 %v3766_v4, 0.0  ;;  %v11704_v46 = vld [vmem:[#allocation12_spill] sm:$0xff]  ;;  %v4026_v4 = vmax.f32 %v3770_v41, 0.0 }
 0x474   :  { %6263 = vmatprep.subr.bf16.mxu0 %v11702_v61  ;;  %5109 = vmatmul.mubr.f32.gmra.mrb[74].mxu1 %v4119_v18  ;;  %v11705_v18 = vld [vmem:[#allocation177_spill] sm:$0xff]  ;;  %v3769_v61 = vadd.f32 %v9369_v15, %v9611_v63  ;;  %v3879_v63 = vadd.f32 %v8932_v53, %v9500_v51  ;;  %v3778_v51 = vadd.f32 %v9346_v31, %v9649_v30 }
 0x475   :  { %v2279_v44 = vpop.f32.mrb[124].mxu0  ;;  %5114 = vmatprep.mubr.f32.mxu1 %v4124_v19  ;;  %v11707_v26 = vcombine.low %v11705_v18, %v11706_v57  ;;  %v3875_v19 = vadd.f32 %v8932_v53, %v9497_v3 }
 0x476   :  { %v9743_v14 = vadd.f32 %v9698_v62, %v2279_v44  ;;  %v2281_v20 = vpop.f32.mrb[125].mxu0  ;;  %4504 = vmatmul.mubr.f32.gmra.mrb[230].mxu0 %v4013_v48 }
 0x477   :  { %v9745_v24 = vadd.f32 %v3202_v27, %v2281_v20  ;;  %4509 = vmatprep.mubr.f32.mxu0 %v4018_v10  ;;  %6265 = vmatpush1.bf16.msra.mxu0 %v11703_v37  ;;  %v9760_v22 = vrot.slane %v11707_v26, %v11704_v46  ;;  %v3880_v10 = vadd.f32 %v8936_v9, %v9490_v7  ;;  %v4131_v7 = vmax.f32 %v3875_v19, 0.0 }
 0x478   :  { %5115 = vmatmul.mubr.f32.gmra.mrb[76].mxu1 %v4123_v25  ;;  %v3218_v20 = vrot.slane %v11708_v36, %v11589_v12  ;;  %v4025_v37 = vmax.f32 %v3769_v61, 0.0  ;;  %v3888_v19 = vadd.f32 %v8936_v9, %v9524_v28 }
 0x479   :  { %v2285_v45 = vpop.f32.mrb[126].mxu0  ;;  %5120 = vmatprep.mubr.f32.mxu1 %v4128_v55  ;;  %v4136_v38 = vmax.f32 %v3880_v10, 0.0  ;;  %v9794_v55 = vrot.slane %v9760_v22, %v8896_v17  ;;  %v9807_v36 = vrot.slane %v9760_v22, %v8892_v23  ;;  %v3782_v10 = vadd.f32 %v9346_v31, %v9664_v47 }
 0x47a   :  { %v9763_v16 = vadd.f32 %v9698_v62, %v2285_v45  ;;  %v2287_v8 = vpop.f32.mrb[127].mxu0  ;;  %4510 = vmatmul.mubr.f32.gmra.mrb[232].mxu0 %v4017_v43  ;;  %v4132_v62 = vmax.f32 %v3876_v11, 0.0  ;;  %v3773_v43 = vadd.f32 %v9369_v15, %v9626_v58 }
 0x47b   :  { %v9765_v48 = vadd.f32 %v3202_v27, %v2287_v8  ;;  %4515 = vmatprep.mubr.f32.mxu0 %v4022_v39  ;;  %v3774_v27 = vadd.f32 %v9346_v31, %v9628_v29  ;;  %v3884_v29 = vadd.f32 %v8936_v9, %v9493_v49  ;;  %v4135_v49 = vmax.f32 %v3879_v63, 0.0 }
 0x47c   :  { %5121 = vmatmul.mubr.f32.gmra.mrb[78].mxu1 %v4127_v6  ;;  %v3883_v8 = vadd.f32 %v8932_v53, %v9503_v60  ;;  %v4029_v30 = vmax.f32 %v3773_v43, 0.0  ;;  %v3777_v6 = vadd.f32 %v9369_v15, %v9647_v42  ;;  %v3887_v42 = vadd.f32 %v8932_v53, %v9533_v0 }
 0x47d   :  { %v2291_v44 = vpop.f32.mrb[128].mxu0  ;;  %5126 = vmatprep.mubr.f32.mxu1 %v4132_v62  ;;  %v4030_v11 = vmax.f32 %v3774_v27, 0.0  ;;  %v4140_v58 = vmax.f32 %v3884_v29, 0.0  ;;  %v4034_v62 = vmax.f32 %v3778_v51, 0.0  ;;  %v4144_v43 = vmax.f32 %v3888_v19, 0.0 }
 0x47e   :  { %v9782_v25 = vadd.f32 %v9769_v50, %v2291_v44  ;;  %v2293_v3 = vpop.f32.mrb[129].mxu0  ;;  %4516 = vmatmul.mubr.f32.gmra.mrb[234].mxu0 %v4021_v21  ;;  %v11709_v21 = vld [vmem:[#allocation72_spill] sm:$0xff]  ;;  %v4139_v28 = vmax.f32 %v3883_v8, 0.0  ;;  %v4033_v29 = vmax.f32 %v3777_v6, 0.0  ;;  %v3786_v0 = vadd.f32 %v9346_v31, %v9679_v5  ;;  %v11713_v8 = vld [vmem:[#allocation73_spill] sm:$0xff] }
 0x47f   :  { %v9786_v56 = vadd.f32 %v3218_v20, %v2293_v3  ;;  %4521 = vmatprep.mubr.f32.mxu0 %v4026_v4  ;;  %v3614_v61 = vadd.f32 %v9794_v55, %v11709_v21  ;;  %v11710_v3 = vld [vmem:[#allocation66_spill] sm:$0xff] }
 0x480   :  { %5127 = vmatmul.mubr.f32.gmra.mrb[80].mxu1 %v4131_v7  ;;  %v3613_v63 = vadd.f32 %v9807_v36, %v11710_v3  ;;  %v11711_v7 = vld [vmem:[#allocation69_spill] sm:$0xff]  ;;  %v11715_v21 = vld [vmem:[#allocation102_spill] sm:$0xff]  ;;  %v11716_v3 = vld [vmem:[#allocation68_spill] sm:$0xff] }
 0x481   :  { %v2297_v39 = vpop.f32.mrb[130].mxu0  ;;  %5132 = vmatprep.mubr.f32.mxu1 %v4136_v38  ;;  %v3618_v47 = vadd.f32 %v9794_v55, %v11711_v7  ;;  %v3892_v38 = vadd.f32 %v8936_v9, %v3614_v61  ;;  %v9854_v61 = vrot.slane %v11715_v21, %v11581_v54 }
 0x482   :  { %v9799_v41 = vadd.f32 %v9769_v50, %v2297_v39  ;;  %v2299_v45 = vpop.f32.mrb[131].mxu0  ;;  %4522 = vmatmul.mubr.f32.gmra.mrb[236].mxu0 %v4025_v37  ;;  %v3781_v37 = vadd.f32 %v9369_v15, %v9662_v13  ;;  %v11712_v39 = vcombine.high %v11705_v18, %v11706_v57  ;;  %v4143_v13 = vmax.f32 %v3887_v42, 0.0  ;;  %v11714_v18 = vld [vmem:[#allocation70_spill] sm:$0xff] }
 0x483   :  { %v9801_v26 = vadd.f32 %v3218_v20, %v2299_v45  ;;  %4527 = vmatprep.mubr.f32.mxu0 %v4030_v11  ;;  %v4038_v11 = vmax.f32 %v3782_v10, 0.0  ;;  %v3891_v5 = vadd.f32 %v8932_v53, %v3613_v63  ;;  %v3896_v19 = vadd.f32 %v8936_v9, %v3618_v47 }
 0x484   :  { %5133 = vmatmul.mubr.f32.gmra.mrb[82].mxu1 %v4135_v49  ;;  %v9837_v45 = vrot.slane %v11712_v39, %v11704_v46  ;;  %v3617_v46 = vadd.f32 %v9807_v36, %v11714_v18  ;;  %v4037_v57 = vmax.f32 %v3781_v37, 0.0  ;;  %v4042_v10 = vmax.f32 %v3786_v0, 0.0 }
 0x485   :  { %v2303_v4 = vpop.f32.mrb[132].mxu0  ;;  %5138 = vmatprep.mubr.f32.mxu1 %v4140_v58  ;;  %v3621_v63 = vadd.f32 %v9807_v36, %v11716_v3  ;;  %v4152_v47 = vmax.f32 %v3896_v19, 0.0  ;;  %v3794_v39 = vadd.f32 %v9346_v31, %v9715_v33  ;;  %v11718_v19 = vld [vmem:[#allocation71_spill] sm:$0xff] }
 0x486   :  { %v9818_v60 = vadd.f32 %v9769_v50, %v2303_v4  ;;  %v2305_v27 = vpop.f32.mrb[133].mxu0  ;;  %4528 = vmatmul.mubr.f32.gmra.mrb[238].mxu0 %v4029_v30  ;;  %v3622_v30 = vadd.f32 %v9794_v55, %v11713_v8  ;;  %v9878_v0 = vrot.slane %v9837_v45, %v8896_v17  ;;  %v3625_v18 = vadd.f32 %v9807_v36, %v11718_v19 }
 0x487   :  { %v9822_v44 = vadd.f32 %v3218_v20, %v2305_v27  ;;  %4533 = vmatprep.mubr.f32.mxu0 %v4034_v62  ;;  %v4148_v62 = vmax.f32 %v3892_v38, 0.0  ;;  %v9860_v27 = vrot.slane %v11715_v21, %v11589_v12  ;;  %v11717_v38 = vld [vmem:[#allocation75_spill] sm:$0xff]  ;;  %v9893_v33 = vrot.slane %v9837_v45, %v8892_v23  ;;  %v11719_v21 = vld [vmem:[#allocation76_spill] sm:$0xff] }
 0x488   :  { %5139 = vmatmul.mubr.f32.gmra.mrb[84].mxu1 %v4139_v28  ;;  %v3903_v3 = vadd.f32 %v8932_v53, %v3625_v18 }
 0x489   :  { %v2309_v51 = vpop.f32.mrb[134].mxu0  ;;  %5144 = vmatprep.mubr.f32.mxu1 %v4144_v43  ;;  %v3789_v43 = vadd.f32 %v9369_v15, %v9692_v34 }
 0x48a   :  { %v9840_v49 = vadd.f32 %v9769_v50, %v2309_v51  ;;  %v2311_v58 = vpop.f32.mrb[135].mxu0  ;;  %4534 = vmatmul.mubr.f32.gmra.mrb[240].mxu0 %v4033_v29  ;;  %v3785_v50 = vadd.f32 %v9369_v15, %v9677_v1  ;;  %v3900_v1 = vadd.f32 %v8936_v9, %v3622_v30  ;;  %v3895_v29 = vadd.f32 %v8932_v53, %v3617_v46 }
 0x48b   :  { %v9844_v6 = vadd.f32 %v3218_v20, %v2311_v58  ;;  %4539 = vmatprep.mubr.f32.mxu0 %v4038_v11  ;;  %v3790_v20 = vadd.f32 %v9346_v31, %v9694_v40  ;;  %v4147_v40 = vmax.f32 %v3891_v5, 0.0  ;;  %v3626_v11 = vadd.f32 %v9794_v55, %v11717_v38 }
 0x48c   :  { %5145 = vmatmul.mubr.f32.gmra.mrb[86].mxu1 %v4143_v13  ;;  %v4041_v37 = vmax.f32 %v3785_v50, 0.0  ;;  %v4156_v34 = vmax.f32 %v3900_v1, 0.0  ;;  %v3899_v30 = vadd.f32 %v8932_v53, %v3621_v63  ;;  %v4151_v5 = vmax.f32 %v3895_v29, 0.0  ;;  %v11720_v63 = vld [vmem:[#allocation74_spill] sm:$0xff] }
 0x48d   :  { %v2315_v4 = vpop.f32.mrb[136].mxu0  ;;  %5150 = vmatprep.mubr.f32.mxu1 %v4148_v62  ;;  %v4046_v51 = vmax.f32 %v3790_v20, 0.0  ;;  %v4045_v46 = vmax.f32 %v3789_v43, 0.0  ;;  %v3904_v50 = vadd.f32 %v8936_v9, %v3626_v11  ;;  %v3630_v62 = vadd.f32 %v9878_v0, %v11719_v21  ;;  %v11723_v21 = vld [vmem:[#allocation80_spill] sm:$0xff] }
 0x48e   :  { %v9863_v42 = vadd.f32 %v9854_v61, %v2315_v4  ;;  %v2317_v28 = vpop.f32.mrb[137].mxu0  ;;  %4540 = vmatmul.mubr.f32.gmra.mrb[242].mxu0 %v4037_v57  ;;  %v3793_v57 = vadd.f32 %v9369_v15, %v9713_v35  ;;  %v3798_v20 = vadd.f32 %v9346_v31, %v9730_v32  ;;  %v4155_v1 = vmax.f32 %v3899_v30, 0.0  ;;  %v11722_v30 = vld [vmem:[#allocation77_spill] sm:$0xff] }
 0x48f   :  { %v9869_v7 = vadd.f32 %v9860_v27, %v2317_v28  ;;  %4545 = vmatprep.mubr.f32.mxu0 %v4042_v10  ;;  %v4050_v10 = vmax.f32 %v3794_v39, 0.0  ;;  %v4160_v43 = vmax.f32 %v3904_v50, 0.0  ;;  %v3908_v38 = vadd.f32 %v8936_v9, %v3630_v62 }
 0x490   :  { %5151 = vmatmul.mubr.f32.gmra.mrb[88].mxu1 %v4147_v40  ;;  %v3629_v40 = vadd.f32 %v9893_v33, %v11720_v63  ;;  %v4049_v29 = vmax.f32 %v3793_v57, 0.0  ;;  %v9918_v11 = vcombine.high %v9760_v22, %v9760_v22  ;;  %v3802_v39 = vadd.f32 %v9346_v31, %v9745_v24 }
 0x491   :  { %v2321_v58 = vpop.f32.mrb[138].mxu0  ;;  %5156 = vmatprep.mubr.f32.mxu1 %v4152_v47  ;;  %v11721_v47 = vld [vmem:[#allocation78_spill] sm:$0xff]  ;;  %v4159_v24 = vmax.f32 %v3903_v3, 0.0  ;;  %v3801_v57 = vadd.f32 %v9369_v15, %v9743_v14  ;;  %v4164_v50 = vmax.f32 %v3908_v38, 0.0  ;;  %v3638_v62 = vadd.f32 %v9878_v0, %v11723_v21 }
 0x492   :  { %v9883_v13 = vadd.f32 %v9854_v61, %v2321_v58  ;;  %v2323_v8 = vpop.f32.mrb[139].mxu0  ;;  %4546 = vmatmul.mubr.f32.gmra.mrb[244].mxu0 %v4041_v37  ;;  %v3634_v32 = vadd.f32 %v9878_v0, %v11721_v47  ;;  %v3797_v37 = vadd.f32 %v9369_v15, %v9728_v59  ;;  %v9927_v59 = vrot.slane %v9267_v52, %v11581_v54 }
 0x493   :  { %v9887_v55 = vadd.f32 %v9860_v27, %v2323_v8  ;;  %4551 = vmatprep.mubr.f32.mxu0 %v4046_v51  ;;  %v4054_v51 = vmax.f32 %v3798_v20, 0.0  ;;  %v3907_v18 = vadd.f32 %v8932_v53, %v3629_v40  ;;  %v3806_v20 = vadd.f32 %v9346_v31, %v9765_v48 }
 0x494   :  { %5157 = vmatmul.mubr.f32.gmra.mrb[90].mxu1 %v4151_v5  ;;  %v3633_v5 = vadd.f32 %v9893_v33, %v11722_v30 }
 0x495   :  { %v2327_v4 = vpop.f32.mrb[140].mxu0  ;;  %5162 = vmatprep.mubr.f32.mxu1 %v4156_v34  ;;  %v4163_v63 = vmax.f32 %v3907_v18, 0.0 }
 0x496   :  { %v9903_v36 = vadd.f32 %v9854_v61, %v2327_v4  ;;  %v2329_v28 = vpop.f32.mrb[141].mxu0  ;;  %4552 = vmatmul.mubr.f32.gmra.mrb[246].mxu0 %v4045_v46  ;;  %v4053_v46 = vmax.f32 %v3797_v37, 0.0  ;;  %v9944_v4 = vrot.slane %v9267_v52, %v11589_v12  ;;  %v3911_v3 = vadd.f32 %v8932_v53, %v3633_v5  ;;  %v11724_v52 = vld [vmem:[#allocation79_spill] sm:$0xff] }
 0x497   :  { %v9906_v35 = vadd.f32 %v9860_v27, %v2329_v28  ;;  %4557 = vmatprep.mubr.f32.mxu0 %v4050_v10  ;;  %v4058_v10 = vmax.f32 %v3802_v39, 0.0  ;;  %v9948_v28 = vrot.slane %v9918_v11, %v8896_v17  ;;  %v3637_v47 = vadd.f32 %v9893_v33, %v11724_v52  ;;  %v11728_v52 = vld [vmem:[#allocation83_spill] sm:$0xff] }
 0x498   :  { %5163 = vmatmul.mubr.f32.gmra.mrb[92].mxu1 %v4155_v1  ;;  %v3916_v37 = vadd.f32 %v8936_v9, %v3638_v62  ;;  %v3810_v39 = vadd.f32 %v9346_v31, %v9786_v56  ;;  %v4167_v56 = vmax.f32 %v3911_v3, 0.0 }
 0x499   :  { %v2333_v58 = vpop.f32.mrb[142].mxu0  ;;  %5168 = vmatprep.mubr.f32.mxu1 %v4160_v43  ;;  %v11725_v43 = vld [vmem:[#allocation82_spill] sm:$0xff]  ;;  %v3915_v18 = vadd.f32 %v8932_v53, %v3637_v47 }
 0x49a   :  { %v9923_v8 = vadd.f32 %v9854_v61, %v2333_v58  ;;  %v2335_v34 = vpop.f32.mrb[143].mxu0  ;;  %4558 = vmatmul.mubr.f32.gmra.mrb[248].mxu0 %v4049_v29  ;;  %v3912_v61 = vadd.f32 %v8936_v9, %v3634_v32  ;;  %v4057_v32 = vmax.f32 %v3801_v57, 0.0  ;;  %v3805_v29 = vadd.f32 %v9369_v15, %v9763_v16  ;;  %v11726_v16 = vld [vmem:[#allocation81_spill] sm:$0xff] }
 0x49b   :  { %v9932_v19 = vadd.f32 %v9860_v27, %v2335_v34  ;;  %4563 = vmatprep.mubr.f32.mxu0 %v4054_v51  ;;  %v3642_v38 = vadd.f32 %v9878_v0, %v11725_v43  ;;  %v4062_v51 = vmax.f32 %v3806_v20, 0.0  ;;  %v9968_v34 = vrot.slane %v9918_v11, %v8892_v23 }
 0x49c   :  { %5169 = vmatmul.mubr.f32.gmra.mrb[94].mxu1 %v4159_v24  ;;  %v4168_v40 = vmax.f32 %v3912_v61, 0.0  ;;  %v3641_v24 = vadd.f32 %v9893_v33, %v11726_v16  ;;  %v11727_v61 = vld [vmem:[#allocation84_spill] sm:$0xff]  ;;  %v4061_v57 = vmax.f32 %v3805_v29, 0.0  ;;  %v4172_v21 = vmax.f32 %v3916_v37, 0.0  ;;  %v11729_v37 = vld [vmem:[#allocation86_spill] sm:$0xff] }
 0x49d   :  { %v2339_v27 = vpop.f32.mrb[144].mxu0  ;;  %5174 = vmatprep.mubr.f32.mxu1 %v4164_v50  ;;  %v3809_v50 = vadd.f32 %v9369_v15, %v9782_v25  ;;  %v3920_v62 = vadd.f32 %v8936_v9, %v3642_v38  ;;  %v3814_v33 = vadd.f32 %v9346_v31, %v9801_v26  ;;  %v4171_v25 = vmax.f32 %v3915_v18, 0.0 }
 0x49e   :  { %v9951_v14 = vadd.f32 %v9927_v59, %v2339_v27  ;;  %v2341_v1 = vpop.f32.mrb[145].mxu0  ;;  %4564 = vmatmul.mubr.f32.gmra.mrb[250].mxu0 %v4053_v46  ;;  %v3646_v46 = vadd.f32 %v9948_v28, %v11727_v61  ;;  %v3919_v3 = vadd.f32 %v8932_v53, %v3641_v24  ;;  %v3645_v26 = vadd.f32 %v9968_v34, %v11728_v52 }
 0x49f   :  { %v9955_v48 = vadd.f32 %v9944_v4, %v2341_v1  ;;  %4569 = vmatprep.mubr.f32.mxu0 %v4058_v10  ;;  %v4066_v10 = vmax.f32 %v3810_v39, 0.0  ;;  %v4065_v47 = vmax.f32 %v3809_v50, 0.0  ;;  %v4176_v29 = vmax.f32 %v3920_v62, 0.0  ;;  %v11732_v62 = vld [vmem:[#allocation88_spill] sm:$0xff] }
 0x4a0   :  { %5175 = vmatmul.mubr.f32.gmra.mrb[96].mxu1 %v4163_v63  ;;  %v3650_v43 = vadd.f32 %v9948_v28, %v11729_v37  ;;  %v4070_v38 = vmax.f32 %v3814_v33, 0.0  ;;  %v3923_v61 = vadd.f32 %v8932_v53, %v3645_v26  ;;  %v3817_v50 = vadd.f32 %v9369_v15, %v9818_v60 }
 0x4a1   :  { %v2345_v58 = vpop.f32.mrb[146].mxu0  ;;  %5180 = vmatprep.mubr.f32.mxu1 %v4168_v40  ;;  %v3924_v40 = vadd.f32 %v8936_v9, %v3646_v46  ;;  %v11731_v46 = vld [vmem:[#allocation85_spill] sm:$0xff]  ;;  %v3821_v37 = vadd.f32 %v9369_v15, %v9840_v49 }
 0x4a2   :  { %v9971_v30 = vadd.f32 %v9927_v59, %v2345_v58  ;;  %v2347_v5 = vpop.f32.mrb[147].mxu0  ;;  %4570 = vmatmul.mubr.f32.gmra.mrb[252].mxu0 %v4057_v32  ;;  %v3813_v32 = vadd.f32 %v9369_v15, %v9799_v41  ;;  %v10004_v58 = vcombine.high %v9837_v45, %v9837_v45  ;;  %v11730_v41 = vld [vmem:[#allocation119_spill] sm:$0xff]  ;;  %v4179_v26 = vmax.f32 %v3923_v61, 0.0 }
 0x4a3   :  { %v9976_v0 = vadd.f32 %v9944_v4, %v2347_v5  ;;  %4575 = vmatprep.mubr.f32.mxu0 %v4062_v51  ;;  %v3818_v51 = vadd.f32 %v9346_v31, %v9822_v44  ;;  %v10011_v24 = vrot.slane %v11730_v41, %v11581_v54  ;;  %v4180_v44 = vmax.f32 %v3924_v40, 0.0 }
 0x4a4   :  { %5181 = vmatmul.mubr.f32.gmra.mrb[98].mxu1 %v4167_v56  ;;  %v4175_v56 = vmax.f32 %v3919_v3, 0.0  ;;  %v11733_v3 = vld [vmem:[#allocation176_spill] sm:$0xff]  ;;  %v10034_v60 = vrot.slane %v10004_v58, %v8896_v17 }
 0x4a5   :  { %v2351_v20 = vpop.f32.mrb[148].mxu0  ;;  %5186 = vmatprep.mubr.f32.mxu1 %v4172_v21  ;;  %v3928_v21 = vadd.f32 %v8936_v9, %v3650_v43  ;;  %v4074_v33 = vmax.f32 %v3818_v51, 0.0 }
 0x4a6   :  { %v9987_v27 = vadd.f32 %v9927_v59, %v2351_v20  ;;  %v2353_v1 = vpop.f32.mrb[149].mxu0  ;;  %4576 = vmatmul.mubr.f32.gmra.mrb[254].mxu0 %v4061_v57  ;;  %v3649_v57 = vadd.f32 %v9968_v34, %v11731_v46  ;;  %v11736_v46 = vld [vmem:[#allocation92_spill] sm:$0xff] }
 0x4a7   :  { %v9991_v63 = vadd.f32 %v9944_v4, %v2353_v1  ;;  %4581 = vmatprep.mubr.f32.mxu0 %v4066_v10  ;;  %v3654_v10 = vadd.f32 %v9948_v28, %v11732_v62  ;;  %v10028_v1 = vrot.slane %v11730_v41, %v11589_v12  ;;  %v4184_v43 = vmax.f32 %v3928_v21, 0.0  ;;  %v11735_v41 = vld [vmem:[#allocation89_spill] sm:$0xff] }
 0x4a8   :  { %5187 = vmatmul.mubr.f32.gmra.mrb[100].mxu1 %v4171_v25  ;;  %v3658_v25 = vadd.f32 %v9948_v28, %v11733_v3  ;;  %v4077_v62 = vmax.f32 %v3821_v37, 0.0  ;;  %v3830_v3 = vadd.f32 %v9346_v31, %v9887_v55 }
 0x4a9   :  { %v2357_v39 = vpop.f32.mrb[150].mxu0  ;;  %5192 = vmatprep.mubr.f32.mxu1 %v4176_v29  ;;  %v4073_v29 = vmax.f32 %v3817_v50, 0.0 }
 0x4aa   :  { %v10007_v5 = vadd.f32 %v9927_v59, %v2357_v39  ;;  %v2359_v16 = vpop.f32.mrb[151].mxu0  ;;  %4582 = vmatmul.mubr.f32.gmra.mrb[0].mxu0 %v4065_v47  ;;  %v4069_v59 = vmax.f32 %v3813_v32, 0.0  ;;  %v3927_v47 = vadd.f32 %v8932_v53, %v3649_v57  ;;  %v11734_v32 = vld [vmem:[#allocation87_spill] sm:$0xff]  ;;  %v3826_v39 = vadd.f32 %v9346_v31, %v9869_v7 }
 0x4ab   :  { %v10014_v18 = vadd.f32 %v9944_v4, %v2359_v16  ;;  %4587 = vmatprep.mubr.f32.mxu0 %v4070_v38  ;;  %v3822_v4 = vadd.f32 %v9346_v31, %v9844_v6  ;;  %v3653_v28 = vadd.f32 %v9968_v34, %v11734_v32  ;;  %v3932_v38 = vadd.f32 %v8936_v9, %v3654_v10 }
 0x4ac   :  { %5193 = vmatmul.mubr.f32.gmra.mrb[102].mxu1 %v4175_v56  ;;  %v3657_v56 = vadd.f32 %v9968_v34, %v11735_v41  ;;  %v3662_v57 = vadd.f32 %v10034_v60, %v11736_v46  ;;  %v4183_v34 = vmax.f32 %v3927_v47, 0.0  ;;  %v3936_v21 = vadd.f32 %v8936_v9, %v3658_v25 }
 0x4ad   :  { %v2363_v20 = vpop.f32.mrb[152].mxu0  ;;  %5198 = vmatprep.mubr.f32.mxu1 %v4180_v44  ;;  %v4078_v51 = vmax.f32 %v3822_v4, 0.0  ;;  %v10054_v44 = vrot.slane %v10004_v58, %v8892_v23  ;;  %v3931_v50 = vadd.f32 %v8932_v53, %v3653_v28  ;;  %v3825_v10 = vadd.f32 %v9369_v15, %v9863_v42  ;;  %v11738_v28 = vld [vmem:[#allocation94_spill] sm:$0xff] }
 0x4ae   :  { %v10037_v40 = vadd.f32 %v10011_v24, %v2363_v20  ;;  %v2365_v52 = vpop.f32.mrb[153].mxu0  ;;  %4588 = vmatmul.mubr.f32.gmra.mrb[2].mxu0 %v4069_v59  ;;  %v4188_v4 = vmax.f32 %v3932_v38, 0.0  ;;  %v4082_v20 = vmax.f32 %v3826_v39, 0.0  ;;  %v3935_v42 = vadd.f32 %v8932_v53, %v3657_v56 }
 0x4af   :  { %v10040_v6 = vadd.f32 %v10028_v1, %v2365_v52  ;;  %4593 = vmatprep.mubr.f32.mxu0 %v4074_v33  ;;  %v4192_v38 = vmax.f32 %v3936_v21, 0.0  ;;  %v4081_v39 = vmax.f32 %v3825_v10, 0.0  ;;  %v4086_v56 = vmax.f32 %v3830_v3, 0.0 }
 0x4b0   :  { %5199 = vmatmul.mubr.f32.gmra.mrb[104].mxu1 %v4179_v26  ;;  %v11737_v26 = vld [vmem:[#allocation91_spill] sm:$0xff] }
 0x4b1   :  { %v2369_v16 = vpop.f32.mrb[154].mxu0  ;;  %5204 = vmatprep.mubr.f32.mxu1 %v4184_v43  ;;  %v3661_v47 = vadd.f32 %v10054_v44, %v11737_v26  ;;  %v4187_v43 = vmax.f32 %v3931_v50, 0.0  ;;  %v3833_v26 = vadd.f32 %v9369_v15, %v9903_v36 }
 0x4b2   :  { %v10057_v61 = vadd.f32 %v10011_v24, %v2369_v16  ;;  %v2371_v49 = vpop.f32.mrb[155].mxu0  ;;  %4594 = vmatmul.mubr.f32.gmra.mrb[4].mxu0 %v4073_v29  ;;  %v3666_v29 = vadd.f32 %v10034_v60, %v11738_v28  ;;  %v3829_v16 = vadd.f32 %v9369_v15, %v9883_v13  ;;  %v4191_v13 = vmax.f32 %v3935_v42, 0.0 }
 0x4b3   :  { %v10062_v7 = vadd.f32 %v10028_v1, %v2371_v49  ;;  %4599 = vmatprep.mubr.f32.mxu0 %v4078_v51  ;;  %v10064_v59 = vpop.f32.mrb[0].mxu1  ;;  %v3940_v51 = vadd.f32 %v8936_v9, %v3662_v57  ;;  %v3834_v49 = vadd.f32 %v9346_v31, %v9906_v35  ;;  %v3939_v10 = vadd.f32 %v8932_v53, %v3661_v47 }
 0x4b4   :  { %v10070_v33 = vpop.f32.mrb[1].mxu1  ;;  %5205 = vmatmul.mubr.f32.gmra.mrb[106].mxu1 %v4183_v34  ;;  %v11739_v34 = vld [vmem:[#allocation93_spill] sm:$0xff]  ;;  %v3838_v47 = vadd.f32 %v9346_v31, %v9932_v19 }
 0x4b5   :  { %v2375_v52 = vpop.f32.mrb[156].mxu0  ;;  %5210 = vmatprep.mubr.f32.mxu1 %v4188_v4  ;;  %v11740_v4 = vld [vmem:[#allocation179_spill] sm:$0xff]  ;;  %v4196_v3 = vmax.f32 %v3940_v51, 0.0  ;;  %v4090_v42 = vmax.f32 %v3834_v49, 0.0 }
 0x4b6   :  { %v10077_v32 = vadd.f32 %v10011_v24, %v2375_v52  ;;  %v2377_v25 = vpop.f32.mrb[157].mxu0  ;;  %4600 = vmatmul.mubr.f32.gmra.mrb[6].mxu0 %v4077_v62  ;;  %v3665_v62 = vadd.f32 %v10054_v44, %v11739_v34  ;;  %v3670_v50 = vadd.f32 %v10034_v60, %v11740_v4  ;;  %v4085_v52 = vmax.f32 %v3829_v16, 0.0 }
 0x4b7   :  { %v10083_v37 = vadd.f32 %v10028_v1, %v2377_v25  ;;  %4605 = vmatprep.mubr.f32.mxu0 %v4082_v20  ;;  %v10085_v55 = vpop.f32.mrb[2].mxu1  ;;  %v3944_v20 = vadd.f32 %v8936_v9, %v3666_v29  ;;  %v4089_v34 = vmax.f32 %v3833_v26, 0.0  ;;  %v3837_v4 = vadd.f32 %v9369_v15, %v9923_v8  ;;  %v11743_v8 = vld [vmem:[#allocation97_spill] sm:$0xff] }
 0x4b8   :  { %v10090_v41 = vpop.f32.mrb[3].mxu1  ;;  %5211 = vmatmul.mubr.f32.gmra.mrb[108].mxu1 %v4187_v43  ;;  %v11741_v43 = vld [vmem:[#allocation96_spill] sm:$0xff]  ;;  %v3943_v16 = vadd.f32 %v8932_v53, %v3665_v62  ;;  %v3948_v19 = vadd.f32 %v8936_v9, %v3670_v50  ;;  %v3673_v26 = vadd.f32 %v10054_v44, %v11743_v8 }
 0x4b9   :  { %v2381_v46 = vpop.f32.mrb[158].mxu0  ;;  %5216 = vmatprep.mubr.f32.mxu1 %v4192_v38  ;;  %v3669_v36 = vadd.f32 %v10054_v44, %v11741_v43  ;;  %v4200_v49 = vmax.f32 %v3944_v20, 0.0  ;;  %v3841_v43 = vadd.f32 %v9369_v15, %v9951_v14 }
 0x4ba   :  { %v10099_v57 = vadd.f32 %v10011_v24, %v2381_v46  ;;  %v2383_v21 = vpop.f32.mrb[159].mxu0  ;;  %4606 = vmatmul.mubr.f32.gmra.mrb[8].mxu0 %v4081_v39  ;;  %v10112_v24 = vrot.slane %v9463_v2, %v11581_v54  ;;  %v4195_v39 = vmax.f32 %v3939_v10, 0.0  ;;  %v11742_v46 = vld [vmem:[#allocation98_spill] sm:$0xff]  ;;  %v3842_v10 = vadd.f32 %v9346_v31, %v9955_v48 }
 0x4bb   :  { %v10104_v35 = vadd.f32 %v10028_v1, %v2383_v21  ;;  %4611 = vmatprep.mubr.f32.mxu0 %v4086_v56  ;;  %v10108_v25 = vpop.f32.mrb[4].mxu1  ;;  %v3282_v1 = vrot.slane %v9463_v2, %v11589_v12  ;;  %v3674_v2 = vadd.f32 %v10034_v60, %v11742_v46  ;;  %v4199_v60 = vmax.f32 %v3943_v16, 0.0 }
 0x4bc   :  { %v10116_v29 = vpop.f32.mrb[5].mxu1  ;;  %5217 = vmatmul.mubr.f32.gmra.mrb[110].mxu1 %v4191_v13  ;;  %v4094_v13 = vmax.f32 %v3838_v47, 0.0  ;;  %v4204_v48 = vmax.f32 %v3948_v19, 0.0  ;;  %v3846_v16 = vadd.f32 %v9346_v31, %v9976_v0  ;;  %v3845_v0 = vadd.f32 %v9369_v15, %v9971_v30 }
 0x4bd   :  { %v2387_v28 = vpop.f32.mrb[160].mxu0  ;;  %5222 = vmatprep.mubr.f32.mxu1 %v4196_v3  ;;  %v3952_v47 = vadd.f32 %v8936_v9, %v3674_v2  ;;  %v3951_v2 = vadd.f32 %v8932_v53, %v3673_v26 }
 0x4be   :  { %v10123_v38 = vadd.f32 %v10112_v24, %v2387_v28  ;;  %v2389_v51 = vpop.f32.mrb[161].mxu0  ;;  %4612 = vmatmul.mubr.f32.gmra.mrb[10].mxu0 %v4085_v52  ;;  %v3947_v52 = vadd.f32 %v8932_v53, %v3669_v36  ;;  %v4093_v28 = vmax.f32 %v3837_v4, 0.0  ;;  %v4097_v4 = vmax.f32 %v3841_v43, 0.0 }
 0x4bf   :  { %v10127_v56 = vadd.f32 %v3282_v1, %v2389_v51  ;;  %4617 = vmatprep.mubr.f32.mxu0 %v4090_v42  ;;  %v10133_v21 = vpop.f32.mrb[6].mxu1  ;;  %v4207_v26 = vmax.f32 %v3951_v2, 0.0  ;;  %v4101_v30 = vmax.f32 %v3845_v0, 0.0  ;;  %v3854_v43 = vadd.f32 %v9346_v31, %v10014_v18 }
 0x4c0   :  { %v10137_v3 = vpop.f32.mrb[7].mxu1  ;;  %5223 = vmatmul.mubr.f32.gmra.mrb[112].mxu1 %v4195_v39  ;;  %v4098_v39 = vmax.f32 %v3842_v10, 0.0  ;;  %v4203_v46 = vmax.f32 %v3947_v52, 0.0  ;;  %v4102_v10 = vmax.f32 %v3846_v16, 0.0  ;;  %v3857_v0 = vadd.f32 %v9369_v15, %v10037_v40 }
 0x4c1   :  { %v2393_v62 = vpop.f32.mrb[162].mxu0  ;;  %5228 = vmatprep.mubr.f32.mxu1 %v4200_v49 }
 0x4c2   :  { %v10140_v50 = vadd.f32 %v10112_v24, %v2393_v62  ;;  %v2395_v20 = vpop.f32.mrb[163].mxu0  ;;  %4618 = vmatmul.mubr.f32.gmra.mrb[12].mxu0 %v4089_v34  ;;  %v4208_v34 = vmax.f32 %v3952_v47, 0.0  ;;  %v3850_v62 = vadd.f32 %v9346_v31, %v9991_v63  ;;  %v3849_v47 = vadd.f32 %v9369_v15, %v9987_v27 }
 0x4c3   :  { %v10145_v42 = vadd.f32 %v3282_v1, %v2395_v20  ;;  %4623 = vmatprep.mubr.f32.mxu0 %v4094_v13  ;;  %v10150_v51 = vpop.f32.mrb[8].mxu1 }
 0x4c4   :  { %v10154_v49 = vpop.f32.mrb[9].mxu1  ;;  %5229 = vmatmul.mubr.f32.gmra.mrb[114].mxu1 %v4199_v60  ;;  %v4106_v63 = vmax.f32 %v3850_v62, 0.0  ;;  %v3862_v62 = vadd.f32 %v9346_v31, %v10062_v7 }
 0x4c5   :  { %v2399_v36 = vpop.f32.mrb[164].mxu0  ;;  %5234 = vmatprep.mubr.f32.mxu1 %v4204_v48 }
 0x4c6   :  { %v10157_v44 = vadd.f32 %v10112_v24, %v2399_v36  ;;  %v2401_v19 = vpop.f32.mrb[165].mxu0  ;;  %4624 = vmatmul.mubr.f32.gmra.mrb[14].mxu0 %v4093_v28  ;;  %v3853_v36 = vadd.f32 %v9369_v15, %v10007_v5  ;;  %v4118_v40 = vmax.f32 %v3862_v62, 0.0 }
 0x4c7   :  { %v10160_v14 = vadd.f32 %v3282_v1, %v2401_v19  ;;  %4629 = vmatprep.mubr.f32.mxu0 %v4098_v39  ;;  %v10164_v13 = vpop.f32.mrb[10].mxu1  ;;  %v4110_v19 = vmax.f32 %v3854_v43, 0.0 }
 0x4c8   :  { %v10168_v60 = vpop.f32.mrb[11].mxu1  ;;  %5235 = vmatmul.mubr.f32.gmra.mrb[116].mxu1 %v4203_v46  ;;  %v3858_v46 = vadd.f32 %v9346_v31, %v10040_v6 }
 0x4c9   :  { %v2405_v20 = vpop.f32.mrb[166].mxu0  ;;  %5240 = vmatprep.mubr.f32.mxu1 %v4208_v34 }
 0x4ca   :  { %v10171_v52 = vadd.f32 %v10112_v24, %v2405_v20  ;;  %v2407_v8 = vpop.f32.mrb[167].mxu0  ;;  %4630 = vmatmul.mubr.f32.gmra.mrb[16].mxu0 %v4097_v4  ;;  %v4109_v4 = vmax.f32 %v3853_v36, 0.0  ;;  %v4114_v5 = vmax.f32 %v3858_v46, 0.0 }
 0x4cb   :  { %v10173_v48 = vadd.f32 %v3282_v1, %v2407_v8  ;;  %4635 = vmatprep.mubr.f32.mxu0 %v4102_v10  ;;  %v10177_v28 = vpop.f32.mrb[12].mxu1  ;;  %v4105_v1 = vmax.f32 %v3849_v47, 0.0 }
 0x4cc   :  { %v10183_v24 = vpop.f32.mrb[13].mxu1  ;;  %5241 = vmatmul.mubr.f32.gmra.mrb[118].mxu1 %v4207_v26  ;;  %v4113_v26 = vmax.f32 %v3857_v0, 0.0 }
 0x4cd   :  { %v10181_v39 = vpop.f32.mrb[168].mxu0 }
 0x4ce   :  { %v10185_v16 = vpop.f32.mrb[169].mxu0  ;;  %4636 = vmatmul.mubr.f32.gmra.mrb[18].mxu0 %v4101_v30  ;;  %v3861_v30 = vadd.f32 %v9369_v15, %v10057_v61 }
 0x4cf   :  { %4641 = vmatprep.mubr.f32.mxu0 %v4106_v63  ;;  %v10189_v27 = vpop.f32.mrb[14].mxu1  ;;  %v3866_v63 = vadd.f32 %v9346_v31, %v10083_v37 }
 0x4d0   :  { %v10195_v2 = vpop.f32.mrb[15].mxu1  ;;  %v4117_v36 = vmax.f32 %v3861_v30, 0.0 }
 0x4d1   :  { %v10193_v18 = vpop.f32.mrb[170].mxu0  ;;  %v4122_v61 = vmax.f32 %v3866_v63, 0.0 }
 0x4d2   :  { %v10197_v34 = vpop.f32.mrb[171].mxu0  ;;  %4642 = vmatmul.mubr.f32.gmra.mrb[20].mxu0 %v4105_v1 }
 0x4d3   :  { %4647 = vmatprep.mubr.f32.mxu0 %v4110_v19  ;;  %v10201_v10 = vpop.f32.mrb[16].mxu1  ;;  %v3865_v19 = vadd.f32 %v9369_v15, %v10077_v32 }
 0x4d4   :  { %v10207_v6 = vpop.f32.mrb[17].mxu1 }
 0x4d5   :  { %v10205_v20 = vpop.f32.mrb[172].mxu0  ;;  %v4121_v62 = vmax.f32 %v3865_v19, 0.0  ;;  %v3873_v19 = vadd.f32 %v9369_v15, %v10123_v38 }
 0x4d6   :  { %v10209_v8 = vpop.f32.mrb[173].mxu0  ;;  %4648 = vmatmul.mubr.f32.gmra.mrb[22].mxu0 %v4109_v4  ;;  %v3870_v4 = vadd.f32 %v9346_v31, %v10104_v35 }
 0x4d7   :  { %4653 = vmatprep.mubr.f32.mxu0 %v4114_v5  ;;  %v10213_v47 = vpop.f32.mrb[18].mxu1 }
 0x4d8   :  { %11744 = vst [vmem:[#allocation114_spill] sm:$0xff] %v10213_v47  ;;  %v10219_v7 = vpop.f32.mrb[19].mxu1  ;;  %v4126_v32 = vmax.f32 %v3870_v4, 0.0  ;;  %v3878_v4 = vadd.f32 %v9346_v31, %v10145_v42 }
 0x4d9   :  { %v10217_v43 = vpop.f32.mrb[174].mxu0  ;;  %11745 = vst [vmem:[#allocation26_spill] sm:$0xff] %v10219_v7 }
 0x4da   :  { %v10221_v1 = vpop.f32.mrb[175].mxu0  ;;  %4654 = vmatmul.mubr.f32.gmra.mrb[24].mxu0 %v4113_v26  ;;  %v3869_v26 = vadd.f32 %v9369_v15, %v10099_v57  ;;  %v4134_v38 = vmax.f32 %v3878_v4, 0.0 }
 0x4db   :  { %4659 = vmatprep.mubr.f32.mxu0 %v4118_v40  ;;  %v10225_v46 = vpop.f32.mrb[20].mxu1  ;;  %v3874_v40 = vadd.f32 %v9346_v31, %v10127_v56 }
 0x4dc   :  { %11746 = vst [vmem:[#allocation116_spill] sm:$0xff] %v10225_v46  ;;  %v10231_v37 = vpop.f32.mrb[21].mxu1 }
 0x4dd   :  { %v10229_v0 = vpop.f32.mrb[176].mxu0  ;;  %11747 = vst [vmem:[#allocation120_spill] sm:$0xff] %v10231_v37  ;;  %v4130_v57 = vmax.f32 %v3874_v40, 0.0  ;;  %v3882_v40 = vadd.f32 %v9346_v31, %v10160_v14  ;;  %v3886_v14 = vadd.f32 %v9346_v31, %v10173_v48 }
 0x4de   :  { %v10233_v5 = vpop.f32.mrb[177].mxu0  ;;  %4660 = vmatmul.mubr.f32.gmra.mrb[26].mxu0 %v4117_v36  ;;  %v4125_v36 = vmax.f32 %v3869_v26, 0.0  ;;  %v3877_v26 = vadd.f32 %v9369_v15, %v10140_v50  ;;  %v3881_v50 = vadd.f32 %v9369_v15, %v10157_v44 }
 0x4df   :  { %4665 = vmatprep.mubr.f32.mxu0 %v4122_v61  ;;  %v10237_v30 = vpop.f32.mrb[22].mxu1  ;;  %v4138_v4 = vmax.f32 %v3882_v40, 0.0 }
 0x4e0   :  { %11748 = vst [vmem:[#allocation29_spill] sm:$0xff] %v10237_v30  ;;  %v10243_v35 = vpop.f32.mrb[23].mxu1  ;;  %v4137_v44 = vmax.f32 %v3881_v50, 0.0 }
 0x4e1   :  { %v10241_v63 = vpop.f32.mrb[178].mxu0  ;;  %11749 = vst [vmem:[#allocation28_spill] sm:$0xff] %v10243_v35 }
 0x4e2   :  { %v10245_v46 = vpop.f32.mrb[179].mxu0  ;;  %4666 = vmatmul.mubr.f32.gmra.mrb[28].mxu0 %v4121_v62  ;;  %v4129_v62 = vmax.f32 %v3873_v19, 0.0  ;;  %v4133_v19 = vmax.f32 %v3877_v26, 0.0  ;;  %v3885_v26 = vadd.f32 %v9369_v15, %v10171_v52 }
 0x4e3   :  { %4671 = vmatprep.mubr.f32.mxu0 %v4126_v32  ;;  %v10249_v61 = vpop.f32.mrb[24].mxu1 }
 0x4e4   :  { %11750 = vst [vmem:[#allocation31_spill] sm:$0xff] %v10249_v61  ;;  %v10255_v56 = vpop.f32.mrb[25].mxu1 }
 0x4e5   :  { %v10253_v30 = vpop.f32.mrb[180].mxu0  ;;  %11751 = vst [vmem:[#allocation30_spill] sm:$0xff] %v10255_v56 }
 0x4e6   :  { %v10257_v37 = vpop.f32.mrb[181].mxu0  ;;  %4672 = vmatmul.mubr.f32.gmra.mrb[30].mxu0 %v4125_v36  ;;  %v3298_v36 = vrot.slane %v9760_v22, %v11589_v12 }
 0x4e7   :  { %4677 = vmatprep.mubr.f32.mxu0 %v4130_v57  ;;  %v10261_v32 = vpop.f32.mrb[26].mxu1 }
 0x4e8   :  { %11752 = vst [vmem:[#allocation33_spill] sm:$0xff] %v10261_v32  ;;  %v10267_v42 = vpop.f32.mrb[27].mxu1  ;;  %v3612_v32 = vadd.f32 %v3298_v36, %v10185_v16  ;;  %v4142_v16 = vmax.f32 %v3886_v14, 0.0 }
 0x4e9   :  { %v10265_v61 = vpop.f32.mrb[182].mxu0  ;;  %11753 = vst [vmem:[#allocation123_spill] sm:$0xff] %v10267_v42 }
 0x4ea   :  { %v10269_v35 = vpop.f32.mrb[183].mxu0  ;;  %4678 = vmatmul.mubr.f32.gmra.mrb[32].mxu0 %v4129_v62  ;;  %v3294_v62 = vrot.slane %v9760_v22, %v11581_v54 }
 0x4eb   :  { %4683 = vmatprep.mubr.f32.mxu0 %v4134_v38  ;;  %v10275_v57 = vpop.f32.mrb[28].mxu1 }
 0x4ec   :  { %11754 = vst [vmem:[#allocation126_spill] sm:$0xff] %v10275_v57  ;;  %v10282_v56 = vpop.f32.mrb[29].mxu1  ;;  %v3611_v40 = vadd.f32 %v3294_v62, %v10181_v39  ;;  %v3890_v57 = vadd.f32 %v9346_v31, %v3612_v32  ;;  %v3615_v39 = vadd.f32 %v3294_v62, %v10193_v18  ;;  %v3619_v18 = vadd.f32 %v3294_v62, %v10205_v20 }
 0x4ed   :  { %v10280_v42 = vpop.f32.mrb[184].mxu0  ;;  %11755 = vst [vmem:[#allocation32_spill] sm:$0xff] %v10282_v56  ;;  %v3616_v56 = vadd.f32 %v3298_v36, %v10197_v34  ;;  %v3620_v34 = vadd.f32 %v3298_v36, %v10209_v8  ;;  %v3624_v8 = vadd.f32 %v3298_v36, %v10221_v1 }
 0x4ee   :  { %v10286_v38 = vpop.f32.mrb[185].mxu0  ;;  %4684 = vmatmul.mubr.f32.gmra.mrb[34].mxu0 %v4133_v19  ;;  %v4141_v19 = vmax.f32 %v3885_v26, 0.0  ;;  %v3889_v52 = vadd.f32 %v9369_v15, %v3611_v40  ;;  %v3893_v26 = vadd.f32 %v9369_v15, %v3615_v39  ;;  %v3897_v20 = vadd.f32 %v9369_v15, %v3619_v18 }
 0x4ef   :  { %4689 = vmatprep.mubr.f32.mxu0 %v4138_v4  ;;  %v10291_v48 = vpop.f32.mrb[30].mxu1  ;;  %v4146_v4 = vmax.f32 %v3890_v57, 0.0  ;;  %v3894_v32 = vadd.f32 %v9346_v31, %v3616_v56  ;;  %v3898_v56 = vadd.f32 %v9346_v31, %v3620_v34  ;;  %v3623_v39 = vadd.f32 %v3294_v62, %v10217_v43 }
 0x4f0   :  { %11756 = vst [vmem:[#allocation35_spill] sm:$0xff] %v10291_v48  ;;  %v10297_v22 = vpop.f32.mrb[31].mxu1  ;;  %v3902_v1 = vadd.f32 %v9346_v31, %v3624_v8 }
 0x4f1   :  { %v10295_v7 = vpop.f32.mrb[186].mxu0  ;;  %11757 = vst [vmem:[#allocation34_spill] sm:$0xff] %v10297_v22  ;;  %v4150_v57 = vmax.f32 %v3894_v32, 0.0  ;;  %v4154_v32 = vmax.f32 %v3898_v56, 0.0  ;;  %v3901_v43 = vadd.f32 %v9369_v15, %v3623_v39 }
 0x4f2   :  { %v10299_v47 = vpop.f32.mrb[187].mxu0  ;;  %4690 = vmatmul.mubr.f32.gmra.mrb[36].mxu0 %v4137_v44  ;;  %v4145_v44 = vmax.f32 %v3889_v52, 0.0  ;;  %v4149_v52 = vmax.f32 %v3893_v26, 0.0  ;;  %v4153_v26 = vmax.f32 %v3897_v20, 0.0  ;;  %v4158_v56 = vmax.f32 %v3902_v1, 0.0 }
 0x4f3   :  { %4695 = vmatprep.mubr.f32.mxu0 %v4142_v16  ;;  %v10303_v50 = vpop.f32.mrb[32].mxu1 }
 0x4f4   :  { %11758 = vst [vmem:[#allocation129_spill] sm:$0xff] %v10303_v50  ;;  %v10309_v48 = vpop.f32.mrb[33].mxu1 }
 0x4f5   :  { %v10307_v14 = vpop.f32.mrb[188].mxu0  ;;  %11759 = vst [vmem:[#allocation37_spill] sm:$0xff] %v10309_v48 }
 0x4f6   :  { %v10311_v22 = vpop.f32.mrb[189].mxu0  ;;  %4696 = vmatmul.mubr.f32.gmra.mrb[38].mxu0 %v4141_v19  ;;  %v3314_v19 = vrot.slane %v9837_v45, %v11589_v12 }
 0x4f7   :  { %4701 = vmatprep.mubr.f32.mxu0 %v4146_v4  ;;  %v10315_v40 = vpop.f32.mrb[34].mxu1 }
 0x4f8   :  { %v10321_v50 = vpop.f32.mrb[35].mxu1  ;;  %v3628_v36 = vadd.f32 %v3314_v19, %v10233_v5  ;;  %v3632_v8 = vadd.f32 %v3314_v19, %v10245_v46  ;;  %v3636_v46 = vadd.f32 %v3314_v19, %v10257_v37  ;;  %v3640_v37 = vadd.f32 %v3314_v19, %v10269_v35 }
 0x4f9   :  { %v10319_v16 = vpop.f32.mrb[190].mxu0  ;;  %11760 = vst [vmem:[#allocation124_spill] sm:$0xff] %v10321_v50 }
 0x4fa   :  { %v10323_v48 = vpop.f32.mrb[191].mxu0  ;;  %4702 = vmatmul.mubr.f32.gmra.mrb[40].mxu0 %v4145_v44  ;;  %v3310_v44 = vrot.slane %v9837_v45, %v11581_v54  ;;  %v3906_v5 = vadd.f32 %v9346_v31, %v3628_v36  ;;  %v3910_v1 = vadd.f32 %v9346_v31, %v3632_v8  ;;  %v3918_v35 = vadd.f32 %v9346_v31, %v3640_v37 }
 0x4fb   :  { %4707 = vmatprep.mubr.f32.mxu0 %v4150_v57  ;;  %v10329_v4 = vpop.f32.mrb[36].mxu1 }
 0x4fc   :  { %11761 = vst [vmem:[#allocation36_spill] sm:$0xff] %v10329_v4  ;;  %v10335_v50 = vpop.f32.mrb[37].mxu1  ;;  %v3627_v62 = vadd.f32 %v3310_v44, %v10229_v0  ;;  %v3631_v0 = vadd.f32 %v3310_v44, %v10241_v63  ;;  %v3635_v63 = vadd.f32 %v3310_v44, %v10253_v30 }
 0x4fd   :  { %v10333_v34 = vpop.f32.mrb[192].mxu0  ;;  %11762 = vst [vmem:[#allocation39_spill] sm:$0xff] %v10335_v50 }
 0x4fe   :  { %v10339_v57 = vpop.f32.mrb[193].mxu0  ;;  %4708 = vmatmul.mubr.f32.gmra.mrb[42].mxu0 %v4149_v52  ;;  %v4157_v52 = vmax.f32 %v3901_v43, 0.0  ;;  %v3905_v20 = vadd.f32 %v9369_v15, %v3627_v62  ;;  %v3909_v43 = vadd.f32 %v9369_v15, %v3631_v0  ;;  %v3913_v30 = vadd.f32 %v9369_v15, %v3635_v63 }
 0x4ff   :  { %4713 = vmatprep.mubr.f32.mxu0 %v4154_v32  ;;  %v10343_v18 = vpop.f32.mrb[38].mxu1  ;;  %v4162_v32 = vmax.f32 %v3906_v5, 0.0  ;;  %v3914_v5 = vadd.f32 %v9346_v31, %v3636_v46  ;;  %v3639_v0 = vadd.f32 %v3310_v44, %v10265_v61  ;;  %v4174_v44 = vmax.f32 %v3918_v35, 0.0 }
 0x500   :  { %11763 = vst [vmem:[#allocation127_spill] sm:$0xff] %v10343_v18  ;;  %v10349_v4 = vpop.f32.mrb[39].mxu1 }
 0x501   :  { %v10347_v50 = vpop.f32.mrb[194].mxu0  ;;  %11764 = vst [vmem:[#allocation117_spill] sm:$0xff] %v10349_v4 }
 0x502   :  { %v10351_v45 = vpop.f32.mrb[195].mxu0  ;;  %4714 = vmatmul.mubr.f32.gmra.mrb[44].mxu0 %v4153_v26  ;;  %v4161_v26 = vmax.f32 %v3905_v20, 0.0  ;;  %v4165_v20 = vmax.f32 %v3909_v43, 0.0  ;;  %v3917_v43 = vadd.f32 %v9369_v15, %v3639_v0 }
 0x503   :  { %4719 = vmatprep.mubr.f32.mxu0 %v4158_v56  ;;  %v10355_v39 = vpop.f32.mrb[40].mxu1  ;;  %v4166_v56 = vmax.f32 %v3910_v1, 0.0  ;;  %v4170_v1 = vmax.f32 %v3914_v5, 0.0 }
 0x504   :  { %11765 = vst [vmem:[#allocation14_spill] sm:$0xff] %v10355_v39  ;;  %v10361_v18 = vpop.f32.mrb[41].mxu1 }
 0x505   :  { %v10359_v36 = vpop.f32.mrb[196].mxu0  ;;  %11766 = vst [vmem:[#allocation38_spill] sm:$0xff] %v10361_v18 }
 0x506   :  { %v10363_v4 = vpop.f32.mrb[197].mxu0  ;;  %4720 = vmatmul.mubr.f32.gmra.mrb[46].mxu0 %v4157_v52  ;;  %v3330_v52 = vrot.slane %v9918_v11, %v11589_v12 }
 0x507   :  { %4725 = vmatprep.mubr.f32.mxu0 %v4162_v32  ;;  %v10367_v62 = vpop.f32.mrb[42].mxu1 }
 0x508   :  { %v10373_v39 = vpop.f32.mrb[43].mxu1  ;;  %v3644_v19 = vadd.f32 %v3330_v52, %v10286_v38  ;;  %v3648_v37 = vadd.f32 %v3330_v52, %v10299_v47  ;;  %v4337_v47 = vld [vmem:[%s10986_s9] sm:$0x3]  ;;  %s6668_s9 = smov [#allocation8]  }
 0x509   :  { %v10371_v8 = vpop.f32.mrb[198].mxu0  ;;  %s5608_s11 = sshll.u32 %s6668_s9, 4  ;;  %s5609_s11 = int_to_ptr.vmem [resolvable:$true] %s5608_s11 }
 0x50a   :  { %v10375_v18 = vpop.f32.mrb[199].mxu0  ;;  %4726 = vmatmul.mubr.f32.gmra.mrb[48].mxu0 %v4161_v26  ;;  %v3326_v26 = vrot.slane %v9918_v11, %v11581_v54  ;;  %v3922_v5 = vadd.f32 %v9346_v31, %v3644_v19  ;;  %s6631_s12 = scalar_lea.vmem %s5609_s11, 512  ;;  %p6636_p11 = scmp.lt.s32.totalorder %s5609_s11, %s5609_s11 }
 0x50b   :  { %4731 = vmatprep.mubr.f32.mxu0 %v4166_v56  ;;  %v10381_v32 = vpop.f32.mrb[44].mxu1  ;;  %v4169_v56 = vmax.f32 %v3913_v30, 0.0  ;;  %p6632_p10 = scmp.ne.s32.totalorder %s5609_s11, %s6631_s12  ;;  %p6637_p12 = scmp.lt.s32.totalorder %s6631_s12, %s6631_s12 }
 0x50c   :  { %v10385_v46 = vpop.f32.mrb[45].mxu1  ;;  %v3643_v63 = vadd.f32 %v3326_v26, %v10280_v42  ;;  %v4178_v0 = vmax.f32 %v3922_v5, 0.0  ;;  %v3926_v42 = vadd.f32 %v9346_v31, %v3648_v37  ;;  %v3346_v37 = vrot.slane %v10004_v58, %v11589_v12 }
 0x50d   :  { %11767 = vst [vmem:[#allocation41_spill] sm:$0xff] %v10385_v46  ;;  %v4173_v46 = vmax.f32 %v3917_v43, 0.0  ;;  %p6638_p13 = por %p6637_p12, %p6636_p11 }
 0x50e   :  { %4732 = vmatmul.mubr.f32.gmra.mrb[50].mxu0 %v4165_v20  ;;  %v3921_v11 = vadd.f32 %v9369_v15, %v3643_v63  ;;  %v3647_v20 = vadd.f32 %v3326_v26, %v10295_v7  ;;  %v3651_v7 = vadd.f32 %v3326_v26, %v10307_v14  ;;  %v4182_v63 = vmax.f32 %v3926_v42, 0.0 }
 0x50f   :  { %4737 = vmatprep.mubr.f32.mxu0 %v4170_v1  ;;  %v10391_v61 = vpop.f32.mrb[46].mxu1  ;;  %v3652_v1 = vadd.f32 %v3330_v52, %v10311_v22  ;;  %v3656_v22 = vadd.f32 %v3330_v52, %v10323_v48  ;;  %p6639_p0 = pnand %p6638_p13, %p6632_p10 }
 0x510   :  { %v10395_v38 = vpop.f32.mrb[47].mxu1  ;;  %v4177_v19 = vmax.f32 %v3921_v11, 0.0  ;;  %v10422_v11 = vrot.slane %v4337_v47, %v11589_v12 }
 0x511   :  { %v3934_v52 = vadd.f32 %v9346_v31, %v3656_v22 }
 0x512   :  { %4738 = vmatmul.mubr.f32.gmra.mrb[52].mxu0 %v4169_v56  ;;  %v3925_v56 = vadd.f32 %v9369_v15, %v3647_v20  ;;  %v3929_v20 = vadd.f32 %v9369_v15, %v3651_v7 }
 0x513   :  { %4743 = vmatprep.mubr.f32.mxu0 %v4174_v44  ;;  %v10399_v30 = vpop.f32.mrb[48].mxu1  ;;  %v3930_v44 = vadd.f32 %v9346_v31, %v3652_v1  ;;  %v3660_v1 = vadd.f32 %v3346_v37, %v10339_v57  ;;  %v4190_v22 = vmax.f32 %v3934_v52, 0.0 }
 0x514   :  { %v10403_v35 = vpop.f32.mrb[49].mxu1  ;;  %v4181_v14 = vmax.f32 %v3925_v56, 0.0 }
 0x515   :  { %v4186_v48 = vmax.f32 %v3930_v44, 0.0 }
 0x516   :  { %4744 = vmatmul.mubr.f32.gmra.mrb[54].mxu0 %v4173_v46  ;;  %v10417_v46 = vrot.slane %v4337_v47, %v11581_v54 }
 0x517   :  { %4749 = vmatprep.mubr.f32.mxu0 %v4178_v0  ;;  %v10410_v43 = vpop.f32.mrb[50].mxu1  ;;  %v3655_v0 = vadd.f32 %v3326_v26, %v10319_v16  ;;  %v4185_v16 = vmax.f32 %v3929_v20, 0.0 }
 0x518   :  { %v10414_v5 = vpop.f32.mrb[51].mxu1 }
 0x519   :  { %11768 = vst [vmem:[#allocation40_spill] sm:$0xff] %v10414_v5  ;;  %v3933_v26 = vadd.f32 %v9369_v15, %v3655_v0 }
 0x51a   :  { %4750 = vmatmul.mubr.f32.gmra.mrb[56].mxu0 %v4177_v19 }
 0x51b   :  { %4755 = vmatprep.mubr.f32.mxu0 %v4182_v63  ;;  %v10426_v42 = vpop.f32.mrb[52].mxu1  ;;  %v3342_v63 = vrot.slane %v10004_v58, %v11581_v54  ;;  %v3664_v54 = vadd.f32 %v3346_v37, %v10351_v45 }
 0x51c   :  { %v10430_v5 = vpop.f32.mrb[53].mxu1 }
 0x51d   :  { %v4439_v19 = vpop.f32.mrb[208].mxu0  ;;  %11769 = vst [vmem:[#allocation13_spill] sm:$0xff] %v10430_v5  ;;  %v3659_v7 = vadd.f32 %v3342_v63, %v10333_v34  ;;  %v3938_v5 = vadd.f32 %v9346_v31, %v3660_v1  ;;  %v3663_v52 = vadd.f32 %v3342_v63, %v10347_v50 }
 0x51e   :  { %v4440_v12 = vadd.f32 %v4439_v19, %v10417_v46  ;;  %v4441_v47 = vpop.f32.mrb[209].mxu0  ;;  %4756 = vmatmul.mubr.f32.gmra.mrb[58].mxu0 %v4181_v14 }
 0x51f   :  { %v4442_v56 = vadd.f32 %v4441_v47, %v10422_v11  ;;  %4761 = vmatprep.mubr.f32.mxu0 %v4186_v48  ;;  %v10439_v44 = vpop.f32.mrb[54].mxu1  ;;  %v3937_v0 = vadd.f32 %v9369_v15, %v3659_v7  ;;  %v3668_v47 = vadd.f32 %v3346_v37, %v10363_v4  ;;  %v3941_v4 = vadd.f32 %v9369_v15, %v3663_v52 }
 0x520   :  { %v4889_v57 = vadd.f32 %v10064_v59, %v4440_v12  ;;  %v10444_v19 = vpop.f32.mrb[55].mxu1  ;;  %v4189_v59 = vmax.f32 %v3933_v26, 0.0  ;;  %v3942_v12 = vadd.f32 %v9346_v31, %v3664_v54 }
 0x521   :  { %v4891_v58 = vadd.f32 %v10070_v33, %v4442_v56  ;;  %v4445_v14 = vpop.f32.mrb[210].mxu0  ;;  %v4194_v33 = vmax.f32 %v3938_v5, 0.0  ;;  %v11770_v5 = vld [vmem:[#allocation95_spill] sm:$0xff]  ;;  %v4193_v54 = vmax.f32 %v3937_v0, 0.0 }
 0x522   :  { %v4446_v20 = vadd.f32 %v4445_v14, %v10417_v46  ;;  %v4447_v48 = vpop.f32.mrb[211].mxu0  ;;  %4762 = vmatmul.mubr.f32.gmra.mrb[60].mxu0 %v4185_v16 }
 0x523   :  { %v4448_v34 = vadd.f32 %v4447_v48, %v10422_v11  ;;  %4767 = vmatprep.mubr.f32.mxu0 %v4190_v22  ;;  %v10451_v45 = vpop.f32.mrb[56].mxu1 }
 0x524   :  { %v4895_v1 = vadd.f32 %v10085_v55, %v4446_v20  ;;  %v10456_v14 = vpop.f32.mrb[57].mxu1  ;;  %v10462_v20 = vrot.slane %v11770_v5, %v8896_v17 }
 0x525   :  { %v4897_v56 = vadd.f32 %v10090_v41, %v4448_v34  ;;  %v4451_v16 = vpop.f32.mrb[212].mxu0  ;;  %v3667_v41 = vadd.f32 %v3342_v63, %v10359_v36  ;;  %v4198_v34 = vmax.f32 %v3942_v12, 0.0  ;;  %v10478_v12 = vrot.slane %v11770_v5, %v8892_v23 }
 0x526   :  { %v5265_v22 = vmax.f32 %v4889_v57, %v4895_v1  ;;  %v4452_v26 = vadd.f32 %v4451_v16, %v10417_v46  ;;  %v4453_v7 = vpop.f32.mrb[213].mxu0  ;;  %4768 = vmatmul.mubr.f32.gmra.mrb[62].mxu0 %v4189_v59  ;;  %v3946_v59 = vadd.f32 %v9346_v31, %v3668_v47  ;;  %v4197_v47 = vmax.f32 %v3941_v4, 0.0 }
 0x527   :  { %v5274_v50 = vmax.f32 %v4891_v58, %v4897_v56  ;;  %v4454_v55 = vadd.f32 %v4453_v7, %v10422_v11  ;;  %4773 = vmatprep.mubr.f32.mxu0 %v4194_v33  ;;  %v10467_v57 = vpop.f32.mrb[58].mxu1  ;;  %v3672_v58 = vadd.f32 %v3346_v37, %v10375_v18  ;;  %v3945_v18 = vadd.f32 %v9369_v15, %v3667_v41 }
 0x528   :  { %v4901_v48 = vadd.f32 %v10108_v25, %v4452_v26  ;;  %v10472_v56 = vpop.f32.mrb[59].mxu1 }
 0x529   :  { %v4903_v1 = vadd.f32 %v10116_v29, %v4454_v55  ;;  %v4457_v33 = vpop.f32.mrb[214].mxu0  ;;  %v3671_v29 = vadd.f32 %v3342_v63, %v10371_v8  ;;  %v3950_v26 = vadd.f32 %v9346_v31, %v3672_v58  ;;  %v4201_v31 = vmax.f32 %v3945_v18, 0.0 }
 0x52a   :  { %v5266_v17 = vmax.f32 %v5265_v22, %v4901_v48  ;;  %v4458_v0 = vadd.f32 %v4457_v33, %v10417_v46  ;;  %v4459_v52 = vpop.f32.mrb[215].mxu0  ;;  %4774 = vmatmul.mubr.f32.gmra.mrb[64].mxu0 %v4193_v54  ;;  %v4202_v22 = vmax.f32 %v3946_v59, 0.0  ;;  %v11771_v54 = vld [vmem:[#allocation142_spill] sm:$0xff] }
 0x52b   :  { %v5275_v36 = vmax.f32 %v5274_v50, %v4903_v1  ;;  %v4460_v25 = vadd.f32 %v4459_v52, %v10422_v11  ;;  %4779 = vmatprep.mubr.f32.mxu0 %v4198_v34  ;;  %v10483_v16 = vpop.f32.mrb[60].mxu1  ;;  %v3422_v23 = vadd.f32 %v10462_v20, %v11771_v54  ;;  %v11774_v34 = vld [vmem:[#allocation141_spill] sm:$0xff]  ;;  %v4206_v58 = vmax.f32 %v3950_v26, 0.0  ;;  %v11775_v52 = vld [vmem:[#allocation144_spill] sm:$0xff] }
 0x52c   :  { %v4907_v37 = vadd.f32 %v10133_v21, %v4458_v0  ;;  %v10487_v55 = vpop.f32.mrb[61].mxu1  ;;  %v3421_v59 = vadd.f32 %v10478_v12, %v11774_v34 }
 0x52d   :  { %v4909_v7 = vadd.f32 %v10137_v3, %v4460_v25  ;;  %v4463_v50 = vpop.f32.mrb[216].mxu0  ;;  %v3949_v3 = vadd.f32 %v9369_v15, %v3671_v29  ;;  %v3700_v0 = vadd.f32 %v8936_v9, %v3422_v23 }
 0x52e   :  { %v10491_v5 = vmax.f32 %v5266_v17, %v4907_v37  ;;  %v4464_v4 = vadd.f32 %v4463_v50, %v10417_v46  ;;  %v4465_v8 = vpop.f32.mrb[217].mxu0  ;;  %4780 = vmatmul.mubr.f32.gmra.mrb[66].mxu0 %v4197_v47  ;;  %v11776_v37 = vld [vmem:[#allocation143_spill] sm:$0xff] }
 0x52f   :  { %v10494_v21 = vmax.f32 %v5275_v36, %v4909_v7  ;;  %v4466_v63 = vadd.f32 %v4465_v8, %v10422_v11  ;;  %4785 = vmatprep.mubr.f32.mxu0 %v4202_v22  ;;  %v10499_v48 = vpop.f32.mrb[62].mxu1  ;;  %v3426_v36 = vadd.f32 %v10462_v20, %v11775_v52  ;;  %v4205_v47 = vmax.f32 %v3949_v3, 0.0 }
 0x530   :  { %11772 = vst [vmem:[#allocation44_spill] sm:$0xff] %v10491_v5  ;;  %v4913_v41 = vadd.f32 %v10150_v51, %v4464_v4  ;;  %v10504_v17 = vpop.f32.mrb[63].mxu1  ;;  %v3425_v22 = vadd.f32 %v10478_v12, %v11776_v37  ;;  %v3956_v54 = vmax.f32 %v3700_v0, 0.0  ;;  %v11777_v4 = vld [vmem:[#allocation146_spill] sm:$0xff]  ;;  %v11778_v0 = vld [vmem:[#allocation145_spill] sm:$0xff] }
 0x531   :  { %11773 = vst [vmem:[#allocation121_spill] sm:$0xff] %v10494_v21  ;;  %v4915_v1 = vadd.f32 %v10154_v49, %v4466_v63  ;;  %v4469_v33 = vpop.f32.mrb[218].mxu0  ;;  %v3699_v49 = vadd.f32 %v8932_v53, %v3421_v59  ;;  %v3704_v23 = vadd.f32 %v8936_v9, %v3426_v36  ;;  %v3430_v8 = vadd.f32 %v10462_v20, %v11777_v4 }
 0x532   :  { %v4470_v15 = vadd.f32 %v4469_v33, %v10417_v46  ;;  %v4471_v25 = vpop.f32.mrb[219].mxu0  ;;  %4786 = vmatmul.mubr.f32.gmra.mrb[68].mxu0 %v4201_v31  ;;  %v3703_v33 = vadd.f32 %v8932_v53, %v3425_v22  ;;  %v3429_v52 = vadd.f32 %v10478_v12, %v11778_v0 }
 0x533   :  { %v4472_v51 = vadd.f32 %v4471_v25, %v10422_v11  ;;  %4791 = vmatprep.mubr.f32.mxu0 %v4206_v58  ;;  %v10512_v29 = vpop.f32.mrb[64].mxu1  ;;  %v3955_v58 = vmax.f32 %v3699_v49, 0.0  ;;  %v3960_v25 = vmax.f32 %v3704_v23, 0.0  ;;  %v11780_v23 = vld [vmem:[#allocation149_spill] sm:$0xff] }
 0x534   :  { %v4919_v18 = vadd.f32 %v10164_v13, %v4470_v15  ;;  %v10518_v50 = vpop.f32.mrb[65].mxu1  ;;  %v3433_v4 = vadd.f32 %v10478_v12, %v11780_v23 }
 0x535   :  { %v4921_v26 = vadd.f32 %v10168_v60, %v4472_v51  ;;  %v4475_v7 = vpop.f32.mrb[220].mxu0  ;;  %v11779_v51 = vld [vmem:[#allocation150_spill] sm:$0xff] }
 0x536   :  { %v5283_v63 = vmax.f32 %v4913_v41, %v4919_v18  ;;  %v4476_v13 = vadd.f32 %v4475_v7, %v10417_v46  ;;  %v4477_v31 = vpop.f32.mrb[221].mxu0  ;;  %4792 = vmatmul.mubr.f32.gmra.mrb[70].mxu0 %v4205_v47  ;;  %v3434_v47 = vadd.f32 %v10462_v20, %v11779_v51  ;;  %v3959_v7 = vmax.f32 %v3703_v33, 0.0 }
 0x537   :  { %v5292_v3 = vmax.f32 %v4915_v1, %v4921_v26  ;;  %v4478_v34 = vadd.f32 %v4477_v31, %v10422_v11  ;;  %4862 = vmatprep.mubr.f32.mxu0 %v3956_v54  ;;  %v10526_v59 = vpop.f32.mrb[66].mxu1  ;;  %v3708_v1 = vadd.f32 %v8936_v9, %v3430_v8  ;;  %v3707_v54 = vadd.f32 %v8932_v53, %v3429_v52 }
 0x538   :  { %v4925_v60 = vadd.f32 %v10177_v28, %v4476_v13  ;;  %v10532_v15 = vpop.f32.mrb[67].mxu1  ;;  %v3712_v31 = vadd.f32 %v8936_v9, %v3434_v47  ;;  %v3711_v0 = vadd.f32 %v8932_v53, %v3433_v4  ;;  %v11783_v47 = vld [vmem:[#allocation114_spill] sm:$0xff]  ;;  %v11785_v4 = vld [vmem:[#allocation116_spill] sm:$0xff] }
 0x539   :  { %v4927_v41 = vadd.f32 %v10183_v24, %v4478_v34  ;;  %v4481_v36 = vpop.f32.mrb[222].mxu0  ;;  %v3964_v13 = vmax.f32 %v3708_v1, 0.0  ;;  %v3963_v33 = vmax.f32 %v3707_v54, 0.0 }
 0x53a   :  { %v5284_v28 = vmax.f32 %v5283_v63, %v4925_v60  ;;  %v4482_v18 = vadd.f32 %v4481_v36, %v10417_v46  ;;  %v4483_v49 = vpop.f32.mrb[223].mxu0  ;;  %4863 = vmatmul.mubr.f32.vlgmr.msra.gmra.mrb[200].mxu0 %v3955_v58  ;;  %v3968_v36 = vmax.f32 %v3712_v31, 0.0 }
 0x53b   :  { %v5293_v37 = vmax.f32 %v5292_v3, %v4927_v41  ;;  %v4484_v22 = vadd.f32 %v4483_v49, %v10422_v11  ;;  %4868 = vmatprep.mubr.f32.mxu0 %v3960_v25  ;;  %v10540_v26 = vpop.f32.mrb[68].mxu1  ;;  %v11784_v49 = vld [vmem:[#allocation26_spill] sm:$0xff] }
 0x53c   :  { %v4931_v24 = vadd.f32 %v10189_v27, %v4482_v18  ;;  %v10546_v63 = vpop.f32.mrb[69].mxu1  ;;  %v3967_v18 = vmax.f32 %v3711_v0, 0.0 }
 0x53d   :  { %v4933_v20 = vadd.f32 %v10195_v2, %v4484_v22  ;;  %v4487_v8 = vpop.f32.mrb[224].mxu0 }
 0x53e   :  { %v10549_v3 = vmax.f32 %v5284_v28, %v4931_v24  ;;  %v4488_v27 = vadd.f32 %v4487_v8, %v10417_v46  ;;  %v4489_v34 = vpop.f32.mrb[225].mxu0  ;;  %4869 = vmatmul.mubr.f32.gmra.mrb[202].mxu0 %v3959_v7 }
 0x53f   :  { %v10552_v60 = vmax.f32 %v5293_v37, %v4933_v20  ;;  %v4490_v58 = vadd.f32 %v4489_v34, %v10422_v11  ;;  %4874 = vmatprep.mubr.f32.mxu0 %v3964_v13  ;;  %v10556_v2 = vpop.f32.mrb[70].mxu1  ;;  %v11786_v13 = vld [vmem:[#allocation120_spill] sm:$0xff] }
 0x540   :  { %11781 = vst [vmem:[#allocation125_spill] sm:$0xff] %v10549_v3  ;;  %v4937_v12 = vadd.f32 %v10201_v10, %v4488_v27  ;;  %v10560_v41 = vpop.f32.mrb[71].mxu1 }
 0x541   :  { %11782 = vst [vmem:[#allocation42_spill] sm:$0xff] %v10552_v60  ;;  %v4939_v9 = vadd.f32 %v10207_v6, %v4490_v58  ;;  %v4493_v52 = vpop.f32.mrb[226].mxu0 }
 0x542   :  { %v4494_v25 = vadd.f32 %v4493_v52, %v10417_v46  ;;  %v4495_v1 = vpop.f32.mrb[227].mxu0  ;;  %4875 = vmatmul.mubr.f32.gmra.mrb[204].mxu0 %v3963_v33 }
 0x543   :  { %v4496_v51 = vadd.f32 %v4495_v1, %v10422_v11  ;;  %4880 = vmatprep.mubr.f32.mxu0 %v3968_v36  ;;  %v10565_v28 = vpop.f32.mrb[72].mxu1  ;;  %v11787_v36 = vld [vmem:[#allocation29_spill] sm:$0xff]  ;;  %v11788_v1 = vld [vmem:[#allocation28_spill] sm:$0xff] }
 0x544   :  { %v4943_v10 = vadd.f32 %v11783_v47, %v4494_v25  ;;  %v10568_v6 = vpop.f32.mrb[73].mxu1 }
 0x545   :  { %v4945_v53 = vadd.f32 %v11784_v49, %v4496_v51  ;;  %v4499_v37 = vpop.f32.mrb[228].mxu0 }
 0x546   :  { %v5301_v22 = vmax.f32 %v4937_v12, %v4943_v10  ;;  %v4500_v24 = vadd.f32 %v4499_v37, %v10417_v46  ;;  %v4501_v7 = vpop.f32.mrb[229].mxu0  ;;  %4881 = vmatmul.mubr.f32.gmra.mrb[206].mxu0 %v3967_v18 }
 0x547   :  { %v5310_v54 = vmax.f32 %v4939_v9, %v4945_v53  ;;  %v4502_v23 = vadd.f32 %v4501_v7, %v10422_v11  ;;  %v10573_v8 = vpop.f32.mrb[74].mxu1 }
 0x548   :  { %v4949_v20 = vadd.f32 %v11785_v4, %v4500_v24  ;;  %v10576_v34 = vpop.f32.mrb[75].mxu1  ;;  %v11791_v24 = vld [vmem:[#allocation31_spill] sm:$0xff] }
 0x549   :  { %v4951_v31 = vadd.f32 %v11786_v13, %v4502_v23  ;;  %v4505_v27 = vpop.f32.mrb[230].mxu0  ;;  %v11792_v23 = vld [vmem:[#allocation30_spill] sm:$0xff] }
 0x54a   :  { %v5302_v58 = vmax.f32 %v5301_v22, %v4949_v20  ;;  %v4506_v33 = vadd.f32 %v4505_v27, %v10417_v46  ;;  %v4507_v12 = vpop.f32.mrb[231].mxu0 }
 0x54b   :  { %v5311_v0 = vmax.f32 %v5310_v54, %v4951_v31  ;;  %v4508_v52 = vadd.f32 %v4507_v12, %v10422_v11  ;;  %v10581_v25 = vpop.f32.mrb[76].mxu1 }
 0x54c   :  { %v4955_v9 = vadd.f32 %v11787_v36, %v4506_v33  ;;  %v10584_v10 = vpop.f32.mrb[77].mxu1  ;;  %v11793_v33 = vld [vmem:[#allocation33_spill] sm:$0xff] }
 0x54d   :  { %v4957_v51 = vadd.f32 %v11788_v1, %v4508_v52  ;;  %v4511_v47 = vpop.f32.mrb[232].mxu0  ;;  %v11794_v52 = vld [vmem:[#allocation123_spill] sm:$0xff] }
 0x54e   :  { %v10586_v18 = vmax.f32 %v5302_v58, %v4955_v9  ;;  %v4512_v49 = vadd.f32 %v4511_v47, %v10417_v46  ;;  %v4513_v53 = vpop.f32.mrb[233].mxu0 }
 0x54f   :  { %v10589_v37 = vmax.f32 %v5311_v0, %v4957_v51  ;;  %v4514_v22 = vadd.f32 %v4513_v53, %v10422_v11  ;;  %v10593_v54 = vpop.f32.mrb[78].mxu1 }
 0x550   :  { %11789 = vst [vmem:[#allocation128_spill] sm:$0xff] %v10586_v18  ;;  %v4961_v7 = vadd.f32 %v11791_v24, %v4512_v49  ;;  %v10596_v13 = vpop.f32.mrb[79].mxu1  ;;  %v11795_v24 = vld [vmem:[#allocation126_spill] sm:$0xff] }
 0x551   :  { %11790 = vst [vmem:[#allocation131_spill] sm:$0xff] %v10589_v37  ;;  %v4963_v4 = vadd.f32 %v11792_v23, %v4514_v22  ;;  %v4517_v20 = vpop.f32.mrb[234].mxu0 }
 0x552   :  { %v4518_v31 = vadd.f32 %v4517_v20, %v10417_v46  ;;  %v4519_v27 = vpop.f32.mrb[235].mxu0 }
 0x553   :  { %v4520_v58 = vadd.f32 %v4519_v27, %v10422_v11  ;;  %v10601_v0 = vpop.f32.mrb[80].mxu1  ;;  %v11796_v27 = vld [vmem:[#allocation32_spill] sm:$0xff] }
 0x554   :  { %v4967_v12 = vadd.f32 %v11793_v33, %v4518_v31  ;;  %v10604_v1 = vpop.f32.mrb[81].mxu1 }
 0x555   :  { %v4969_v36 = vadd.f32 %v11794_v52, %v4520_v58  ;;  %v4523_v9 = vpop.f32.mrb[236].mxu0 }
 0x556   :  { %v5319_v51 = vmax.f32 %v4961_v7, %v4967_v12  ;;  %v4524_v47 = vadd.f32 %v4523_v9, %v10417_v46  ;;  %v4525_v49 = vpop.f32.mrb[237].mxu0  ;;  %v11797_v9 = vld [vmem:[#allocation35_spill] sm:$0xff] }
 0x557   :  { %v5328_v53 = vmax.f32 %v4963_v4, %v4969_v36  ;;  %v4526_v22 = vadd.f32 %v4525_v49, %v10422_v11  ;;  %v10609_v20 = vpop.f32.mrb[82].mxu1  ;;  %v11798_v49 = vld [vmem:[#allocation34_spill] sm:$0xff] }
 0x558   :  { %v4973_v23 = vadd.f32 %v11795_v24, %v4524_v47  ;;  %v10612_v37 = vpop.f32.mrb[83].mxu1 }
 0x559   :  { %v4975_v31 = vadd.f32 %v11796_v27, %v4526_v22  ;;  %v4529_v33 = vpop.f32.mrb[238].mxu0 }
 0x55a   :  { %v5320_v58 = vmax.f32 %v5319_v51, %v4973_v23  ;;  %v4530_v52 = vadd.f32 %v4529_v33, %v10417_v46  ;;  %v4531_v18 = vpop.f32.mrb[239].mxu0 }
 0x55b   :  { %v5329_v7 = vmax.f32 %v5328_v53, %v4975_v31  ;;  %v4532_v12 = vadd.f32 %v4531_v18, %v10422_v11  ;;  %v10617_v36 = vpop.f32.mrb[84].mxu1  ;;  %v11801_v31 = vld [vmem:[#allocation129_spill] sm:$0xff] }
 0x55c   :  { %v4979_v4 = vadd.f32 %v11797_v9, %v4530_v52  ;;  %v10620_v60 = vpop.f32.mrb[85].mxu1  ;;  %v11802_v52 = vld [vmem:[#allocation37_spill] sm:$0xff] }
 0x55d   :  { %v4981_v47 = vadd.f32 %v11798_v49, %v4532_v12  ;;  %v4535_v24 = vpop.f32.mrb[240].mxu0 }
 0x55e   :  { %v10622_v22 = vmax.f32 %v5320_v58, %v4979_v4  ;;  %v4536_v27 = vadd.f32 %v4535_v24, %v10417_v46  ;;  %v4537_v51 = vpop.f32.mrb[241].mxu0 }
 0x55f   :  { %v10625_v23 = vmax.f32 %v5329_v7, %v4981_v47  ;;  %v4538_v53 = vadd.f32 %v4537_v51, %v10422_v11  ;;  %v10629_v33 = vpop.f32.mrb[86].mxu1  ;;  %v11805_v47 = vld [vmem:[#allocation124_spill] sm:$0xff] }
 0x560   :  { %11799 = vst [vmem:[#allocation48_spill] sm:$0xff] %v10622_v22  ;;  %v4985_v18 = vadd.f32 %v11801_v31, %v4536_v27  ;;  %v10632_v12 = vpop.f32.mrb[87].mxu1 }
 0x561   :  { %11800 = vst [vmem:[#allocation45_spill] sm:$0xff] %v10625_v23  ;;  %v4987_v9 = vadd.f32 %v11802_v52, %v4538_v53  ;;  %v4541_v3 = vpop.f32.mrb[242].mxu0  ;;  %11803 = vst [vmem:[#allocation49_spill] sm:$0xff] %v10632_v12 }
 0x562   :  { %v4542_v49 = vadd.f32 %v4541_v3, %v10417_v46  ;;  %v4543_v58 = vpop.f32.mrb[243].mxu0  ;;  %v11807_v3 = vld [vmem:[#allocation36_spill] sm:$0xff] }
 0x563   :  { %v4544_v4 = vadd.f32 %v4543_v58, %v10422_v11  ;;  %v10637_v7 = vpop.f32.mrb[88].mxu1  ;;  %v11809_v58 = vld [vmem:[#allocation39_spill] sm:$0xff] }
 0x564   :  { %v4991_v24 = vadd.f32 %v10315_v40, %v4542_v49  ;;  %11804 = vst [vmem:[#allocation46_spill] sm:$0xff] %v10637_v7  ;;  %v10640_v27 = vpop.f32.mrb[89].mxu1 }
 0x565   :  { %v4993_v51 = vadd.f32 %v11805_v47, %v4544_v4  ;;  %v4547_v23 = vpop.f32.mrb[244].mxu0  ;;  %11806 = vst [vmem:[#allocation50_spill] sm:$0xff] %v10640_v27 }
 0x566   :  { %v5337_v31 = vmax.f32 %v4985_v18, %v4991_v24  ;;  %v4548_v53 = vadd.f32 %v4547_v23, %v10417_v46  ;;  %v4549_v52 = vpop.f32.mrb[245].mxu0  ;;  %v11810_v24 = vld [vmem:[#allocation127_spill] sm:$0xff] }
 0x567   :  { %v5346_v22 = vmax.f32 %v4987_v9, %v4993_v51  ;;  %v4550_v21 = vadd.f32 %v4549_v52, %v10422_v11  ;;  %v10645_v12 = vpop.f32.mrb[90].mxu1  ;;  %v11812_v52 = vld [vmem:[#allocation117_spill] sm:$0xff] }
 0x568   :  { %v4997_v5 = vadd.f32 %v11807_v3, %v4548_v53  ;;  %11808 = vst [vmem:[#allocation130_spill] sm:$0xff] %v10645_v12  ;;  %v10648_v7 = vpop.f32.mrb[91].mxu1 }
 0x569   :  { %v4999_v40 = vadd.f32 %v11809_v58, %v4550_v21  ;;  %v4553_v49 = vpop.f32.mrb[246].mxu0 }
 0x56a   :  { %v5338_v4 = vmax.f32 %v5337_v31, %v4997_v5  ;;  %v4554_v47 = vadd.f32 %v4553_v49, %v10417_v46  ;;  %v4555_v27 = vpop.f32.mrb[247].mxu0 }
 0x56b   :  { %v5347_v18 = vmax.f32 %v5346_v22, %v4999_v40  ;;  %v4556_v23 = vadd.f32 %v4555_v27, %v10422_v11  ;;  %v10653_v51 = vpop.f32.mrb[92].mxu1  ;;  %v11815_v40 = vld [vmem:[#allocation14_spill] sm:$0xff] }
 0x56c   :  { %v5003_v9 = vadd.f32 %v11810_v24, %v4554_v47  ;;  %11811 = vst [vmem:[#allocation136_spill] sm:$0xff] %v10653_v51  ;;  %v10656_v12 = vpop.f32.mrb[93].mxu1  ;;  %v11816_v47 = vld [vmem:[#allocation38_spill] sm:$0xff] }
 0x56d   :  { %v5005_v53 = vadd.f32 %v11812_v52, %v4556_v23  ;;  %v4559_v3 = vpop.f32.mrb[248].mxu0 }
 0x56e   :  { %v10658_v21 = vmax.f32 %v5338_v4, %v5003_v9  ;;  %v4560_v58 = vadd.f32 %v4559_v3, %v10417_v46  ;;  %v4561_v5 = vpop.f32.mrb[249].mxu0 }
 0x56f   :  { %v10661_v31 = vmax.f32 %v5347_v18, %v5005_v53  ;;  %v4562_v22 = vadd.f32 %v4561_v5, %v10422_v11  ;;  %v10665_v49 = vpop.f32.mrb[94].mxu1 }
 0x570   :  { %11813 = vst [vmem:[#allocation43_spill] sm:$0xff] %v10658_v21  ;;  %v5009_v27 = vadd.f32 %v11815_v40, %v4560_v58  ;;  %v10668_v23 = vpop.f32.mrb[95].mxu1 }
 0x571   :  { %11814 = vst [vmem:[#allocation55_spill] sm:$0xff] %v10661_v31  ;;  %v5011_v24 = vadd.f32 %v11816_v47, %v4562_v22  ;;  %v4565_v51 = vpop.f32.mrb[250].mxu0  ;;  %11817 = vst [vmem:[#allocation134_spill] sm:$0xff] %v10668_v23 }
 0x572   :  { %v4566_v52 = vadd.f32 %v4565_v51, %v10417_v46  ;;  %v4567_v4 = vpop.f32.mrb[251].mxu0 }
 0x573   :  { %v4568_v9 = vadd.f32 %v4567_v4, %v10422_v11  ;;  %v10673_v18 = vpop.f32.mrb[96].mxu1  ;;  %v11820_v4 = vld [vmem:[#allocation41_spill] sm:$0xff] }
 0x574   :  { %v5015_v3 = vadd.f32 %v10367_v62, %v4566_v52  ;;  %11818 = vst [vmem:[#allocation47_spill] sm:$0xff] %v10673_v18  ;;  %v10676_v58 = vpop.f32.mrb[97].mxu1 }
 0x575   :  { %v5017_v53 = vadd.f32 %v10373_v39, %v4568_v9  ;;  %v4571_v5 = vpop.f32.mrb[252].mxu0  ;;  %11819 = vst [vmem:[#allocation90_spill] sm:$0xff] %v10676_v58 }
 0x576   :  { %v5355_v40 = vmax.f32 %v5009_v27, %v5015_v3  ;;  %v4572_v22 = vadd.f32 %v4571_v5, %v10417_v46  ;;  %v4573_v47 = vpop.f32.mrb[253].mxu0 }
 0x577   :  { %v5364_v31 = vmax.f32 %v5011_v24, %v5017_v53  ;;  %v4574_v21 = vadd.f32 %v4573_v47, %v10422_v11  ;;  %v10681_v23 = vpop.f32.mrb[98].mxu1 }
 0x578   :  { %v5021_v51 = vadd.f32 %v10381_v32, %v4572_v22  ;;  %v10684_v18 = vpop.f32.mrb[99].mxu1 }
 0x579   :  { %v5023_v62 = vadd.f32 %v11820_v4, %v4574_v21  ;;  %v4577_v52 = vpop.f32.mrb[254].mxu0 }
 0x57a   :  { %v5356_v39 = vmax.f32 %v5355_v40, %v5021_v51  ;;  %v4578_v9 = vadd.f32 %v4577_v52, %v10417_v46  ;;  %v4579_v58 = vpop.f32.mrb[255].mxu0 }
 0x57b   :  { %v5365_v27 = vmax.f32 %v5364_v31, %v5023_v62  ;;  %v4580_v3 = vadd.f32 %v4579_v58, %v10422_v11  ;;  %v10689_v53 = vpop.f32.mrb[100].mxu1 }
 0x57c   :  { %v5027_v24 = vadd.f32 %v10391_v61, %v4578_v9  ;;  %v10692_v22 = vpop.f32.mrb[101].mxu1 }
 0x57d   :  { %v5029_v32 = vadd.f32 %v10395_v38, %v4580_v3  ;;  %v4583_v5 = vpop.f32.mrb[0].mxu0 }
 0x57e   :  { %v10694_v21 = vmax.f32 %v5356_v39, %v5027_v24  ;;  %v4584_v47 = vadd.f32 %v4583_v5, %v10417_v46  ;;  %v4585_v40 = vpop.f32.mrb[1].mxu0  ;;  %v11824_v24 = vld [vmem:[#allocation40_spill] sm:$0xff] }
 0x57f   :  { %v10697_v51 = vmax.f32 %v5365_v27, %v5029_v32  ;;  %v4586_v31 = vadd.f32 %v4585_v40, %v10422_v11  ;;  %v10701_v4 = vpop.f32.mrb[102].mxu1 }
 0x580   :  { %11821 = vst [vmem:[#allocation133_spill] sm:$0xff] %v10694_v21  ;;  %v5033_v58 = vadd.f32 %v10399_v30, %v4584_v47  ;;  %v10704_v38 = vpop.f32.mrb[103].mxu1 }
 0x581   :  { %11822 = vst [vmem:[#allocation132_spill] sm:$0xff] %v10697_v51  ;;  %v5035_v61 = vadd.f32 %v10403_v35, %v4586_v31  ;;  %v4589_v62 = vpop.f32.mrb[2].mxu0 }
 0x582   :  { %v4590_v52 = vadd.f32 %v4589_v62, %v10417_v46  ;;  %v4591_v39 = vpop.f32.mrb[3].mxu0 }
 0x583   :  { %v4592_v9 = vadd.f32 %v4591_v39, %v10422_v11  ;;  %v10709_v27 = vpop.f32.mrb[104].mxu1  ;;  %v11826_v39 = vld [vmem:[#allocation13_spill] sm:$0xff] }
 0x584   :  { %v5039_v3 = vadd.f32 %v10410_v43, %v4590_v52  ;;  %11823 = vst [vmem:[#allocation137_spill] sm:$0xff] %v10709_v27  ;;  %v10712_v30 = vpop.f32.mrb[105].mxu1 }
 0x585   :  { %v5041_v32 = vadd.f32 %v11824_v24, %v4592_v9  ;;  %v4595_v5 = vpop.f32.mrb[4].mxu0  ;;  %11825 = vst [vmem:[#allocation56_spill] sm:$0xff] %v10712_v30 }
 0x586   :  { %v5373_v47 = vmax.f32 %v5033_v58, %v5039_v3  ;;  %v4596_v35 = vadd.f32 %v4595_v5, %v10417_v46  ;;  %v4597_v40 = vpop.f32.mrb[5].mxu0 }
 0x587   :  { %v5382_v31 = vmax.f32 %v5035_v61, %v5041_v32  ;;  %v4598_v51 = vadd.f32 %v4597_v40, %v10422_v11  ;;  %v10717_v21 = vpop.f32.mrb[106].mxu1 }
 0x588   :  { %v5045_v62 = vadd.f32 %v10426_v42, %v4596_v35  ;;  %v10720_v27 = vpop.f32.mrb[107].mxu1 }
 0x589   :  { %v5047_v43 = vadd.f32 %v11826_v39, %v4598_v51  ;;  %v4601_v52 = vpop.f32.mrb[6].mxu0 }
 0x58a   :  { %v5374_v9 = vmax.f32 %v5373_v47, %v5045_v62  ;;  %v4602_v24 = vadd.f32 %v4601_v52, %v10417_v46  ;;  %v4603_v30 = vpop.f32.mrb[7].mxu0 }
 0x58b   :  { %v5383_v58 = vmax.f32 %v5382_v31, %v5047_v43  ;;  %v4604_v3 = vadd.f32 %v4603_v30, %v10422_v11  ;;  %v10725_v32 = vpop.f32.mrb[108].mxu1 }
 0x58c   :  { %v5051_v61 = vadd.f32 %v10439_v44, %v4602_v24  ;;  %v10728_v35 = vpop.f32.mrb[109].mxu1 }
 0x58d   :  { %v5053_v42 = vadd.f32 %v10444_v19, %v4604_v3  ;;  %v4607_v5 = vpop.f32.mrb[8].mxu0 }
 0x58e   :  { %v10730_v51 = vmax.f32 %v5374_v9, %v5051_v61  ;;  %v4608_v40 = vadd.f32 %v4607_v5, %v10417_v46  ;;  %v4609_v47 = vpop.f32.mrb[9].mxu0 }
 0x58f   :  { %v10733_v62 = vmax.f32 %v5383_v58, %v5053_v42  ;;  %v4610_v31 = vadd.f32 %v4609_v47, %v10422_v11  ;;  %v10737_v39 = vpop.f32.mrb[110].mxu1 }
 0x590   :  { %11827 = vst [vmem:[#allocation51_spill] sm:$0xff] %v10730_v51  ;;  %v5057_v30 = vadd.f32 %v10451_v45, %v4608_v40  ;;  %v10740_v19 = vpop.f32.mrb[111].mxu1 }
 0x591   :  { %11828 = vst [vmem:[#allocation57_spill] sm:$0xff] %v10733_v62  ;;  %v5059_v44 = vadd.f32 %v10456_v14, %v4610_v31  ;;  %v4613_v43 = vpop.f32.mrb[10].mxu0 }
 0x592   :  { %v4614_v52 = vadd.f32 %v4613_v43, %v10417_v46  ;;  %v4615_v9 = vpop.f32.mrb[11].mxu0 }
 0x593   :  { %v4616_v24 = vadd.f32 %v4615_v9, %v10422_v11  ;;  %v10745_v58 = vpop.f32.mrb[112].mxu1 }
 0x594   :  { %v5063_v3 = vadd.f32 %v10467_v57, %v4614_v52  ;;  %v10748_v45 = vpop.f32.mrb[113].mxu1 }
 0x595   :  { %v5065_v61 = vadd.f32 %v10472_v56, %v4616_v24  ;;  %v4619_v42 = vpop.f32.mrb[12].mxu0 }
 0x596   :  { %v5391_v5 = vmax.f32 %v5057_v30, %v5063_v3  ;;  %v4620_v14 = vadd.f32 %v4619_v42, %v10417_v46  ;;  %v4621_v40 = vpop.f32.mrb[13].mxu0 }
 0x597   :  { %v5400_v47 = vmax.f32 %v5059_v44, %v5065_v61  ;;  %v4622_v31 = vadd.f32 %v4621_v40, %v10422_v11  ;;  %v10753_v62 = vpop.f32.mrb[114].mxu1 }
 0x598   :  { %v5069_v43 = vadd.f32 %v10483_v16, %v4620_v14  ;;  %v10756_v9 = vpop.f32.mrb[115].mxu1 }
 0x599   :  { %v5071_v57 = vadd.f32 %v10487_v55, %v4622_v31  ;;  %v4625_v52 = vpop.f32.mrb[14].mxu0 }
 0x59a   :  { %v5392_v56 = vmax.f32 %v5391_v5, %v5069_v43  ;;  %v4626_v24 = vadd.f32 %v4625_v52, %v10417_v46  ;;  %v4627_v51 = vpop.f32.mrb[15].mxu0 }
 0x59b   :  { %v5401_v30 = vmax.f32 %v5400_v47, %v5071_v57  ;;  %v4628_v3 = vadd.f32 %v4627_v51, %v10422_v11  ;;  %v10761_v61 = vpop.f32.mrb[116].mxu1 }
 0x59c   :  { %v5075_v44 = vadd.f32 %v10499_v48, %v4626_v24  ;;  %v10764_v14 = vpop.f32.mrb[117].mxu1 }
 0x59d   :  { %v5077_v16 = vadd.f32 %v10504_v17, %v4628_v3  ;;  %v4631_v42 = vpop.f32.mrb[16].mxu0  ;;  %11829 = vst [vmem:[#allocation52_spill] sm:$0xff] %v10764_v14 }
 0x59e   :  { %v5393_v55 = vmax.f32 %v5392_v56, %v5075_v44  ;;  %v4632_v40 = vadd.f32 %v4631_v42, %v10417_v46  ;;  %v4633_v31 = vpop.f32.mrb[17].mxu0 }
 0x59f   :  { %v5402_v5 = vmax.f32 %v5401_v30, %v5077_v16  ;;  %v4634_v43 = vadd.f32 %v4633_v31, %v10422_v11  ;;  %v10769_v57 = vpop.f32.mrb[118].mxu1 }
 0x5a0   :  { %v5081_v47 = vadd.f32 %v10512_v29, %v4632_v40  ;;  %11830 = vst [vmem:[#allocation59_spill] sm:$0xff] %v10769_v57  ;;  %v10772_v52 = vpop.f32.mrb[119].mxu1  ;;  %v5394_v16 = vrot.slane %v5393_v55, 4 }
 0x5a1   :  { %v5083_v48 = vadd.f32 %v10518_v50, %v4634_v43  ;;  %v4637_v51 = vpop.f32.mrb[18].mxu0  ;;  %11831 = vst [vmem:[#allocation53_spill] sm:$0xff] %v10772_v52  ;;  %v5403_v31 = vrot.slane %v5402_v5, 4 }
 0x5a2   :  { %v4638_v17 = vadd.f32 %v4637_v51, %v10417_v46  ;;  %v4639_v24 = vpop.f32.mrb[19].mxu0 }
 0x5a3   :  { %v4640_v56 = vadd.f32 %v4639_v24, %v10422_v11  ;;  %v5395_v24 = vmax.f32 %v5393_v55, %v5394_v16 }
 0x5a4   :  { %v5087_v3 = vadd.f32 %v10526_v59, %v4638_v17  ;;  %v5404_v17 = vmax.f32 %v5402_v5, %v5403_v31 }
 0x5a5   :  { %v5089_v30 = vadd.f32 %v10532_v15, %v4640_v56  ;;  %v4643_v44 = vpop.f32.mrb[20].mxu0 }
 0x5a6   :  { %v5409_v42 = vmax.f32 %v5081_v47, %v5087_v3  ;;  %v4644_v29 = vadd.f32 %v4643_v44, %v10417_v46  ;;  %v4645_v40 = vpop.f32.mrb[21].mxu0  ;;  %v5396_v44 = vrot.slane %v5395_v24, 2 }
 0x5a7   :  { %v5418_v50 = vmax.f32 %v5083_v48, %v5089_v30  ;;  %v4646_v43 = vadd.f32 %v4645_v40, %v10422_v11 }
 0x5a8   :  { %v5093_v52 = vadd.f32 %v10540_v26, %v4644_v29  ;;  %v5405_v29 = vrot.slane %v5404_v17, 2 }
 0x5a9   :  { %v5095_v51 = vadd.f32 %v10546_v63, %v4646_v43  ;;  %v4649_v57 = vpop.f32.mrb[22].mxu0 }
 0x5aa   :  { %v5410_v14 = vmax.f32 %v5409_v42, %v5093_v52  ;;  %v4650_v59 = vadd.f32 %v4649_v57, %v10417_v46  ;;  %v4651_v15 = vpop.f32.mrb[23].mxu0 }
 0x5ab   :  { %v5419_v56 = vmax.f32 %v5418_v50, %v5095_v51  ;;  %v4652_v47 = vadd.f32 %v4651_v15, %v10422_v11 }
 0x5ac   :  { %v5099_v3 = vadd.f32 %v10556_v2, %v4650_v59  ;;  %v5397_v2 = vmax.f32 %v5395_v24, %v5396_v44 }
 0x5ad   :  { %v5101_v48 = vadd.f32 %v10560_v41, %v4652_v47  ;;  %v4655_v30 = vpop.f32.mrb[24].mxu0 }
 0x5ae   :  { %v5411_v40 = vmax.f32 %v5410_v14, %v5099_v3  ;;  %v4656_v26 = vadd.f32 %v4655_v30, %v10417_v46  ;;  %v4657_v63 = vpop.f32.mrb[25].mxu0  ;;  %v5406_v14 = vmax.f32 %v5404_v17, %v5405_v29 }
 0x5af   :  { %v5420_v55 = vmax.f32 %v5419_v56, %v5101_v48  ;;  %v4658_v52 = vadd.f32 %v4657_v63, %v10422_v11  ;;  %v5398_v48 = vrot.slane %v5397_v2, 1 }
 0x5b0   :  { %v5412_v57 = vrot.slane %v5411_v40, 4  ;;  %v5105_v5 = vadd.f32 %v10565_v28, %v4656_v26 }
 0x5b1   :  { %v5421_v16 = vrot.slane %v5420_v55, 4  ;;  %v5107_v42 = vadd.f32 %v10568_v6, %v4658_v52  ;;  %v4661_v31 = vpop.f32.mrb[26].mxu0 }
 0x5b2   :  { %v5413_v50 = vmax.f32 %v5411_v40, %v5412_v57  ;;  %v4662_v41 = vadd.f32 %v4661_v31, %v10417_v46  ;;  %v4663_v43 = vpop.f32.mrb[27].mxu0  ;;  %v5407_v40 = vrot.slane %v5406_v14, 1 }
 0x5b3   :  { %v5422_v51 = vmax.f32 %v5420_v55, %v5421_v16  ;;  %v4664_v59 = vadd.f32 %v4663_v43, %v10422_v11 }
 0x5b4   :  { %v5414_v15 = vrot.slane %v5413_v50, 2  ;;  %v5111_v56 = vadd.f32 %v10573_v8, %v4662_v41  ;;  %v5408_v41 = vmax.f32 %v5406_v14, %v5407_v40 }
 0x5b5   :  { %v5423_v47 = vrot.slane %v5422_v51, 2  ;;  %v5113_v3 = vadd.f32 %v10576_v34, %v4664_v59  ;;  %v4667_v28 = vpop.f32.mrb[28].mxu0  ;;  %v5399_v34 = vmax.f32 %v5397_v2, %v5398_v48 }
 0x5b6   :  { %v5415_v30 = vmax.f32 %v5413_v50, %v5414_v15  ;;  %v5427_v6 = vmax.f32 %v5105_v5, %v5111_v56  ;;  %v4668_v24 = vadd.f32 %v4667_v28, %v10417_v46  ;;  %v4669_v44 = vpop.f32.mrb[29].mxu0 }
 0x5b7   :  { %v5424_v26 = vmax.f32 %v5422_v51, %v5423_v47  ;;  %v5436_v63 = vmax.f32 %v5107_v42, %v5113_v3  ;;  %v4670_v17 = vadd.f32 %v4669_v44, %v10422_v11 }
 0x5b8   :  { %v5416_v29 = vrot.slane %v5415_v30, 1  ;;  %v5117_v55 = vadd.f32 %v10581_v25, %v4668_v24 }
 0x5b9   :  { %v5425_v52 = vrot.slane %v5424_v26, 1  ;;  %v5119_v8 = vadd.f32 %v10584_v10, %v4670_v17  ;;  %v4673_v57 = vpop.f32.mrb[30].mxu0 }
 0x5ba   :  { %v5417_v16 = vmax.f32 %v5415_v30, %v5416_v29  ;;  %v5428_v31 = vmax.f32 %v5427_v6, %v5117_v55  ;;  %v4674_v5 = vadd.f32 %v4673_v57, %v10417_v46  ;;  %v4675_v50 = vpop.f32.mrb[31].mxu0 }
 0x5bb   :  { %v5426_v43 = vmax.f32 %v5424_v26, %v5425_v52  ;;  %v5437_v59 = vmax.f32 %v5436_v63, %v5119_v8  ;;  %v4676_v42 = vadd.f32 %v4675_v50, %v10422_v11 }
 0x5bc   :  { %v5581_v51 = vsel %vm1736_vm2, %v5417_v16, %v5399_v34  ;;  %v5123_v15 = vadd.f32 %v10593_v54, %v4674_v5 }
 0x5bd   :  { %v5588_v25 = vsel %vm1736_vm2, %v5426_v43, %v5408_v41  ;;  %v5125_v10 = vadd.f32 %v10596_v13, %v4676_v42  ;;  %v4679_v56 = vpop.f32.mrb[32].mxu0 }
 0x5be   :  { %v5429_v2 = vmax.f32 %v5428_v31, %v5123_v15  ;;  %v4680_v47 = vadd.f32 %v4679_v56, %v10417_v46  ;;  %v4681_v3 = vpop.f32.mrb[33].mxu0 }
 0x5bf   :  { %v5438_v28 = vmax.f32 %v5437_v59, %v5125_v10  ;;  %v4682_v14 = vadd.f32 %v4681_v3, %v10422_v11 }
 0x5c0   :  { %v5430_v48 = vrot.slane %v5429_v2, 4  ;;  %v5129_v30 = vadd.f32 %v10601_v0, %v4680_v47 }
 0x5c1   :  { %v5439_v6 = vrot.slane %v5438_v28, 4  ;;  %v5131_v24 = vadd.f32 %v10604_v1, %v4682_v14  ;;  %v4685_v44 = vpop.f32.mrb[34].mxu0 }
 0x5c2   :  { %v5431_v54 = vmax.f32 %v5429_v2, %v5430_v48  ;;  %v4686_v40 = vadd.f32 %v4685_v44, %v10417_v46  ;;  %v4687_v26 = vpop.f32.mrb[35].mxu0 }
 0x5c3   :  { %v5440_v13 = vmax.f32 %v5438_v28, %v5439_v6  ;;  %v4688_v63 = vadd.f32 %v4687_v26, %v10422_v11  ;;  %v11833_v26 = vld [vmem:[#allocation46_spill] sm:$0xff] }
 0x5c4   :  { %v5432_v17 = vrot.slane %v5431_v54, 2  ;;  %v5135_v29 = vadd.f32 %v10609_v20, %v4686_v40 }
 0x5c5   :  { %v5441_v55 = vrot.slane %v5440_v13, 2  ;;  %v5137_v52 = vadd.f32 %v10612_v37, %v4688_v63  ;;  %v4691_v8 = vpop.f32.mrb[36].mxu0 }
 0x5c6   :  { %v5433_v57 = vmax.f32 %v5431_v54, %v5432_v17  ;;  %v5445_v0 = vmax.f32 %v5129_v30, %v5135_v29  ;;  %v4692_v34 = vadd.f32 %v4691_v8, %v10417_v46  ;;  %v4693_v1 = vpop.f32.mrb[37].mxu0  ;;  %v11834_v17 = vld [vmem:[#allocation50_spill] sm:$0xff] }
 0x5c7   :  { %v5442_v16 = vmax.f32 %v5440_v13, %v5441_v55  ;;  %v5454_v31 = vmax.f32 %v5131_v24, %v5137_v52  ;;  %v4694_v5 = vadd.f32 %v4693_v1, %v10422_v11 }
 0x5c8   :  { %v5434_v50 = vrot.slane %v5433_v57, 1  ;;  %v5141_v41 = vadd.f32 %v10617_v36, %v4692_v34  ;;  %v11832_v36 = vld [vmem:[#allocation49_spill] sm:$0xff] }
 0x5c9   :  { %v5443_v43 = vrot.slane %v5442_v16, 1  ;;  %v5143_v59 = vadd.f32 %v10620_v60, %v4694_v5  ;;  %v4697_v20 = vpop.f32.mrb[38].mxu0 }
 0x5ca   :  { %v5435_v42 = vmax.f32 %v5433_v57, %v5434_v50  ;;  %v5446_v15 = vmax.f32 %v5445_v0, %v5141_v41  ;;  %v4698_v37 = vadd.f32 %v4697_v20, %v10417_v46  ;;  %v4699_v10 = vpop.f32.mrb[39].mxu0  ;;  %v11835_v0 = vld [vmem:[#allocation130_spill] sm:$0xff] }
 0x5cb   :  { %v5444_v56 = vmax.f32 %v5442_v16, %v5443_v43  ;;  %v5455_v2 = vmax.f32 %v5454_v31, %v5143_v59  ;;  %v4700_v47 = vadd.f32 %v4699_v10, %v10422_v11 }
 0x5cc   :  { %v5582_v3 = vsel %vm1738_vm3, %v5435_v42, %v5581_v51  ;;  %v5147_v28 = vadd.f32 %v10629_v33, %v4698_v37  ;;  %v11836_v37 = vld [vmem:[#allocation136_spill] sm:$0xff] }
 0x5cd   :  { %v5589_v14 = vsel %vm1738_vm3, %v5444_v56, %v5588_v25  ;;  %v5149_v48 = vadd.f32 %v11832_v36, %v4700_v47  ;;  %v4703_v30 = vpop.f32.mrb[40].mxu0 }
 0x5ce   :  { %v5447_v60 = vmax.f32 %v5446_v15, %v5147_v28  ;;  %v4704_v6 = vadd.f32 %v4703_v30, %v10417_v46  ;;  %v4705_v24 = vpop.f32.mrb[41].mxu0 }
 0x5cf   :  { %v5456_v44 = vmax.f32 %v5455_v2, %v5149_v48  ;;  %v4706_v54 = vadd.f32 %v4705_v24, %v10422_v11 }
 0x5d0   :  { %v5448_v40 = vrot.slane %v5447_v60, 4  ;;  %v5153_v13 = vadd.f32 %v11833_v26, %v4704_v6 }
 0x5d1   :  { %v5457_v63 = vrot.slane %v5456_v44, 4  ;;  %v5155_v51 = vadd.f32 %v11834_v17, %v4706_v54  ;;  %v4709_v29 = vpop.f32.mrb[42].mxu0 }
 0x5d2   :  { %v5449_v33 = vmax.f32 %v5447_v60, %v5448_v40  ;;  %v4710_v25 = vadd.f32 %v4709_v29, %v10417_v46  ;;  %v4711_v55 = vpop.f32.mrb[43].mxu0  ;;  %v11837_v40 = vld [vmem:[#allocation134_spill] sm:$0xff] }
 0x5d3   :  { %v5458_v52 = vmax.f32 %v5456_v44, %v5457_v63  ;;  %v4712_v8 = vadd.f32 %v4711_v55, %v10422_v11 }
 0x5d4   :  { %v5450_v57 = vrot.slane %v5449_v33, 2  ;;  %v5159_v34 = vadd.f32 %v11835_v0, %v4710_v25  ;;  %v11838_v25 = vld [vmem:[#allocation47_spill] sm:$0xff] }
 0x5d5   :  { %v5459_v1 = vrot.slane %v5458_v52, 2  ;;  %v5161_v16 = vadd.f32 %v10648_v7, %v4712_v8  ;;  %v4715_v31 = vpop.f32.mrb[44].mxu0  ;;  %v11839_v8 = vld [vmem:[#allocation90_spill] sm:$0xff] }
 0x5d6   :  { %v5451_v5 = vmax.f32 %v5449_v33, %v5450_v57  ;;  %v5463_v50 = vmax.f32 %v5153_v13, %v5159_v34  ;;  %v4716_v41 = vadd.f32 %v4715_v31, %v10417_v46  ;;  %v4717_v43 = vpop.f32.mrb[45].mxu0 }
 0x5d7   :  { %v5460_v59 = vmax.f32 %v5458_v52, %v5459_v1  ;;  %v5472_v20 = vmax.f32 %v5155_v51, %v5161_v16  ;;  %v4718_v42 = vadd.f32 %v4717_v43, %v10422_v11 }
 0x5d8   :  { %v5452_v15 = vrot.slane %v5451_v5, 1  ;;  %v5165_v10 = vadd.f32 %v11836_v37, %v4716_v41 }
 0x5d9   :  { %v5461_v56 = vrot.slane %v5460_v59, 1  ;;  %v5167_v2 = vadd.f32 %v10656_v12, %v4718_v42  ;;  %v4721_v47 = vpop.f32.mrb[46].mxu0 }
 0x5da   :  { %v5453_v28 = vmax.f32 %v5451_v5, %v5452_v15  ;;  %v5464_v36 = vmax.f32 %v5463_v50, %v5165_v10  ;;  %v4722_v7 = vadd.f32 %v4721_v47, %v10417_v46  ;;  %v4723_v48 = vpop.f32.mrb[47].mxu0 }
 0x5db   :  { %v5462_v30 = vmax.f32 %v5460_v59, %v5461_v56  ;;  %v5473_v60 = vmax.f32 %v5472_v20, %v5167_v2  ;;  %v4724_v6 = vadd.f32 %v4723_v48, %v10422_v11 }
 0x5dc   :  { %v5583_v24 = vsel %vm1740_vm4, %v5453_v28, %v5582_v3  ;;  %v5171_v44 = vadd.f32 %v10665_v49, %v4722_v7 }
 0x5dd   :  { %v5590_v54 = vsel %vm1740_vm4, %v5462_v30, %v5589_v14  ;;  %v5173_v26 = vadd.f32 %v11837_v40, %v4724_v6  ;;  %v4727_v13 = vpop.f32.mrb[48].mxu0 }
 0x5de   :  { %v5465_v12 = vmax.f32 %v5464_v36, %v5171_v44  ;;  %v4728_v63 = vadd.f32 %v4727_v13, %v10417_v46  ;;  %v4729_v17 = vpop.f32.mrb[49].mxu0 }
 0x5df   :  { %v5474_v51 = vmax.f32 %v5473_v60, %v5173_v26  ;;  %v4730_v29 = vadd.f32 %v4729_v17, %v10422_v11 }
 0x5e0   :  { %v5466_v33 = vrot.slane %v5465_v12, 4  ;;  %v5177_v55 = vadd.f32 %v11838_v25, %v4728_v63 }
 0x5e1   :  { %v5475_v52 = vrot.slane %v5474_v51, 4  ;;  %v5179_v3 = vadd.f32 %v11839_v8, %v4730_v29  ;;  %v4733_v57 = vpop.f32.mrb[50].mxu0 }
 0x5e2   :  { %v5467_v49 = vmax.f32 %v5465_v12, %v5466_v33  ;;  %v4734_v14 = vadd.f32 %v4733_v57, %v10417_v46  ;;  %v4735_v0 = vpop.f32.mrb[51].mxu0  ;;  %v11840_v33 = vld [vmem:[#allocation137_spill] sm:$0xff] }
 0x5e3   :  { %v5476_v34 = vmax.f32 %v5474_v51, %v5475_v52  ;;  %v4736_v1 = vadd.f32 %v4735_v0, %v10422_v11  ;;  %v11841_v52 = vld [vmem:[#allocation56_spill] sm:$0xff] }
 0x5e4   :  { %v5468_v16 = vrot.slane %v5467_v49, 2  ;;  %v5183_v31 = vadd.f32 %v10681_v23, %v4734_v14 }
 0x5e5   :  { %v5477_v5 = vrot.slane %v5476_v34, 2  ;;  %v5185_v50 = vadd.f32 %v10684_v18, %v4736_v1  ;;  %v4739_v41 = vpop.f32.mrb[52].mxu0 }
 0x5e6   :  { %v5469_v43 = vmax.f32 %v5467_v49, %v5468_v16  ;;  %v5481_v59 = vmax.f32 %v5177_v55, %v5183_v31  ;;  %v4740_v20 = vadd.f32 %v4739_v41, %v10417_v46  ;;  %v4741_v42 = vpop.f32.mrb[53].mxu0 }
 0x5e7   :  { %v5478_v15 = vmax.f32 %v5476_v34, %v5477_v5  ;;  %v5490_v37 = vmax.f32 %v5179_v3, %v5185_v50  ;;  %v4742_v10 = vadd.f32 %v4741_v42, %v10422_v11 }
 0x5e8   :  { %v5470_v56 = vrot.slane %v5469_v43, 1  ;;  %v5189_v2 = vadd.f32 %v10689_v53, %v4740_v20 }
 0x5e9   :  { %v5479_v47 = vrot.slane %v5478_v15, 1  ;;  %v5191_v28 = vadd.f32 %v10692_v22, %v4742_v10  ;;  %v4745_v23 = vpop.f32.mrb[54].mxu0 }
 0x5ea   :  { %v5471_v36 = vmax.f32 %v5469_v43, %v5470_v56  ;;  %v5482_v7 = vmax.f32 %v5481_v59, %v5189_v2  ;;  %v4746_v18 = vadd.f32 %v4745_v23, %v10417_v46  ;;  %v4747_v48 = vpop.f32.mrb[55].mxu0 }
 0x5eb   :  { %v5480_v30 = vmax.f32 %v5478_v15, %v5479_v47  ;;  %v5491_v60 = vmax.f32 %v5490_v37, %v5191_v28  ;;  %v4748_v6 = vadd.f32 %v4747_v48, %v10422_v11 }
 0x5ec   :  { %v5584_v44 = vsel %vm1742_vm5, %v5471_v36, %v5583_v24  ;;  %v5195_v40 = vadd.f32 %v10701_v4, %v4746_v18 }
 0x5ed   :  { %v5591_v26 = vsel %vm1742_vm5, %v5480_v30, %v5590_v54  ;;  %v5197_v53 = vadd.f32 %v10704_v38, %v4748_v6  ;;  %v4751_v13 = vpop.f32.mrb[56].mxu0 }
 0x5ee   :  { %v5483_v22 = vmax.f32 %v5482_v7, %v5195_v40  ;;  %v4752_v12 = vadd.f32 %v4751_v13, %v10417_v46  ;;  %v4753_v63 = vpop.f32.mrb[57].mxu0 }
 0x5ef   :  { %v5492_v17 = vmax.f32 %v5491_v60, %v5197_v53  ;;  %v4754_v51 = vadd.f32 %v4753_v63, %v10422_v11  ;;  %v11842_v53 = vld [vmem:[#allocation44_spill] sm:$0xff] }
 0x5f0   :  { %v5484_v29 = vrot.slane %v5483_v22, 4  ;;  %v5201_v25 = vadd.f32 %v11840_v33, %v4752_v12  ;;  %v5268_v13 = vrot.slane %v11842_v53, 4 }
 0x5f1   :  { %v5493_v55 = vrot.slane %v5492_v17, 4  ;;  %v5203_v24 = vadd.f32 %v11841_v52, %v4754_v51  ;;  %v4757_v8 = vpop.f32.mrb[58].mxu0 }
 0x5f2   :  { %v5485_v4 = vmax.f32 %v5483_v22, %v5484_v29  ;;  %v4758_v54 = vadd.f32 %v4757_v8, %v10417_v46  ;;  %v4759_v3 = vpop.f32.mrb[59].mxu0  ;;  %v11843_v22 = vld [vmem:[#allocation121_spill] sm:$0xff] }
 0x5f3   :  { %v5494_v38 = vmax.f32 %v5492_v17, %v5493_v55  ;;  %v4760_v57 = vadd.f32 %v4759_v3, %v10422_v11  ;;  %v5277_v12 = vrot.slane %v11843_v22, 4  ;;  %v5269_v55 = vmax.f32 %v11842_v53, %v5268_v13 }
 0x5f4   :  { %v5486_v49 = vrot.slane %v5485_v4, 2  ;;  %v5207_v14 = vadd.f32 %v10717_v21, %v4758_v54 }
 0x5f5   :  { %v5495_v0 = vrot.slane %v5494_v38, 2  ;;  %v5209_v34 = vadd.f32 %v10720_v27, %v4760_v57  ;;  %v4763_v1 = vpop.f32.mrb[60].mxu0  ;;  %v5278_v52 = vmax.f32 %v11843_v22, %v5277_v12 }
 0x5f6   :  { %v5487_v16 = vmax.f32 %v5485_v4, %v5486_v49  ;;  %v5499_v31 = vmax.f32 %v5201_v25, %v5207_v14  ;;  %v4764_v5 = vadd.f32 %v4763_v1, %v10417_v46  ;;  %v4765_v50 = vpop.f32.mrb[61].mxu0 }
 0x5f7   :  { %v5496_v41 = vmax.f32 %v5494_v38, %v5495_v0  ;;  %v5508_v43 = vmax.f32 %v5203_v24, %v5209_v34  ;;  %v4766_v59 = vadd.f32 %v4765_v50, %v10422_v11  ;;  %v5270_v34 = vrot.slane %v5269_v55, 2 }
 0x5f8   :  { %v5488_v20 = vrot.slane %v5487_v16, 1  ;;  %v5213_v42 = vadd.f32 %v10725_v32, %v4764_v5  ;;  %v5279_v1 = vrot.slane %v5278_v52, 2 }
 0x5f9   :  { %v5497_v15 = vrot.slane %v5496_v41, 1  ;;  %v5215_v37 = vadd.f32 %v10728_v35, %v4766_v59  ;;  %v4769_v21 = vpop.f32.mrb[62].mxu0 }
 0x5fa   :  { %v5489_v10 = vmax.f32 %v5487_v16, %v5488_v20  ;;  %v5500_v56 = vmax.f32 %v5499_v31, %v5213_v42  ;;  %v4770_v27 = vadd.f32 %v4769_v21, %v10417_v46  ;;  %v4771_v2 = vpop.f32.mrb[63].mxu0  ;;  %v5271_v21 = vmax.f32 %v5269_v55, %v5270_v34 }
 0x5fb   :  { %v5498_v47 = vmax.f32 %v5496_v41, %v5497_v15  ;;  %v5509_v28 = vmax.f32 %v5508_v43, %v5215_v37  ;;  %v4772_v23 = vadd.f32 %v4771_v2, %v10422_v11 }
 0x5fc   :  { %v5219_v36 = vadd.f32 %v10737_v39, %v4770_v27  ;;  %v5585_v7 = vsel %vm1744_vm6, %v5489_v10, %v5584_v44  ;;  %v5280_v10 = vmax.f32 %v5278_v52, %v5279_v1  ;;  %v5272_v13 = vrot.slane %v5271_v21, 1 }
 0x5fd   :  { %v5221_v18 = vadd.f32 %v10740_v19, %v4772_v23  ;;  %v4775_v32 = vpop.f32.mrb[64].mxu0  ;;  %v5592_v48 = vsel %vm1744_vm6, %v5498_v47, %v5591_v26 }
 0x5fe   :  { %v5501_v35 = vmax.f32 %v5500_v56, %v5219_v36  ;;  %v4776_v30 = vadd.f32 %v4775_v32, %v10417_v46  ;;  %v4777_v60 = vpop.f32.mrb[65].mxu0  ;;  %v11845_v56 = vld [vmem:[#allocation59_spill] sm:$0xff]  ;;  %v11848_v36 = vld [vmem:[#allocation53_spill] sm:$0xff]  ;;  %v5281_v12 = vrot.slane %v5280_v10, 1 }
 0x5ff   :  { %v5510_v6 = vmax.f32 %v5509_v28, %v5221_v18  ;;  %v4778_v40 = vadd.f32 %v4777_v60, %v10422_v11  ;;  %v11847_v28 = vld [vmem:[#allocation42_spill] sm:$0xff] }
 0x600   :  { %v5502_v63 = vrot.slane %v5501_v35, 4  ;;  %v5225_v39 = vadd.f32 %v10745_v58, %v4776_v30  ;;  %v5295_v23 = vrot.slane %v11847_v28, 4 }
 0x601   :  { %v5511_v44 = vrot.slane %v5510_v6, 4  ;;  %v5227_v19 = vadd.f32 %v10748_v45, %v4778_v40  ;;  %v4781_v17 = vpop.f32.mrb[66].mxu0 }
 0x602   :  { %v5503_v51 = vmax.f32 %v5501_v35, %v5502_v63  ;;  %v4782_v26 = vadd.f32 %v4781_v17, %v10417_v46  ;;  %v4783_v29 = vpop.f32.mrb[67].mxu0  ;;  %v10907_v63 = vmax.f32 %v11847_v28, %v5295_v23  ;;  %v11857_v28 = vld [vmem:[#allocation51_spill] sm:$0xff] }
 0x603   :  { %v5512_v33 = vmax.f32 %v5510_v6, %v5511_v44  ;;  %v4784_v25 = vadd.f32 %v4783_v29, %v10422_v11  ;;  %v11849_v6 = vld [vmem:[#allocation128_spill] sm:$0xff]  ;;  %v5376_v23 = vrot.slane %v11857_v28, 4 }
 0x604   :  { %v5504_v24 = vrot.slane %v5503_v51, 2  ;;  %v5231_v8 = vadd.f32 %v10753_v62, %v4782_v26  ;;  %v11844_v62 = vld [vmem:[#allocation52_spill] sm:$0xff]  ;;  %v5304_v40 = vrot.slane %v11849_v6, 4 }
 0x605   :  { %v5513_v4 = vrot.slane %v5512_v33, 2  ;;  %v5233_v58 = vadd.f32 %v10756_v9, %v4784_v25  ;;  %v4787_v54 = vpop.f32.mrb[68].mxu0 }
 0x606   :  { %v5505_v45 = vmax.f32 %v5503_v51, %v5504_v24  ;;  %v5517_v3 = vmax.f32 %v5225_v39, %v5231_v8  ;;  %v4788_v38 = vadd.f32 %v4787_v54, %v10417_v46  ;;  %v4789_v57 = vpop.f32.mrb[69].mxu0  ;;  %v10915_v24 = vmax.f32 %v5271_v21, %v5272_v13 }
 0x607   :  { %v5514_v49 = vmax.f32 %v5512_v33, %v5513_v4  ;;  %v5526_v14 = vmax.f32 %v5227_v19, %v5233_v58  ;;  %v4790_v0 = vadd.f32 %v4789_v57, %v10422_v11  ;;  %v11850_v19 = vld [vmem:[#allocation131_spill] sm:$0xff]  ;;  %v5305_v33 = vmax.f32 %v11849_v6, %v5304_v40 }
 0x608   :  { %v5506_v16 = vrot.slane %v5505_v45, 1  ;;  %v5237_v31 = vadd.f32 %v10761_v61, %v4788_v38  ;;  %v11846_v61 = vld [vmem:[#allocation125_spill] sm:$0xff]  ;;  %v5313_v17 = vrot.slane %v11850_v19, 4  ;;  %v10917_v58 = vmax.f32 %v5280_v10, %v5281_v12 }
 0x609   :  { %v5515_v5 = vrot.slane %v5514_v49, 1  ;;  %v5239_v50 = vadd.f32 %v11844_v62, %v4790_v0  ;;  %v4793_v41 = vpop.f32.mrb[70].mxu0  ;;  %v5286_v47 = vrot.slane %v11846_v61, 4  ;;  %v5297_v57 = vrot.slane %v10907_v63, 2 }
 0x60a   :  { %v5507_v9 = vmax.f32 %v5505_v45, %v5506_v16  ;;  %v5518_v43 = vmax.f32 %v5517_v3, %v5237_v31  ;;  %v4794_v59 = vadd.f32 %v4793_v41, %v10417_v46  ;;  %v4795_v20 = vpop.f32.mrb[71].mxu0  ;;  %v5306_v1 = vrot.slane %v5305_v33, 2  ;;  %v11851_v16 = vld [vmem:[#allocation48_spill] sm:$0xff] }
 0x60b   :  { %v5516_v42 = vmax.f32 %v5514_v49, %v5515_v5  ;;  %v5527_v15 = vmax.f32 %v5526_v14, %v5239_v50  ;;  %v4796_v37 = vadd.f32 %v4795_v20, %v10422_v11  ;;  %v5314_v49 = vmax.f32 %v11850_v19, %v5313_v17  ;;  %v11852_v50 = vld [vmem:[#allocation45_spill] sm:$0xff] }
 0x60c   :  { %v5243_v27 = vadd.f32 %v11845_v56, %v4794_v59  ;;  %v10896_v2 = vsel %vm1746_vm7, %v5507_v9, %v5585_v7  ;;  %v5287_v7 = vmax.f32 %v11846_v61, %v5286_v47  ;;  %v5322_v31 = vrot.slane %v11851_v16, 4  ;;  %v11853_v9 = vld [vmem:[#allocation43_spill] sm:$0xff]  ;;  %v11856_v61 = vld [vmem:[#allocation132_spill] sm:$0xff] }
 0x60d   :  { %v5245_v18 = vadd.f32 %v11848_v36, %v4796_v37  ;;  %v4864_v32 = vpop.f32.mrb[200].mxu0  ;;  %v10902_v35 = vsel %vm1746_vm7, %v5516_v42, %v5592_v48  ;;  %v5331_v41 = vrot.slane %v11852_v50, 4  ;;  %v11854_v42 = vld [vmem:[#allocation55_spill] sm:$0xff]  ;;  %v11855_v37 = vld [vmem:[#allocation133_spill] sm:$0xff]  ;;  %v5367_v47 = vrot.slane %v11856_v61, 4 }
 0x60e   :  { %v5519_v30 = vmax.f32 %v5518_v43, %v5243_v27  ;;  %v4866_v60 = vpop.f32.mrb[201].mxu0  ;;  %v6298_v48 = vadd.f32 %v4864_v32, %v10417_v46  ;;  %v5288_v54 = vrot.slane %v5287_v7, 2  ;;  %v5340_v43 = vrot.slane %v11853_v9, 4 }
 0x60f   :  { %v5528_v53 = vmax.f32 %v5527_v15, %v5245_v18  ;;  %v6299_v55 = vadd.f32 %v4866_v60, %v10422_v11  ;;  %v5349_v15 = vrot.slane %v11854_v42, 4  ;;  %v5358_v21 = vrot.slane %v11855_v37, 4  ;;  %v11858_v60 = vld [vmem:[#allocation57_spill] sm:$0xff] }
 0x610   :  { %v5520_v22 = vrot.slane %v5519_v30, 4  ;;  %v5385_v6 = vrot.slane %v11858_v60, 4  ;;  %v5332_v13 = vmax.f32 %v11852_v50, %v5331_v41 }
 0x611   :  { %v5529_v39 = vrot.slane %v5528_v53, 4  ;;  %v4870_v44 = vpop.f32.mrb[202].mxu0 }
 0x612   :  { %v5521_v51 = vmax.f32 %v5519_v30, %v5520_v22  ;;  %v6300_v26 = vadd.f32 %v4870_v44, %v10417_v46  ;;  %v4872_v29 = vpop.f32.mrb[203].mxu0  ;;  %v5323_v30 = vmax.f32 %v11851_v16, %v5322_v31  ;;  %v5341_v22 = vmax.f32 %v11853_v9, %v5340_v43 }
 0x613   :  { %v5530_v25 = vmax.f32 %v5528_v53, %v5529_v39  ;;  %v6301_v52 = vadd.f32 %v4872_v29, %v10422_v11  ;;  %v5350_v44 = vmax.f32 %v11854_v42, %v5349_v15  ;;  %v5289_v29 = vmax.f32 %v5287_v7, %v5288_v54 }
 0x614   :  { %v5522_v8 = vrot.slane %v5521_v51, 2  ;;  %v5247_v4 = vmax.f32 %v6298_v48, %v6300_v26  ;;  %v5377_v48 = vmax.f32 %v11857_v28, %v5376_v23 }
 0x615   :  { %v5531_v45 = vrot.slane %v5530_v25, 2  ;;  %v5256_v3 = vmax.f32 %v6299_v55, %v6301_v52  ;;  %v4876_v38 = vpop.f32.mrb[204].mxu0  ;;  %v5298_v52 = vmax.f32 %v10907_v63, %v5297_v57 }
 0x616   :  { %v5523_v14 = vmax.f32 %v5521_v51, %v5522_v8  ;;  %v6302_v0 = vadd.f32 %v4876_v38, %v10417_v46  ;;  %v4878_v34 = vpop.f32.mrb[205].mxu0  ;;  %v5315_v51 = vrot.slane %v5314_v49, 2  ;;  %v5333_v8 = vrot.slane %v5332_v13, 2 }
 0x617   :  { %v5532_v5 = vmax.f32 %v5530_v25, %v5531_v45  ;;  %v6303_v62 = vadd.f32 %v4878_v34, %v10422_v11  ;;  %v5324_v25 = vrot.slane %v5323_v30, 2  ;;  %v5378_v16 = vrot.slane %v5377_v48, 2 }
 0x618   :  { %v5524_v59 = vrot.slane %v5523_v14, 1  ;;  %v5248_v20 = vmax.f32 %v5247_v4, %v6302_v0  ;;  %v5342_v4 = vrot.slane %v5341_v22, 2  ;;  %v5316_v0 = vmax.f32 %v5314_v49, %v5315_v51 }
 0x619   :  { %v5533_v10 = vrot.slane %v5532_v5, 1  ;;  %v5257_v56 = vmax.f32 %v5256_v3, %v6303_v62  ;;  %v4882_v27 = vpop.f32.mrb[206].mxu0  ;;  %v5307_v3 = vmax.f32 %v5305_v33, %v5306_v1  ;;  %v5325_v62 = vmax.f32 %v5323_v30, %v5324_v25 }
 0x61a   :  { %v5525_v36 = vmax.f32 %v5523_v14, %v5524_v59  ;;  %v6304_v18 = vadd.f32 %v4882_v27, %v10417_v46  ;;  %v4884_v32 = vpop.f32.mrb[207].mxu0  ;;  %v5359_v46 = vmax.f32 %v11855_v37, %v5358_v21  ;;  %v5299_v50 = vrot.slane %v5298_v52, 1 }
 0x61b   :  { %v5534_v40 = vmax.f32 %v5532_v5, %v5533_v10  ;;  %v6305_v53 = vadd.f32 %v4884_v32, %v10422_v11  ;;  %v5368_v11 = vmax.f32 %v11856_v61, %v5367_v47  ;;  %v5290_v5 = vrot.slane %v5289_v29, 1 }
 0x61c   :  { %v5249_v12 = vmax.f32 %v5248_v20, %v6304_v18  ;;  %v5587_v39 = vsel %vm1748_vm8, %v5525_v36, %v10896_v2  ;;  %v5386_v2 = vmax.f32 %v11858_v60, %v5385_v6  ;;  %v5360_v38 = vrot.slane %v5359_v46, 2 }
 0x61d   :  { %v5258_v19 = vmax.f32 %v5257_v56, %v6305_v53  ;;  %v5594_v17 = vsel %vm1748_vm8, %v5534_v40, %v10902_v35  ;;  %5601 = vst [vmem:[#allocation8 + $0x10] sm:$0xff] %v5587_v39  ;;  %v5351_v35 = vrot.slane %v5350_v44, 2  ;;  %v5369_v34 = vrot.slane %v5368_v11, 2 }
 0x61e   :  { %v5250_v26 = vrot.slane %v5249_v12, 4  ;;  %5602 = vst [vmem:[#allocation8 + $0x18] sm:$0xff] %v5594_v17  ;;  %v5387_v7 = vrot.slane %v5386_v2, 2  ;;  %v5334_v41 = vmax.f32 %v5332_v13, %v5333_v8  ;;  %v5343_v9 = vmax.f32 %v5341_v22, %v5342_v4 }
 0x61f   :  { %v5259_v55 = vrot.slane %v5258_v19, 4  ;;  %v5308_v63 = vrot.slane %v5307_v3, 1  ;;  %v5352_v57 = vmax.f32 %v5350_v44, %v5351_v35  ;;  %v5361_v59 = vmax.f32 %v5359_v46, %v5360_v38 }
 0x620   :  { %v5251_v45 = vmax.f32 %v5249_v12, %v5250_v26  ;;  %v5317_v33 = vrot.slane %v5316_v0, 1  ;;  %v5370_v1 = vmax.f32 %v5368_v11, %v5369_v34  ;;  %v5379_v42 = vmax.f32 %v5377_v48, %v5378_v16 }
 0x621   :  { %v5260_v14 = vmax.f32 %v5258_v19, %v5259_v55  ;;  %v5291_v49 = vmax.f32 %v5289_v29, %v5290_v5  ;;  %v5326_v37 = vrot.slane %v5325_v62, 1  ;;  %v5388_v21 = vmax.f32 %v5386_v2, %v5387_v7 }
 0x622   :  { %v5252_v31 = vrot.slane %v5251_v45, 2  ;;  %v5300_v56 = vmax.f32 %v5298_v52, %v5299_v50  ;;  %v5335_v27 = vrot.slane %v5334_v41, 1  ;;  %v5344_v61 = vrot.slane %v5343_v9, 1 }
 0x623   :  { %v5261_v54 = vrot.slane %v5260_v14, 2  ;;  %v5309_v28 = vmax.f32 %v5307_v3, %v5308_v63  ;;  %v5353_v23 = vrot.slane %v5352_v57, 1  ;;  %v5362_v36 = vrot.slane %v5361_v59, 1 }
 0x624   :  { %v5253_v43 = vmax.f32 %v5251_v45, %v5252_v31  ;;  %v5318_v32 = vmax.f32 %v5316_v0, %v5317_v33  ;;  %v5371_v30 = vrot.slane %v5370_v1, 1  ;;  %v5380_v60 = vrot.slane %v5379_v42, 1 }
 0x625   :  { %v5262_v20 = vmax.f32 %v5260_v14, %v5261_v54  ;;  %v5327_v40 = vmax.f32 %v5325_v62, %v5326_v37  ;;  %v5389_v53 = vrot.slane %v5388_v21, 1  ;;  %v5336_v12 = vmax.f32 %v5334_v41, %v5335_v27 }
 0x626   :  { %v5254_v15 = vrot.slane %v5253_v43, 1  ;;  %v5345_v39 = vmax.f32 %v5343_v9, %v5344_v61  ;;  %v5354_v19 = vmax.f32 %v5352_v57, %v5353_v23  ;;  %v5363_v17 = vmax.f32 %v5361_v59, %v5362_v36 }
 0x627   :  { %v5263_v10 = vrot.slane %v5262_v20, 1  ;;  %v5381_v48 = vmax.f32 %v5379_v42, %v5380_v60  ;;  %v5390_v29 = vmax.f32 %v5388_v21, %v5389_v53 }
 0x628   :  { %v5255_v47 = vmax.f32 %v5253_v43, %v5254_v15 }
 0x629   :  { %v5264_v18 = vmax.f32 %v5262_v20, %v5263_v10 }
 0x62a   :  { %v5567_v6 = vsel %vm1736_vm2, %v10915_v24, %v5255_v47  ;;  %v5372_v24 = vmax.f32 %v5370_v1, %v5371_v30 }
 0x62b   :  { %v5568_v13 = vsel %vm1738_vm3, %v5291_v49, %v5567_v6  ;;  %v5574_v22 = vsel %vm1736_vm2, %v10917_v58, %v5264_v18 }
 0x62c   :  { %v5569_v44 = vsel %vm1740_vm4, %v5309_v28, %v5568_v13  ;;  %v5575_v46 = vsel %vm1738_vm3, %v5300_v56, %v5574_v22 }
 0x62d   :  { %v5576_v51 = vsel %vm1740_vm4, %v5318_v32, %v5575_v46  ;;  %v5570_v11 = vsel %vm1742_vm5, %v5327_v40, %v5569_v44 }
 0x62e   :  { %v5571_v26 = vsel %vm1744_vm6, %v5345_v39, %v5570_v11  ;;  %v5577_v58 = vsel %vm1742_vm5, %v5336_v12, %v5576_v51 }
 0x62f   :  { %v5572_v25 = vsel %vm1746_vm7, %v5363_v17, %v5571_v26  ;;  %v5578_v2 = vsel %vm1744_vm6, %v5354_v19, %v5577_v58 }
 0x630   :  { %v5573_v55 = vsel %vm1748_vm8, %v5381_v48, %v5572_v25  ;;  %v5579_v52 = vsel %vm1746_vm7, %v5372_v24, %v5578_v2 }
 0x631   :  { %v5580_v8 = vsel %vm1748_vm8, %v5390_v29, %v5579_v52  ;;  %5599 = vst [vmem:[#allocation8] sm:$0xff] %v5573_v55 }
 0x632   :  { %5600 = vst [vmem:[#allocation8 + $0x8] sm:$0xff] %v5580_v8 }
 0x633   :  { %6642 = shalt.err (!%p6639_p0)
}
 0x634   :  { %s6643_s17 = scalar_lea.hbm %s10987_s10, 512 }
 0x635   :  { %p6644_p1 = scmp.ne.s32.totalorder %s10987_s10, %s6643_s17  ;;  %p6647_p2 = scmp.lt.u32.totalorder %s6643_s17, %s10987_s10 }
 0x637   :  { %p6649_p3 = pnand %p6647_p2, %p6644_p1 }
 0x639   :  { %6652 = shalt.err (!%p6649_p3)
}
 0x63a   :  { %5614 = dma.vmem_to_hbm [thread:$0]  %s5609_s11, 512, %s10987_s10, [#allocation4], %s6664_s5, %s6664_s5, %s6665_s16  }
 0x63b   :  { %6657 = dma.done.wait [#allocation4], 512  }
 0x63c   :  { %6658 = vsyncadd [#allocation4], 4294966784 }
 0x63d   :  { %5618 = vsyncpa [#allocation3], 1 }
 0x63e   :  { %5619 = vsyncpa [#allocation6], 1 }
 0x63f   :  { %5620 = vsyncpa [#allocation4], 1 }

</bundles_post_ra>
